<compile_context>
chip_gen: v5e
topology: v5e:2x2
jax: 0.10.0
libtpu: 0.0.40
codegen_flags: <defaults>
</compile_context>

<pallas_src>
import math

import jax
import jax.numpy as jnp
from jax import lax
from jax.experimental import pallas as pl
from jax.experimental.pallas import tpu as pltpu

NEG_SLOPE = 0.1                 # LeakyReLU slope used by this wideresnet variant
MXU_DTYPE = jnp.bfloat16        # matmul-input / scratch dtype (f32 accumulation)


def _leaky(v):
    return jnp.where(v > 0, v, NEG_SLOPE * v)


# --------------------- fused BasicBlock Pallas kernel ---------------------

def _make_block_kernel(s, ho, wo, cin, cout, bt, equal, use_act1, mxu_dtype):
    """Build the fused kernel for one BasicBlock.

    s        : conv1 / shortcut stride (1 or 2)
    ho, wo   : output spatial dims (= input dims // s)
    bt       : images processed per grid step (stacked into matmul M)
    equal    : in_planes == out_planes  (identity residual)
    use_act1 : conv1 / shortcut consume leaky(bn1(x)) (else raw x)
    """
    rows = ho * wo
    n_planes = s * s
    m = bt * rows

    def plane_off(d):
        # For kernel tap coordinate d in {0,1,2}: which parity plane and which
        # (contiguous) offset inside its zero-padded scratch.
        if s == 1:
            return 0, d
        return (d + 1) % 2, (0 if d == 0 else 1)          # s == 2

    def kernel(x_ref, w1_ref, w2_ref, s1_ref, b1_ref, b2_ref, o_ref,
               a1p_ref, c1_ref, a2p_ref, c2_ref):
        dt = mxu_dtype
        s1 = s1_ref[...].reshape(1, 1, cin)
        b1 = b1_ref[...].reshape(1, 1, cin)
        b2 = b2_ref[...]                                   # (1, cout) f32

        # ---- stage 0: (re)zero ONLY the 1-pixel halo of the padded scratch.
        # Interiors are fully overwritten below.  Done every step so the
        # kernel is independent of scratch state / core assignment.
        zr1 = jnp.zeros((1, wo + 2, cin), dt)
        zc1 = jnp.zeros((ho + 2, 1, cin), dt)
        zr2 = jnp.zeros((1, wo + 2, cout), dt)
        zc2 = jnp.zeros((ho + 2, 1, cout), dt)
        for b in range(bt):
            for pidx in range(n_planes):
                a1p_ref[b, pidx, 0:1, :, :] = zr1
                a1p_ref[b, pidx, ho + 1:ho + 2, :, :] = zr1
                a1p_ref[b, pidx, :, 0:1, :] = zc1
                a1p_ref[b, pidx, :, wo + 1:wo + 2, :] = zc1
            a2p_ref[b, 0:1, :, :] = zr2
            a2p_ref[b, ho + 1:ho + 2, :, :] = zr2
            a2p_ref[b, :, 0:1, :] = zc2
            a2p_ref[b, :, wo + 1:wo + 2, :] = zc2

        # ---- stage 1: BN1 + LeakyReLU (or raw copy) -> bf16 padded planes
        for b in range(bt):
            for pidx in range(n_planes):
                xp = x_ref[b, pidx]                        # (ho, wo, cin) f32
                a1 = _leaky(xp * s1 + b1) if use_act1 else xp
                a1p_ref[b, pidx, 1:ho + 1, 1:wo + 1, :] = a1.astype(dt)

        # ---- stage 2: im2col gather for conv1 (matmul-friendly 2D layout)
        for b in range(bt):
            for dy in range(3):
                py, oy = plane_off(dy)
                for dx in range(3):
                    px, ox = plane_off(dx)
                    k = dy * 3 + dx
                    c1_ref[b, :, :, k * cin:(k + 1) * cin] = (
                        a1p_ref[b, py * s + px, oy:oy + ho, ox:ox + wo, :])

        # ---- stage 3: conv1 (3x3, stride s) [+ fused 1x1 shortcut columns]
        #      as ONE MXU dot with K = 9*cin.  BN2 scale is pre-folded into
        #      w1; epilogue = bias-add + LeakyReLU.
        lhs1 = c1_ref[...].reshape(m, 9 * cin)             # bf16
        acc = jnp.dot(lhs1, w1_ref[...], preferred_element_type=jnp.float32)
        act2 = _leaky(acc[:, :cout] + b2)                  # (m, cout) f32
        # dropRate == 0.0 -> dropout is the identity (skipped).

        # ---- stage 4: conv2 (3x3, stride 1) as ONE MXU dot with K = 9*cout
        for b in range(bt):
            a2p_ref[b, 1:ho + 1, 1:wo + 1, :] = (
                act2[b * rows:(b + 1) * rows].reshape(ho, wo, cout).astype(dt))
        for b in range(bt):
            for dy in range(3):
                for dx in range(3):
                    k = dy * 3 + dx
                    c2_ref[b, :, :, k * cout:(k + 1) * cout] = (
                        a2p_ref[b, dy:dy + ho, dx:dx + wo, :])
        lhs2 = c2_ref[...].reshape(m, 9 * cout)            # bf16
        out = jnp.dot(lhs2, w2_ref[...], preferred_element_type=jnp.float32)

        # ---- stage 5: residual add (identity | fused 1x1 shortcut columns)
        if equal:
            # equal => s == 1, n_planes == 1, cin == cout: raw input residual
            res = x_ref[...].reshape(m, cout)
        else:
            res = acc[:, cout:]                            # shortcut columns
        o_ref[...] = (out + res).reshape(bt, rows, cout).astype(o_ref.dtype)

    return kernel


# ------------------------------ JAX wrapper ------------------------------

def basic_block_forward(x_nhwc, p, stride, activate_before_residual,
                        batch_tile=None):
    n, h, w, cin = x_nhwc.shape
    cout = p['w1'].shape[0]
    equal = (cin == cout)                       # equalInOut in the PyTorch block
    s = int(stride)
    if equal and s != 1:
        raise ValueError("identity shortcut requires stride == 1")
    assert h % s == 0 and w % s == 0
    ho, wo = h // s, w // s
    rows = ho * wo
    use_act1 = equal or activate_before_residual
    n_planes = s * s
    n_cols = cout if equal else 2 * cout

    # Batch tile: pack images into the matmul M dimension to amortize the
    # ~0.35us per-grid-step overhead, while keeping >= 2 grid steps so both
    # v7x TensorCores get work (on v5e/v6e the extra step is harmless).
    if batch_tile is None:
        batch_tile = n // 2 if (n >= 2 and n % 2 == 0) else 1
    bt = batch_tile
    assert n % bt == 0

    # -- parameter prep (one-time layout glue) --
    #  * BN2 scale folded into conv1 columns.
    #  * 1x1 shortcut weight folded into extra conv1 output columns: the
    #    shortcut input equals the centre tap (dy=dx=1) K-slice.
    w1f = jnp.transpose(p['w1'], (2, 3, 1, 0)).reshape(9 * cin, cout)
    w1f = w1f * p['bn2_scale'].reshape(1, cout)
    if not equal:
        wsf = jnp.transpose(p['ws'], (2, 3, 1, 0)).reshape(cin, cout)
        sc_cols = jnp.zeros((9 * cin, cout), jnp.float32)
        sc_cols = sc_cols.at[4 * cin:5 * cin, :].set(wsf)   # centre-tap rows
        w1f = jnp.concatenate([w1f, sc_cols], axis=1)        # (9*cin, 2*cout)
    w1f = w1f.astype(MXU_DTYPE)
    w2f = jnp.transpose(p['w2'], (2, 3, 1, 0)).reshape(9 * cout, cout) \
        .astype(MXU_DTYPE)
    s1, b1 = p['bn1_scale'], p['bn1_bias']      # (1, cin)  f32
    b2 = p['bn2_bias']                          # (1, cout) f32

    # -- parity-split the raw input so stride-s taps are contiguous slices --
    if s == 1:
        x_planes = x_nhwc[:, None]                               # (n,1,ho,wo,cin)
    else:
        xp = x_nhwc.reshape(n, ho, s, wo, s, cin)
        xp = jnp.transpose(xp, (0, 2, 4, 1, 3, 5))               # (n,s,s,ho,wo,cin)
        x_planes = xp.reshape(n, n_planes, ho, wo, cin)

    kernel = _make_block_kernel(s, ho, wo, cin, cout, bt, equal, use_act1,
                                MXU_DTYPE)

    flops = 2 * n * rows * (9 * cin * n_cols + 9 * cout * cout)
    bytes_accessed = (x_planes.size * 4 + n * rows * cout * 4
                      + (w1f.size + w2f.size) * 2
                      + (s1.size + b1.size + b2.size) * 4)

    # VMEM footprint is tiny at these shapes; vmem_limit_bytes is left at the
    # default (would only matter at real WRN channel counts / large B_TILE).
    out = pl.pallas_call(
        kernel,
        out_shape=jax.ShapeDtypeStruct((n, rows, cout), jnp.float32),
        grid=(n // bt,),                          # bt images per grid step
        in_specs=[
            pl.BlockSpec((bt, n_planes, ho, wo, cin), lambda i: (i, 0, 0, 0, 0)),
            pl.BlockSpec((9 * cin, n_cols), lambda i: (0, 0)),
            pl.BlockSpec((9 * cout, cout), lambda i: (0, 0)),
            pl.BlockSpec((1, cin), lambda i: (0, 0)),
            pl.BlockSpec((1, cin), lambda i: (0, 0)),
            pl.BlockSpec((1, cout), lambda i: (0, 0)),
        ],
        out_specs=pl.BlockSpec((bt, rows, cout), lambda i: (i, 0, 0)),
        scratch_shapes=[
            pltpu.VMEM((bt, n_planes, ho + 2, wo + 2, cin), MXU_DTYPE),  # padded act1 planes
            pltpu.VMEM((bt, ho, wo, 9 * cin), MXU_DTYPE),                # conv1 im2col LHS
            pltpu.VMEM((bt, ho + 2, wo + 2, cout), MXU_DTYPE),           # padded act2
            pltpu.VMEM((bt, ho, wo, 9 * cout), MXU_DTYPE),               # conv2 im2col LHS
        ],
        compiler_params=pltpu.CompilerParams(
            dimension_semantics=("parallel",)),
        cost_estimate=pl.CostEstimate(
            flops=int(flops), transcendentals=0,
            bytes_accessed=int(bytes_accessed)),
    )(x_planes, w1f, w2f, s1, b1, b2)
    return out.reshape(n, ho, wo, cout)


def network_block_forward(x_nchw, params_list, stride, activate_before_residual):
    x = jnp.transpose(x_nchw, (0, 2, 3, 1)).astype(jnp.float32)   # NCHW -> NHWC
    for i, p in enumerate(params_list):
        s = stride if i == 0 else 1
        x = basic_block_forward(x, p, s, activate_before_residual)
    return jnp.transpose(x, (0, 3, 1, 2))                         # NHWC -> NCHW


# ---------------------- deterministic parameter init ----------------------

def init_basic_block_params(key, in_planes, out_planes):
    keys = jax.random.split(key, 5)

    def bn_params(k, c):
        ka, kb, kc, kd = jax.random.split(k, 4)
        gamma = 1.0 + 0.1 * jax.random.normal(ka, (c,), jnp.float32)
        beta = 0.1 * jax.random.normal(kb, (c,), jnp.float32)
        mean = 0.1 * jax.random.normal(kc, (c,), jnp.float32)
        var = jnp.abs(jax.random.normal(kd, (c,), jnp.float32)) + 0.5
        scale = gamma * lax.rsqrt(var + 1e-5)
        bias = beta - mean * scale
        return scale.reshape(1, c), bias.reshape(1, c)

    p = {}
    p['w1'] = jax.random.normal(keys[0], (out_planes, in_planes, 3, 3), jnp.float32) \
        * math.sqrt(2.0 / (9 * out_planes))
    p['w2'] = jax.random.normal(keys[1], (out_planes, out_planes, 3, 3), jnp.float32) \
        * math.sqrt(2.0 / (9 * out_planes))
    p['bn1_scale'], p['bn1_bias'] = bn_params(keys[2], in_planes)
    p['bn2_scale'], p['bn2_bias'] = bn_params(keys[3], out_planes)
    if in_planes != out_planes:
        p['ws'] = jax.random.normal(keys[4], (out_planes, in_planes, 1, 1), jnp.float32) \
            * math.sqrt(2.0 / out_planes)
    return p


# -------------------------- pure-JAX reference (f32) --------------------------

def _conv_ref(v, w_oihw, s):
    k = w_oihw.shape[2]
    pad = (k - 1) // 2
    return lax.conv_general_dilated(
        v, jnp.transpose(w_oihw, (2, 3, 1, 0)), (s, s),
        ((pad, pad), (pad, pad)), dimension_numbers=('NHWC', 'HWIO', 'NHWC'))


def _ref_basic_block(x, p, stride, activate_before_residual):
    equal = p['w1'].shape[0] == p['w1'].shape[1]
    bn1 = lambda v: v * p['bn1_scale'].reshape(1, 1, 1, -1) + p['bn1_bias'].reshape(1, 1, 1, -1)
    bn2 = lambda v: v * p['bn2_scale'].reshape(1, 1, 1, -1) + p['bn2_bias'].reshape(1, 1, 1, -1)
    out = None
    if (not equal) and activate_before_residual:
        x = _leaky(bn1(x))
    else:
        out = _leaky(bn1(x))
    out = _leaky(bn2(_conv_ref(out if equal else x, p['w1'], stride)))
    out = _conv_ref(out, p['w2'], 1)
    return (x if equal else _conv_ref(x, p['ws'], stride)) + out


def ref_network_block(x_nchw, params_list, stride, activate_before_residual):
    x = jnp.transpose(x_nchw, (0, 2, 3, 1)).astype(jnp.float32)
    for i, p in enumerate(params_list):
        s = stride if i == 0 else 1
        x = _ref_basic_block(x, p, s, activate_before_residual)
    return jnp.transpose(x, (0, 3, 1, 2))


# -------------------------------- main --------------------------------

if __name__ == "__main__":
    key = jax.random.PRNGKey(0)
    kx, kb0, kb1 = jax.random.split(key, 3)

    # NetworkBlock(nb_layers=2, in_planes=4, out_planes=8, block=BasicBlock,
    #              stride=2, dropRate=0.0, activate_before_residual=True)
    N, C_IN, H, W = 2, 4, 16, 16
    C_OUT = 8
    STRIDE = 2
    ABR = True

    x = jax.random.normal(kx, (N, C_IN, H, W), jnp.float32)
    params = [init_basic_block_params(kb0, C_IN, C_OUT),
              init_basic_block_params(kb1, C_OUT, C_OUT)]

    fwd = jax.jit(network_block_forward, static_argnums=(2, 3))
    out = jax.block_until_ready(fwd(x, params, STRIDE, ABR))

    assert out.shape == (N, C_OUT, H // STRIDE, W // STRIDE), out.shape

    # Reference is pure f32; the Pallas kernels feed the MXU bf16 inputs with
    # f32 accumulation, so compare with a bf16-appropriate tolerance.
    ref = ref_network_block(x, params, STRIDE, ABR)
    max_err = float(jnp.max(jnp.abs(out - ref)))
    if not bool(jnp.allclose(out, ref, atol=1e-1, rtol=5e-2)):
        raise AssertionError(f"Pallas output mismatch vs reference, max |err| = {max_err}")

    print("KERNEL_OK")
</pallas_src>

<mosaic_0001>
module attributes {stable_mosaic.version = 11 : i64} {
  func.func @kernel(%arg0: i32, %arg1: memref<1x4x8x8x4xf32, #tpu.memory_space<vmem>>, %arg2: memref<36x16xbf16, #tpu.memory_space<vmem>>, %arg3: memref<72x8xbf16, #tpu.memory_space<vmem>>, %arg4: memref<1x4xf32, #tpu.memory_space<vmem>>, %arg5: memref<1x4xf32, #tpu.memory_space<vmem>>, %arg6: memref<1x8xf32, #tpu.memory_space<vmem>>, %arg7: memref<1x64x8xf32, #tpu.memory_space<vmem>>, %arg8: memref<1x4x10x10x4xbf16, #tpu.memory_space<vmem>>, %arg9: memref<1x8x8x36xbf16, #tpu.memory_space<vmem>>, %arg10: memref<1x10x10x8xbf16, #tpu.memory_space<vmem>>, %arg11: memref<1x8x8x72xbf16, #tpu.memory_space<vmem>>) attributes {dimension_semantics = [#tpu.dimension_semantics<parallel>], iteration_bounds = array<i64: 2>, scalar_prefetch = 0 : i64, scratch_operands = 4 : i64, tpu.core_type = #tpu.core_type<tc>, window_params = [{transform_indices = @transform_0, window_bounds = array<i64: 1, 4, 8, 8, 4>}, {pipeline_mode = #tpu.pipeline_mode<synchronous>, transform_indices = @transform_1, window_bounds = array<i64: 36, 16>}, {pipeline_mode = #tpu.pipeline_mode<synchronous>, transform_indices = @transform_2, window_bounds = array<i64: 72, 8>}, {pipeline_mode = #tpu.pipeline_mode<synchronous>, transform_indices = @transform_3, window_bounds = array<i64: 1, 4>}, {pipeline_mode = #tpu.pipeline_mode<synchronous>, transform_indices = @transform_4, window_bounds = array<i64: 1, 4>}, {pipeline_mode = #tpu.pipeline_mode<synchronous>, transform_indices = @transform_5, window_bounds = array<i64: 1, 8>}, {transform_indices = @transform_6, window_bounds = array<i64: 1, 64, 8>}]} {
    %c0 = arith.constant 0 : index
    %c0_0 = arith.constant 0 : index
    %0 = vector.load %arg4[%c0, %c0_0] : memref<1x4xf32, #tpu.memory_space<vmem>>, vector<1x4xf32>
    %1 = vector.shape_cast %0 : vector<1x4xf32> to vector<1x1x4xf32>
    %c0_1 = arith.constant 0 : index
    %c0_2 = arith.constant 0 : index
    %2 = vector.load %arg5[%c0_1, %c0_2] : memref<1x4xf32, #tpu.memory_space<vmem>>, vector<1x4xf32>
    %3 = vector.shape_cast %2 : vector<1x4xf32> to vector<1x1x4xf32>
    %c0_3 = arith.constant 0 : index
    %c0_4 = arith.constant 0 : index
    %4 = vector.load %arg6[%c0_3, %c0_4] : memref<1x8xf32, #tpu.memory_space<vmem>>, vector<1x8xf32>
    %cst = arith.constant 0.000000e+00 : bf16
    %5 = vector.broadcast %cst : bf16 to vector<1x10x4xbf16>
    %cst_5 = arith.constant 0.000000e+00 : bf16
    %6 = vector.broadcast %cst_5 : bf16 to vector<10x1x4xbf16>
    %cst_6 = arith.constant 0.000000e+00 : bf16
    %7 = vector.broadcast %cst_6 : bf16 to vector<1x10x8xbf16>
    %cst_7 = arith.constant 0.000000e+00 : bf16
    %8 = vector.broadcast %cst_7 : bf16 to vector<10x1x8xbf16>
    %c0_8 = arith.constant 0 : index
    %c0_9 = arith.constant 0 : index
    %c0_10 = arith.constant 0 : index
    %c0_11 = arith.constant 0 : index
    %c0_12 = arith.constant 0 : index
    %9 = vector.load %arg8[%c0_8, %c0_9, %c0_10, %c0_11, %c0_12] : memref<1x4x10x10x4xbf16, #tpu.memory_space<vmem>>, vector<1x1x1x10x4xbf16>
    %10 = vector.shape_cast %9 : vector<1x1x1x10x4xbf16> to vector<1x10x4xbf16>
    %11 = vector.shape_cast %5 : vector<1x10x4xbf16> to vector<1x1x1x10x4xbf16>
    tpu.vector_store %arg8[%c0_8, %c0_9, %c0_10, %c0_11, %c0_12], %11 {strides = array<i32>} : memref<1x4x10x10x4xbf16, #tpu.memory_space<vmem>>, vector<1x1x1x10x4xbf16>,
    %c0_13 = arith.constant 0 : index
    %c0_14 = arith.constant 0 : index
    %c9 = arith.constant 9 : index
    %c0_15 = arith.constant 0 : index
    %c0_16 = arith.constant 0 : index
    %12 = vector.load %arg8[%c0_13, %c0_14, %c9, %c0_15, %c0_16] : memref<1x4x10x10x4xbf16, #tpu.memory_space<vmem>>, vector<1x1x1x10x4xbf16>
    %13 = vector.shape_cast %12 : vector<1x1x1x10x4xbf16> to vector<1x10x4xbf16>
    %14 = vector.shape_cast %5 : vector<1x10x4xbf16> to vector<1x1x1x10x4xbf16>
    tpu.vector_store %arg8[%c0_13, %c0_14, %c9, %c0_15, %c0_16], %14 {strides = array<i32>} : memref<1x4x10x10x4xbf16, #tpu.memory_space<vmem>>, vector<1x1x1x10x4xbf16>,
    %c0_17 = arith.constant 0 : index
    %c0_18 = arith.constant 0 : index
    %c0_19 = arith.constant 0 : index
    %c0_20 = arith.constant 0 : index
    %c0_21 = arith.constant 0 : index
    %15 = vector.load %arg8[%c0_17, %c0_18, %c0_19, %c0_20, %c0_21] : memref<1x4x10x10x4xbf16, #tpu.memory_space<vmem>>, vector<1x1x10x1x4xbf16>
    %16 = vector.shape_cast %15 : vector<1x1x10x1x4xbf16> to vector<10x1x4xbf16>
    %17 = vector.shape_cast %6 : vector<10x1x4xbf16> to vector<1x1x10x1x4xbf16>
    tpu.vector_store %arg8[%c0_17, %c0_18, %c0_19, %c0_20, %c0_21], %17 {strides = array<i32>} : memref<1x4x10x10x4xbf16, #tpu.memory_space<vmem>>, vector<1x1x10x1x4xbf16>,
    %c0_22 = arith.constant 0 : index
    %c0_23 = arith.constant 0 : index
    %c0_24 = arith.constant 0 : index
    %c9_25 = arith.constant 9 : index
    %c0_26 = arith.constant 0 : index
    %18 = vector.load %arg8[%c0_22, %c0_23, %c0_24, %c9_25, %c0_26] : memref<1x4x10x10x4xbf16, #tpu.memory_space<vmem>>, vector<1x1x10x1x4xbf16>
    %19 = vector.shape_cast %18 : vector<1x1x10x1x4xbf16> to vector<10x1x4xbf16>
    %20 = vector.shape_cast %6 : vector<10x1x4xbf16> to vector<1x1x10x1x4xbf16>
    tpu.vector_store %arg8[%c0_22, %c0_23, %c0_24, %c9_25, %c0_26], %20 {strides = array<i32>} : memref<1x4x10x10x4xbf16, #tpu.memory_space<vmem>>, vector<1x1x10x1x4xbf16>,
    %c0_27 = arith.constant 0 : index
    %c1 = arith.constant 1 : index
    %c0_28 = arith.constant 0 : index
    %c0_29 = arith.constant 0 : index
    %c0_30 = arith.constant 0 : index
    %21 = vector.load %arg8[%c0_27, %c1, %c0_28, %c0_29, %c0_30] : memref<1x4x10x10x4xbf16, #tpu.memory_space<vmem>>, vector<1x1x1x10x4xbf16>
    %22 = vector.shape_cast %21 : vector<1x1x1x10x4xbf16> to vector<1x10x4xbf16>
    %23 = vector.shape_cast %5 : vector<1x10x4xbf16> to vector<1x1x1x10x4xbf16>
    tpu.vector_store %arg8[%c0_27, %c1, %c0_28, %c0_29, %c0_30], %23 {strides = array<i32>} : memref<1x4x10x10x4xbf16, #tpu.memory_space<vmem>>, vector<1x1x1x10x4xbf16>,
    %c0_31 = arith.constant 0 : index
    %c1_32 = arith.constant 1 : index
    %c9_33 = arith.constant 9 : index
    %c0_34 = arith.constant 0 : index
    %c0_35 = arith.constant 0 : index
    %24 = vector.load %arg8[%c0_31, %c1_32, %c9_33, %c0_34, %c0_35] : memref<1x4x10x10x4xbf16, #tpu.memory_space<vmem>>, vector<1x1x1x10x4xbf16>
    %25 = vector.shape_cast %24 : vector<1x1x1x10x4xbf16> to vector<1x10x4xbf16>
    %26 = vector.shape_cast %5 : vector<1x10x4xbf16> to vector<1x1x1x10x4xbf16>
    tpu.vector_store %arg8[%c0_31, %c1_32, %c9_33, %c0_34, %c0_35], %26 {strides = array<i32>} : memref<1x4x10x10x4xbf16, #tpu.memory_space<vmem>>, vector<1x1x1x10x4xbf16>,
    %c0_36 = arith.constant 0 : index
    %c1_37 = arith.constant 1 : index
    %c0_38 = arith.constant 0 : index
    %c0_39 = arith.constant 0 : index
    %c0_40 = arith.constant 0 : index
    %27 = vector.load %arg8[%c0_36, %c1_37, %c0_38, %c0_39, %c0_40] : memref<1x4x10x10x4xbf16, #tpu.memory_space<vmem>>, vector<1x1x10x1x4xbf16>
    %28 = vector.shape_cast %27 : vector<1x1x10x1x4xbf16> to vector<10x1x4xbf16>
    %29 = vector.shape_cast %6 : vector<10x1x4xbf16> to vector<1x1x10x1x4xbf16>
    tpu.vector_store %arg8[%c0_36, %c1_37, %c0_38, %c0_39, %c0_40], %29 {strides = array<i32>} : memref<1x4x10x10x4xbf16, #tpu.memory_space<vmem>>, vector<1x1x10x1x4xbf16>,
    %c0_41 = arith.constant 0 : index
    %c1_42 = arith.constant 1 : index
    %c0_43 = arith.constant 0 : index
    %c9_44 = arith.constant 9 : index
    %c0_45 = arith.constant 0 : index
    %30 = vector.load %arg8[%c0_41, %c1_42, %c0_43, %c9_44, %c0_45] : memref<1x4x10x10x4xbf16, #tpu.memory_space<vmem>>, vector<1x1x10x1x4xbf16>
    %31 = vector.shape_cast %30 : vector<1x1x10x1x4xbf16> to vector<10x1x4xbf16>
    %32 = vector.shape_cast %6 : vector<10x1x4xbf16> to vector<1x1x10x1x4xbf16>
    tpu.vector_store %arg8[%c0_41, %c1_42, %c0_43, %c9_44, %c0_45], %32 {strides = array<i32>} : memref<1x4x10x10x4xbf16, #tpu.memory_space<vmem>>, vector<1x1x10x1x4xbf16>,
    %c0_46 = arith.constant 0 : index
    %c2 = arith.constant 2 : index
    %c0_47 = arith.constant 0 : index
    %c0_48 = arith.constant 0 : index
    %c0_49 = arith.constant 0 : index
    %33 = vector.load %arg8[%c0_46, %c2, %c0_47, %c0_48, %c0_49] : memref<1x4x10x10x4xbf16, #tpu.memory_space<vmem>>, vector<1x1x1x10x4xbf16>
    %34 = vector.shape_cast %33 : vector<1x1x1x10x4xbf16> to vector<1x10x4xbf16>
    %35 = vector.shape_cast %5 : vector<1x10x4xbf16> to vector<1x1x1x10x4xbf16>
    tpu.vector_store %arg8[%c0_46, %c2, %c0_47, %c0_48, %c0_49], %35 {strides = array<i32>} : memref<1x4x10x10x4xbf16, #tpu.memory_space<vmem>>, vector<1x1x1x10x4xbf16>,
    %c0_50 = arith.constant 0 : index
    %c2_51 = arith.constant 2 : index
    %c9_52 = arith.constant 9 : index
    %c0_53 = arith.constant 0 : index
    %c0_54 = arith.constant 0 : index
    %36 = vector.load %arg8[%c0_50, %c2_51, %c9_52, %c0_53, %c0_54] : memref<1x4x10x10x4xbf16, #tpu.memory_space<vmem>>, vector<1x1x1x10x4xbf16>
    %37 = vector.shape_cast %36 : vector<1x1x1x10x4xbf16> to vector<1x10x4xbf16>
    %38 = vector.shape_cast %5 : vector<1x10x4xbf16> to vector<1x1x1x10x4xbf16>
    tpu.vector_store %arg8[%c0_50, %c2_51, %c9_52, %c0_53, %c0_54], %38 {strides = array<i32>} : memref<1x4x10x10x4xbf16, #tpu.memory_space<vmem>>, vector<1x1x1x10x4xbf16>,
    %c0_55 = arith.constant 0 : index
    %c2_56 = arith.constant 2 : index
    %c0_57 = arith.constant 0 : index
    %c0_58 = arith.constant 0 : index
    %c0_59 = arith.constant 0 : index
    %39 = vector.load %arg8[%c0_55, %c2_56, %c0_57, %c0_58, %c0_59] : memref<1x4x10x10x4xbf16, #tpu.memory_space<vmem>>, vector<1x1x10x1x4xbf16>
    %40 = vector.shape_cast %39 : vector<1x1x10x1x4xbf16> to vector<10x1x4xbf16>
    %41 = vector.shape_cast %6 : vector<10x1x4xbf16> to vector<1x1x10x1x4xbf16>
    tpu.vector_store %arg8[%c0_55, %c2_56, %c0_57, %c0_58, %c0_59], %41 {strides = array<i32>} : memref<1x4x10x10x4xbf16, #tpu.memory_space<vmem>>, vector<1x1x10x1x4xbf16>,
    %c0_60 = arith.constant 0 : index
    %c2_61 = arith.constant 2 : index
    %c0_62 = arith.constant 0 : index
    %c9_63 = arith.constant 9 : index
    %c0_64 = arith.constant 0 : index
    %42 = vector.load %arg8[%c0_60, %c2_61, %c0_62, %c9_63, %c0_64] : memref<1x4x10x10x4xbf16, #tpu.memory_space<vmem>>, vector<1x1x10x1x4xbf16>
    %43 = vector.shape_cast %42 : vector<1x1x10x1x4xbf16> to vector<10x1x4xbf16>
    %44 = vector.shape_cast %6 : vector<10x1x4xbf16> to vector<1x1x10x1x4xbf16>
    tpu.vector_store %arg8[%c0_60, %c2_61, %c0_62, %c9_63, %c0_64], %44 {strides = array<i32>} : memref<1x4x10x10x4xbf16, #tpu.memory_space<vmem>>, vector<1x1x10x1x4xbf16>,
    %c0_65 = arith.constant 0 : index
    %c3 = arith.constant 3 : index
    %c0_66 = arith.constant 0 : index
    %c0_67 = arith.constant 0 : index
    %c0_68 = arith.constant 0 : index
    %45 = vector.load %arg8[%c0_65, %c3, %c0_66, %c0_67, %c0_68] : memref<1x4x10x10x4xbf16, #tpu.memory_space<vmem>>, vector<1x1x1x10x4xbf16>
    %46 = vector.shape_cast %45 : vector<1x1x1x10x4xbf16> to vector<1x10x4xbf16>
    %47 = vector.shape_cast %5 : vector<1x10x4xbf16> to vector<1x1x1x10x4xbf16>
    tpu.vector_store %arg8[%c0_65, %c3, %c0_66, %c0_67, %c0_68], %47 {strides = array<i32>} : memref<1x4x10x10x4xbf16, #tpu.memory_space<vmem>>, vector<1x1x1x10x4xbf16>,
    %c0_69 = arith.constant 0 : index
    %c3_70 = arith.constant 3 : index
    %c9_71 = arith.constant 9 : index
    %c0_72 = arith.constant 0 : index
    %c0_73 = arith.constant 0 : index
    %48 = vector.load %arg8[%c0_69, %c3_70, %c9_71, %c0_72, %c0_73] : memref<1x4x10x10x4xbf16, #tpu.memory_space<vmem>>, vector<1x1x1x10x4xbf16>
    %49 = vector.shape_cast %48 : vector<1x1x1x10x4xbf16> to vector<1x10x4xbf16>
    %50 = vector.shape_cast %5 : vector<1x10x4xbf16> to vector<1x1x1x10x4xbf16>
    tpu.vector_store %arg8[%c0_69, %c3_70, %c9_71, %c0_72, %c0_73], %50 {strides = array<i32>} : memref<1x4x10x10x4xbf16, #tpu.memory_space<vmem>>, vector<1x1x1x10x4xbf16>,
    %c0_74 = arith.constant 0 : index
    %c3_75 = arith.constant 3 : index
    %c0_76 = arith.constant 0 : index
    %c0_77 = arith.constant 0 : index
    %c0_78 = arith.constant 0 : index
    %51 = vector.load %arg8[%c0_74, %c3_75, %c0_76, %c0_77, %c0_78] : memref<1x4x10x10x4xbf16, #tpu.memory_space<vmem>>, vector<1x1x10x1x4xbf16>
    %52 = vector.shape_cast %51 : vector<1x1x10x1x4xbf16> to vector<10x1x4xbf16>
    %53 = vector.shape_cast %6 : vector<10x1x4xbf16> to vector<1x1x10x1x4xbf16>
    tpu.vector_store %arg8[%c0_74, %c3_75, %c0_76, %c0_77, %c0_78], %53 {strides = array<i32>} : memref<1x4x10x10x4xbf16, #tpu.memory_space<vmem>>, vector<1x1x10x1x4xbf16>,
    %c0_79 = arith.constant 0 : index
    %c3_80 = arith.constant 3 : index
    %c0_81 = arith.constant 0 : index
    %c9_82 = arith.constant 9 : index
    %c0_83 = arith.constant 0 : index
    %54 = vector.load %arg8[%c0_79, %c3_80, %c0_81, %c9_82, %c0_83] : memref<1x4x10x10x4xbf16, #tpu.memory_space<vmem>>, vector<1x1x10x1x4xbf16>
    %55 = vector.shape_cast %54 : vector<1x1x10x1x4xbf16> to vector<10x1x4xbf16>
    %56 = vector.shape_cast %6 : vector<10x1x4xbf16> to vector<1x1x10x1x4xbf16>
    tpu.vector_store %arg8[%c0_79, %c3_80, %c0_81, %c9_82, %c0_83], %56 {strides = array<i32>} : memref<1x4x10x10x4xbf16, #tpu.memory_space<vmem>>, vector<1x1x10x1x4xbf16>,
    %c0_84 = arith.constant 0 : index
    %c0_85 = arith.constant 0 : index
    %c0_86 = arith.constant 0 : index
    %c0_87 = arith.constant 0 : index
    %57 = vector.load %arg10[%c0_84, %c0_85, %c0_86, %c0_87] : memref<1x10x10x8xbf16, #tpu.memory_space<vmem>>, vector<1x1x10x8xbf16>
    %58 = vector.shape_cast %57 : vector<1x1x10x8xbf16> to vector<1x10x8xbf16>
    %59 = vector.shape_cast %7 : vector<1x10x8xbf16> to vector<1x1x10x8xbf16>
    tpu.vector_store %arg10[%c0_84, %c0_85, %c0_86, %c0_87], %59 {strides = array<i32>} : memref<1x10x10x8xbf16, #tpu.memory_space<vmem>>, vector<1x1x10x8xbf16>,
    %c0_88 = arith.constant 0 : index
    %c9_89 = arith.constant 9 : index
    %c0_90 = arith.constant 0 : index
    %c0_91 = arith.constant 0 : index
    %60 = vector.load %arg10[%c0_88, %c9_89, %c0_90, %c0_91] : memref<1x10x10x8xbf16, #tpu.memory_space<vmem>>, vector<1x1x10x8xbf16>
    %61 = vector.shape_cast %60 : vector<1x1x10x8xbf16> to vector<1x10x8xbf16>
    %62 = vector.shape_cast %7 : vector<1x10x8xbf16> to vector<1x1x10x8xbf16>
    tpu.vector_store %arg10[%c0_88, %c9_89, %c0_90, %c0_91], %62 {strides = array<i32>} : memref<1x10x10x8xbf16, #tpu.memory_space<vmem>>, vector<1x1x10x8xbf16>,
    %c0_92 = arith.constant 0 : index
    %c0_93 = arith.constant 0 : index
    %c0_94 = arith.constant 0 : index
    %c0_95 = arith.constant 0 : index
    %63 = vector.load %arg10[%c0_92, %c0_93, %c0_94, %c0_95] : memref<1x10x10x8xbf16, #tpu.memory_space<vmem>>, vector<1x10x1x8xbf16>
    %64 = vector.shape_cast %63 : vector<1x10x1x8xbf16> to vector<10x1x8xbf16>
    %65 = vector.shape_cast %8 : vector<10x1x8xbf16> to vector<1x10x1x8xbf16>
    tpu.vector_store %arg10[%c0_92, %c0_93, %c0_94, %c0_95], %65 {strides = array<i32>} : memref<1x10x10x8xbf16, #tpu.memory_space<vmem>>, vector<1x10x1x8xbf16>,
    %c0_96 = arith.constant 0 : index
    %c0_97 = arith.constant 0 : index
    %c9_98 = arith.constant 9 : index
    %c0_99 = arith.constant 0 : index
    %66 = vector.load %arg10[%c0_96, %c0_97, %c9_98, %c0_99] : memref<1x10x10x8xbf16, #tpu.memory_space<vmem>>, vector<1x10x1x8xbf16>
    %67 = vector.shape_cast %66 : vector<1x10x1x8xbf16> to vector<10x1x8xbf16>
    %68 = vector.shape_cast %8 : vector<10x1x8xbf16> to vector<1x10x1x8xbf16>
    tpu.vector_store %arg10[%c0_96, %c0_97, %c9_98, %c0_99], %68 {strides = array<i32>} : memref<1x10x10x8xbf16, #tpu.memory_space<vmem>>, vector<1x10x1x8xbf16>,
    %c0_100 = arith.constant 0 : index
    %c0_101 = arith.constant 0 : index
    %c0_102 = arith.constant 0 : index
    %c0_103 = arith.constant 0 : index
    %c0_104 = arith.constant 0 : index
    %69 = vector.load %arg1[%c0_100, %c0_101, %c0_102, %c0_103, %c0_104] : memref<1x4x8x8x4xf32, #tpu.memory_space<vmem>>, vector<1x1x8x8x4xf32>
    %70 = vector.shape_cast %69 : vector<1x1x8x8x4xf32> to vector<8x8x4xf32>
    %71 = vector.broadcast %1 : vector<1x1x4xf32> to vector<8x8x4xf32>
    %72 = arith.mulf %70, %71 : vector<8x8x4xf32>
    %73 = vector.broadcast %3 : vector<1x1x4xf32> to vector<8x8x4xf32>
    %74 = arith.addf %72, %73 : vector<8x8x4xf32>
    %cst_105 = arith.constant 0.000000e+00 : f32
    %75 = vector.broadcast %cst_105 : f32 to vector<8x8x4xf32>
    %76 = arith.cmpf ogt, %74, %75 : vector<8x8x4xf32>
    %cst_106 = arith.constant 1.000000e-01 : f32
    %77 = vector.broadcast %cst_106 : f32 to vector<8x8x4xf32>
    %78 = arith.mulf %77, %74 : vector<8x8x4xf32>
    %79 = arith.select %76, %74, %78 : vector<8x8x4xi1>, vector<8x8x4xf32>
    %80 = arith.truncf %79 : vector<8x8x4xf32> to vector<8x8x4xbf16>
    %c0_107 = arith.constant 0 : index
    %c0_108 = arith.constant 0 : index
    %c1_109 = arith.constant 1 : index
    %c1_110 = arith.constant 1 : index
    %c0_111 = arith.constant 0 : index
    %81 = vector.load %arg8[%c0_107, %c0_108, %c1_109, %c1_110, %c0_111] : memref<1x4x10x10x4xbf16, #tpu.memory_space<vmem>>, vector<1x1x8x8x4xbf16>
    %82 = vector.shape_cast %81 : vector<1x1x8x8x4xbf16> to vector<8x8x4xbf16>
    %83 = vector.shape_cast %80 : vector<8x8x4xbf16> to vector<1x1x8x8x4xbf16>
    tpu.vector_store %arg8[%c0_107, %c0_108, %c1_109, %c1_110, %c0_111], %83 {strides = array<i32>} : memref<1x4x10x10x4xbf16, #tpu.memory_space<vmem>>, vector<1x1x8x8x4xbf16>,
    %c0_112 = arith.constant 0 : index
    %c1_113 = arith.constant 1 : index
    %c0_114 = arith.constant 0 : index
    %c0_115 = arith.constant 0 : index
    %c0_116 = arith.constant 0 : index
    %84 = vector.load %arg1[%c0_112, %c1_113, %c0_114, %c0_115, %c0_116] : memref<1x4x8x8x4xf32, #tpu.memory_space<vmem>>, vector<1x1x8x8x4xf32>
    %85 = vector.shape_cast %84 : vector<1x1x8x8x4xf32> to vector<8x8x4xf32>
    %86 = vector.broadcast %1 : vector<1x1x4xf32> to vector<8x8x4xf32>
    %87 = arith.mulf %85, %86 : vector<8x8x4xf32>
    %88 = vector.broadcast %3 : vector<1x1x4xf32> to vector<8x8x4xf32>
    %89 = arith.addf %87, %88 : vector<8x8x4xf32>
    %cst_117 = arith.constant 0.000000e+00 : f32
    %90 = vector.broadcast %cst_117 : f32 to vector<8x8x4xf32>
    %91 = arith.cmpf ogt, %89, %90 : vector<8x8x4xf32>
    %cst_118 = arith.constant 1.000000e-01 : f32
    %92 = vector.broadcast %cst_118 : f32 to vector<8x8x4xf32>
    %93 = arith.mulf %92, %89 : vector<8x8x4xf32>
    %94 = arith.select %91, %89, %93 : vector<8x8x4xi1>, vector<8x8x4xf32>
    %95 = arith.truncf %94 : vector<8x8x4xf32> to vector<8x8x4xbf16>
    %c0_119 = arith.constant 0 : index
    %c1_120 = arith.constant 1 : index
    %c1_121 = arith.constant 1 : index
    %c1_122 = arith.constant 1 : index
    %c0_123 = arith.constant 0 : index
    %96 = vector.load %arg8[%c0_119, %c1_120, %c1_121, %c1_122, %c0_123] : memref<1x4x10x10x4xbf16, #tpu.memory_space<vmem>>, vector<1x1x8x8x4xbf16>
    %97 = vector.shape_cast %96 : vector<1x1x8x8x4xbf16> to vector<8x8x4xbf16>
    %98 = vector.shape_cast %95 : vector<8x8x4xbf16> to vector<1x1x8x8x4xbf16>
    tpu.vector_store %arg8[%c0_119, %c1_120, %c1_121, %c1_122, %c0_123], %98 {strides = array<i32>} : memref<1x4x10x10x4xbf16, #tpu.memory_space<vmem>>, vector<1x1x8x8x4xbf16>,
    %c0_124 = arith.constant 0 : index
    %c2_125 = arith.constant 2 : index
    %c0_126 = arith.constant 0 : index
    %c0_127 = arith.constant 0 : index
    %c0_128 = arith.constant 0 : index
    %99 = vector.load %arg1[%c0_124, %c2_125, %c0_126, %c0_127, %c0_128] : memref<1x4x8x8x4xf32, #tpu.memory_space<vmem>>, vector<1x1x8x8x4xf32>
    %100 = vector.shape_cast %99 : vector<1x1x8x8x4xf32> to vector<8x8x4xf32>
    %101 = vector.broadcast %1 : vector<1x1x4xf32> to vector<8x8x4xf32>
    %102 = arith.mulf %100, %101 : vector<8x8x4xf32>
    %103 = vector.broadcast %3 : vector<1x1x4xf32> to vector<8x8x4xf32>
    %104 = arith.addf %102, %103 : vector<8x8x4xf32>
    %cst_129 = arith.constant 0.000000e+00 : f32
    %105 = vector.broadcast %cst_129 : f32 to vector<8x8x4xf32>
    %106 = arith.cmpf ogt, %104, %105 : vector<8x8x4xf32>
    %cst_130 = arith.constant 1.000000e-01 : f32
    %107 = vector.broadcast %cst_130 : f32 to vector<8x8x4xf32>
    %108 = arith.mulf %107, %104 : vector<8x8x4xf32>
    %109 = arith.select %106, %104, %108 : vector<8x8x4xi1>, vector<8x8x4xf32>
    %110 = arith.truncf %109 : vector<8x8x4xf32> to vector<8x8x4xbf16>
    %c0_131 = arith.constant 0 : index
    %c2_132 = arith.constant 2 : index
    %c1_133 = arith.constant 1 : index
    %c1_134 = arith.constant 1 : index
    %c0_135 = arith.constant 0 : index
    %111 = vector.load %arg8[%c0_131, %c2_132, %c1_133, %c1_134, %c0_135] : memref<1x4x10x10x4xbf16, #tpu.memory_space<vmem>>, vector<1x1x8x8x4xbf16>
    %112 = vector.shape_cast %111 : vector<1x1x8x8x4xbf16> to vector<8x8x4xbf16>
    %113 = vector.shape_cast %110 : vector<8x8x4xbf16> to vector<1x1x8x8x4xbf16>
    tpu.vector_store %arg8[%c0_131, %c2_132, %c1_133, %c1_134, %c0_135], %113 {strides = array<i32>} : memref<1x4x10x10x4xbf16, #tpu.memory_space<vmem>>, vector<1x1x8x8x4xbf16>,
    %c0_136 = arith.constant 0 : index
    %c3_137 = arith.constant 3 : index
    %c0_138 = arith.constant 0 : index
    %c0_139 = arith.constant 0 : index
    %c0_140 = arith.constant 0 : index
    %114 = vector.load %arg1[%c0_136, %c3_137, %c0_138, %c0_139, %c0_140] : memref<1x4x8x8x4xf32, #tpu.memory_space<vmem>>, vector<1x1x8x8x4xf32>
    %115 = vector.shape_cast %114 : vector<1x1x8x8x4xf32> to vector<8x8x4xf32>
    %116 = vector.broadcast %1 : vector<1x1x4xf32> to vector<8x8x4xf32>
    %117 = arith.mulf %115, %116 : vector<8x8x4xf32>
    %118 = vector.broadcast %3 : vector<1x1x4xf32> to vector<8x8x4xf32>
    %119 = arith.addf %117, %118 : vector<8x8x4xf32>
    %cst_141 = arith.constant 0.000000e+00 : f32
    %120 = vector.broadcast %cst_141 : f32 to vector<8x8x4xf32>
    %121 = arith.cmpf ogt, %119, %120 : vector<8x8x4xf32>
    %cst_142 = arith.constant 1.000000e-01 : f32
    %122 = vector.broadcast %cst_142 : f32 to vector<8x8x4xf32>
    %123 = arith.mulf %122, %119 : vector<8x8x4xf32>
    %124 = arith.select %121, %119, %123 : vector<8x8x4xi1>, vector<8x8x4xf32>
    %125 = arith.truncf %124 : vector<8x8x4xf32> to vector<8x8x4xbf16>
    %c0_143 = arith.constant 0 : index
    %c3_144 = arith.constant 3 : index
    %c1_145 = arith.constant 1 : index
    %c1_146 = arith.constant 1 : index
    %c0_147 = arith.constant 0 : index
    %126 = vector.load %arg8[%c0_143, %c3_144, %c1_145, %c1_146, %c0_147] : memref<1x4x10x10x4xbf16, #tpu.memory_space<vmem>>, vector<1x1x8x8x4xbf16>
    %127 = vector.shape_cast %126 : vector<1x1x8x8x4xbf16> to vector<8x8x4xbf16>
    %128 = vector.shape_cast %125 : vector<8x8x4xbf16> to vector<1x1x8x8x4xbf16>
    tpu.vector_store %arg8[%c0_143, %c3_144, %c1_145, %c1_146, %c0_147], %128 {strides = array<i32>} : memref<1x4x10x10x4xbf16, #tpu.memory_space<vmem>>, vector<1x1x8x8x4xbf16>,
    %c0_148 = arith.constant 0 : index
    %c3_149 = arith.constant 3 : index
    %c0_150 = arith.constant 0 : index
    %c0_151 = arith.constant 0 : index
    %c0_152 = arith.constant 0 : index
    %129 = vector.load %arg8[%c0_148, %c3_149, %c0_150, %c0_151, %c0_152] : memref<1x4x10x10x4xbf16, #tpu.memory_space<vmem>>, vector<1x1x8x8x4xbf16>
    %130 = vector.shape_cast %129 : vector<1x1x8x8x4xbf16> to vector<8x8x4xbf16>
    %c0_153 = arith.constant 0 : index
    %c0_154 = arith.constant 0 : index
    %c0_155 = arith.constant 0 : index
    %c0_156 = arith.constant 0 : index
    %131 = vector.load %arg9[%c0_153, %c0_154, %c0_155, %c0_156] : memref<1x8x8x36xbf16, #tpu.memory_space<vmem>>, vector<1x8x8x4xbf16>
    %132 = vector.shape_cast %131 : vector<1x8x8x4xbf16> to vector<8x8x4xbf16>
    %133 = vector.shape_cast %130 : vector<8x8x4xbf16> to vector<1x8x8x4xbf16>
    tpu.vector_store %arg9[%c0_153, %c0_154, %c0_155, %c0_156], %133 {strides = array<i32>} : memref<1x8x8x36xbf16, #tpu.memory_space<vmem>>, vector<1x8x8x4xbf16>,
    %c0_157 = arith.constant 0 : index
    %c2_158 = arith.constant 2 : index
    %c0_159 = arith.constant 0 : index
    %c1_160 = arith.constant 1 : index
    %c0_161 = arith.constant 0 : index
    %134 = vector.load %arg8[%c0_157, %c2_158, %c0_159, %c1_160, %c0_161] : memref<1x4x10x10x4xbf16, #tpu.memory_space<vmem>>, vector<1x1x8x8x4xbf16>
    %135 = vector.shape_cast %134 : vector<1x1x8x8x4xbf16> to vector<8x8x4xbf16>
    %c0_162 = arith.constant 0 : index
    %c0_163 = arith.constant 0 : index
    %c0_164 = arith.constant 0 : index
    %c4 = arith.constant 4 : index
    %136 = vector.load %arg9[%c0_162, %c0_163, %c0_164, %c4] : memref<1x8x8x36xbf16, #tpu.memory_space<vmem>>, vector<1x8x8x4xbf16>
    %137 = vector.shape_cast %136 : vector<1x8x8x4xbf16> to vector<8x8x4xbf16>
    %138 = vector.shape_cast %135 : vector<8x8x4xbf16> to vector<1x8x8x4xbf16>
    tpu.vector_store %arg9[%c0_162, %c0_163, %c0_164, %c4], %138 {strides = array<i32>} : memref<1x8x8x36xbf16, #tpu.memory_space<vmem>>, vector<1x8x8x4xbf16>,
    %c0_165 = arith.constant 0 : index
    %c3_166 = arith.constant 3 : index
    %c0_167 = arith.constant 0 : index
    %c1_168 = arith.constant 1 : index
    %c0_169 = arith.constant 0 : index
    %139 = vector.load %arg8[%c0_165, %c3_166, %c0_167, %c1_168, %c0_169] : memref<1x4x10x10x4xbf16, #tpu.memory_space<vmem>>, vector<1x1x8x8x4xbf16>
    %140 = vector.shape_cast %139 : vector<1x1x8x8x4xbf16> to vector<8x8x4xbf16>
    %c0_170 = arith.constant 0 : index
    %c0_171 = arith.constant 0 : index
    %c0_172 = arith.constant 0 : index
    %c8 = arith.constant 8 : index
    %141 = vector.load %arg9[%c0_170, %c0_171, %c0_172, %c8] : memref<1x8x8x36xbf16, #tpu.memory_space<vmem>>, vector<1x8x8x4xbf16>
    %142 = vector.shape_cast %141 : vector<1x8x8x4xbf16> to vector<8x8x4xbf16>
    %143 = vector.shape_cast %140 : vector<8x8x4xbf16> to vector<1x8x8x4xbf16>
    tpu.vector_store %arg9[%c0_170, %c0_171, %c0_172, %c8], %143 {strides = array<i32>} : memref<1x8x8x36xbf16, #tpu.memory_space<vmem>>, vector<1x8x8x4xbf16>,
    %c0_173 = arith.constant 0 : index
    %c1_174 = arith.constant 1 : index
    %c1_175 = arith.constant 1 : index
    %c0_176 = arith.constant 0 : index
    %c0_177 = arith.constant 0 : index
    %144 = vector.load %arg8[%c0_173, %c1_174, %c1_175, %c0_176, %c0_177] : memref<1x4x10x10x4xbf16, #tpu.memory_space<vmem>>, vector<1x1x8x8x4xbf16>
    %145 = vector.shape_cast %144 : vector<1x1x8x8x4xbf16> to vector<8x8x4xbf16>
    %c0_178 = arith.constant 0 : index
    %c0_179 = arith.constant 0 : index
    %c0_180 = arith.constant 0 : index
    %c12 = arith.constant 12 : index
    %146 = vector.load %arg9[%c0_178, %c0_179, %c0_180, %c12] : memref<1x8x8x36xbf16, #tpu.memory_space<vmem>>, vector<1x8x8x4xbf16>
    %147 = vector.shape_cast %146 : vector<1x8x8x4xbf16> to vector<8x8x4xbf16>
    %148 = vector.shape_cast %145 : vector<8x8x4xbf16> to vector<1x8x8x4xbf16>
    tpu.vector_store %arg9[%c0_178, %c0_179, %c0_180, %c12], %148 {strides = array<i32>} : memref<1x8x8x36xbf16, #tpu.memory_space<vmem>>, vector<1x8x8x4xbf16>,
    %c0_181 = arith.constant 0 : index
    %c0_182 = arith.constant 0 : index
    %c1_183 = arith.constant 1 : index
    %c1_184 = arith.constant 1 : index
    %c0_185 = arith.constant 0 : index
    %149 = vector.load %arg8[%c0_181, %c0_182, %c1_183, %c1_184, %c0_185] : memref<1x4x10x10x4xbf16, #tpu.memory_space<vmem>>, vector<1x1x8x8x4xbf16>
    %150 = vector.shape_cast %149 : vector<1x1x8x8x4xbf16> to vector<8x8x4xbf16>
    %c0_186 = arith.constant 0 : index
    %c0_187 = arith.constant 0 : index
    %c0_188 = arith.constant 0 : index
    %c16 = arith.constant 16 : index
    %151 = vector.load %arg9[%c0_186, %c0_187, %c0_188, %c16] : memref<1x8x8x36xbf16, #tpu.memory_space<vmem>>, vector<1x8x8x4xbf16>
    %152 = vector.shape_cast %151 : vector<1x8x8x4xbf16> to vector<8x8x4xbf16>
    %153 = vector.shape_cast %150 : vector<8x8x4xbf16> to vector<1x8x8x4xbf16>
    tpu.vector_store %arg9[%c0_186, %c0_187, %c0_188, %c16], %153 {strides = array<i32>} : memref<1x8x8x36xbf16, #tpu.memory_space<vmem>>, vector<1x8x8x4xbf16>,
    %c0_189 = arith.constant 0 : index
    %c1_190 = arith.constant 1 : index
    %c1_191 = arith.constant 1 : index
    %c1_192 = arith.constant 1 : index
    %c0_193 = arith.constant 0 : index
    %154 = vector.load %arg8[%c0_189, %c1_190, %c1_191, %c1_192, %c0_193] : memref<1x4x10x10x4xbf16, #tpu.memory_space<vmem>>, vector<1x1x8x8x4xbf16>
    %155 = vector.shape_cast %154 : vector<1x1x8x8x4xbf16> to vector<8x8x4xbf16>
    %c0_194 = arith.constant 0 : index
    %c0_195 = arith.constant 0 : index
    %c0_196 = arith.constant 0 : index
    %c20 = arith.constant 20 : index
    %156 = vector.load %arg9[%c0_194, %c0_195, %c0_196, %c20] : memref<1x8x8x36xbf16, #tpu.memory_space<vmem>>, vector<1x8x8x4xbf16>
    %157 = vector.shape_cast %156 : vector<1x8x8x4xbf16> to vector<8x8x4xbf16>
    %158 = vector.shape_cast %155 : vector<8x8x4xbf16> to vector<1x8x8x4xbf16>
    tpu.vector_store %arg9[%c0_194, %c0_195, %c0_196, %c20], %158 {strides = array<i32>} : memref<1x8x8x36xbf16, #tpu.memory_space<vmem>>, vector<1x8x8x4xbf16>,
    %c0_197 = arith.constant 0 : index
    %c3_198 = arith.constant 3 : index
    %c1_199 = arith.constant 1 : index
    %c0_200 = arith.constant 0 : index
    %c0_201 = arith.constant 0 : index
    %159 = vector.load %arg8[%c0_197, %c3_198, %c1_199, %c0_200, %c0_201] : memref<1x4x10x10x4xbf16, #tpu.memory_space<vmem>>, vector<1x1x8x8x4xbf16>
    %160 = vector.shape_cast %159 : vector<1x1x8x8x4xbf16> to vector<8x8x4xbf16>
    %c0_202 = arith.constant 0 : index
    %c0_203 = arith.constant 0 : index
    %c0_204 = arith.constant 0 : index
    %c24 = arith.constant 24 : index
    %161 = vector.load %arg9[%c0_202, %c0_203, %c0_204, %c24] : memref<1x8x8x36xbf16, #tpu.memory_space<vmem>>, vector<1x8x8x4xbf16>
    %162 = vector.shape_cast %161 : vector<1x8x8x4xbf16> to vector<8x8x4xbf16>
    %163 = vector.shape_cast %160 : vector<8x8x4xbf16> to vector<1x8x8x4xbf16>
    tpu.vector_store %arg9[%c0_202, %c0_203, %c0_204, %c24], %163 {strides = array<i32>} : memref<1x8x8x36xbf16, #tpu.memory_space<vmem>>, vector<1x8x8x4xbf16>,
    %c0_205 = arith.constant 0 : index
    %c2_206 = arith.constant 2 : index
    %c1_207 = arith.constant 1 : index
    %c1_208 = arith.constant 1 : index
    %c0_209 = arith.constant 0 : index
    %164 = vector.load %arg8[%c0_205, %c2_206, %c1_207, %c1_208, %c0_209] : memref<1x4x10x10x4xbf16, #tpu.memory_space<vmem>>, vector<1x1x8x8x4xbf16>
    %165 = vector.shape_cast %164 : vector<1x1x8x8x4xbf16> to vector<8x8x4xbf16>
    %c0_210 = arith.constant 0 : index
    %c0_211 = arith.constant 0 : index
    %c0_212 = arith.constant 0 : index
    %c28 = arith.constant 28 : index
    %166 = vector.load %arg9[%c0_210, %c0_211, %c0_212, %c28] : memref<1x8x8x36xbf16, #tpu.memory_space<vmem>>, vector<1x8x8x4xbf16>
    %167 = vector.shape_cast %166 : vector<1x8x8x4xbf16> to vector<8x8x4xbf16>
    %168 = vector.shape_cast %165 : vector<8x8x4xbf16> to vector<1x8x8x4xbf16>
    tpu.vector_store %arg9[%c0_210, %c0_211, %c0_212, %c28], %168 {strides = array<i32>} : memref<1x8x8x36xbf16, #tpu.memory_space<vmem>>, vector<1x8x8x4xbf16>,
    %c0_213 = arith.constant 0 : index
    %c3_214 = arith.constant 3 : index
    %c1_215 = arith.constant 1 : index
    %c1_216 = arith.constant 1 : index
    %c0_217 = arith.constant 0 : index
    %169 = vector.load %arg8[%c0_213, %c3_214, %c1_215, %c1_216, %c0_217] : memref<1x4x10x10x4xbf16, #tpu.memory_space<vmem>>, vector<1x1x8x8x4xbf16>
    %170 = vector.shape_cast %169 : vector<1x1x8x8x4xbf16> to vector<8x8x4xbf16>
    %c0_218 = arith.constant 0 : index
    %c0_219 = arith.constant 0 : index
    %c0_220 = arith.constant 0 : index
    %c32 = arith.constant 32 : index
    %171 = vector.load %arg9[%c0_218, %c0_219, %c0_220, %c32] : memref<1x8x8x36xbf16, #tpu.memory_space<vmem>>, vector<1x8x8x4xbf16>
    %172 = vector.shape_cast %171 : vector<1x8x8x4xbf16> to vector<8x8x4xbf16>
    %173 = vector.shape_cast %170 : vector<8x8x4xbf16> to vector<1x8x8x4xbf16>
    tpu.vector_store %arg9[%c0_218, %c0_219, %c0_220, %c32], %173 {strides = array<i32>} : memref<1x8x8x36xbf16, #tpu.memory_space<vmem>>, vector<1x8x8x4xbf16>,
    %c0_221 = arith.constant 0 : index
    %c0_222 = arith.constant 0 : index
    %c0_223 = arith.constant 0 : index
    %c0_224 = arith.constant 0 : index
    %174 = vector.load %arg9[%c0_221, %c0_222, %c0_223, %c0_224] : memref<1x8x8x36xbf16, #tpu.memory_space<vmem>>, vector<1x8x8x36xbf16>
    %175 = vector.shape_cast %174 : vector<1x8x8x36xbf16> to vector<64x36xbf16>
    %c0_225 = arith.constant 0 : index
    %c0_226 = arith.constant 0 : index
    %176 = vector.load %arg2[%c0_225, %c0_226] : memref<36x16xbf16, #tpu.memory_space<vmem>>, vector<36x16xbf16>
    %cst_227 = arith.constant dense<0.000000e+00> : vector<64x16xf32>
    %177 = tpu.matmul %175, %176, %cst_227 {dimension_numbers = #tpu.dot_dimension_numbers<[1], [0], [0], [1], [0, 0, 1, 1], [], []>} : vector<64x36xbf16>, vector<36x16xbf16>, vector<64x16xf32> -> vector<64x16xf32>
    %178 = vector.extract_strided_slice %177 {offsets = [0, 0], sizes = [64, 8], strides = [1, 1]} : vector<64x16xf32> to vector<64x8xf32>
    %179 = vector.broadcast %4 : vector<1x8xf32> to vector<64x8xf32>
    %180 = arith.addf %178, %179 : vector<64x8xf32>
    %cst_228 = arith.constant 0.000000e+00 : f32
    %181 = vector.broadcast %cst_228 : f32 to vector<64x8xf32>
    %182 = arith.cmpf ogt, %180, %181 : vector<64x8xf32>
    %cst_229 = arith.constant 1.000000e-01 : f32
    %183 = vector.broadcast %cst_229 : f32 to vector<64x8xf32>
    %184 = arith.mulf %183, %180 : vector<64x8xf32>
    %185 = arith.select %182, %180, %184 : vector<64x8xi1>, vector<64x8xf32>
    %186 = vector.shape_cast %185 : vector<64x8xf32> to vector<8x8x8xf32>
    %187 = arith.truncf %186 : vector<8x8x8xf32> to vector<8x8x8xbf16>
    %c0_230 = arith.constant 0 : index
    %c1_231 = arith.constant 1 : index
    %c1_232 = arith.constant 1 : index
    %c0_233 = arith.constant 0 : index
    %188 = vector.load %arg10[%c0_230, %c1_231, %c1_232, %c0_233] : memref<1x10x10x8xbf16, #tpu.memory_space<vmem>>, vector<1x8x8x8xbf16>
    %189 = vector.shape_cast %188 : vector<1x8x8x8xbf16> to vector<8x8x8xbf16>
    %190 = vector.shape_cast %187 : vector<8x8x8xbf16> to vector<1x8x8x8xbf16>
    tpu.vector_store %arg10[%c0_230, %c1_231, %c1_232, %c0_233], %190 {strides = array<i32>} : memref<1x10x10x8xbf16, #tpu.memory_space<vmem>>, vector<1x8x8x8xbf16>,
    %c0_234 = arith.constant 0 : index
    %c0_235 = arith.constant 0 : index
    %c0_236 = arith.constant 0 : index
    %c0_237 = arith.constant 0 : index
    %191 = vector.load %arg10[%c0_234, %c0_235, %c0_236, %c0_237] : memref<1x10x10x8xbf16, #tpu.memory_space<vmem>>, vector<1x8x8x8xbf16>
    %192 = vector.shape_cast %191 : vector<1x8x8x8xbf16> to vector<8x8x8xbf16>
    %c0_238 = arith.constant 0 : index
    %c0_239 = arith.constant 0 : index
    %c0_240 = arith.constant 0 : index
    %c0_241 = arith.constant 0 : index
    %193 = vector.load %arg11[%c0_238, %c0_239, %c0_240, %c0_241] : memref<1x8x8x72xbf16, #tpu.memory_space<vmem>>, vector<1x8x8x8xbf16>
    %194 = vector.shape_cast %193 : vector<1x8x8x8xbf16> to vector<8x8x8xbf16>
    %195 = vector.shape_cast %192 : vector<8x8x8xbf16> to vector<1x8x8x8xbf16>
    tpu.vector_store %arg11[%c0_238, %c0_239, %c0_240, %c0_241], %195 {strides = array<i32>} : memref<1x8x8x72xbf16, #tpu.memory_space<vmem>>, vector<1x8x8x8xbf16>,
    %c0_242 = arith.constant 0 : index
    %c0_243 = arith.constant 0 : index
    %c1_244 = arith.constant 1 : index
    %c0_245 = arith.constant 0 : index
    %196 = vector.load %arg10[%c0_242, %c0_243, %c1_244, %c0_245] : memref<1x10x10x8xbf16, #tpu.memory_space<vmem>>, vector<1x8x8x8xbf16>
    %197 = vector.shape_cast %196 : vector<1x8x8x8xbf16> to vector<8x8x8xbf16>
    %c0_246 = arith.constant 0 : index
    %c0_247 = arith.constant 0 : index
    %c0_248 = arith.constant 0 : index
    %c8_249 = arith.constant 8 : index
    %198 = vector.load %arg11[%c0_246, %c0_247, %c0_248, %c8_249] : memref<1x8x8x72xbf16, #tpu.memory_space<vmem>>, vector<1x8x8x8xbf16>
    %199 = vector.shape_cast %198 : vector<1x8x8x8xbf16> to vector<8x8x8xbf16>
    %200 = vector.shape_cast %197 : vector<8x8x8xbf16> to vector<1x8x8x8xbf16>
    tpu.vector_store %arg11[%c0_246, %c0_247, %c0_248, %c8_249], %200 {strides = array<i32>} : memref<1x8x8x72xbf16, #tpu.memory_space<vmem>>, vector<1x8x8x8xbf16>,
    %c0_250 = arith.constant 0 : index
    %c0_251 = arith.constant 0 : index
    %c2_252 = arith.constant 2 : index
    %c0_253 = arith.constant 0 : index
    %201 = vector.load %arg10[%c0_250, %c0_251, %c2_252, %c0_253] : memref<1x10x10x8xbf16, #tpu.memory_space<vmem>>, vector<1x8x8x8xbf16>
    %202 = vector.shape_cast %201 : vector<1x8x8x8xbf16> to vector<8x8x8xbf16>
    %c0_254 = arith.constant 0 : index
    %c0_255 = arith.constant 0 : index
    %c0_256 = arith.constant 0 : index
    %c16_257 = arith.constant 16 : index
    %203 = vector.load %arg11[%c0_254, %c0_255, %c0_256, %c16_257] : memref<1x8x8x72xbf16, #tpu.memory_space<vmem>>, vector<1x8x8x8xbf16>
    %204 = vector.shape_cast %203 : vector<1x8x8x8xbf16> to vector<8x8x8xbf16>
    %205 = vector.shape_cast %202 : vector<8x8x8xbf16> to vector<1x8x8x8xbf16>
    tpu.vector_store %arg11[%c0_254, %c0_255, %c0_256, %c16_257], %205 {strides = array<i32>} : memref<1x8x8x72xbf16, #tpu.memory_space<vmem>>, vector<1x8x8x8xbf16>,
    %c0_258 = arith.constant 0 : index
    %c1_259 = arith.constant 1 : index
    %c0_260 = arith.constant 0 : index
    %c0_261 = arith.constant 0 : index
    %206 = vector.load %arg10[%c0_258, %c1_259, %c0_260, %c0_261] : memref<1x10x10x8xbf16, #tpu.memory_space<vmem>>, vector<1x8x8x8xbf16>
    %207 = vector.shape_cast %206 : vector<1x8x8x8xbf16> to vector<8x8x8xbf16>
    %c0_262 = arith.constant 0 : index
    %c0_263 = arith.constant 0 : index
    %c0_264 = arith.constant 0 : index
    %c24_265 = arith.constant 24 : index
    %208 = vector.load %arg11[%c0_262, %c0_263, %c0_264, %c24_265] : memref<1x8x8x72xbf16, #tpu.memory_space<vmem>>, vector<1x8x8x8xbf16>
    %209 = vector.shape_cast %208 : vector<1x8x8x8xbf16> to vector<8x8x8xbf16>
    %210 = vector.shape_cast %207 : vector<8x8x8xbf16> to vector<1x8x8x8xbf16>
    tpu.vector_store %arg11[%c0_262, %c0_263, %c0_264, %c24_265], %210 {strides = array<i32>} : memref<1x8x8x72xbf16, #tpu.memory_space<vmem>>, vector<1x8x8x8xbf16>,
    %c0_266 = arith.constant 0 : index
    %c1_267 = arith.constant 1 : index
    %c1_268 = arith.constant 1 : index
    %c0_269 = arith.constant 0 : index
    %211 = vector.load %arg10[%c0_266, %c1_267, %c1_268, %c0_269] : memref<1x10x10x8xbf16, #tpu.memory_space<vmem>>, vector<1x8x8x8xbf16>
    %212 = vector.shape_cast %211 : vector<1x8x8x8xbf16> to vector<8x8x8xbf16>
    %c0_270 = arith.constant 0 : index
    %c0_271 = arith.constant 0 : index
    %c0_272 = arith.constant 0 : index
    %c32_273 = arith.constant 32 : index
    %213 = vector.load %arg11[%c0_270, %c0_271, %c0_272, %c32_273] : memref<1x8x8x72xbf16, #tpu.memory_space<vmem>>, vector<1x8x8x8xbf16>
    %214 = vector.shape_cast %213 : vector<1x8x8x8xbf16> to vector<8x8x8xbf16>
    %215 = vector.shape_cast %212 : vector<8x8x8xbf16> to vector<1x8x8x8xbf16>
    tpu.vector_store %arg11[%c0_270, %c0_271, %c0_272, %c32_273], %215 {strides = array<i32>} : memref<1x8x8x72xbf16, #tpu.memory_space<vmem>>, vector<1x8x8x8xbf16>,
    %c0_274 = arith.constant 0 : index
    %c1_275 = arith.constant 1 : index
    %c2_276 = arith.constant 2 : index
    %c0_277 = arith.constant 0 : index
    %216 = vector.load %arg10[%c0_274, %c1_275, %c2_276, %c0_277] : memref<1x10x10x8xbf16, #tpu.memory_space<vmem>>, vector<1x8x8x8xbf16>
    %217 = vector.shape_cast %216 : vector<1x8x8x8xbf16> to vector<8x8x8xbf16>
    %c0_278 = arith.constant 0 : index
    %c0_279 = arith.constant 0 : index
    %c0_280 = arith.constant 0 : index
    %c40 = arith.constant 40 : index
    %218 = vector.load %arg11[%c0_278, %c0_279, %c0_280, %c40] : memref<1x8x8x72xbf16, #tpu.memory_space<vmem>>, vector<1x8x8x8xbf16>
    %219 = vector.shape_cast %218 : vector<1x8x8x8xbf16> to vector<8x8x8xbf16>
    %220 = vector.shape_cast %217 : vector<8x8x8xbf16> to vector<1x8x8x8xbf16>
    tpu.vector_store %arg11[%c0_278, %c0_279, %c0_280, %c40], %220 {strides = array<i32>} : memref<1x8x8x72xbf16, #tpu.memory_space<vmem>>, vector<1x8x8x8xbf16>,
    %c0_281 = arith.constant 0 : index
    %c2_282 = arith.constant 2 : index
    %c0_283 = arith.constant 0 : index
    %c0_284 = arith.constant 0 : index
    %221 = vector.load %arg10[%c0_281, %c2_282, %c0_283, %c0_284] : memref<1x10x10x8xbf16, #tpu.memory_space<vmem>>, vector<1x8x8x8xbf16>
    %222 = vector.shape_cast %221 : vector<1x8x8x8xbf16> to vector<8x8x8xbf16>
    %c0_285 = arith.constant 0 : index
    %c0_286 = arith.constant 0 : index
    %c0_287 = arith.constant 0 : index
    %c48 = arith.constant 48 : index
    %223 = vector.load %arg11[%c0_285, %c0_286, %c0_287, %c48] : memref<1x8x8x72xbf16, #tpu.memory_space<vmem>>, vector<1x8x8x8xbf16>
    %224 = vector.shape_cast %223 : vector<1x8x8x8xbf16> to vector<8x8x8xbf16>
    %225 = vector.shape_cast %222 : vector<8x8x8xbf16> to vector<1x8x8x8xbf16>
    tpu.vector_store %arg11[%c0_285, %c0_286, %c0_287, %c48], %225 {strides = array<i32>} : memref<1x8x8x72xbf16, #tpu.memory_space<vmem>>, vector<1x8x8x8xbf16>,
    %c0_288 = arith.constant 0 : index
    %c2_289 = arith.constant 2 : index
    %c1_290 = arith.constant 1 : index
    %c0_291 = arith.constant 0 : index
    %226 = vector.load %arg10[%c0_288, %c2_289, %c1_290, %c0_291] : memref<1x10x10x8xbf16, #tpu.memory_space<vmem>>, vector<1x8x8x8xbf16>
    %227 = vector.shape_cast %226 : vector<1x8x8x8xbf16> to vector<8x8x8xbf16>
    %c0_292 = arith.constant 0 : index
    %c0_293 = arith.constant 0 : index
    %c0_294 = arith.constant 0 : index
    %c56 = arith.constant 56 : index
    %228 = vector.load %arg11[%c0_292, %c0_293, %c0_294, %c56] : memref<1x8x8x72xbf16, #tpu.memory_space<vmem>>, vector<1x8x8x8xbf16>
    %229 = vector.shape_cast %228 : vector<1x8x8x8xbf16> to vector<8x8x8xbf16>
    %230 = vector.shape_cast %227 : vector<8x8x8xbf16> to vector<1x8x8x8xbf16>
    tpu.vector_store %arg11[%c0_292, %c0_293, %c0_294, %c56], %230 {strides = array<i32>} : memref<1x8x8x72xbf16, #tpu.memory_space<vmem>>, vector<1x8x8x8xbf16>,
    %c0_295 = arith.constant 0 : index
    %c2_296 = arith.constant 2 : index
    %c2_297 = arith.constant 2 : index
    %c0_298 = arith.constant 0 : index
    %231 = vector.load %arg10[%c0_295, %c2_296, %c2_297, %c0_298] : memref<1x10x10x8xbf16, #tpu.memory_space<vmem>>, vector<1x8x8x8xbf16>
    %232 = vector.shape_cast %231 : vector<1x8x8x8xbf16> to vector<8x8x8xbf16>
    %c0_299 = arith.constant 0 : index
    %c0_300 = arith.constant 0 : index
    %c0_301 = arith.constant 0 : index
    %c64 = arith.constant 64 : index
    %233 = vector.load %arg11[%c0_299, %c0_300, %c0_301, %c64] : memref<1x8x8x72xbf16, #tpu.memory_space<vmem>>, vector<1x8x8x8xbf16>
    %234 = vector.shape_cast %233 : vector<1x8x8x8xbf16> to vector<8x8x8xbf16>
    %235 = vector.shape_cast %232 : vector<8x8x8xbf16> to vector<1x8x8x8xbf16>
    tpu.vector_store %arg11[%c0_299, %c0_300, %c0_301, %c64], %235 {strides = array<i32>} : memref<1x8x8x72xbf16, #tpu.memory_space<vmem>>, vector<1x8x8x8xbf16>,
    %c0_302 = arith.constant 0 : index
    %c0_303 = arith.constant 0 : index
    %c0_304 = arith.constant 0 : index
    %c0_305 = arith.constant 0 : index
    %236 = vector.load %arg11[%c0_302, %c0_303, %c0_304, %c0_305] : memref<1x8x8x72xbf16, #tpu.memory_space<vmem>>, vector<1x8x8x72xbf16>
    %237 = vector.shape_cast %236 : vector<1x8x8x72xbf16> to vector<64x72xbf16>
    %c0_306 = arith.constant 0 : index
    %c0_307 = arith.constant 0 : index
    %238 = vector.load %arg3[%c0_306, %c0_307] : memref<72x8xbf16, #tpu.memory_space<vmem>>, vector<72x8xbf16>
    %cst_308 = arith.constant dense<0.000000e+00> : vector<64x8xf32>
    %239 = tpu.matmul %237, %238, %cst_308 {dimension_numbers = #tpu.dot_dimension_numbers<[1], [0], [0], [1], [0, 0, 1, 1], [], []>} : vector<64x72xbf16>, vector<72x8xbf16>, vector<64x8xf32> -> vector<64x8xf32>
    %240 = vector.extract_strided_slice %177 {offsets = [0, 8], sizes = [64, 8], strides = [1, 1]} : vector<64x16xf32> to vector<64x8xf32>
    %241 = arith.addf %239, %240 : vector<64x8xf32>
    %242 = vector.shape_cast %241 : vector<64x8xf32> to vector<1x64x8xf32>
    %c0_309 = arith.constant 0 : index
    %c0_310 = arith.constant 0 : index
    %c0_311 = arith.constant 0 : index
    %243 = vector.load %arg7[%c0_309, %c0_310, %c0_311] : memref<1x64x8xf32, #tpu.memory_space<vmem>>, vector<1x64x8xf32>
    tpu.vector_store %arg7[%c0_309, %c0_310, %c0_311], %242 {strides = array<i32>} : memref<1x64x8xf32, #tpu.memory_space<vmem>>, vector<1x64x8xf32>,
    return
  }
  func.func @transform_0(%arg0: i32) -> (i32, i32, i32, i32, i32) {
    %c0_i32 = arith.constant 0 : i32
    %c0_i32_0 = arith.constant 0 : i32
    %c0_i32_1 = arith.constant 0 : i32
    %c0_i32_2 = arith.constant 0 : i32
    %c0_i32_3 = arith.constant 0 : i32
    return %arg0, %c0_i32, %c0_i32_0, %c0_i32_1, %c0_i32_2 : i32, i32, i32, i32, i32
  }
  func.func @transform_1(%arg0: i32) -> (i32, i32) {
    %c0_i32 = arith.constant 0 : i32
    %c0_i32_0 = arith.constant 0 : i32
    %c0_i32_1 = arith.constant 0 : i32
    return %c0_i32, %c0_i32_0 : i32, i32
  }
  func.func @transform_2(%arg0: i32) -> (i32, i32) {
    %c0_i32 = arith.constant 0 : i32
    %c0_i32_0 = arith.constant 0 : i32
    %c0_i32_1 = arith.constant 0 : i32
    return %c0_i32, %c0_i32_0 : i32, i32
  }
  func.func @transform_3(%arg0: i32) -> (i32, i32) {
    %c0_i32 = arith.constant 0 : i32
    %c0_i32_0 = arith.constant 0 : i32
    %c0_i32_1 = arith.constant 0 : i32
    return %c0_i32, %c0_i32_0 : i32, i32
  }
  func.func @transform_4(%arg0: i32) -> (i32, i32) {
    %c0_i32 = arith.constant 0 : i32
    %c0_i32_0 = arith.constant 0 : i32
    %c0_i32_1 = arith.constant 0 : i32
    return %c0_i32, %c0_i32_0 : i32, i32
  }
  func.func @transform_5(%arg0: i32) -> (i32, i32) {
    %c0_i32 = arith.constant 0 : i32
    %c0_i32_0 = arith.constant 0 : i32
    %c0_i32_1 = arith.constant 0 : i32
    return %c0_i32, %c0_i32_0 : i32, i32
  }
  func.func @transform_6(%arg0: i32) -> (i32, i32, i32) {
    %c0_i32 = arith.constant 0 : i32
    %c0_i32_0 = arith.constant 0 : i32
    %c0_i32_1 = arith.constant 0 : i32
    return %arg0, %c0_i32, %c0_i32_0 : i32, i32, i32
  }
}

module attributes {stable_mosaic.version = 11 : i64} {
  func.func @kernel(%arg0: i32, %arg1: memref<1x1x8x8x8xf32, #tpu.memory_space<vmem>>, %arg2: memref<72x8xbf16, #tpu.memory_space<vmem>>, %arg3: memref<72x8xbf16, #tpu.memory_space<vmem>>, %arg4: memref<1x8xf32, #tpu.memory_space<vmem>>, %arg5: memref<1x8xf32, #tpu.memory_space<vmem>>, %arg6: memref<1x8xf32, #tpu.memory_space<vmem>>, %arg7: memref<1x64x8xf32, #tpu.memory_space<vmem>>, %arg8: memref<1x1x10x10x8xbf16, #tpu.memory_space<vmem>>, %arg9: memref<1x8x8x72xbf16, #tpu.memory_space<vmem>>, %arg10: memref<1x10x10x8xbf16, #tpu.memory_space<vmem>>, %arg11: memref<1x8x8x72xbf16, #tpu.memory_space<vmem>>) attributes {dimension_semantics = [#tpu.dimension_semantics<parallel>], iteration_bounds = array<i64: 2>, scalar_prefetch = 0 : i64, scratch_operands = 4 : i64, tpu.core_type = #tpu.core_type<tc>, window_params = [{transform_indices = @transform_0, window_bounds = array<i64: 1, 1, 8, 8, 8>}, {pipeline_mode = #tpu.pipeline_mode<synchronous>, transform_indices = @transform_1, window_bounds = array<i64: 72, 8>}, {pipeline_mode = #tpu.pipeline_mode<synchronous>, transform_indices = @transform_2, window_bounds = array<i64: 72, 8>}, {pipeline_mode = #tpu.pipeline_mode<synchronous>, transform_indices = @transform_3, window_bounds = array<i64: 1, 8>}, {pipeline_mode = #tpu.pipeline_mode<synchronous>, transform_indices = @transform_4, window_bounds = array<i64: 1, 8>}, {pipeline_mode = #tpu.pipeline_mode<synchronous>, transform_indices = @transform_5, window_bounds = array<i64: 1, 8>}, {transform_indices = @transform_6, window_bounds = array<i64: 1, 64, 8>}]} {
    %c0 = arith.constant 0 : index
    %c0_0 = arith.constant 0 : index
    %0 = vector.load %arg4[%c0, %c0_0] : memref<1x8xf32, #tpu.memory_space<vmem>>, vector<1x8xf32>
    %1 = vector.shape_cast %0 : vector<1x8xf32> to vector<1x1x8xf32>
    %c0_1 = arith.constant 0 : index
    %c0_2 = arith.constant 0 : index
    %2 = vector.load %arg5[%c0_1, %c0_2] : memref<1x8xf32, #tpu.memory_space<vmem>>, vector<1x8xf32>
    %3 = vector.shape_cast %2 : vector<1x8xf32> to vector<1x1x8xf32>
    %c0_3 = arith.constant 0 : index
    %c0_4 = arith.constant 0 : index
    %4 = vector.load %arg6[%c0_3, %c0_4] : memref<1x8xf32, #tpu.memory_space<vmem>>, vector<1x8xf32>
    %cst = arith.constant 0.000000e+00 : bf16
    %5 = vector.broadcast %cst : bf16 to vector<1x10x8xbf16>
    %cst_5 = arith.constant 0.000000e+00 : bf16
    %6 = vector.broadcast %cst_5 : bf16 to vector<10x1x8xbf16>
    %cst_6 = arith.constant 0.000000e+00 : bf16
    %7 = vector.broadcast %cst_6 : bf16 to vector<1x10x8xbf16>
    %cst_7 = arith.constant 0.000000e+00 : bf16
    %8 = vector.broadcast %cst_7 : bf16 to vector<10x1x8xbf16>
    %c0_8 = arith.constant 0 : index
    %c0_9 = arith.constant 0 : index
    %c0_10 = arith.constant 0 : index
    %c0_11 = arith.constant 0 : index
    %c0_12 = arith.constant 0 : index
    %9 = vector.load %arg8[%c0_8, %c0_9, %c0_10, %c0_11, %c0_12] : memref<1x1x10x10x8xbf16, #tpu.memory_space<vmem>>, vector<1x1x1x10x8xbf16>
    %10 = vector.shape_cast %9 : vector<1x1x1x10x8xbf16> to vector<1x10x8xbf16>
    %11 = vector.shape_cast %5 : vector<1x10x8xbf16> to vector<1x1x1x10x8xbf16>
    tpu.vector_store %arg8[%c0_8, %c0_9, %c0_10, %c0_11, %c0_12], %11 {strides = array<i32>} : memref<1x1x10x10x8xbf16, #tpu.memory_space<vmem>>, vector<1x1x1x10x8xbf16>,
    %c0_13 = arith.constant 0 : index
    %c0_14 = arith.constant 0 : index
    %c9 = arith.constant 9 : index
    %c0_15 = arith.constant 0 : index
    %c0_16 = arith.constant 0 : index
    %12 = vector.load %arg8[%c0_13, %c0_14, %c9, %c0_15, %c0_16] : memref<1x1x10x10x8xbf16, #tpu.memory_space<vmem>>, vector<1x1x1x10x8xbf16>
    %13 = vector.shape_cast %12 : vector<1x1x1x10x8xbf16> to vector<1x10x8xbf16>
    %14 = vector.shape_cast %5 : vector<1x10x8xbf16> to vector<1x1x1x10x8xbf16>
    tpu.vector_store %arg8[%c0_13, %c0_14, %c9, %c0_15, %c0_16], %14 {strides = array<i32>} : memref<1x1x10x10x8xbf16, #tpu.memory_space<vmem>>, vector<1x1x1x10x8xbf16>,
    %c0_17 = arith.constant 0 : index
    %c0_18 = arith.constant 0 : index
    %c0_19 = arith.constant 0 : index
    %c0_20 = arith.constant 0 : index
    %c0_21 = arith.constant 0 : index
    %15 = vector.load %arg8[%c0_17, %c0_18, %c0_19, %c0_20, %c0_21] : memref<1x1x10x10x8xbf16, #tpu.memory_space<vmem>>, vector<1x1x10x1x8xbf16>
    %16 = vector.shape_cast %15 : vector<1x1x10x1x8xbf16> to vector<10x1x8xbf16>
    %17 = vector.shape_cast %6 : vector<10x1x8xbf16> to vector<1x1x10x1x8xbf16>
    tpu.vector_store %arg8[%c0_17, %c0_18, %c0_19, %c0_20, %c0_21], %17 {strides = array<i32>} : memref<1x1x10x10x8xbf16, #tpu.memory_space<vmem>>, vector<1x1x10x1x8xbf16>,
    %c0_22 = arith.constant 0 : index
    %c0_23 = arith.constant 0 : index
    %c0_24 = arith.constant 0 : index
    %c9_25 = arith.constant 9 : index
    %c0_26 = arith.constant 0 : index
    %18 = vector.load %arg8[%c0_22, %c0_23, %c0_24, %c9_25, %c0_26] : memref<1x1x10x10x8xbf16, #tpu.memory_space<vmem>>, vector<1x1x10x1x8xbf16>
    %19 = vector.shape_cast %18 : vector<1x1x10x1x8xbf16> to vector<10x1x8xbf16>
    %20 = vector.shape_cast %6 : vector<10x1x8xbf16> to vector<1x1x10x1x8xbf16>
    tpu.vector_store %arg8[%c0_22, %c0_23, %c0_24, %c9_25, %c0_26], %20 {strides = array<i32>} : memref<1x1x10x10x8xbf16, #tpu.memory_space<vmem>>, vector<1x1x10x1x8xbf16>,
    %c0_27 = arith.constant 0 : index
    %c0_28 = arith.constant 0 : index
    %c0_29 = arith.constant 0 : index
    %c0_30 = arith.constant 0 : index
    %21 = vector.load %arg10[%c0_27, %c0_28, %c0_29, %c0_30] : memref<1x10x10x8xbf16, #tpu.memory_space<vmem>>, vector<1x1x10x8xbf16>
    %22 = vector.shape_cast %21 : vector<1x1x10x8xbf16> to vector<1x10x8xbf16>
    %23 = vector.shape_cast %7 : vector<1x10x8xbf16> to vector<1x1x10x8xbf16>
    tpu.vector_store %arg10[%c0_27, %c0_28, %c0_29, %c0_30], %23 {strides = array<i32>} : memref<1x10x10x8xbf16, #tpu.memory_space<vmem>>, vector<1x1x10x8xbf16>,
    %c0_31 = arith.constant 0 : index
    %c9_32 = arith.constant 9 : index
    %c0_33 = arith.constant 0 : index
    %c0_34 = arith.constant 0 : index
    %24 = vector.load %arg10[%c0_31, %c9_32, %c0_33, %c0_34] : memref<1x10x10x8xbf16, #tpu.memory_space<vmem>>, vector<1x1x10x8xbf16>
    %25 = vector.shape_cast %24 : vector<1x1x10x8xbf16> to vector<1x10x8xbf16>
    %26 = vector.shape_cast %7 : vector<1x10x8xbf16> to vector<1x1x10x8xbf16>
    tpu.vector_store %arg10[%c0_31, %c9_32, %c0_33, %c0_34], %26 {strides = array<i32>} : memref<1x10x10x8xbf16, #tpu.memory_space<vmem>>, vector<1x1x10x8xbf16>,
    %c0_35 = arith.constant 0 : index
    %c0_36 = arith.constant 0 : index
    %c0_37 = arith.constant 0 : index
    %c0_38 = arith.constant 0 : index
    %27 = vector.load %arg10[%c0_35, %c0_36, %c0_37, %c0_38] : memref<1x10x10x8xbf16, #tpu.memory_space<vmem>>, vector<1x10x1x8xbf16>
    %28 = vector.shape_cast %27 : vector<1x10x1x8xbf16> to vector<10x1x8xbf16>
    %29 = vector.shape_cast %8 : vector<10x1x8xbf16> to vector<1x10x1x8xbf16>
    tpu.vector_store %arg10[%c0_35, %c0_36, %c0_37, %c0_38], %29 {strides = array<i32>} : memref<1x10x10x8xbf16, #tpu.memory_space<vmem>>, vector<1x10x1x8xbf16>,
    %c0_39 = arith.constant 0 : index
    %c0_40 = arith.constant 0 : index
    %c9_41 = arith.constant 9 : index
    %c0_42 = arith.constant 0 : index
    %30 = vector.load %arg10[%c0_39, %c0_40, %c9_41, %c0_42] : memref<1x10x10x8xbf16, #tpu.memory_space<vmem>>, vector<1x10x1x8xbf16>
    %31 = vector.shape_cast %30 : vector<1x10x1x8xbf16> to vector<10x1x8xbf16>
    %32 = vector.shape_cast %8 : vector<10x1x8xbf16> to vector<1x10x1x8xbf16>
    tpu.vector_store %arg10[%c0_39, %c0_40, %c9_41, %c0_42], %32 {strides = array<i32>} : memref<1x10x10x8xbf16, #tpu.memory_space<vmem>>, vector<1x10x1x8xbf16>,
    %c0_43 = arith.constant 0 : index
    %c0_44 = arith.constant 0 : index
    %c0_45 = arith.constant 0 : index
    %c0_46 = arith.constant 0 : index
    %c0_47 = arith.constant 0 : index
    %33 = vector.load %arg1[%c0_43, %c0_44, %c0_45, %c0_46, %c0_47] : memref<1x1x8x8x8xf32, #tpu.memory_space<vmem>>, vector<1x1x8x8x8xf32>
    %34 = vector.shape_cast %33 : vector<1x1x8x8x8xf32> to vector<8x8x8xf32>
    %35 = vector.broadcast %1 : vector<1x1x8xf32> to vector<8x8x8xf32>
    %36 = arith.mulf %34, %35 : vector<8x8x8xf32>
    %37 = vector.broadcast %3 : vector<1x1x8xf32> to vector<8x8x8xf32>
    %38 = arith.addf %36, %37 : vector<8x8x8xf32>
    %cst_48 = arith.constant 0.000000e+00 : f32
    %39 = vector.broadcast %cst_48 : f32 to vector<8x8x8xf32>
    %40 = arith.cmpf ogt, %38, %39 : vector<8x8x8xf32>
    %cst_49 = arith.constant 1.000000e-01 : f32
    %41 = vector.broadcast %cst_49 : f32 to vector<8x8x8xf32>
    %42 = arith.mulf %41, %38 : vector<8x8x8xf32>
    %43 = arith.select %40, %38, %42 : vector<8x8x8xi1>, vector<8x8x8xf32>
    %44 = arith.truncf %43 : vector<8x8x8xf32> to vector<8x8x8xbf16>
    %c0_50 = arith.constant 0 : index
    %c0_51 = arith.constant 0 : index
    %c1 = arith.constant 1 : index
    %c1_52 = arith.constant 1 : index
    %c0_53 = arith.constant 0 : index
    %45 = vector.load %arg8[%c0_50, %c0_51, %c1, %c1_52, %c0_53] : memref<1x1x10x10x8xbf16, #tpu.memory_space<vmem>>, vector<1x1x8x8x8xbf16>
    %46 = vector.shape_cast %45 : vector<1x1x8x8x8xbf16> to vector<8x8x8xbf16>
    %47 = vector.shape_cast %44 : vector<8x8x8xbf16> to vector<1x1x8x8x8xbf16>
    tpu.vector_store %arg8[%c0_50, %c0_51, %c1, %c1_52, %c0_53], %47 {strides = array<i32>} : memref<1x1x10x10x8xbf16, #tpu.memory_space<vmem>>, vector<1x1x8x8x8xbf16>,
    %c0_54 = arith.constant 0 : index
    %c0_55 = arith.constant 0 : index
    %c0_56 = arith.constant 0 : index
    %c0_57 = arith.constant 0 : index
    %c0_58 = arith.constant 0 : index
    %48 = vector.load %arg8[%c0_54, %c0_55, %c0_56, %c0_57, %c0_58] : memref<1x1x10x10x8xbf16, #tpu.memory_space<vmem>>, vector<1x1x8x8x8xbf16>
    %49 = vector.shape_cast %48 : vector<1x1x8x8x8xbf16> to vector<8x8x8xbf16>
    %c0_59 = arith.constant 0 : index
    %c0_60 = arith.constant 0 : index
    %c0_61 = arith.constant 0 : index
    %c0_62 = arith.constant 0 : index
    %50 = vector.load %arg9[%c0_59, %c0_60, %c0_61, %c0_62] : memref<1x8x8x72xbf16, #tpu.memory_space<vmem>>, vector<1x8x8x8xbf16>
    %51 = vector.shape_cast %50 : vector<1x8x8x8xbf16> to vector<8x8x8xbf16>
    %52 = vector.shape_cast %49 : vector<8x8x8xbf16> to vector<1x8x8x8xbf16>
    tpu.vector_store %arg9[%c0_59, %c0_60, %c0_61, %c0_62], %52 {strides = array<i32>} : memref<1x8x8x72xbf16, #tpu.memory_space<vmem>>, vector<1x8x8x8xbf16>,
    %c0_63 = arith.constant 0 : index
    %c0_64 = arith.constant 0 : index
    %c0_65 = arith.constant 0 : index
    %c1_66 = arith.constant 1 : index
    %c0_67 = arith.constant 0 : index
    %53 = vector.load %arg8[%c0_63, %c0_64, %c0_65, %c1_66, %c0_67] : memref<1x1x10x10x8xbf16, #tpu.memory_space<vmem>>, vector<1x1x8x8x8xbf16>
    %54 = vector.shape_cast %53 : vector<1x1x8x8x8xbf16> to vector<8x8x8xbf16>
    %c0_68 = arith.constant 0 : index
    %c0_69 = arith.constant 0 : index
    %c0_70 = arith.constant 0 : index
    %c8 = arith.constant 8 : index
    %55 = vector.load %arg9[%c0_68, %c0_69, %c0_70, %c8] : memref<1x8x8x72xbf16, #tpu.memory_space<vmem>>, vector<1x8x8x8xbf16>
    %56 = vector.shape_cast %55 : vector<1x8x8x8xbf16> to vector<8x8x8xbf16>
    %57 = vector.shape_cast %54 : vector<8x8x8xbf16> to vector<1x8x8x8xbf16>
    tpu.vector_store %arg9[%c0_68, %c0_69, %c0_70, %c8], %57 {strides = array<i32>} : memref<1x8x8x72xbf16, #tpu.memory_space<vmem>>, vector<1x8x8x8xbf16>,
    %c0_71 = arith.constant 0 : index
    %c0_72 = arith.constant 0 : index
    %c0_73 = arith.constant 0 : index
    %c2 = arith.constant 2 : index
    %c0_74 = arith.constant 0 : index
    %58 = vector.load %arg8[%c0_71, %c0_72, %c0_73, %c2, %c0_74] : memref<1x1x10x10x8xbf16, #tpu.memory_space<vmem>>, vector<1x1x8x8x8xbf16>
    %59 = vector.shape_cast %58 : vector<1x1x8x8x8xbf16> to vector<8x8x8xbf16>
    %c0_75 = arith.constant 0 : index
    %c0_76 = arith.constant 0 : index
    %c0_77 = arith.constant 0 : index
    %c16 = arith.constant 16 : index
    %60 = vector.load %arg9[%c0_75, %c0_76, %c0_77, %c16] : memref<1x8x8x72xbf16, #tpu.memory_space<vmem>>, vector<1x8x8x8xbf16>
    %61 = vector.shape_cast %60 : vector<1x8x8x8xbf16> to vector<8x8x8xbf16>
    %62 = vector.shape_cast %59 : vector<8x8x8xbf16> to vector<1x8x8x8xbf16>
    tpu.vector_store %arg9[%c0_75, %c0_76, %c0_77, %c16], %62 {strides = array<i32>} : memref<1x8x8x72xbf16, #tpu.memory_space<vmem>>, vector<1x8x8x8xbf16>,
    %c0_78 = arith.constant 0 : index
    %c0_79 = arith.constant 0 : index
    %c1_80 = arith.constant 1 : index
    %c0_81 = arith.constant 0 : index
    %c0_82 = arith.constant 0 : index
    %63 = vector.load %arg8[%c0_78, %c0_79, %c1_80, %c0_81, %c0_82] : memref<1x1x10x10x8xbf16, #tpu.memory_space<vmem>>, vector<1x1x8x8x8xbf16>
    %64 = vector.shape_cast %63 : vector<1x1x8x8x8xbf16> to vector<8x8x8xbf16>
    %c0_83 = arith.constant 0 : index
    %c0_84 = arith.constant 0 : index
    %c0_85 = arith.constant 0 : index
    %c24 = arith.constant 24 : index
    %65 = vector.load %arg9[%c0_83, %c0_84, %c0_85, %c24] : memref<1x8x8x72xbf16, #tpu.memory_space<vmem>>, vector<1x8x8x8xbf16>
    %66 = vector.shape_cast %65 : vector<1x8x8x8xbf16> to vector<8x8x8xbf16>
    %67 = vector.shape_cast %64 : vector<8x8x8xbf16> to vector<1x8x8x8xbf16>
    tpu.vector_store %arg9[%c0_83, %c0_84, %c0_85, %c24], %67 {strides = array<i32>} : memref<1x8x8x72xbf16, #tpu.memory_space<vmem>>, vector<1x8x8x8xbf16>,
    %c0_86 = arith.constant 0 : index
    %c0_87 = arith.constant 0 : index
    %c1_88 = arith.constant 1 : index
    %c1_89 = arith.constant 1 : index
    %c0_90 = arith.constant 0 : index
    %68 = vector.load %arg8[%c0_86, %c0_87, %c1_88, %c1_89, %c0_90] : memref<1x1x10x10x8xbf16, #tpu.memory_space<vmem>>, vector<1x1x8x8x8xbf16>
    %69 = vector.shape_cast %68 : vector<1x1x8x8x8xbf16> to vector<8x8x8xbf16>
    %c0_91 = arith.constant 0 : index
    %c0_92 = arith.constant 0 : index
    %c0_93 = arith.constant 0 : index
    %c32 = arith.constant 32 : index
    %70 = vector.load %arg9[%c0_91, %c0_92, %c0_93, %c32] : memref<1x8x8x72xbf16, #tpu.memory_space<vmem>>, vector<1x8x8x8xbf16>
    %71 = vector.shape_cast %70 : vector<1x8x8x8xbf16> to vector<8x8x8xbf16>
    %72 = vector.shape_cast %69 : vector<8x8x8xbf16> to vector<1x8x8x8xbf16>
    tpu.vector_store %arg9[%c0_91, %c0_92, %c0_93, %c32], %72 {strides = array<i32>} : memref<1x8x8x72xbf16, #tpu.memory_space<vmem>>, vector<1x8x8x8xbf16>,
    %c0_94 = arith.constant 0 : index
    %c0_95 = arith.constant 0 : index
    %c1_96 = arith.constant 1 : index
    %c2_97 = arith.constant 2 : index
    %c0_98 = arith.constant 0 : index
    %73 = vector.load %arg8[%c0_94, %c0_95, %c1_96, %c2_97, %c0_98] : memref<1x1x10x10x8xbf16, #tpu.memory_space<vmem>>, vector<1x1x8x8x8xbf16>
    %74 = vector.shape_cast %73 : vector<1x1x8x8x8xbf16> to vector<8x8x8xbf16>
    %c0_99 = arith.constant 0 : index
    %c0_100 = arith.constant 0 : index
    %c0_101 = arith.constant 0 : index
    %c40 = arith.constant 40 : index
    %75 = vector.load %arg9[%c0_99, %c0_100, %c0_101, %c40] : memref<1x8x8x72xbf16, #tpu.memory_space<vmem>>, vector<1x8x8x8xbf16>
    %76 = vector.shape_cast %75 : vector<1x8x8x8xbf16> to vector<8x8x8xbf16>
    %77 = vector.shape_cast %74 : vector<8x8x8xbf16> to vector<1x8x8x8xbf16>
    tpu.vector_store %arg9[%c0_99, %c0_100, %c0_101, %c40], %77 {strides = array<i32>} : memref<1x8x8x72xbf16, #tpu.memory_space<vmem>>, vector<1x8x8x8xbf16>,
    %c0_102 = arith.constant 0 : index
    %c0_103 = arith.constant 0 : index
    %c2_104 = arith.constant 2 : index
    %c0_105 = arith.constant 0 : index
    %c0_106 = arith.constant 0 : index
    %78 = vector.load %arg8[%c0_102, %c0_103, %c2_104, %c0_105, %c0_106] : memref<1x1x10x10x8xbf16, #tpu.memory_space<vmem>>, vector<1x1x8x8x8xbf16>
    %79 = vector.shape_cast %78 : vector<1x1x8x8x8xbf16> to vector<8x8x8xbf16>
    %c0_107 = arith.constant 0 : index
    %c0_108 = arith.constant 0 : index
    %c0_109 = arith.constant 0 : index
    %c48 = arith.constant 48 : index
    %80 = vector.load %arg9[%c0_107, %c0_108, %c0_109, %c48] : memref<1x8x8x72xbf16, #tpu.memory_space<vmem>>, vector<1x8x8x8xbf16>
    %81 = vector.shape_cast %80 : vector<1x8x8x8xbf16> to vector<8x8x8xbf16>
    %82 = vector.shape_cast %79 : vector<8x8x8xbf16> to vector<1x8x8x8xbf16>
    tpu.vector_store %arg9[%c0_107, %c0_108, %c0_109, %c48], %82 {strides = array<i32>} : memref<1x8x8x72xbf16, #tpu.memory_space<vmem>>, vector<1x8x8x8xbf16>,
    %c0_110 = arith.constant 0 : index
    %c0_111 = arith.constant 0 : index
    %c2_112 = arith.constant 2 : index
    %c1_113 = arith.constant 1 : index
    %c0_114 = arith.constant 0 : index
    %83 = vector.load %arg8[%c0_110, %c0_111, %c2_112, %c1_113, %c0_114] : memref<1x1x10x10x8xbf16, #tpu.memory_space<vmem>>, vector<1x1x8x8x8xbf16>
    %84 = vector.shape_cast %83 : vector<1x1x8x8x8xbf16> to vector<8x8x8xbf16>
    %c0_115 = arith.constant 0 : index
    %c0_116 = arith.constant 0 : index
    %c0_117 = arith.constant 0 : index
    %c56 = arith.constant 56 : index
    %85 = vector.load %arg9[%c0_115, %c0_116, %c0_117, %c56] : memref<1x8x8x72xbf16, #tpu.memory_space<vmem>>, vector<1x8x8x8xbf16>
    %86 = vector.shape_cast %85 : vector<1x8x8x8xbf16> to vector<8x8x8xbf16>
    %87 = vector.shape_cast %84 : vector<8x8x8xbf16> to vector<1x8x8x8xbf16>
    tpu.vector_store %arg9[%c0_115, %c0_116, %c0_117, %c56], %87 {strides = array<i32>} : memref<1x8x8x72xbf16, #tpu.memory_space<vmem>>, vector<1x8x8x8xbf16>,
    %c0_118 = arith.constant 0 : index
    %c0_119 = arith.constant 0 : index
    %c2_120 = arith.constant 2 : index
    %c2_121 = arith.constant 2 : index
    %c0_122 = arith.constant 0 : index
    %88 = vector.load %arg8[%c0_118, %c0_119, %c2_120, %c2_121, %c0_122] : memref<1x1x10x10x8xbf16, #tpu.memory_space<vmem>>, vector<1x1x8x8x8xbf16>
    %89 = vector.shape_cast %88 : vector<1x1x8x8x8xbf16> to vector<8x8x8xbf16>
    %c0_123 = arith.constant 0 : index
    %c0_124 = arith.constant 0 : index
    %c0_125 = arith.constant 0 : index
    %c64 = arith.constant 64 : index
    %90 = vector.load %arg9[%c0_123, %c0_124, %c0_125, %c64] : memref<1x8x8x72xbf16, #tpu.memory_space<vmem>>, vector<1x8x8x8xbf16>
    %91 = vector.shape_cast %90 : vector<1x8x8x8xbf16> to vector<8x8x8xbf16>
    %92 = vector.shape_cast %89 : vector<8x8x8xbf16> to vector<1x8x8x8xbf16>
    tpu.vector_store %arg9[%c0_123, %c0_124, %c0_125, %c64], %92 {strides = array<i32>} : memref<1x8x8x72xbf16, #tpu.memory_space<vmem>>, vector<1x8x8x8xbf16>,
    %c0_126 = arith.constant 0 : index
    %c0_127 = arith.constant 0 : index
    %c0_128 = arith.constant 0 : index
    %c0_129 = arith.constant 0 : index
    %93 = vector.load %arg9[%c0_126, %c0_127, %c0_128, %c0_129] : memref<1x8x8x72xbf16, #tpu.memory_space<vmem>>, vector<1x8x8x72xbf16>
    %94 = vector.shape_cast %93 : vector<1x8x8x72xbf16> to vector<64x72xbf16>
    %c0_130 = arith.constant 0 : index
    %c0_131 = arith.constant 0 : index
    %95 = vector.load %arg2[%c0_130, %c0_131] : memref<72x8xbf16, #tpu.memory_space<vmem>>, vector<72x8xbf16>
    %cst_132 = arith.constant dense<0.000000e+00> : vector<64x8xf32>
    %96 = tpu.matmul %94, %95, %cst_132 {dimension_numbers = #tpu.dot_dimension_numbers<[1], [0], [0], [1], [0, 0, 1, 1], [], []>} : vector<64x72xbf16>, vector<72x8xbf16>, vector<64x8xf32> -> vector<64x8xf32>
    %97 = vector.broadcast %4 : vector<1x8xf32> to vector<64x8xf32>
    %98 = arith.addf %96, %97 : vector<64x8xf32>
    %cst_133 = arith.constant 0.000000e+00 : f32
    %99 = vector.broadcast %cst_133 : f32 to vector<64x8xf32>
    %100 = arith.cmpf ogt, %98, %99 : vector<64x8xf32>
    %cst_134 = arith.constant 1.000000e-01 : f32
    %101 = vector.broadcast %cst_134 : f32 to vector<64x8xf32>
    %102 = arith.mulf %101, %98 : vector<64x8xf32>
    %103 = arith.select %100, %98, %102 : vector<64x8xi1>, vector<64x8xf32>
    %104 = vector.shape_cast %103 : vector<64x8xf32> to vector<8x8x8xf32>
    %105 = arith.truncf %104 : vector<8x8x8xf32> to vector<8x8x8xbf16>
    %c0_135 = arith.constant 0 : index
    %c1_136 = arith.constant 1 : index
    %c1_137 = arith.constant 1 : index
    %c0_138 = arith.constant 0 : index
    %106 = vector.load %arg10[%c0_135, %c1_136, %c1_137, %c0_138] : memref<1x10x10x8xbf16, #tpu.memory_space<vmem>>, vector<1x8x8x8xbf16>
    %107 = vector.shape_cast %106 : vector<1x8x8x8xbf16> to vector<8x8x8xbf16>
    %108 = vector.shape_cast %105 : vector<8x8x8xbf16> to vector<1x8x8x8xbf16>
    tpu.vector_store %arg10[%c0_135, %c1_136, %c1_137, %c0_138], %108 {strides = array<i32>} : memref<1x10x10x8xbf16, #tpu.memory_space<vmem>>, vector<1x8x8x8xbf16>,
    %c0_139 = arith.constant 0 : index
    %c0_140 = arith.constant 0 : index
    %c0_141 = arith.constant 0 : index
    %c0_142 = arith.constant 0 : index
    %109 = vector.load %arg10[%c0_139, %c0_140, %c0_141, %c0_142] : memref<1x10x10x8xbf16, #tpu.memory_space<vmem>>, vector<1x8x8x8xbf16>
    %110 = vector.shape_cast %109 : vector<1x8x8x8xbf16> to vector<8x8x8xbf16>
    %c0_143 = arith.constant 0 : index
    %c0_144 = arith.constant 0 : index
    %c0_145 = arith.constant 0 : index
    %c0_146 = arith.constant 0 : index
    %111 = vector.load %arg11[%c0_143, %c0_144, %c0_145, %c0_146] : memref<1x8x8x72xbf16, #tpu.memory_space<vmem>>, vector<1x8x8x8xbf16>
    %112 = vector.shape_cast %111 : vector<1x8x8x8xbf16> to vector<8x8x8xbf16>
    %113 = vector.shape_cast %110 : vector<8x8x8xbf16> to vector<1x8x8x8xbf16>
    tpu.vector_store %arg11[%c0_143, %c0_144, %c0_145, %c0_146], %113 {strides = array<i32>} : memref<1x8x8x72xbf16, #tpu.memory_space<vmem>>, vector<1x8x8x8xbf16>,
    %c0_147 = arith.constant 0 : index
    %c0_148 = arith.constant 0 : index
    %c1_149 = arith.constant 1 : index
    %c0_150 = arith.constant 0 : index
    %114 = vector.load %arg10[%c0_147, %c0_148, %c1_149, %c0_150] : memref<1x10x10x8xbf16, #tpu.memory_space<vmem>>, vector<1x8x8x8xbf16>
    %115 = vector.shape_cast %114 : vector<1x8x8x8xbf16> to vector<8x8x8xbf16>
    %c0_151 = arith.constant 0 : index
    %c0_152 = arith.constant 0 : index
    %c0_153 = arith.constant 0 : index
    %c8_154 = arith.constant 8 : index
    %116 = vector.load %arg11[%c0_151, %c0_152, %c0_153, %c8_154] : memref<1x8x8x72xbf16, #tpu.memory_space<vmem>>, vector<1x8x8x8xbf16>
    %117 = vector.shape_cast %116 : vector<1x8x8x8xbf16> to vector<8x8x8xbf16>
    %118 = vector.shape_cast %115 : vector<8x8x8xbf16> to vector<1x8x8x8xbf16>
    tpu.vector_store %arg11[%c0_151, %c0_152, %c0_153, %c8_154], %118 {strides = array<i32>} : memref<1x8x8x72xbf16, #tpu.memory_space<vmem>>, vector<1x8x8x8xbf16>,
    %c0_155 = arith.constant 0 : index
    %c0_156 = arith.constant 0 : index
    %c2_157 = arith.constant 2 : index
    %c0_158 = arith.constant 0 : index
    %119 = vector.load %arg10[%c0_155, %c0_156, %c2_157, %c0_158] : memref<1x10x10x8xbf16, #tpu.memory_space<vmem>>, vector<1x8x8x8xbf16>
    %120 = vector.shape_cast %119 : vector<1x8x8x8xbf16> to vector<8x8x8xbf16>
    %c0_159 = arith.constant 0 : index
    %c0_160 = arith.constant 0 : index
    %c0_161 = arith.constant 0 : index
    %c16_162 = arith.constant 16 : index
    %121 = vector.load %arg11[%c0_159, %c0_160, %c0_161, %c16_162] : memref<1x8x8x72xbf16, #tpu.memory_space<vmem>>, vector<1x8x8x8xbf16>
    %122 = vector.shape_cast %121 : vector<1x8x8x8xbf16> to vector<8x8x8xbf16>
    %123 = vector.shape_cast %120 : vector<8x8x8xbf16> to vector<1x8x8x8xbf16>
    tpu.vector_store %arg11[%c0_159, %c0_160, %c0_161, %c16_162], %123 {strides = array<i32>} : memref<1x8x8x72xbf16, #tpu.memory_space<vmem>>, vector<1x8x8x8xbf16>,
    %c0_163 = arith.constant 0 : index
    %c1_164 = arith.constant 1 : index
    %c0_165 = arith.constant 0 : index
    %c0_166 = arith.constant 0 : index
    %124 = vector.load %arg10[%c0_163, %c1_164, %c0_165, %c0_166] : memref<1x10x10x8xbf16, #tpu.memory_space<vmem>>, vector<1x8x8x8xbf16>
    %125 = vector.shape_cast %124 : vector<1x8x8x8xbf16> to vector<8x8x8xbf16>
    %c0_167 = arith.constant 0 : index
    %c0_168 = arith.constant 0 : index
    %c0_169 = arith.constant 0 : index
    %c24_170 = arith.constant 24 : index
    %126 = vector.load %arg11[%c0_167, %c0_168, %c0_169, %c24_170] : memref<1x8x8x72xbf16, #tpu.memory_space<vmem>>, vector<1x8x8x8xbf16>
    %127 = vector.shape_cast %126 : vector<1x8x8x8xbf16> to vector<8x8x8xbf16>
    %128 = vector.shape_cast %125 : vector<8x8x8xbf16> to vector<1x8x8x8xbf16>
    tpu.vector_store %arg11[%c0_167, %c0_168, %c0_169, %c24_170], %128 {strides = array<i32>} : memref<1x8x8x72xbf16, #tpu.memory_space<vmem>>, vector<1x8x8x8xbf16>,
    %c0_171 = arith.constant 0 : index
    %c1_172 = arith.constant 1 : index
    %c1_173 = arith.constant 1 : index
    %c0_174 = arith.constant 0 : index
    %129 = vector.load %arg10[%c0_171, %c1_172, %c1_173, %c0_174] : memref<1x10x10x8xbf16, #tpu.memory_space<vmem>>, vector<1x8x8x8xbf16>
    %130 = vector.shape_cast %129 : vector<1x8x8x8xbf16> to vector<8x8x8xbf16>
    %c0_175 = arith.constant 0 : index
    %c0_176 = arith.constant 0 : index
    %c0_177 = arith.constant 0 : index
    %c32_178 = arith.constant 32 : index
    %131 = vector.load %arg11[%c0_175, %c0_176, %c0_177, %c32_178] : memref<1x8x8x72xbf16, #tpu.memory_space<vmem>>, vector<1x8x8x8xbf16>
    %132 = vector.shape_cast %131 : vector<1x8x8x8xbf16> to vector<8x8x8xbf16>
    %133 = vector.shape_cast %130 : vector<8x8x8xbf16> to vector<1x8x8x8xbf16>
    tpu.vector_store %arg11[%c0_175, %c0_176, %c0_177, %c32_178], %133 {strides = array<i32>} : memref<1x8x8x72xbf16, #tpu.memory_space<vmem>>, vector<1x8x8x8xbf16>,
    %c0_179 = arith.constant 0 : index
    %c1_180 = arith.constant 1 : index
    %c2_181 = arith.constant 2 : index
    %c0_182 = arith.constant 0 : index
    %134 = vector.load %arg10[%c0_179, %c1_180, %c2_181, %c0_182] : memref<1x10x10x8xbf16, #tpu.memory_space<vmem>>, vector<1x8x8x8xbf16>
    %135 = vector.shape_cast %134 : vector<1x8x8x8xbf16> to vector<8x8x8xbf16>
    %c0_183 = arith.constant 0 : index
    %c0_184 = arith.constant 0 : index
    %c0_185 = arith.constant 0 : index
    %c40_186 = arith.constant 40 : index
    %136 = vector.load %arg11[%c0_183, %c0_184, %c0_185, %c40_186] : memref<1x8x8x72xbf16, #tpu.memory_space<vmem>>, vector<1x8x8x8xbf16>
    %137 = vector.shape_cast %136 : vector<1x8x8x8xbf16> to vector<8x8x8xbf16>
    %138 = vector.shape_cast %135 : vector<8x8x8xbf16> to vector<1x8x8x8xbf16>
    tpu.vector_store %arg11[%c0_183, %c0_184, %c0_185, %c40_186], %138 {strides = array<i32>} : memref<1x8x8x72xbf16, #tpu.memory_space<vmem>>, vector<1x8x8x8xbf16>,
    %c0_187 = arith.constant 0 : index
    %c2_188 = arith.constant 2 : index
    %c0_189 = arith.constant 0 : index
    %c0_190 = arith.constant 0 : index
    %139 = vector.load %arg10[%c0_187, %c2_188, %c0_189, %c0_190] : memref<1x10x10x8xbf16, #tpu.memory_space<vmem>>, vector<1x8x8x8xbf16>
    %140 = vector.shape_cast %139 : vector<1x8x8x8xbf16> to vector<8x8x8xbf16>
    %c0_191 = arith.constant 0 : index
    %c0_192 = arith.constant 0 : index
    %c0_193 = arith.constant 0 : index
    %c48_194 = arith.constant 48 : index
    %141 = vector.load %arg11[%c0_191, %c0_192, %c0_193, %c48_194] : memref<1x8x8x72xbf16, #tpu.memory_space<vmem>>, vector<1x8x8x8xbf16>
    %142 = vector.shape_cast %141 : vector<1x8x8x8xbf16> to vector<8x8x8xbf16>
    %143 = vector.shape_cast %140 : vector<8x8x8xbf16> to vector<1x8x8x8xbf16>
    tpu.vector_store %arg11[%c0_191, %c0_192, %c0_193, %c48_194], %143 {strides = array<i32>} : memref<1x8x8x72xbf16, #tpu.memory_space<vmem>>, vector<1x8x8x8xbf16>,
    %c0_195 = arith.constant 0 : index
    %c2_196 = arith.constant 2 : index
    %c1_197 = arith.constant 1 : index
    %c0_198 = arith.constant 0 : index
    %144 = vector.load %arg10[%c0_195, %c2_196, %c1_197, %c0_198] : memref<1x10x10x8xbf16, #tpu.memory_space<vmem>>, vector<1x8x8x8xbf16>
    %145 = vector.shape_cast %144 : vector<1x8x8x8xbf16> to vector<8x8x8xbf16>
    %c0_199 = arith.constant 0 : index
    %c0_200 = arith.constant 0 : index
    %c0_201 = arith.constant 0 : index
    %c56_202 = arith.constant 56 : index
    %146 = vector.load %arg11[%c0_199, %c0_200, %c0_201, %c56_202] : memref<1x8x8x72xbf16, #tpu.memory_space<vmem>>, vector<1x8x8x8xbf16>
    %147 = vector.shape_cast %146 : vector<1x8x8x8xbf16> to vector<8x8x8xbf16>
    %148 = vector.shape_cast %145 : vector<8x8x8xbf16> to vector<1x8x8x8xbf16>
    tpu.vector_store %arg11[%c0_199, %c0_200, %c0_201, %c56_202], %148 {strides = array<i32>} : memref<1x8x8x72xbf16, #tpu.memory_space<vmem>>, vector<1x8x8x8xbf16>,
    %c0_203 = arith.constant 0 : index
    %c2_204 = arith.constant 2 : index
    %c2_205 = arith.constant 2 : index
    %c0_206 = arith.constant 0 : index
    %149 = vector.load %arg10[%c0_203, %c2_204, %c2_205, %c0_206] : memref<1x10x10x8xbf16, #tpu.memory_space<vmem>>, vector<1x8x8x8xbf16>
    %150 = vector.shape_cast %149 : vector<1x8x8x8xbf16> to vector<8x8x8xbf16>
    %c0_207 = arith.constant 0 : index
    %c0_208 = arith.constant 0 : index
    %c0_209 = arith.constant 0 : index
    %c64_210 = arith.constant 64 : index
    %151 = vector.load %arg11[%c0_207, %c0_208, %c0_209, %c64_210] : memref<1x8x8x72xbf16, #tpu.memory_space<vmem>>, vector<1x8x8x8xbf16>
    %152 = vector.shape_cast %151 : vector<1x8x8x8xbf16> to vector<8x8x8xbf16>
    %153 = vector.shape_cast %150 : vector<8x8x8xbf16> to vector<1x8x8x8xbf16>
    tpu.vector_store %arg11[%c0_207, %c0_208, %c0_209, %c64_210], %153 {strides = array<i32>} : memref<1x8x8x72xbf16, #tpu.memory_space<vmem>>, vector<1x8x8x8xbf16>,
    %c0_211 = arith.constant 0 : index
    %c0_212 = arith.constant 0 : index
    %c0_213 = arith.constant 0 : index
    %c0_214 = arith.constant 0 : index
    %154 = vector.load %arg11[%c0_211, %c0_212, %c0_213, %c0_214] : memref<1x8x8x72xbf16, #tpu.memory_space<vmem>>, vector<1x8x8x72xbf16>
    %155 = vector.shape_cast %154 : vector<1x8x8x72xbf16> to vector<64x72xbf16>
    %c0_215 = arith.constant 0 : index
    %c0_216 = arith.constant 0 : index
    %156 = vector.load %arg3[%c0_215, %c0_216] : memref<72x8xbf16, #tpu.memory_space<vmem>>, vector<72x8xbf16>
    %cst_217 = arith.constant dense<0.000000e+00> : vector<64x8xf32>
    %157 = tpu.matmul %155, %156, %cst_217 {dimension_numbers = #tpu.dot_dimension_numbers<[1], [0], [0], [1], [0, 0, 1, 1], [], []>} : vector<64x72xbf16>, vector<72x8xbf16>, vector<64x8xf32> -> vector<64x8xf32>
    %c0_218 = arith.constant 0 : index
    %c0_219 = arith.constant 0 : index
    %c0_220 = arith.constant 0 : index
    %c0_221 = arith.constant 0 : index
    %c0_222 = arith.constant 0 : index
    %158 = vector.load %arg1[%c0_218, %c0_219, %c0_220, %c0_221, %c0_222] : memref<1x1x8x8x8xf32, #tpu.memory_space<vmem>>, vector<1x1x8x8x8xf32>
    %159 = vector.shape_cast %158 : vector<1x1x8x8x8xf32> to vector<64x8xf32>
    %160 = arith.addf %157, %159 : vector<64x8xf32>
    %161 = vector.shape_cast %160 : vector<64x8xf32> to vector<1x64x8xf32>
    %c0_223 = arith.constant 0 : index
    %c0_224 = arith.constant 0 : index
    %c0_225 = arith.constant 0 : index
    %162 = vector.load %arg7[%c0_223, %c0_224, %c0_225] : memref<1x64x8xf32, #tpu.memory_space<vmem>>, vector<1x64x8xf32>
    tpu.vector_store %arg7[%c0_223, %c0_224, %c0_225], %161 {strides = array<i32>} : memref<1x64x8xf32, #tpu.memory_space<vmem>>, vector<1x64x8xf32>,
    return
  }
  func.func @transform_0(%arg0: i32) -> (i32, i32, i32, i32, i32) {
    %c0_i32 = arith.constant 0 : i32
    %c0_i32_0 = arith.constant 0 : i32
    %c0_i32_1 = arith.constant 0 : i32
    %c0_i32_2 = arith.constant 0 : i32
    %c0_i32_3 = arith.constant 0 : i32
    return %arg0, %c0_i32, %c0_i32_0, %c0_i32_1, %c0_i32_2 : i32, i32, i32, i32, i32
  }
  func.func @transform_1(%arg0: i32) -> (i32, i32) {
    %c0_i32 = arith.constant 0 : i32
    %c0_i32_0 = arith.constant 0 : i32
    %c0_i32_1 = arith.constant 0 : i32
    return %c0_i32, %c0_i32_0 : i32, i32
  }
  func.func @transform_2(%arg0: i32) -> (i32, i32) {
    %c0_i32 = arith.constant 0 : i32
    %c0_i32_0 = arith.constant 0 : i32
    %c0_i32_1 = arith.constant 0 : i32
    return %c0_i32, %c0_i32_0 : i32, i32
  }
  func.func @transform_3(%arg0: i32) -> (i32, i32) {
    %c0_i32 = arith.constant 0 : i32
    %c0_i32_0 = arith.constant 0 : i32
    %c0_i32_1 = arith.constant 0 : i32
    return %c0_i32, %c0_i32_0 : i32, i32
  }
  func.func @transform_4(%arg0: i32) -> (i32, i32) {
    %c0_i32 = arith.constant 0 : i32
    %c0_i32_0 = arith.constant 0 : i32
    %c0_i32_1 = arith.constant 0 : i32
    return %c0_i32, %c0_i32_0 : i32, i32
  }
  func.func @transform_5(%arg0: i32) -> (i32, i32) {
    %c0_i32 = arith.constant 0 : i32
    %c0_i32_0 = arith.constant 0 : i32
    %c0_i32_1 = arith.constant 0 : i32
    return %c0_i32, %c0_i32_0 : i32, i32
  }
  func.func @transform_6(%arg0: i32) -> (i32, i32, i32) {
    %c0_i32 = arith.constant 0 : i32
    %c0_i32_0 = arith.constant 0 : i32
    %c0_i32_1 = arith.constant 0 : i32
    return %arg0, %c0_i32, %c0_i32_0 : i32, i32, i32
  }
}

</mosaic_0001>

<bundles_post_ra>
// kernel: network_block_forward.3
= control target key start
LH: loop header
LB: loop body
LE: loop exit
PB: predicated region body
PF: predicated region fallthrough
CT: control target
= control target key end

     0   :  { %s3047_s21 = smov 0   ;;  %s3898_s0 = inlined_call_operand.vmem [shape: f32[2,1,8,8,8], index: 0, kind: input, shape index: {}]   ;;  %s3899_s1 = inlined_call_operand.vmem [shape: bf16[72,8], index: 1, kind: input, shape index: {}]   ;;  %s3900_s2 = inlined_call_operand.vmem [shape: bf16[72,8], index: 2, kind: input, shape index: {}]   ;;  %s3901_s3 = inlined_call_operand.vmem [shape: f32[1,8], index: 3, kind: input, shape index: {}]   ;;  %s3902_s4 = inlined_call_operand.vmem [shape: f32[1,8], index: 4, kind: input, shape index: {}]   ;;  %s3903_s5 = inlined_call_operand.vmem [shape: f32[1,8], index: 5, kind: input, shape index: {}]   ;;  %s3904_s6 = inlined_call_operand.vmem [shape: f32[2,64,8], index: 6, kind: output, shape index: {}]  }
   0x1 LB: > { %s2816_s22 = sadd.s32 4294967295, %s3001_s21   ;;  %p2820_p0 = scmp.ge.s32.totalorder %s3001_s21, 1  ;;  %s3001_s21 = sphi %s3047_s21, %s16_s21  }
   0x2   : > { %p212_p1 = scmp.lt.s32.totalorder %s3001_s21, 3 }
   0x4   : > { %p213_p2 = pnand %p2820_p0, %p212_p1 }
   0x5   : > { %p242_p3 = scmp.lt.s32.totalorder (!%p213_p2), %s2816_s22, 1  ;;  %s3004_s7 = smov (!%p213_p2), 16  }
   0x6   : > { %216 = sbr.rel (%p213_p2) target bundleno = 833 (0x341), region = 44  ;;  %s3005_s8 = smov (!%p213_p2), 8  }
   0x7   : > { %s3006_s9 = smov (!%p213_p2), 48   ;;  %s3007_s10 = smov (!%p213_p2), 40  }
   0x8   : > { %s3008_s11 = smov (!%p213_p2), 24   ;;  %s3009_s12 = smov (!%p213_p2), 64  }
   0x9   : > { %s3010_s13 = smov (!%p213_p2), 32   ;;  %s3011_s14 = smov (!%p213_p2), 56  }
   0xb   : > { %vm256_vm0 = vcmask 60416   ;;  %vm258_vm1 = vcmask 57344   ;;  %v3003_v0 = vmov 0   ;;  %vm264_vm2 = vsmask.f32 256  ;;  %s3923_s22 = smov (!%p242_p3, %s2816_s22), 1 }
   0xc   : > { %257 = vst.msk [vmem:[#allocation2] sm:$0xf] %vm256_vm0, %v3003_v0  ;;  %vm296_vm3 = vsmask.f32 7938  ;;  %v272_v1 = vld [vmem:[#allocation2 + $0x10] sm:$0x1]  ;;  %vm3060_vm4 = vmand %vm258_vm1, %vm264_vm2 }
   0xd   : > { %259 = vst.msk [vmem:[#allocation2 + $0x4] sm:$0x1] %vm258_vm1, %v3003_v0  ;;  %v273_v3 = vsel %vm3060_vm4, 0, %v272_v1  ;;  %v3073_v4 = vld [vmem:[%s3901_s3] ss:$0 sm:$0xff]  ;;  %vm3077_vm5 = vmand %vm258_vm1, %vm296_vm3  ;;  %vm798_vm6 = vcmask 1042432  }
   0xe   : > { %261 = vst.msk [vmem:[#allocation2 + $0x48] sm:$0xf] %vm256_vm0, %v3003_v0  ;;  %s2947_s25 = sshll.u32 %s3923_s22, 6  ;;  %v304_v6 = vld [vmem:[#allocation2 + $0x14] sm:$0x1]  ;;  %vm799_vm7 = vcmask 1046532   ;;  %vm3142_vm15 = vmand %vm256_vm0, %vm296_vm3 }
   0xf   : > { %262 = vst.msk [vmem:[#allocation2 + $0x4c] sm:$0x1] %vm258_vm1, %v3003_v0  ;;  %s3089_s28 = scalar_lea.vmem %s3898_s0, %s2947_s25  ;;  %v3094_v8 = vld [vmem:[%s3902_s4] ss:$0 sm:$0xff]  ;;  %v305_v13 = vsel %vm3077_vm5, 0, %v304_v6  ;;  %vm3123_vm12 = vmor %vm798_vm6, %vm799_vm7  ;;  %s3870_s19 = scalar_lea.vmem %s3904_s6, %s2947_s25 }
  0x10   : > { %328 = vst.msk [vmem:[#allocation4] sm:$0xf] %vm256_vm0, %v3003_v0  ;;  %v394_v12 = vld [vmem:[%s3089_s28 + $0x8] sm:$0xff]  ;;  %v393_v14 = vld [vmem:[%s3089_s28] sm:$0xff]  ;;  %v275_v22 = vld [vmem:[#allocation2 + $0x18] sm:$0x1] }
  0x11   : > { %329 = vst.msk [vmem:[#allocation4 + $0x4] sm:$0x1] %vm258_vm1, %v3003_v0  ;;  %v405_v16 = vmul.f32 %v3073_v4, %v394_v12  ;;  %v269_v17 = vld [vmem:[#allocation2 + $0x8] sm:$0x1]  ;;  %v301_v18 = vld [vmem:[#allocation2 + $0xc] sm:$0x1]  ;;  %v404_v19 = vmul.f32 %v3073_v4, %v393_v14 }
  0x12   : > { %331 = vst.msk [vmem:[#allocation4 + $0x48] sm:$0xf] %vm256_vm0, %v3003_v0  ;;  %v270_v20 = vsel %vm3060_vm4, 0, %v269_v17  ;;  %v302_v21 = vsel %vm3077_vm5, 0, %v301_v18  ;;  %v276_v25 = vsel %vm3060_vm4, 0, %v275_v22  ;;  %v395_v27 = vld [vmem:[%s3089_s28 + $0x10] sm:$0xff] }
  0x13   : > { %332 = vst.msk [vmem:[#allocation4 + $0x4c] sm:$0x1] %vm258_vm1, %v3003_v0  ;;  %v266_v7 = vld [vmem:[#allocation2] sm:$0x1]  ;;  %v766_v15 = vld [vmem:[#allocation2] sm:$0xe]  ;;  %v416_v23 = vadd.f32 %v3094_v8, %v405_v16  ;;  %v415_v24 = vadd.f32 %v3094_v8, %v404_v19  ;;  %v406_v29 = vmul.f32 %v3073_v4, %v395_v27 }
  0x14   : > { %v298_v9 = vld [vmem:[#allocation2 + $0x4] sm:$0x1]  ;;  %v267_v10 = vsel %vm3060_vm4, 0, %v266_v7  ;;  %274 = vst [vmem:[#allocation2 + $0x10] sm:$0x1] %v273_v3  ;;  %v396_v30 = vld [vmem:[%s3089_s28 + $0x18] sm:$0xff] }
  0x15   : > { %v299_v11 = vsel %vm3077_vm5, 0, %v298_v9  ;;  %268 = vst [vmem:[#allocation2] sm:$0x1] %v267_v10  ;;  %v307_v26 = vld [vmem:[#allocation2 + $0x1c] sm:$0x1]  ;;  %vm424_vm9 = vcmp.gt.f32.partialorder %v416_v23, 0.0  ;;  %v417_v34 = vadd.f32 %v3094_v8, %v406_v29  ;;  %v407_v39 = vmul.f32 %v3073_v4, %v396_v30 }
  0x16   : > { %300 = vst [vmem:[#allocation2 + $0x4] sm:$0x1] %v299_v11  ;;  %vm618_vm8 = vsmask.f32 3328  ;;  %v308_v28 = vsel %vm3077_vm5, 0, %v307_v26  ;;  %vm423_vm10 = vcmp.gt.f32.partialorder %v415_v24, 0.0 }
  0x17   : > { %306 = vst [vmem:[#allocation2 + $0x14] sm:$0x1] %v305_v13  ;;  %v432_v31 = vmul.f32 0.1, %v416_v23  ;;  %v431_v32 = vmul.f32 0.1, %v415_v24  ;;  %v418_v1 = vadd.f32 %v3094_v8, %v407_v39 }
  0x18   : > { %271 = vst [vmem:[#allocation2 + $0x8] sm:$0x1] %v270_v20  ;;  %v2825_v33 = vrot.slane %v766_v15, 9  ;;  %vm619_vm11 = vsmask.f32 7440  ;;  %vm425_vm13 = vcmp.gt.f32.partialorder %v417_v34, 0.0 }
  0x19   : > { %303 = vst [vmem:[#allocation2 + $0xc] sm:$0x1] %v302_v21  ;;  %v440_v36 = vsel %vm424_vm9, %v416_v23, %v432_v31  ;;  %v439_v37 = vsel %vm423_vm10, %v415_v24, %v431_v32  ;;  %v278_v38 = vld [vmem:[#allocation2 + $0x20] sm:$0x1]  ;;  %vm3135_vm14 = vmor %vm618_vm8, %vm619_vm11  ;;  %v433_v0 = vmul.f32 0.1, %v417_v34 }
  0x1a   : > { %277 = vst [vmem:[#allocation2 + $0x18] sm:$0x1] %v276_v25  ;;  %v448_v45 = vpack.c.bf16 %v440_v36, %v440_v36  ;;  %v447_v46 = vpack.c.bf16 %v439_v37, %v439_v37  ;;  %v279_v49 = vsel %vm3060_vm4, 0, %v278_v38  ;;  %v397_v60 = vld [vmem:[%s3089_s28 + $0x20] sm:$0xff]  ;;  %v281_v20 = vld [vmem:[#allocation2 + $0x28] sm:$0x1] }
  0x1b   : > { %309 = vst [vmem:[#allocation2 + $0x1c] sm:$0x1] %v308_v28  ;;  %v544_v56 = vld [vmem:[#allocation2 + $0x10] sm:$0xf]  ;;  %v310_v9 = vld [vmem:[#allocation2 + $0x24] sm:$0x1]  ;;  %v408_v10 = vmul.f32 %v3073_v4, %v397_v60  ;;  %v441_v15 = vsel %vm425_vm13, %v417_v34, %v433_v0 }
  0x1c   : > { %v602_v35 = vld [vmem:[#allocation2] sm:$0xf]  ;;  %v464_v52 = vshrl.u32 %v448_v45, 16  ;;  %v467_v53 = vshll.u32 %v448_v45, 16  ;;  %v456_v58 = vshrl.u32 %v447_v46, 16  ;;  %v459_v59 = vshll.u32 %v447_v46, 16 }
  0x1d   : > { %v767_v40 = vld [vmem:[#allocation2 + $0x4] sm:$0x1]  ;;  %v622_v43 = vshrl.u32 %v602_v35, 16  ;;  %v625_v44 = vshll.u32 %v602_v35, 16  ;;  %280 = vst [vmem:[#allocation2 + $0x20] sm:$0x1] %v279_v49  ;;  %v449_v18 = vpack.c.bf16 %v441_v15, %v441_v15  ;;  %v419_v32 = vadd.f32 %v3094_v8, %v408_v10 }
  0x1e   : > { %v603_v42 = vld [vmem:[#allocation2 + $0x4] sm:$0x1]  ;;  %v803_v47 = vrot.slane %v767_v40, 5  ;;  %v547_v57 = vld [vmem:[#allocation2 + $0x14] sm:$0x1]  ;;  %v466_v63 = vrot.slane %v464_v52, 7 }
  0x1f   : > { %v631_v48 = vshll.u32 %v603_v42, 16  ;;  %v624_v50 = vrot.slane %v622_v43, 4  ;;  %v627_v51 = vrot.slane %v625_v44, 5  ;;  %v458_v6 = vrot.slane %v456_v58, 7  ;;  %v538_v7 = vld [vmem:[#allocation2 + $0x8] sm:$0xf] }
  0x20   : > { %v804_v54 = vsel %vm3123_vm12, %v2825_v33, %v803_v47  ;;  %v469_v12 = vor.u32 %v467_v53, %v466_v63  ;;  %v470_v13 = vrot.slane %v466_v63, 4  ;;  %v541_v14 = vld [vmem:[#allocation2 + $0xc] sm:$0x1]  ;;  %v311_v19 = vsel %vm3077_vm5, 0, %v310_v9 }
  0x21   : > { %v633_v55 = vrot.slane %v631_v48, 5  ;;  %833 = vrot.lane.b32.xlu1 %v804_v54, %s3004_s7  ;;  %v628_v62 = vor.u32 %v627_v51, %v624_v50  ;;  %v461_v16 = vor.u32 %v459_v59, %v458_v6  ;;  %v462_v17 = vrot.slane %v458_v6, 4  ;;  %312 = vst [vmem:[#allocation2 + $0x24] sm:$0x1] %v311_v19  ;;  %v313_v24 = vld [vmem:[#allocation2 + $0x2c] sm:$0x1] }
  0x22   : > { %v545_v22 = vsel %vm3142_vm15, %v469_v12, %v544_v56  ;;  %v548_v23 = vsel %vm3060_vm4, %v470_v13, %v547_v57  ;;  %vm426_vm1 = vcmp.gt.f32.partialorder %v418_v1, 0.0  ;;  %v472_v27 = vshrl.u32 %v449_v18, 16  ;;  %v550_v29 = vld [vmem:[#allocation2 + $0x18] sm:$0xf]  ;;  %v553_v34 = vld [vmem:[#allocation2 + $0x1c] sm:$0x1] }
  0x23   : > { %v629_v11 = vrot.slane %v628_v62, 4  ;;  %546 = vst [vmem:[#allocation2 + $0x10] sm:$0xf] %v545_v22  ;;  %v539_v25 = vsel %vm3142_vm15, %v461_v16, %v538_v7  ;;  %v542_v26 = vsel %vm3060_vm4, %v462_v17, %v541_v14  ;;  %v475_v28 = vshll.u32 %v449_v18, 16 }
  0x24   : > { %549 = vst [vmem:[#allocation2 + $0x14] sm:$0x1] %v548_v23  ;;  %v434_v30 = vmul.f32 0.1, %v418_v1  ;;  %v282_v31 = vsel %vm3060_vm4, 0, %v281_v20  ;;  %v474_v33 = vrot.slane %v472_v27, 7 }
  0x25   : > { %v634_v21 = vsel %vm3135_vm14, %v629_v11, %v633_v55  ;;  %540 = vst [vmem:[#allocation2 + $0x8] sm:$0xf] %v539_v25  ;;  %v314_v35 = vsel %vm3077_vm5, 0, %v313_v24  ;;  %vm427_vm2 = vcmp.gt.f32.partialorder %v419_v32, 0.0  ;;  %v435_v37 = vmul.f32 0.1, %v419_v32 }
  0x26   : > { %733 = vrot.lane.b32.xlu0 %v634_v21, %s3005_s8  ;;  %543 = vst [vmem:[#allocation2 + $0xc] sm:$0x1] %v542_v26  ;;  %v442_v36 = vsel %vm426_vm1, %v418_v1, %v434_v30  ;;  %v477_v38 = vor.u32 %v475_v28, %v474_v33  ;;  %v478_v39 = vrot.slane %v474_v33, 4  ;;  %v556_v62 = vld [vmem:[#allocation2 + $0x20] sm:$0xf]  ;;  %vm757_vm8 = vcmask 126016  }
  0x27   : > { %v450_v40 = vpack.c.bf16 %v442_v36, %v442_v36  ;;  %283 = vst [vmem:[#allocation2 + $0x28] sm:$0x1] %v282_v31  ;;  %v443_v42 = vsel %vm427_vm2, %v419_v32, %v435_v37  ;;  %vm857_vm9 = vcmask 191616   ;;  %vm906_vm10 = vcmask 257216  }
  0x28   : > { %315 = vst [vmem:[#allocation2 + $0x2c] sm:$0x1] %v314_v35  ;;  %v551_v43 = vsel %vm3142_vm15, %v477_v38, %v550_v29  ;;  %v554_v44 = vsel %vm3060_vm4, %v478_v39, %v553_v34  ;;  %v3172_v55 = vpack.c.bf16 %v443_v42, %v443_v42  ;;  %v559_v9 = vld [vmem:[#allocation2 + $0x24] sm:$0x1]  ;;  %v398_v39 = vld [vmem:[%s3089_s28 + $0x28] sm:$0xff]  ;;  %vm3905_vm11 = vcmask 1043456  }
  0x29   : > { %v480_v45 = vshrl.u32 %v450_v40, 16  ;;  %v483_v46 = vshll.u32 %v450_v40, 16  ;;  %552 = vst [vmem:[#allocation2 + $0x18] sm:$0xf] %v551_v43  ;;  %vm1067_vm13 = vcmask 322816   ;;  %vm1164_vm1 = vcmask 388416  }
  0x2a   : > { %v1174_v47 = vld [vmem:[#allocation2 + $0x10] sm:$0xf]  ;;  %555 = vst [vmem:[#allocation2 + $0x1c] sm:$0x1] %v554_v44  ;;  %v488_v19 = vshrl.u32 %v3172_v55, 16  ;;  %vm1214_vm2 = vcmask 454016  }
  0x2b   : > { %v1078_v48 = vld [vmem:[#allocation2 + $0x10] sm:$0xe]  ;;  %1190 = vrot.lane.b32.xlu1 %v1174_v47, %s3006_s9  ;;  %v1079_v49 = vld [vmem:[#allocation2 + $0x14] sm:$0x1]  ;;  %v482_v51 = vrot.slane %v480_v45, 7 }
  0x2c   : > { %v2834_v50 = vrot.slane %v1078_v48, 9  ;;  %v1114_v52 = vrot.slane %v1079_v49, 5  ;;  %v768_v53 = vld [vmem:[#allocation2 + $0x8] sm:$0xe]  ;;  %v917_v54 = vld [vmem:[#allocation2 + $0x10] sm:$0xf] }
  0x2d   : > { %v769_v56 = vld [vmem:[#allocation2 + $0xc] sm:$0x1]  ;;  %v2826_v57 = vrot.slane %v768_v53, 9  ;;  %v918_v58 = vld [vmem:[#allocation2 + $0x14] sm:$0x1]  ;;  %v946_v59 = vshrl.u32 %v917_v54, 16  ;;  %v485_v60 = vor.u32 %v483_v46, %v482_v51  ;;  %v409_v53 = vmul.f32 %v3073_v4, %v398_v39 }
  0x2e   : > { %v1115_v63 = vsel %vm3123_vm12, %v2834_v50, %v1114_v52  ;;  %v807_v0 = vrot.slane %v769_v56, 5  ;;  %v949_v1 = vshll.u32 %v917_v54, 16  ;;  %v955_v6 = vshll.u32 %v918_v58, 16  ;;  %v604_v7 = vld [vmem:[#allocation2 + $0x8] sm:$0xf] }
  0x2f   : > { %1142 = vrot.lane.b32.xlu0 %v1115_v63, %s3007_s10  ;;  %v948_v10 = vrot.slane %v946_v59, 4  ;;  %v605_v11 = vld [vmem:[#allocation2 + $0xc] sm:$0x1]  ;;  %v636_v12 = vshrl.u32 %v604_v7, 16  ;;  %v639_v13 = vshll.u32 %v604_v7, 16  ;;  %v486_v14 = vrot.slane %v482_v51, 4 }
  0x30   : > { %v808_v15 = vsel %vm3123_vm12, %v2826_v57, %v807_v0  ;;  %v951_v16 = vrot.slane %v949_v1, 5  ;;  %v645_v17 = vshll.u32 %v605_v11, 16  ;;  %v866_v18 = vld [vmem:[#allocation2 + $0x8] sm:$0xf]  ;;  %v1386_v20 = vld [vmem:[#allocation2 + $0x18] sm:$0xe]  ;;  %v557_v28 = vsel %vm3142_vm15, %v485_v60, %v556_v62 }
  0x31   : > { %v638_v21 = vrot.slane %v636_v12, 4  ;;  %v641_v22 = vrot.slane %v639_v13, 5  ;;  %882 = vrot.lane.b32.xlu2 %v866_v18, %s3008_s11  ;;  %v1225_v23 = vld [vmem:[#allocation2 + $0x18] sm:$0xf]  ;;  %v1387_v24 = vld [vmem:[#allocation2 + $0x1c] sm:$0x1]  ;;  %v560_v33 = vsel %vm3060_vm4, %v486_v14, %v559_v9 }
  0x32   : > { %v2842_v25 = vrot.slane %v1386_v20, 9  ;;  %v952_v26 = vor.u32 %v951_v16, %v948_v10  ;;  %v957_v27 = vrot.slane %v955_v6, 5  ;;  %v1422_v29 = vrot.slane %v1387_v24, 5  ;;  %v915_v32 = vld [vmem:[#allocation2 + $0x8] sm:$0xf] }
  0x33   : > { %835 = vrot.lane.b32.xlu1 %v808_v15, %s3004_s7  ;;  %v1254_v30 = vshrl.u32 %v1225_v23, 16  ;;  %v1257_v31 = vshll.u32 %v1225_v23, 16  ;;  %v642_v35 = vor.u32 %v641_v22, %v638_v21  ;;  %v1226_v36 = vld [vmem:[#allocation2 + $0x1c] sm:$0x1]  ;;  %v932_v37 = vshrl.u32 %v915_v32, 16  ;;  %v399_v15 = vld [vmem:[%s3089_s28 + $0x30] sm:$0xff] }
  0x34   : > { %v953_v34 = vrot.slane %v952_v26, 4  ;;  %v935_v38 = vshll.u32 %v915_v32, 16  ;;  %v1423_v40 = vsel %vm3123_vm12, %v2842_v25, %v1422_v29  ;;  %v647_v42 = vrot.slane %v645_v17, 5  ;;  %v916_v45 = vld [vmem:[#allocation2 + $0xc] sm:$0x1] }
  0x35   : > { %v1256_v43 = vrot.slane %v1254_v30, 4  ;;  %v1259_v44 = vrot.slane %v1257_v31, 5  ;;  %v934_v46 = vrot.slane %v932_v37, 4  ;;  %v867_v48 = vld [vmem:[#allocation2 + $0x10] sm:$0xf]  ;;  %v1263_v50 = vshll.u32 %v1226_v36, 16 }
  0x36   : > { %v937_v47 = vrot.slane %v935_v38, 5  ;;  %558 = vst [vmem:[#allocation2 + $0x20] sm:$0xf] %v557_v28  ;;  %v1223_v51 = vld [vmem:[#allocation2 + $0x10] sm:$0xf]  ;;  %v490_v52 = vrot.slane %v488_v19, 7  ;;  %v958_v54 = vsel %vm3135_vm14, %v953_v34, %v957_v27  ;;  %v420_v10 = vadd.f32 %v3094_v8, %v409_v53 }
  0x37   : > { %1450 = vrot.lane.b32.xlu0 %v1423_v40, %s3009_s12  ;;  %v1260_v49 = vor.u32 %v1259_v44, %v1256_v43  ;;  %561 = vst [vmem:[#allocation2 + $0x24] sm:$0x1] %v560_v33  ;;  %v643_v56 = vrot.slane %v642_v35, 4  ;;  %v941_v58 = vshll.u32 %v916_v45, 16  ;;  %v1240_v59 = vshrl.u32 %v1223_v51, 16 }
  0x38   : > { %v938_v57 = vor.u32 %v937_v47, %v934_v46  ;;  %v1243_v60 = vshll.u32 %v1223_v51, 16  ;;  %v491_v62 = vshll.u32 %v3172_v55, 16  ;;  %v494_v63 = vrot.slane %v490_v52, 4  ;;  %v562_v0 = vld [vmem:[#allocation2 + $0x28] sm:$0xf] }
  0x39   : > { %884 = vrot.lane.b32.xlu2 %v867_v48, %s3008_s11  ;;  %v565_v1 = vld [vmem:[#allocation2 + $0x2c] sm:$0x1]  ;;  %v1261_v6 = vrot.slane %v1260_v49, 4  ;;  %v1265_v7 = vrot.slane %v1263_v50, 5  ;;  %v648_v11 = vsel %vm3135_vm14, %v643_v56, %v647_v42  ;;  %v943_v13 = vrot.slane %v941_v58, 5 }
  0x3a   : > { %v493_v9 = vor.u32 %v491_v62, %v490_v52  ;;  %v939_v12 = vrot.slane %v938_v57, 4  ;;  %v1175_v14 = vld [vmem:[#allocation2 + $0x18] sm:$0xf]  ;;  %v566_v55 = vsel %vm3060_vm4, %v494_v63, %v565_v1  ;;  %v1242_v17 = vrot.slane %v1240_v59, 4  ;;  %v284_v23 = vld [vmem:[#allocation2 + $0x30] sm:$0x1] }
  0x3b   : > { %1045 = vrot.lane.b32.xlu1 %v958_v54, %s3010_s13  ;;  %v1245_v18 = vrot.slane %v1243_v60, 5  ;;  %567 = vst [vmem:[#allocation2 + $0x2c] sm:$0x1] %v566_v55  ;;  %v1266_v24 = vsel %vm3135_vm14, %v1261_v6, %v1265_v7  ;;  %v1076_v25 = vld [vmem:[#allocation2 + $0x8] sm:$0xe]  ;;  %vm428_vm3 = vcmp.gt.f32.partialorder %v420_v10, 0.0  ;;  %v410_v34 = vmul.f32 %v3073_v4, %v399_v15 }
  0x3c   : > { %v563_v19 = vsel %vm3142_vm15, %v493_v9, %v562_v0  ;;  %v1077_v26 = vld [vmem:[#allocation2 + $0xc] sm:$0x1]  ;;  %v1224_v30 = vld [vmem:[#allocation2 + $0x14] sm:$0x1]  ;;  %v285_v31 = vsel %vm3060_vm4, 0, %v284_v23  ;;  %v2833_v36 = vrot.slane %v1076_v25, 9  ;;  %v944_v43 = vsel %vm3135_vm14, %v939_v12, %v943_v13 }
  0x3d   : > { %v610_v16 = vld [vmem:[#allocation2 + $0x20] sm:$0xf]  ;;  %564 = vst [vmem:[#allocation2 + $0x28] sm:$0xf] %v563_v19  ;;  %v436_v32 = vmul.f32 0.1, %v420_v10  ;;  %v1246_v38 = vor.u32 %v1245_v18, %v1242_v17  ;;  %v421_v51 = vadd.f32 %v3094_v8, %v410_v34 }
  0x3e   : > { %v611_v20 = vld [vmem:[#allocation2 + $0x24] sm:$0x1]  ;;  %v678_v21 = vshrl.u32 %v610_v16, 16  ;;  %v681_v22 = vshll.u32 %v610_v16, 16  ;;  %v316_v33 = vld [vmem:[#allocation2 + $0x34] sm:$0x1] }
  0x3f   : > { %735 = vrot.lane.b32.xlu0 %v648_v11, %s3005_s8  ;;  %v687_v29 = vshll.u32 %v611_v20, 16  ;;  %v1110_v37 = vrot.slane %v1077_v26, 5  ;;  %286 = vst [vmem:[#allocation2 + $0x30] sm:$0x1] %v285_v31  ;;  %v1249_v39 = vshll.u32 %v1224_v30, 16  ;;  %v444_v40 = vsel %vm428_vm3, %v420_v10, %v436_v32 }
  0x40   : > { %v680_v27 = vrot.slane %v678_v21, 4  ;;  %v683_v28 = vrot.slane %v681_v22, 5  ;;  %v317_v42 = vsel %vm3077_vm5, 0, %v316_v33  ;;  %v452_v46 = vpack.c.bf16 %v444_v40, %v444_v40  ;;  %v287_v47 = vld [vmem:[#allocation2 + $0x38] sm:$0x1] }
  0x41   : > { %1192 = vrot.lane.b32.xlu2 %v1175_v14, %s3006_s9  ;;  %v689_v45 = vrot.slane %v687_v29, 5  ;;  %v319_v48 = vld [vmem:[#allocation2 + $0x3c] sm:$0x1]  ;;  %v1384_v49 = vld [vmem:[#allocation2 + $0x10] sm:$0xe]  ;;  %v1111_v53 = vsel %vm3123_vm12, %v2833_v36, %v1110_v37  ;;  %v1247_v58 = vrot.slane %v1246_v38, 4 }
  0x42   : > { %v684_v35 = vor.u32 %v683_v28, %v680_v27  ;;  %v1385_v50 = vld [vmem:[#allocation2 + $0x14] sm:$0x1]  ;;  %318 = vst [vmem:[#allocation2 + $0x34] sm:$0x1] %v317_v42  ;;  %v777_v52 = vld [vmem:[#allocation2 + $0x2c] sm:$0x1] }
  0x43   : > { %1353 = vrot.lane.b32.xlu1 %v1266_v24, %s3011_s14  ;;  %v496_v56 = vshrl.u32 %v452_v46, 16  ;;  %v499_v57 = vshll.u32 %v452_v46, 16  ;;  %v1251_v59 = vrot.slane %v1249_v39, 5  ;;  %v288_v62 = vsel %vm3060_vm4, 0, %v287_v47  ;;  %v774_v14 = vld [vmem:[#allocation2 + $0x20] sm:$0xe] }
  0x44   : > { %v685_v44 = vrot.slane %v684_v35, 4  ;;  %v923_v54 = vld [vmem:[#allocation2 + $0x28] sm:$0xf]  ;;  %v320_v63 = vsel %vm3077_vm5, 0, %v319_v48  ;;  %v823_v10 = vrot.slane %v777_v52, 5  ;;  %v2841_v12 = vrot.slane %v1384_v49, 9 }
  0x45   : > { %v776_v60 = vld [vmem:[#allocation2 + $0x28] sm:$0xe]  ;;  %v988_v1 = vshrl.u32 %v923_v54, 16  ;;  %v991_v6 = vshll.u32 %v923_v54, 16  ;;  %v498_v7 = vrot.slane %v496_v56, 7  ;;  %v1418_v13 = vrot.slane %v1385_v50, 5 }
  0x46   : > { %v690_v0 = vsel %vm3135_vm14, %v685_v44, %v689_v45  ;;  %v612_v9 = vld [vmem:[#allocation2 + $0x28] sm:$0xf]  ;;  %v568_v11 = vld [vmem:[#allocation2 + $0x30] sm:$0xf]  ;;  %vm429_vm6 = vcmp.gt.f32.partialorder %v421_v51, 0.0  ;;  %v1252_v18 = vsel %vm3135_vm14, %v1247_v58, %v1251_v59  ;;  %v2830_v19 = vrot.slane %v776_v60, 9 }
  0x47   : > { %1043 = vrot.lane.b32.xlu0 %v944_v43, %s3010_s13  ;;  %v501_v55 = vor.u32 %v499_v57, %v498_v7  ;;  %v502_v15 = vrot.slane %v498_v7, 4  ;;  %v613_v16 = vld [vmem:[#allocation2 + $0x2c] sm:$0x1]  ;;  %v692_v17 = vshrl.u32 %v612_v9, 16  ;;  %289 = vst [vmem:[#allocation2 + $0x38] sm:$0x1] %v288_v62  ;;  %v1419_v31 = vsel %vm3123_vm12, %v2841_v12, %v1418_v13 }
  0x48   : > { %v775_v20 = vld [vmem:[#allocation2 + $0x24] sm:$0x1]  ;;  %v695_v21 = vshll.u32 %v612_v9, 16  ;;  %v437_v22 = vmul.f32 0.1, %v421_v51  ;;  %v990_v23 = vrot.slane %v988_v1, 4  ;;  %v824_v37 = vsel %vm3123_vm12, %v2830_v19, %v823_v10 }
  0x49   : > { %1140 = vrot.lane.b32.xlu2 %v1111_v53, %s3007_s10  ;;  %321 = vst [vmem:[#allocation2 + $0x3c] sm:$0x1] %v320_v63  ;;  %v993_v24 = vrot.slane %v991_v6, 5  ;;  %v569_v25 = vsel %vm3142_vm15, %v501_v55, %v568_v11  ;;  %v571_v26 = vld [vmem:[#allocation2 + $0x34] sm:$0x1]  ;;  %v694_v27 = vrot.slane %v692_v17, 4 }
  0x4a   : > { %v924_v28 = vld [vmem:[#allocation2 + $0x2c] sm:$0x1]  ;;  %570 = vst [vmem:[#allocation2 + $0x30] sm:$0xf] %v569_v25  ;;  %v572_v29 = vsel %vm3060_vm4, %v502_v15, %v571_v26  ;;  %v697_v30 = vrot.slane %v695_v21, 5  ;;  %v701_v32 = vshll.u32 %v613_v16, 16  ;;  %v445_v33 = vsel %vm429_vm6, %v421_v51, %v437_v22 }
  0x4b   : > { %741 = vrot.lane.b32.xlu1 %v690_v0, %s3005_s8  ;;  %573 = vst [vmem:[#allocation2 + $0x34] sm:$0x1] %v572_v29  ;;  %v2829_v34 = vrot.slane %v774_v14, 9  ;;  %v453_v36 = vpack.c.bf16 %v445_v33, %v445_v33  ;;  %v819_v38 = vrot.slane %v775_v20, 5  ;;  %v994_v39 = vor.u32 %v993_v24, %v990_v23  ;;  %v1084_v9 = vld [vmem:[#allocation2 + $0x28] sm:$0xe] }
  0x4c   : > { %v698_v35 = vor.u32 %v697_v30, %v694_v27  ;;  %v997_v40 = vshll.u32 %v924_v28, 16  ;;  %v703_v45 = vrot.slane %v701_v32, 5  ;;  %v1085_v17 = vld [vmem:[#allocation2 + $0x2c] sm:$0x1]  ;;  %v870_v19 = vld [vmem:[#allocation2 + $0x28] sm:$0xf] }
  0x4d   : > { %v504_v42 = vshrl.u32 %v453_v36, 16  ;;  %v507_v43 = vshll.u32 %v453_v36, 16  ;;  %v820_v47 = vsel %vm3123_vm12, %v2829_v34, %v819_v38  ;;  %v995_v48 = vrot.slane %v994_v39, 4  ;;  %v608_v39 = vld [vmem:[#allocation2 + $0x18] sm:$0xf] }
  0x4e   : > { %v699_v44 = vrot.slane %v698_v35, 4  ;;  %v999_v49 = vrot.slane %v997_v40, 5  ;;  %v574_v50 = vld [vmem:[#allocation2 + $0x38] sm:$0xf]  ;;  %v2837_v22 = vrot.slane %v1084_v9, 9  ;;  %v1126_v24 = vrot.slane %v1085_v17, 5 }
  0x4f   : > { %1351 = vrot.lane.b32.xlu0 %v1252_v18, %s3011_s14  ;;  %v506_v46 = vrot.slane %v504_v42, 7  ;;  %vm1375_vm3 = vcmask 519616   ;;  %vm1472_vm6 = vcmask 585216  }
  0x50   : > { %v577_v53 = vld [vmem:[#allocation2 + $0x3c] sm:$0x1]  ;;  %v704_v54 = vsel %vm3135_vm14, %v699_v44, %v703_v45  ;;  %v1000_v59 = vsel %vm3135_vm14, %v995_v48, %v999_v49  ;;  %v1127_v30 = vsel %vm3123_vm12, %v2837_v22, %v1126_v24  ;;  %v921_v24 = vld [vmem:[#allocation2 + $0x20] sm:$0xf] }
  0x51   : > { %1448 = vrot.lane.b32.xlu2 %v1419_v31, %s3009_s12  ;;  %v1231_v51 = vld [vmem:[#allocation2 + $0x30] sm:$0xf]  ;;  %v509_v52 = vor.u32 %v507_v43, %v506_v46  ;;  %v510_v56 = vrot.slane %v506_v46, 4 }
  0x52   : > { %v925_v58 = vld [vmem:[#allocation2 + $0x30] sm:$0xf]  ;;  %v1296_v62 = vshrl.u32 %v1231_v51, 16  ;;  %v1299_v63 = vshll.u32 %v1231_v51, 16  ;;  %v1087_v1 = vld [vmem:[#allocation2 + $0x34] sm:$0x1] }
  0x53   : > { %843 = vrot.lane.b32.xlu1 %v824_v37, %s3004_s7  ;;  %v575_v57 = vsel %vm3142_vm15, %v509_v52, %v574_v50  ;;  %v1086_v60 = vld [vmem:[#allocation2 + $0x30] sm:$0xe]  ;;  %v578_v0 = vsel %vm3060_vm4, %v510_v56, %v577_v53  ;;  %v1002_v6 = vshrl.u32 %v925_v58, 16  ;;  %v1005_v7 = vshll.u32 %v925_v58, 16  ;;  %v926_v10 = vld [vmem:[#allocation2 + $0x34] sm:$0x1] }
  0x54   : > { %576 = vst [vmem:[#allocation2 + $0x38] sm:$0xf] %v575_v57  ;;  %v871_v13 = vld [vmem:[#allocation2 + $0x30] sm:$0xf]  ;;  %v2838_v14 = vrot.slane %v1086_v60, 9  ;;  %v1130_v55 = vrot.slane %v1087_v1, 5 }
  0x55   : > { %579 = vst [vmem:[#allocation2 + $0x3c] sm:$0x1] %v578_v0  ;;  %v1004_v11 = vrot.slane %v1002_v6, 4  ;;  %v1007_v12 = vrot.slane %v1005_v7, 5  ;;  %v1298_v15 = vrot.slane %v1296_v62, 4  ;;  %v1301_v16 = vrot.slane %v1299_v63, 5 }
  0x56   : > { %v1232_v18 = vld [vmem:[#allocation2 + $0x34] sm:$0x1]  ;;  %v1011_v21 = vshll.u32 %v926_v10, 16  ;;  %v1131_v23 = vsel %vm3123_vm12, %v2838_v14, %v1130_v55  ;;  %v1392_v40 = vld [vmem:[#allocation2 + $0x30] sm:$0xe]  ;;  %v664_v50 = vshrl.u32 %v608_v39, 16 }
  0x57   : > { %841 = vrot.lane.b32.xlu0 %v820_v47, %s3004_s7  ;;  %v1008_v20 = vor.u32 %v1007_v12, %v1004_v11  ;;  %v1302_v25 = vor.u32 %v1301_v16, %v1298_v15  ;;  %v1305_v26 = vshll.u32 %v1232_v18, 16  ;;  %v1393_v44 = vld [vmem:[#allocation2 + $0x34] sm:$0x1]  ;;  %v606_v46 = vld [vmem:[#allocation2 + $0x10] sm:$0xf]  ;;  %v667_v51 = vshll.u32 %v608_v39, 16 }
  0x58   : > { %v1013_v28 = vrot.slane %v1011_v21, 5  ;;  %v1178_v52 = vld [vmem:[#allocation2 + $0x30] sm:$0xf]  ;;  %v650_v56 = vshrl.u32 %v606_v46, 16  ;;  %v653_v57 = vshll.u32 %v606_v46, 16  ;;  %v2845_v58 = vrot.slane %v1392_v40, 9 }
  0x59   : > { %743 = vrot.lane.b32.xlu2 %v704_v54, %s3005_s8  ;;  %v1009_v27 = vrot.slane %v1008_v20, 4  ;;  %v1303_v31 = vrot.slane %v1302_v25, 4  ;;  %v1307_v32 = vrot.slane %v1305_v26, 5  ;;  %v666_v62 = vrot.slane %v664_v50, 4  ;;  %v609_v0 = vld [vmem:[#allocation2 + $0x1c] sm:$0x1] }
  0x5a   : > { %v669_v63 = vrot.slane %v667_v51, 5  ;;  %v770_v1 = vld [vmem:[#allocation2 + $0x10] sm:$0xe]  ;;  %v771_v6 = vld [vmem:[#allocation2 + $0x14] sm:$0x1]  ;;  %v652_v10 = vrot.slane %v650_v56, 4 }
  0x5b   : > { %1051 = vrot.lane.b32.xlu1 %v1000_v59, %s3010_s13  ;;  %v1233_v29 = vld [vmem:[#allocation2 + $0x38] sm:$0xf]  ;;  %v1014_v33 = vsel %vm3135_vm14, %v1009_v27, %v1013_v28  ;;  %v1308_v36 = vsel %vm3135_vm14, %v1303_v31, %v1307_v32  ;;  %v1434_v59 = vrot.slane %v1393_v44, 5  ;;  %v655_v11 = vrot.slane %v653_v57, 5  ;;  %v586_v20 = vld [vmem:[#allocation2] sm:$0xf] }
  0x5c   : > { %v1310_v34 = vshrl.u32 %v1233_v29, 16  ;;  %v1313_v35 = vshll.u32 %v1233_v29, 16  ;;  %v1394_v37 = vld [vmem:[#allocation2 + $0x38] sm:$0xe]  ;;  %v1395_v38 = vld [vmem:[#allocation2 + $0x3c] sm:$0x1]  ;;  %v670_v14 = vor.u32 %v669_v63, %v666_v62 }
  0x5d   : > { %v1234_v45 = vld [vmem:[#allocation2 + $0x3c] sm:$0x1]  ;;  %v1179_v47 = vld [vmem:[#allocation2 + $0x38] sm:$0xf]  ;;  %v2846_v48 = vrot.slane %v1394_v37, 9  ;;  %v1438_v49 = vrot.slane %v1395_v38, 5  ;;  %v1435_v12 = vsel %vm3123_vm12, %v2845_v58, %v1434_v59  ;;  %v656_v18 = vor.u32 %v655_v11, %v652_v10 }
  0x5e   : > { %v1312_v42 = vrot.slane %v1310_v34, 4  ;;  %v1315_v43 = vrot.slane %v1313_v35, 5  ;;  %v1319_v54 = vshll.u32 %v1234_v45, 16  ;;  %v673_v55 = vshll.u32 %v609_v0, 16  ;;  %594 = vst.msk [vmem:[#allocation3] sm:$0xf] %vm256_vm0, %v586_v20 }
  0x5f   : > { %892 = vrot.lane.b32.xlu0 %v871_v13, %s3008_s11  ;;  %v1439_v60 = vsel %vm3123_vm12, %v2846_v48, %v1438_v49  ;;  %v607_v13 = vld [vmem:[#allocation2 + $0x14] sm:$0x1]  ;;  %v2827_v15 = vrot.slane %v770_v1, 9  ;;  %v811_v16 = vrot.slane %v771_v6, 5  ;;  %v671_v21 = vrot.slane %v670_v14, 4  ;;  %v400_v32 = vld [vmem:[%s3089_s28 + $0x38] sm:$0xff] }
  0x60   : > { %v1316_v53 = vor.u32 %v1315_v43, %v1312_v42  ;;  %v1321_v9 = vrot.slane %v1319_v54, 5  ;;  %v675_v22 = vrot.slane %v673_v55, 5  ;;  %v657_v25 = vrot.slane %v656_v18, 4  ;;  %v919_v27 = vld [vmem:[#allocation2 + $0x18] sm:$0xf] }
  0x61   : > { %890 = vrot.lane.b32.xlu2 %v870_v19, %s3008_s11  ;;  %v659_v19 = vshll.u32 %v607_v13, 16  ;;  %v974_v29 = vshrl.u32 %v921_v24, 16  ;;  %v960_v31 = vshrl.u32 %v919_v27, 16  ;;  %v772_v34 = vld [vmem:[#allocation2 + $0x18] sm:$0xe]  ;;  %v411_v37 = vmul.f32 %v3073_v4, %v400_v32 }
  0x62   : > { %v1317_v7 = vrot.slane %v1316_v53, 4  ;;  %v676_v28 = vsel %vm3135_vm14, %v671_v21, %v675_v22  ;;  %v773_v35 = vld [vmem:[#allocation2 + $0x1c] sm:$0x1]  ;;  %v869_v38 = vld [vmem:[#allocation2 + $0x20] sm:$0xf]  ;;  %v2828_v46 = vrot.slane %v772_v34, 9 }
  0x63   : > { %1150 = vrot.lane.b32.xlu1 %v1131_v23, %s3007_s10  ;;  %v812_v23 = vsel %vm3123_vm12, %v2827_v15, %v811_v16  ;;  %v661_v26 = vrot.slane %v659_v19, 5  ;;  %v922_v39 = vld [vmem:[#allocation2 + $0x24] sm:$0x1]  ;;  %v976_v40 = vrot.slane %v974_v29, 4  ;;  %v1080_v43 = vld [vmem:[#allocation2 + $0x18] sm:$0xe]  ;;  %v422_v44 = vadd.f32 %v3094_v8, %v411_v37 }
  0x64   : > { %v1322_v17 = vsel %vm3135_vm14, %v1317_v7, %v1321_v9  ;;  %v1081_v45 = vld [vmem:[#allocation2 + $0x1c] sm:$0x1]  ;;  %v962_v48 = vrot.slane %v960_v31, 4  ;;  %v290_v50 = vld [vmem:[#allocation2 + $0x40] sm:$0x1]  ;;  %v983_v4 = vshll.u32 %v922_v39, 16 }
  0x65   : > { %vm430_vm7 = vcmp.gt.f32.partialorder %v422_v44, 0.0  ;;  %v438_v51 = vmul.f32 0.1, %v422_v44  ;;  %v291_v53 = vsel %vm3060_vm4, 0, %v290_v50  ;;  %v868_v54 = vld [vmem:[#allocation2 + $0x18] sm:$0xf] }
  0x66   : > { %v2835_v8 = vrot.slane %v1080_v43, 9  ;;  %v1118_v57 = vrot.slane %v1081_v45, 5  ;;  %292 = vst [vmem:[#allocation2 + $0x40] sm:$0x1] %v291_v53  ;;  %v1229_v62 = vld [vmem:[#allocation2 + $0x28] sm:$0xf] }
  0x67   : > { %1148 = vrot.lane.b32.xlu0 %v1127_v30, %s3007_s10  ;;  %v977_v30 = vshll.u32 %v921_v24, 16  ;;  %v446_v58 = vsel %vm430_vm7, %v422_v44, %v438_v51  ;;  %v322_v1 = vld [vmem:[#allocation2 + $0x44] sm:$0x1]  ;;  %v985_v9 = vrot.slane %v983_v4, 5  ;;  %v1282_v11 = vshrl.u32 %v1229_v62, 16 }
  0x68   : > { %v454_v59 = vpack.c.bf16 %v446_v58, %v446_v58  ;;  %v323_v6 = vsel %vm3077_vm5, 0, %v322_v1  ;;  %v1119_v10 = vsel %vm3123_vm12, %v2835_v8, %v1118_v57  ;;  %v1227_v16 = vld [vmem:[#allocation2 + $0x20] sm:$0xf]  ;;  %v1230_v19 = vld [vmem:[#allocation2 + $0x2c] sm:$0x1]  ;;  %vm3906_vm7 = vcmask 588800  }
  0x69   : > { %1053 = vrot.lane.b32.xlu2 %v1014_v33, %s3010_s13  ;;  %v662_v33 = vsel %vm3135_vm14, %v657_v25, %v661_v26  ;;  %v979_v42 = vrot.slane %v977_v30, 5  ;;  %324 = vst [vmem:[#allocation2 + $0x44] sm:$0x1] %v323_v6  ;;  %v1284_v21 = vrot.slane %v1282_v11, 4  ;;  %v616_v24 = vld [vmem:[#allocation2 + $0x38] sm:$0xf] }
  0x6a   : > { %v512_v13 = vshrl.u32 %v454_v59, 16  ;;  %v1177_v25 = vld [vmem:[#allocation2 + $0x28] sm:$0xf]  ;;  %v1271_v29 = vshll.u32 %v1227_v16, 16  ;;  %v1291_v31 = vshll.u32 %v1230_v19, 16  ;;  %v720_v37 = vshrl.u32 %v616_v24, 16 }
  0x6b   : > { %1359 = vrot.lane.b32.xlu1 %v1308_v36, %s3011_s14  ;;  %v963_v36 = vshll.u32 %v919_v27, 16  ;;  %v980_v56 = vor.u32 %v979_v42, %v976_v40  ;;  %v1082_v27 = vld [vmem:[#allocation2 + $0x20] sm:$0xe]  ;;  %v1083_v32 = vld [vmem:[#allocation2 + $0x24] sm:$0x1] }
  0x6c   : > { %v514_v20 = vrot.slane %v512_v13, 7  ;;  %v587_v39 = vld [vmem:[#allocation2 + $0x8] sm:$0xf]  ;;  %v1389_v40 = vld [vmem:[#allocation2 + $0x24] sm:$0x1]  ;;  %v722_v57 = vrot.slane %v720_v37, 4 }
  0x6d   : > { %v965_v49 = vrot.slane %v963_v36, 5  ;;  %v981_v7 = vrot.slane %v980_v56, 4  ;;  %v580_v30 = vld [vmem:[#allocation2 + $0x40] sm:$0xf]  ;;  %595 = vst.msk [vmem:[#allocation3 + $0x4] sm:$0xf] %vm256_vm0, %v587_v39 }
  0x6e   : > { %v518_v34 = vrot.slane %v514_v20, 4  ;;  %v1388_v36 = vld [vmem:[#allocation2 + $0x20] sm:$0xe]  ;;  %v1426_v8 = vrot.slane %v1389_v40, 5  ;;  %v1293_v11 = vrot.slane %v1291_v31, 5 }
  0x6f   : > { %1200 = vrot.lane.b32.xlu0 %v1179_v47, %s3006_s9  ;;  %v815_v47 = vrot.slane %v773_v35, 5  ;;  %v966_v63 = vor.u32 %v965_v49, %v962_v48  ;;  %v986_v18 = vsel %vm3135_vm14, %v981_v7, %v985_v9  ;;  %v1273_v49 = vrot.slane %v1271_v29, 5  ;;  %v1497_v53 = vld [vmem:[%s3899_s1 + $0x20] sm:$0xf]  ;;  %v615_v13 = vld [vmem:[#allocation2 + $0x34] sm:$0x1] }
  0x70   : > { %v583_v35 = vld [vmem:[#allocation2 + $0x44] sm:$0x1]  ;;  %v2843_v56 = vrot.slane %v1388_v36, 9  ;;  %v2955_v36 = vld [vmem:[%s3899_s1 + $0x10] sm:$0xff]  ;;  %v325_v37 = vld [vmem:[#allocation2 + $0x4c] sm:$0x1] }
  0x71   : > { %1198 = vrot.lane.b32.xlu2 %v1178_v52, %s3006_s9  ;;  %v920_v52 = vld [vmem:[#allocation2 + $0x1c] sm:$0x1]  ;;  %v967_v14 = vrot.slane %v966_v63, 4  ;;  %v584_v45 = vsel %vm3060_vm4, %v518_v34, %v583_v35  ;;  %v590_v35 = vld [vmem:[#allocation2 + $0x20] sm:$0xf] }
  0x72   : > { %v969_v0 = vshll.u32 %v920_v52, 16  ;;  %v1228_v52 = vld [vmem:[#allocation2 + $0x24] sm:$0x1]  ;;  %585 = vst [vmem:[#allocation2 + $0x44] sm:$0x1] %v584_v45 }
  0x73   : > { %1458 = vrot.lane.b32.xlu1 %v1439_v60, %s3009_s12  ;;  %v816_v60 = vsel %vm3123_vm12, %v2828_v46, %v815_v47  ;;  %v2836_v46 = vrot.slane %v1082_v27, 9  ;;  %v1122_v47 = vrot.slane %v1083_v32, 5  ;;  %v617_v63 = vld [vmem:[#allocation2 + $0x3c] sm:$0x1]  ;;  %v1277_v7 = vshll.u32 %v1228_v52, 16 }
  0x74   : > { %v971_v55 = vrot.slane %v969_v0, 5  ;;  %v1538_v0 = vunpack.c.l.b16 %v1497_v53  ;;  %v1390_v32 = vld [vmem:[#allocation2 + $0x28] sm:$0xe]  ;;  %598 = vst.msk [vmem:[#allocation3 + $0x10] sm:$0xf] %vm256_vm0, %v590_v35 }
  0x75   : > { %v1123_v1 = vsel %vm3123_vm12, %v2836_v46, %v1122_v47  ;;  %v1279_v19 = vrot.slane %v1277_v7, 5  ;;  %v2844_v45 = vrot.slane %v1390_v32, 9  ;;  %v872_v7 = vld [vmem:[#allocation2 + $0x38] sm:$0xf] }
  0x76   : > { %v972_v26 = vsel %vm3135_vm14, %v967_v14, %v971_v55  ;;  %v729_v55 = vshll.u32 %v617_v63, 16  ;;  %v779_v63 = vld [vmem:[#allocation2 + $0x34] sm:$0x1] }
  0x77   : > { %1456 = vrot.lane.b32.xlu0 %v1435_v12, %s3009_s12  ;;  %v1285_v12 = vshll.u32 %v1229_v62, 16 }
  0x79   : > { %1361 = vrot.lane.b32.xlu2 %v1322_v17, %s3011_s14  ;;  %v515_v17 = vshll.u32 %v454_v59, 16  ;;  %v1287_v22 = vrot.slane %v1285_v12, 5  ;;  %v1427_v12 = vsel %vm3123_vm12, %v2843_v56, %v1426_v8  ;;  %v780_v56 = vld [vmem:[#allocation2 + $0x38] sm:$0xe]  ;;  %v781_v8 = vld [vmem:[#allocation2 + $0x3c] sm:$0x1] }
  0x7b   : > { %837 = vrot.lane.b32.xlu1 %v812_v23, %s3004_s7  ;;  %v614_v23 = vld [vmem:[#allocation2 + $0x30] sm:$0xf]  ;;  %v1288_v51 = vor.u32 %v1287_v22, %v1284_v21  ;;  %v2956_v21 = vld [vmem:[%s3899_s1 + $0x18] sm:$0xff] }
  0x7c   : > { %v706_v42 = vshrl.u32 %v614_v23, 16  ;;  %v709_v43 = vshll.u32 %v614_v23, 16 }
  0x7d   : > { %v1289_v9 = vrot.slane %v1288_v51, 4 }
  0x7e   : > { %v711_v62 = vrot.slane %v709_v43, 5 }
  0x7f   : > { %739 = vrot.lane.b32.xlu0 %v676_v28, %s3005_s8  ;;  %v1268_v28 = vshrl.u32 %v1227_v16, 16  ;;  %v1294_v22 = vsel %vm3135_vm14, %v1289_v9, %v1293_v11 }
  0x81   : > { %737 = vrot.lane.b32.xlu2 %v662_v33, %s3005_s8  ;;  %v517_v33 = vor.u32 %v515_v17, %v514_v20  ;;  %v1270_v48 = vrot.slane %v1268_v28, 4  ;;  %v715_v20 = vshll.u32 %v615_v13, 16  ;;  %v927_v28 = vld [vmem:[#allocation2 + $0x38] sm:$0xf] }
  0x83   : > { %888 = vrot.lane.b32.xlu1 %v869_v38, %s3008_s11  ;;  %v723_v38 = vshll.u32 %v616_v24, 16  ;;  %v581_v44 = vsel %vm3142_vm15, %v517_v33, %v580_v30  ;;  %v1274_v6 = vor.u32 %v1273_v49, %v1270_v48  ;;  %v731_v24 = vrot.slane %v729_v55, 5  ;;  %v1391_v33 = vld [vmem:[#allocation2 + $0x2c] sm:$0x1]  ;;  %v591_v49 = vld [vmem:[#allocation2 + $0x28] sm:$0xf] }
  0x84   : > { %582 = vst [vmem:[#allocation2 + $0x40] sm:$0xf] %v581_v44  ;;  %v717_v34 = vrot.slane %v715_v20, 5  ;;  %v1016_v44 = vshrl.u32 %v927_v28, 16  ;;  %v1430_v46 = vrot.slane %v1391_v33, 5  ;;  %v1019_v48 = vshll.u32 %v927_v28, 16 }
  0x85   : > { %v725_v58 = vrot.slane %v723_v38, 5  ;;  %599 = vst.msk [vmem:[#allocation3 + $0x14] sm:$0xf] %vm256_vm0, %v591_v49  ;;  %v1089_v49 = vld [vmem:[#allocation2 + $0x3c] sm:$0x1] }
  0x87   : > { %886 = vrot.lane.b32.xlu0 %v868_v54, %s3008_s11  ;;  %v1176_v54 = vld [vmem:[#allocation2 + $0x20] sm:$0xf]  ;;  %v726_v14 = vor.u32 %v725_v58, %v722_v57  ;;  %v930_v57 = vld [vmem:[#allocation2 + $0x44] sm:$0x1]  ;;  %v1018_v58 = vrot.slane %v1016_v44, 4 }
  0x89   : > { %839 = vrot.lane.b32.xlu2 %v816_v60, %s3004_s7  ;;  %v708_v60 = vrot.slane %v706_v42, 4  ;;  %v727_v23 = vrot.slane %v726_v14, 4  ;;  %v326_v42 = vsel %vm3077_vm5, 0, %v325_v37  ;;  %v827_v14 = vrot.slane %v779_v63, 5 }
  0x8a   : > { %327 = vst [vmem:[#allocation2 + $0x4c] sm:$0x1] %v326_v42 }
  0x8b   : > { %1144 = vrot.lane.b32.xlu1 %v1119_v10, %s3007_s10  ;;  %v3305_v15 = vpop.permute.xlu2 %882  ;;  %v1543_v10 = vpack.c.b16 %v1538_v0, %v1538_v0  ;;  %v712_v16 = vor.u32 %v711_v62, %v708_v60  ;;  %v929_v29 = vld [vmem:[#allocation2 + $0x40] sm:$0xf]  ;;  %v732_v38 = vsel %vm3135_vm14, %v727_v23, %v731_v24  ;;  %v1021_v60 = vrot.slane %v1019_v48, 5  ;;  %v778_v62 = vld [vmem:[#allocation2 + $0x30] sm:$0xe] }
  0x8c   : > { %v1030_v39 = vshrl.u32 %v929_v29, 16  ;;  %v1033_v40 = vshll.u32 %v929_v29, 16  ;;  %v2953_v0 = vld [vmem:[%s3899_s1] sm:$0xff]  ;;  %v2831_v13 = vrot.slane %v778_v62, 9 }
  0x8d   : > { %v1563_v17 = vsel %vm3905_vm11, %v1543_v10, 0  ;;  %v713_v27 = vrot.slane %v712_v16, 4  ;;  %v1039_v10 = vshll.u32 %v930_v57, 16  ;;  %v1022_v55 = vor.u32 %v1021_v60, %v1018_v58  ;;  %v1090_v32 = vld [vmem:[#allocation2 + $0x40] sm:$0xe] }
  0x8e   : > { %1568 = vmatpush.bf16.msra.mxu0 %v1563_v17  ;;  %2965 = vmatpush.bf16.msra.mxu2 %v1563_v17  ;;  %v1032_v52 = vrot.slane %v1030_v39, 4  ;;  %v1035_v53 = vrot.slane %v1033_v40, 5  ;;  %v828_v23 = vsel %vm3123_vm12, %v2831_v13, %v827_v14  ;;  %v2840_v42 = vrot.slane %v1090_v32, 9  ;;  %v873_v48 = vld [vmem:[#allocation2 + $0x40] sm:$0xf] }
  0x8f   : > { %1049 = vrot.lane.b32.xlu0 %v986_v18, %s3010_s13  ;;  %v1275_v18 = vrot.slane %v1274_v6, 4  ;;  %v718_v51 = vsel %vm3135_vm14, %v713_v27, %v717_v34  ;;  %v831_v6 = vrot.slane %v781_v8, 5  ;;  %v1041_v20 = vrot.slane %v1039_v10, 5  ;;  %v1091_v34 = vld [vmem:[#allocation2 + $0x44] sm:$0x1] }
  0x90   : > { %v1036_v9 = vor.u32 %v1035_v53, %v1032_v52  ;;  %v1023_v24 = vrot.slane %v1022_v55, 4  ;;  %v1396_v14 = vld [vmem:[#allocation2 + $0x40] sm:$0xe]  ;;  %v1397_v55 = vld [vmem:[#allocation2 + $0x44] sm:$0x1] }
  0x91   : > { %1047 = vrot.lane.b32.xlu2 %v972_v26, %s3010_s13  ;;  %v1280_v31 = vsel %vm3135_vm14, %v1275_v18, %v1279_v19  ;;  %v1238_v44 = vld [vmem:[#allocation2 + $0x4c] sm:$0x1] }
  0x92   : > { %1569 = vmatpush.bf16.msra.mxu0 %v2956_v21  ;;  %2966 = vmatpush.bf16.msra.mxu2 %v2956_v21  ;;  %v1037_v19 = vrot.slane %v1036_v9, 4  ;;  %v1347_v53 = vshll.u32 %v1238_v44, 16 }
  0x93   : > { %v834_v50 = vpop.permute.xlu1 %833  ;;  %1196 = vrot.lane.b32.xlu1 %v1177_v25, %s3006_s9  ;;  %v3319_v4 = vpop.permute.xlu2 %884  ;;  %v293_v25 = vld [vmem:[#allocation2 + $0x48] sm:$0x1] }
  0x94   : > { %v294_v30 = vsel %vm3060_vm4, 0, %v293_v25  ;;  %v1235_v25 = vld [vmem:[#allocation2 + $0x40] sm:$0xf]  ;;  %v1042_v28 = vsel %vm3135_vm14, %v1037_v19, %v1041_v20  ;;  %v1349_v62 = vrot.slane %v1347_v53, 5 }
  0x95   : > { %295 = vst [vmem:[#allocation2 + $0x48] sm:$0x1] %v294_v30  ;;  %v1324_v33 = vshrl.u32 %v1235_v25, 16  ;;  %v1327_v37 = vshll.u32 %v1235_v25, 16 }
  0x96   : > { %1570 = vmatpush.bf16.msra.mxu0 %v2955_v36  ;;  %2967 = vmatpush.bf16.msra.mxu2 %v2955_v36 }
  0x97   : > { %1194 = vrot.lane.b32.xlu0 %v1176_v54, %s3006_s9 }
  0x98   : > { %v734_v59 = vpop.permute.xlu0 %733 }
  0x99   : > { %758 = vst.msk [vmem:[#allocation3] sm:$0xf] %vm757_vm8, %v734_v59  ;;  %1146 = vrot.lane.b32.xlu2 %v1123_v1, %s3007_s10  ;;  %v1431_v59 = vsel %vm3123_vm12, %v2844_v45, %v1430_v46  ;;  %v2832_v1 = vrot.slane %v780_v56, 9  ;;  %v1138_v45 = vrot.slane %v1091_v34, 5  ;;  %v1326_v46 = vrot.slane %v1324_v33, 4 }
  0x9a   : > { %858 = vst.msk [vmem:[#allocation3] sm:$0xf] %vm857_vm9, %v834_v50  ;;  %v2954_v50 = vld [vmem:[%s3899_s1 + $0x8] sm:$0xff] }
  0x9b   : > { %907 = vst.msk [vmem:[#allocation3] sm:$0xf] %vm906_vm10, %v3305_v15  ;;  %1452 = vrot.lane.b32.xlu1 %v1427_v12, %s3009_s12  ;;  %v3336_v15 = vpop.permute.xlu2 %1192  ;;  %1571 = vmatpush.bf16.msra.mxu0 %v2954_v50  ;;  %v928_v12 = vld [vmem:[#allocation2 + $0x3c] sm:$0x1]  ;;  %v832_v17 = vsel %vm3123_vm12, %v2832_v1, %v831_v6  ;;  %v1139_v8 = vsel %vm3123_vm12, %v2840_v42, %v1138_v45  ;;  %v592_v45 = vld [vmem:[#allocation2 + $0x30] sm:$0xf] }
  0x9c   : > { %2968 = vmatpush.bf16.msra.mxu2 %v2954_v50  ;;  %v1025_v18 = vshll.u32 %v928_v12, 16  ;;  %v1180_v50 = vld [vmem:[#allocation2 + $0x40] sm:$0xf]  ;;  %v1399_v12 = vld [vmem:[#allocation2 + $0x4c] sm:$0x1] }
  0x9d   : > { %v3343_v26 = vpop.permute.xlu1 %1190  ;;  %v1181_v13 = vld [vmem:[#allocation2 + $0x48] sm:$0xf]  ;;  %600 = vst.msk [vmem:[#allocation3 + $0x18] sm:$0xf] %vm256_vm0, %v592_v45  ;;  %v369_v45 = vld [vmem:[#allocation4 + $0x14] sm:$0x1] }
  0x9e   : > { %v1027_v27 = vrot.slane %v1025_v18, 5  ;;  %v1446_v18 = vrot.slane %v1399_v12, 5 }
  0x9f   : > { %1357 = vrot.lane.b32.xlu0 %v1294_v22, %s3011_s14  ;;  %1572 = vmatpush.bf16.msra.mxu0 %v2953_v0  ;;  %v1237_v22 = vld [vmem:[#allocation2 + $0x48] sm:$0xf] }
  0xa0   : > { %2969 = vmatpush.bf16.msra.mxu2 %v2953_v0  ;;  %v1338_v29 = vshrl.u32 %v1237_v22, 16  ;;  %v1341_v30 = vshll.u32 %v1237_v22, 16  ;;  %v1028_v36 = vsel %vm3135_vm14, %v1023_v24, %v1027_v27  ;;  %v588_v22 = vld [vmem:[#allocation2 + $0x10] sm:$0xf]  ;;  %v589_v24 = vld [vmem:[#allocation2 + $0x18] sm:$0xf] }
  0xa1   : > { %v3358_v43 = vpop.permute.xlu0 %1142  ;;  %1355 = vrot.lane.b32.xlu2 %v1280_v31, %s3011_s14  ;;  %596 = vst.msk [vmem:[#allocation3 + $0x8] sm:$0xf] %vm256_vm0, %v588_v22 }
  0xa2   : > { %v1343_v39 = vrot.slane %v1341_v30, 5  ;;  %597 = vst.msk [vmem:[#allocation3 + $0xc] sm:$0xf] %vm256_vm0, %v589_v24 }
  0xa3   : > { %747 = vrot.lane.b32.xlu1 %v732_v38, %s3005_s8  ;;  %v3362_v47 = vpop.permute.xlu2 %1140  ;;  %v1340_v38 = vrot.slane %v1338_v29, 4 }
  0xa5   : > { %v836_v54 = vpop.permute.xlu1 %835  ;;  %v1344_v52 = vor.u32 %v1343_v39, %v1340_v38 }
  0xa7   : > { %745 = vrot.lane.b32.xlu0 %v718_v51, %s3005_s8  ;;  %v1329_v51 = vrot.slane %v1327_v37, 5  ;;  %v1345_v60 = vrot.slane %v1344_v52, 4 }
  0xa9   : > { %v1451_v11 = vpop.permute.xlu0 %1450  ;;  %1454 = vrot.lane.b32.xlu2 %v1431_v59, %s3009_s12  ;;  %v1330_v58 = vor.u32 %v1329_v51, %v1326_v46  ;;  %v1350_v6 = vsel %vm3135_vm14, %v1345_v60, %v1349_v62 }
  0xab   : > { %894 = vrot.lane.b32.xlu1 %v872_v7, %s3008_s11  ;;  %v3378_v16 = vpop.permute.xlu2 %1448  ;;  %v1331_v0 = vrot.slane %v1330_v58, 4 }
  0xad   : > { %v1046_v21 = vpop.permute.xlu1 %1045 }
  0xaf   : > { %847 = vrot.lane.b32.xlu0 %v832_v17, %s3004_s7 }
  0xb1   : > { %v736_v31 = vpop.permute.xlu0 %735  ;;  %845 = vrot.lane.b32.xlu2 %v828_v23, %s3004_s7 }
  0xb2   : > { %759 = vst.msk [vmem:[#allocation3 + $0x4] sm:$0xf] %vm757_vm8, %v736_v31 }
  0xb3   : > { %859 = vst.msk [vmem:[#allocation3 + $0x4] sm:$0xf] %vm857_vm9, %v836_v54  ;;  %1057 = vrot.lane.b32.xlu1 %v1042_v28, %s3010_s13  ;;  %v744_v35 = vpop.permute.xlu2 %743 }
  0xb4   : > { %908 = vst.msk [vmem:[#allocation3 + $0x4] sm:$0xf] %vm906_vm10, %v3319_v4  ;;  %v1088_v4 = vld [vmem:[#allocation2 + $0x38] sm:$0xe] }
  0xb5   : > { %v1354_v40 = vpop.permute.xlu1 %1353  ;;  %1069 = vst.msk [vmem:[#allocation3 + $0x4] sm:$0xf] %vm1067_vm13, %v1046_v21  ;;  %v2839_v56 = vrot.slane %v1088_v4, 9  ;;  %v1442_v21 = vrot.slane %v1397_v55, 5 }
  0xb6   : > { %1166 = vst.msk [vmem:[#allocation3 + $0x4] sm:$0xf] %vm1164_vm1, %v3358_v43  ;;  %v1236_v43 = vld [vmem:[#allocation2 + $0x44] sm:$0x1] }
  0xb7   : > { %1216 = vst.msk [vmem:[#allocation3 + $0x4] sm:$0xf] %vm1214_vm2, %v3336_v15  ;;  %1055 = vrot.lane.b32.xlu0 %v1028_v36, %s3010_s13  ;;  %v1134_v15 = vrot.slane %v1089_v49, 5  ;;  %v1333_v59 = vshll.u32 %v1236_v43, 16  ;;  %v593_v49 = vld [vmem:[#allocation2 + $0x38] sm:$0xf] }
  0xb8   : > { %1377 = vst.msk [vmem:[#allocation3 + $0x4] sm:$0xf] %vm1375_vm3, %v1354_v40 }
  0xb9   : > { %1474 = vst.msk [vmem:[#allocation3 + $0x4] sm:$0xf] %vm1472_vm6, %v1451_v11  ;;  %v1044_v54 = vpop.permute.xlu0 %1043  ;;  %896 = vrot.lane.b32.xlu2 %v873_v48, %s3008_s11  ;;  %v1335_v1 = vrot.slane %v1333_v59, 5  ;;  %v1398_v11 = vld [vmem:[#allocation2 + $0x48] sm:$0xe] }
  0xba   : > { %1068 = vst.msk [vmem:[#allocation3] sm:$0xf] %vm1067_vm13, %v1044_v54  ;;  %v2848_v17 = vrot.slane %v1398_v11, 9  ;;  %v363_v11 = vld [vmem:[#allocation4 + $0x4] sm:$0x1] }
  0xbb   : > { %1165 = vst.msk [vmem:[#allocation3] sm:$0xf] %vm1164_vm1, %v3362_v47  ;;  %1202 = vrot.lane.b32.xlu1 %v1180_v50, %s3006_s9  ;;  %v891_v57 = vpop.permute.xlu2 %890  ;;  %v1135_v47 = vsel %vm3123_vm12, %v2839_v56, %v1134_v15  ;;  %v1336_v9 = vsel %vm3135_vm14, %v1331_v0, %v1335_v1  ;;  %v336_v0 = vld [vmem:[#allocation4 + $0x8] sm:$0x1]  ;;  %v366_v1 = vld [vmem:[#allocation4 + $0xc] sm:$0x1] }
  0xbc   : > { %1215 = vst.msk [vmem:[#allocation3] sm:$0xf] %vm1214_vm2, %v3343_v26  ;;  %v1447_v25 = vsel %vm3123_vm12, %v2848_v17, %v1446_v18  ;;  %v364_v12 = vsel %vm3077_vm5, 0, %v363_v11  ;;  %v390_v17 = vld [vmem:[#allocation4 + $0x4c] sm:$0x1] }
  0xbd   : > { %v742_v63 = vpop.permute.xlu1 %741  ;;  %763 = vst.msk [vmem:[#allocation3 + $0x14] sm:$0xf] %vm757_vm8, %v744_v35  ;;  %v391_v18 = vsel %vm3077_vm5, 0, %v390_v17 }
  0xbe   : > { %762 = vst.msk [vmem:[#allocation3 + $0x10] sm:$0xf] %vm757_vm8, %v742_v63 }
  0xbf   : > { %1154 = vrot.lane.b32.xlu0 %v1139_v8, %s3007_s10  ;;  %601 = vst.msk [vmem:[#allocation3 + $0x1c] sm:$0xf] %vm256_vm0, %v593_v49 }
  0xc0   : > { %365 = vst [vmem:[#allocation4 + $0x4] sm:$0x1] %v364_v12 }
  0xc1   : > { %v1352_v26 = vpop.permute.xlu0 %1351  ;;  %1152 = vrot.lane.b32.xlu2 %v1135_v47, %s3007_s10  ;;  %v333_v47 = vld [vmem:[#allocation4] sm:$0x1]  ;;  %392 = vst [vmem:[#allocation4 + $0x4c] sm:$0x1] %v391_v18 }
  0xc2   : > { %1376 = vst.msk [vmem:[#allocation3] sm:$0xf] %vm1375_vm3, %v1352_v26  ;;  %v367_v26 = vsel %vm3077_vm5, 0, %v366_v1  ;;  %v378_v1 = vld [vmem:[#allocation4 + $0x2c] sm:$0x1] }
  0xc3   : > { %1473 = vst.msk [vmem:[#allocation3] sm:$0xf] %vm1472_vm6, %v3378_v16  ;;  %1365 = vrot.lane.b32.xlu1 %v1350_v6, %s3011_s14  ;;  %v1054_v7 = vpop.permute.xlu2 %1053  ;;  %v2847_v16 = vrot.slane %v1396_v14, 9  ;;  %v337_v6 = vsel %vm3060_vm4, 0, %v336_v0  ;;  %v348_v0 = vld [vmem:[#allocation4 + $0x28] sm:$0x1] }
  0xc4   : > { %338 = vst [vmem:[#allocation4 + $0x8] sm:$0x1] %v337_v6 }
  0xc5   : > { %v844_v10 = vpop.permute.xlu1 %843  ;;  %v1443_v28 = vsel %vm3123_vm12, %v2847_v16, %v1442_v21  ;;  %368 = vst [vmem:[#allocation4 + $0xc] sm:$0x1] %v367_v26 }
  0xc6   : > { %863 = vst.msk [vmem:[#allocation3 + $0x14] sm:$0xf] %vm857_vm9, %v844_v10 }
  0xc7   : > { %1363 = vrot.lane.b32.xlu0 %v1336_v9, %s3011_s14  ;;  %v334_v9 = vsel %vm3060_vm4, 0, %v333_v47  ;;  %v1772_v21 = vld [vmem:[#allocation4 + $0x4] sm:$0x1] }
  0xc8   : > { %335 = vst [vmem:[#allocation4] sm:$0x1] %v334_v9  ;;  %v1797_v24 = vshll.u32 %v1772_v21, 16  ;;  %v379_v9 = vsel %vm3077_vm5, 0, %v378_v1 }
  0xc9   : > { %v842_v19 = vpop.permute.xlu0 %841  ;;  %1204 = vrot.lane.b32.xlu2 %v1181_v13, %s3006_s9  ;;  %v360_v13 = vld [vmem:[#allocation4 + $0x48] sm:$0x1]  ;;  %380 = vst [vmem:[#allocation4 + $0x2c] sm:$0x1] %v379_v9 }
  0xca   : > { %862 = vst.msk [vmem:[#allocation3 + $0x10] sm:$0xf] %vm857_vm9, %v842_v19  ;;  %v2949_v20 = vld [vmem:[#allocation3] sm:$0xff]  ;;  %v361_v14 = vsel %vm3060_vm4, 0, %v360_v13 }
  0xcb   : > { %911 = vst.msk [vmem:[#allocation3 + $0x10] sm:$0xf] %vm906_vm10, %v891_v57  ;;  %v1199_v23 = vpop.permute.xlu2 %1198  ;;  %2881 = vmatmul.msk.bf16.vlgmr.msra.gmra.mxu0 %vm3906_vm7, %v2949_v20  ;;  %v1707_v13 = vld [vmem:[#allocation4 + $0x8] sm:$0xf] }
  0xcc   : > { %362 = vst [vmem:[#allocation4 + $0x48] sm:$0x1] %v361_v14  ;;  %v1710_v14 = vld [vmem:[#allocation4 + $0xc] sm:$0x1] }
  0xcd   : > { %v1052_v27 = vpop.permute.xlu1 %1051 }
  0xce   : > { %1072 = vst.msk [vmem:[#allocation3 + $0x10] sm:$0xf] %vm1067_vm13, %v1052_v27 }
  0xcf   : > { %1462 = vrot.lane.b32.xlu0 %v1447_v25, %s3009_s12  ;;  %v1771_v20 = vld [vmem:[#allocation4] sm:$0xf] }
  0xd0   : > { %v1788_v22 = vshrl.u32 %v1771_v20, 16 }
  0xd1   : > { %v893_v29 = vpop.permute.xlu0 %892  ;;  %1460 = vrot.lane.b32.xlu2 %v1443_v28, %s3009_s12 }
  0xd2   : > { %912 = vst.msk [vmem:[#allocation3 + $0x14] sm:$0xf] %vm906_vm10, %v893_v29  ;;  %v1790_v28 = vrot.slane %v1788_v22, 4 }
  0xd3   : > { %1073 = vst.msk [vmem:[#allocation3 + $0x14] sm:$0xf] %vm1067_vm13, %v1054_v7  ;;  %v1362_v30 = vpop.permute.xlu2 %1361  ;;  %v2394_v25 = vld [vmem:[#allocation4 + $0x48] sm:$0xf] }
  0xd5   : > { %v1151_v31 = vpop.permute.xlu1 %1150 }
  0xd6   : > { %1170 = vst.msk [vmem:[#allocation3 + $0x14] sm:$0xf] %vm1164_vm1, %v1151_v31  ;;  %v2498_v31 = vshll.u32 %v2394_v25, 16 }
  0xd9   : > { %v1149_v32 = vpop.permute.xlu0 %1148 }
  0xda   : > { %1169 = vst.msk [vmem:[#allocation3 + $0x10] sm:$0xf] %vm1164_vm1, %v1149_v32  ;;  %v1799_v32 = vrot.slane %v1797_v24, 5 }
  0xdb   : > { %1219 = vst.msk [vmem:[#allocation3 + $0x10] sm:$0xf] %vm1214_vm2, %v1199_v23  ;;  %v738_v33 = vpop.permute.xlu2 %737  ;;  %v1791_v23 = vshll.u32 %v1771_v20, 16 }
  0xdc   : > { %760 = vst.msk [vmem:[#allocation3 + $0x8] sm:$0xf] %vm757_vm8, %v738_v33 }
  0xdd   : > { %v1360_v34 = vpop.permute.xlu1 %1359  ;;  %v1793_v29 = vrot.slane %v1791_v23, 5 }
  0xde   : > { %1380 = vst.msk [vmem:[#allocation3 + $0x10] sm:$0xf] %vm1375_vm3, %v1360_v34  ;;  %v2395_v34 = vld [vmem:[#allocation4 + $0x4c] sm:$0x1] }
  0xdf   : > { %v1794_v33 = vor.u32 %v1793_v29, %v1790_v28 }
  0xe1   : > { %v1201_v35 = vpop.permute.xlu0 %1200 }
  0xe2   : > { %1220 = vst.msk [vmem:[#allocation3 + $0x14] sm:$0xf] %vm1214_vm2, %v1201_v35 }
  0xe3   : > { %1381 = vst.msk [vmem:[#allocation3 + $0x14] sm:$0xf] %vm1375_vm3, %v1362_v30  ;;  %v840_v36 = vpop.permute.xlu2 %839  ;;  %v2495_v30 = vshrl.u32 %v2394_v25, 16 }
  0xe5   : > { %v1459_v37 = vpop.permute.xlu1 %1458  ;;  %v2497_v35 = vrot.slane %v2495_v30, 4 }
  0xe6   : > { %1478 = vst.msk [vmem:[#allocation3 + $0x14] sm:$0xf] %vm1472_vm6, %v1459_v37  ;;  %v2504_v37 = vshll.u32 %v2395_v34, 16 }
  0xe9   : > { %v1457_v38 = vpop.permute.xlu0 %1456 }
  0xea   : > { %1477 = vst.msk [vmem:[#allocation3 + $0x10] sm:$0xf] %vm1472_vm6, %v1457_v38 }
  0xeb   : > { %v1048_v39 = vpop.permute.xlu2 %1047 }
  0xed   : > { %v838_v40 = vpop.permute.xlu1 %837 }
  0xee   : > { %860 = vst.msk [vmem:[#allocation3 + $0x8] sm:$0xf] %vm857_vm9, %v838_v40 }
  0xf1   : > { %v740_v42 = vpop.permute.xlu0 %739  ;;  %v2951_v44 = vld [vmem:[#allocation3 + $0x10] sm:$0xff] }
  0xf2   : > { %761 = vst.msk [vmem:[#allocation3 + $0xc] sm:$0xf] %vm757_vm8, %v740_v42  ;;  %2883 = vmatmul.msk.bf16.vlgmr.msra.gmra.mxu2 %vm3906_vm7, %v2951_v44  ;;  %v339_v42 = vld [vmem:[#allocation4 + $0x10] sm:$0x1] }
  0xf3   : > { %861 = vst.msk [vmem:[#allocation3 + $0xc] sm:$0xf] %vm857_vm9, %v840_v36  ;;  %v1147_v46 = vpop.permute.xlu2 %1146  ;;  %v2500_v36 = vrot.slane %v2498_v31, 5  ;;  %v340_v44 = vsel %vm3060_vm4, 0, %v339_v42 }
  0xf4   : > { %341 = vst [vmem:[#allocation4 + $0x10] sm:$0x1] %v340_v44 }
  0xf5   : > { %v889_v48 = vpop.permute.xlu1 %888  ;;  %v2501_v40 = vor.u32 %v2500_v36, %v2497_v35 }
  0xf6   : > { %910 = vst.msk [vmem:[#allocation3 + $0xc] sm:$0xf] %vm906_vm10, %v889_v48 }
  0xf7   : > { %v2502_v48 = vrot.slane %v2501_v40, 4 }
  0xf9   : > { %v887_v4 = vpop.permute.xlu0 %886 }
  0xfa   : > { %909 = vst.msk [vmem:[#allocation3 + $0x8] sm:$0xf] %vm906_vm10, %v887_v4  ;;  %v2506_v4 = vrot.slane %v2504_v37, 5 }
  0xfb   : > { %1070 = vst.msk [vmem:[#allocation3 + $0x8] sm:$0xf] %vm1067_vm13, %v1048_v39  ;;  %v1356_v51 = vpop.permute.xlu2 %1355  ;;  %v1795_v39 = vrot.slane %v1794_v33, 4  ;;  %v1713_v31 = vld [vmem:[#allocation4 + $0x10] sm:$0xf] }
  0xfd   : > { %v1145_v50 = vpop.permute.xlu1 %1144 }
  0xfe   : > { %1167 = vst.msk [vmem:[#allocation3 + $0x8] sm:$0xf] %vm1164_vm1, %v1145_v50  ;;  %v370_v50 = vsel %vm3077_vm5, 0, %v369_v45 }
  0xff   : > { %371 = vst [vmem:[#allocation4 + $0x14] sm:$0x1] %v370_v50  ;;  %v381_v50 = vld [vmem:[#allocation4 + $0x34] sm:$0x1] }
 0x101   : > { %v1050_v52 = vpop.permute.xlu0 %1049 }
 0x102   : > { %1071 = vst.msk [vmem:[#allocation3 + $0xc] sm:$0xf] %vm1067_vm13, %v1050_v52 }
 0x103   : > { %1168 = vst.msk [vmem:[#allocation3 + $0xc] sm:$0xf] %vm1164_vm1, %v1147_v46  ;;  %v1455_v54 = vpop.permute.xlu2 %1454  ;;  %v1800_v46 = vsel %vm3135_vm14, %v1795_v39, %v1799_v32 }
 0x104   : > { %1899 = vrot.lane.b32.xlu1 %v1800_v46, %s3005_s8 }
 0x105   : > { %v1197_v53 = vpop.permute.xlu1 %1196 }
 0x106   : > { %1218 = vst.msk [vmem:[#allocation3 + $0xc] sm:$0xf] %vm1214_vm2, %v1197_v53  ;;  %v2507_v53 = vsel %vm3135_vm14, %v2502_v48, %v2506_v4  ;;  %v1716_v32 = vld [vmem:[#allocation4 + $0x14] sm:$0x1] }
 0x107   : > { %2522 = vrot.lane.b32.xlu0 %v2507_v53, %s3011_s14  ;;  %v2339_v53 = vld [vmem:[#allocation4 + $0x48] sm:$0xf] }
 0x109   : > { %v1195_v43 = vpop.permute.xlu0 %1194 }
 0x10a   : > { %1217 = vst.msk [vmem:[#allocation3 + $0x8] sm:$0xf] %vm1214_vm2, %v1195_v43 }
 0x10b   : > { %1378 = vst.msk [vmem:[#allocation3 + $0x8] sm:$0xf] %vm1375_vm3, %v1356_v51  ;;  %v846_v15 = vpop.permute.xlu2 %845  ;;  %v2554_v51 = vld [vmem:[#allocation4 + $0x48] sm:$0xe] }
 0x10c   : > { %v2908_v43 = vrot.slane %v2554_v51, 9 }
 0x10d   : > { %v1453_v56 = vpop.permute.xlu1 %1452 }
 0x10e   : > { %1475 = vst.msk [vmem:[#allocation3 + $0x8] sm:$0xf] %vm1472_vm6, %v1453_v56 }
 0x111   : > { %v1358_v8 = vpop.permute.xlu0 %1357 }
 0x112   : > { %1379 = vst.msk [vmem:[#allocation3 + $0xc] sm:$0xf] %vm1375_vm3, %v1358_v8 }
 0x113   : > { %1476 = vst.msk [vmem:[#allocation3 + $0xc] sm:$0xf] %vm1472_vm6, %v1455_v54  ;;  %v897_v60 = vpop.permute.xlu2 %896  ;;  %v2555_v54 = vld [vmem:[#allocation4 + $0x4c] sm:$0x1] }
 0x114   : > { %v2602_v56 = vrot.slane %v2555_v54, 5 }
 0x115   : > { %v748_v57 = vpop.permute.xlu1 %747 }
 0x116   : > { %765 = vst.msk [vmem:[#allocation3 + $0x1c] sm:$0xf] %vm757_vm8, %v748_v57  ;;  %v3515_v57 = vld [vmem:[%s3903_s5] ss:$0 sm:$0xff] }
 0x119   : > { %v746_v58 = vpop.permute.xlu0 %745 }
 0x11a   : > { %764 = vst.msk [vmem:[#allocation3 + $0x18] sm:$0xf] %vm757_vm8, %v746_v58  ;;  %v2950_v59 = vld [vmem:[#allocation3 + $0x8] sm:$0xff] }
 0x11b   : > { %864 = vst.msk [vmem:[#allocation3 + $0x18] sm:$0xf] %vm857_vm9, %v846_v15  ;;  %2882 = vmatmul.msk.bf16.gmra.mxu0 %vm3906_vm7, %v2950_v59  ;;  %v1153_v7 = vpop.permute.xlu2 %1152  ;;  %v2603_v15 = vsel %vm3123_vm12, %v2908_v43, %v2602_v56 }
 0x11c   : > { %2618 = vrot.lane.b32.xlu1 %v2603_v15, %s3009_s12 }
 0x11d   : > { %v895_v62 = vpop.permute.xlu1 %894 }
 0x11e   : > { %913 = vst.msk [vmem:[#allocation3 + $0x18] sm:$0xf] %vm906_vm10, %v895_v62 }
 0x121   : > { %v848_v63 = vpop.permute.xlu0 %847 }
 0x122   : > { %865 = vst.msk [vmem:[#allocation3 + $0x1c] sm:$0xf] %vm857_vm9, %v848_v63 }
 0x123   : > { %914 = vst.msk [vmem:[#allocation3 + $0x1c] sm:$0xf] %vm906_vm10, %v897_v60  ;;  %v1205_v16 = vpop.permute.xlu2 %1204 }
 0x125   : > { %v1058_v10 = vpop.permute.xlu1 %1057 }
 0x126   : > { %1075 = vst.msk [vmem:[#allocation3 + $0x1c] sm:$0xf] %vm1067_vm13, %v1058_v10 }
 0x129   : > { %v1056_v55 = vpop.permute.xlu0 %1055 }
 0x12a   : > { %1074 = vst.msk [vmem:[#allocation3 + $0x18] sm:$0xf] %vm1067_vm13, %v1056_v55 }
 0x12b   : > { %1171 = vst.msk [vmem:[#allocation3 + $0x18] sm:$0xf] %vm1164_vm1, %v1153_v7  ;;  %v1461_v49 = vpop.permute.xlu2 %1460  ;;  %v349_v7 = vsel %vm3060_vm4, 0, %v348_v0 }
 0x12c   : > { %350 = vst [vmem:[#allocation4 + $0x28] sm:$0x1] %v349_v7 }
 0x12d   : > { %v1203_v19 = vpop.permute.xlu1 %1202 }
 0x12e   : > { %1221 = vst.msk [vmem:[#allocation3 + $0x18] sm:$0xf] %vm1214_vm2, %v1203_v19  ;;  %v1931_v19 = vld [vmem:[#allocation4] sm:$0xe] }
 0x12f   : > { %v2885_v21 = vrot.slane %v1931_v19, 9 }
 0x131   : > { %v1155_v27 = vpop.permute.xlu0 %1154 }
 0x132   : > { %1172 = vst.msk [vmem:[#allocation3 + $0x1c] sm:$0xf] %vm1164_vm1, %v1155_v27 }
 0x133   : > { %1222 = vst.msk [vmem:[#allocation3 + $0x1c] sm:$0xf] %vm1214_vm2, %v1205_v16  ;;  %v1932_v16 = vld [vmem:[#allocation4 + $0x4] sm:$0x1] }
 0x134   : > { %v1965_v22 = vrot.slane %v1932_v16, 5 }
 0x135   : > { %v1366_v38 = vpop.permute.xlu1 %1365 }
 0x136   : > { %1383 = vst.msk [vmem:[#allocation3 + $0x1c] sm:$0xf] %vm1375_vm3, %v1366_v38  ;;  %v1966_v27 = vsel %vm3123_vm12, %v2885_v21, %v1965_v22 }
 0x137   : > { %1995 = vrot.lane.b32.xlu2 %v1966_v27, %s3004_s7 }
 0x139   : > { %v1364_v52 = vpop.permute.xlu0 %1363 }
 0x13a   : > { %1382 = vst.msk [vmem:[#allocation3 + $0x18] sm:$0xf] %vm1375_vm3, %v1364_v52  ;;  %v382_v52 = vsel %vm3077_vm5, 0, %v381_v50 }
 0x13b   : > { %1479 = vst.msk [vmem:[#allocation3 + $0x18] sm:$0xf] %vm1472_vm6, %v1461_v49  ;;  %v351_v49 = vld [vmem:[#allocation4 + $0x30] sm:$0x1] }
 0x13c   : > { %v352_v51 = vsel %vm3060_vm4, 0, %v351_v49  ;;  %383 = vst [vmem:[#allocation4 + $0x34] sm:$0x1] %v382_v52 }
 0x13d   : > { %353 = vst [vmem:[#allocation4 + $0x30] sm:$0x1] %v352_v51 }
 0x13f   : > { %2362 = vrot.lane.b32.xlu2 %v2339_v53, %s3006_s9 }
 0x141   : > { %v1463_v8 = vpop.permute.xlu0 %1462 }
 0x142   : > { %1480 = vst.msk [vmem:[#allocation3 + $0x1c] sm:$0xf] %vm1472_vm6, %v1463_v8 }
 0x148   : > { %v1574_v58 = vpop.f32.mrf.mxu0 }
 0x149   : > { %v2952_v59 = vld [vmem:[#allocation3 + $0x18] sm:$0xff]  ;;  %v1575_v60 = vadd.f32 %v3515_v57, %v1574_v58 }
 0x14a   : > { %2884 = vmatmul.msk.bf16.gmra.mxu2 %vm3906_vm7, %v2952_v59 }
 0x14b   : > { %vm1594_vm11 = vcmp.gt.f32.partialorder %v1575_v60, 0.0  ;;  %v1602_v62 = vmul.f32 0.1, %v1575_v60 }
 0x14d   : > { %v1610_v63 = vsel %vm1594_vm11, %v1575_v60, %v1602_v62  ;;  %v342_v62 = vld [vmem:[#allocation4 + $0x18] sm:$0x1] }
 0x14e   : > { %v1618_v47 = vpack.c.bf16 %v1610_v63, %v1610_v63  ;;  %v372_v63 = vld [vmem:[#allocation4 + $0x1c] sm:$0x1]  ;;  %v343_v0 = vsel %vm3060_vm4, 0, %v342_v62 }
 0x14f   : > { %v373_v1 = vsel %vm3077_vm5, 0, %v372_v63  ;;  %344 = vst [vmem:[#allocation4 + $0x18] sm:$0x1] %v343_v0 }
 0x150   : > { %v1627_v6 = vshrl.u32 %v1618_v47, 16  ;;  %v1576_v26 = vpop.f32.mrf.mxu0  ;;  %v1630_v12 = vshll.u32 %v1618_v47, 16  ;;  %374 = vst [vmem:[#allocation4 + $0x1c] sm:$0x1] %v373_v1 }
 0x151   : > { %v1577_v10 = vadd.f32 %v3515_v57, %v1576_v26 }
 0x152   : > { %v1629_v11 = vrot.slane %v1627_v6, 7 }
 0x153   : > { %vm1595_vm11 = vcmp.gt.f32.partialorder %v1577_v10, 0.0  ;;  %v1603_v55 = vmul.f32 0.1, %v1577_v10 }
 0x154   : > { %v1632_v17 = vor.u32 %v1630_v12, %v1629_v11  ;;  %v1633_v18 = vrot.slane %v1629_v11, 4  ;;  %v1731_v12 = vld [vmem:[#allocation4 + $0x28] sm:$0xf] }
 0x155   : > { %v1611_v20 = vsel %vm1595_vm11, %v1577_v10, %v1603_v55 }
 0x156   : > { %v1708_v23 = vsel %vm3142_vm15, %v1632_v17, %v1707_v13  ;;  %v1711_v24 = vsel %vm3060_vm4, %v1633_v18, %v1710_v14  ;;  %v1619_v25 = vpack.c.bf16 %v1611_v20, %v1611_v20  ;;  %v1734_v14 = vld [vmem:[#allocation4 + $0x2c] sm:$0x1] }
 0x157   : > { %1709 = vst [vmem:[#allocation4 + $0x8] sm:$0xf] %v1708_v23 }
 0x158   : > { %1712 = vst [vmem:[#allocation4 + $0xc] sm:$0x1] %v1711_v24  ;;  %v1635_v28 = vshrl.u32 %v1619_v25, 16  ;;  %v1638_v30 = vshll.u32 %v1619_v25, 16 }
 0x15a   : > { %v1637_v29 = vrot.slane %v1635_v28, 7 }
 0x15c   : > { %v1640_v33 = vor.u32 %v1638_v30, %v1637_v29  ;;  %v1641_v34 = vrot.slane %v1637_v29, 4  ;;  %v1737_v29 = vld [vmem:[#allocation4 + $0x30] sm:$0xf] }
 0x15e   : > { %v1714_v35 = vsel %vm3142_vm15, %v1640_v33, %v1713_v31  ;;  %v1717_v36 = vsel %vm3060_vm4, %v1641_v34, %v1716_v32  ;;  %v2027_v37 = vld [vmem:[#allocation4 + $0x8] sm:$0xf]  ;;  %v1740_v32 = vld [vmem:[#allocation4 + $0x34] sm:$0x1]  ;;  %v345_v33 = vld [vmem:[#allocation4 + $0x20] sm:$0x1] }
 0x15f   : > { %v2235_v38 = vld [vmem:[#allocation4 + $0x8] sm:$0xe]  ;;  %1715 = vst [vmem:[#allocation4 + $0x10] sm:$0xf] %v1714_v35  ;;  %2043 = vrot.lane.b32.xlu0 %v2027_v37, %s3008_s11  ;;  %v2236_v40 = vld [vmem:[#allocation4 + $0xc] sm:$0x1] }
 0x160   : > { %v1933_v39 = vld [vmem:[#allocation4 + $0x8] sm:$0xe]  ;;  %v2893_v42 = vrot.slane %v2235_v38, 9  ;;  %1718 = vst [vmem:[#allocation4 + $0x14] sm:$0x1] %v1717_v36  ;;  %v2269_v44 = vrot.slane %v2236_v40, 5 }
 0x161   : > { %v1934_v45 = vld [vmem:[#allocation4 + $0xc] sm:$0x1]  ;;  %v2886_v48 = vrot.slane %v1933_v39, 9  ;;  %v1756_v15 = vld [vmem:[#allocation4 + $0x8] sm:$0xf]  ;;  %v346_v38 = vsel %vm3060_vm4, 0, %v345_v33 }
 0x162   : > { %v2270_v46 = vsel %vm3123_vm12, %v2893_v42, %v2269_v44  ;;  %v1969_v4 = vrot.slane %v1934_v45, 5  ;;  %1764 = vst.msk [vmem:[#allocation5 + $0x4] sm:$0xf] %vm256_vm0, %v1756_v15  ;;  %v1773_v13 = vld [vmem:[#allocation4 + $0x8] sm:$0xf] }
 0x163   : > { %2299 = vrot.lane.b32.xlu1 %v2270_v46, %s3007_s10  ;;  %v1802_v16 = vshrl.u32 %v1773_v13, 16  ;;  %v1805_v23 = vshll.u32 %v1773_v13, 16  ;;  %v2075_v25 = vld [vmem:[#allocation4 + $0x8] sm:$0xf]  ;;  %v375_v34 = vld [vmem:[#allocation4 + $0x24] sm:$0x1] }
 0x164   : > { %v1970_v54 = vsel %vm3123_vm12, %v2886_v48, %v1969_v4  ;;  %v1774_v37 = vld [vmem:[#allocation4 + $0xc] sm:$0x1]  ;;  %v2092_v39 = vshrl.u32 %v2075_v25, 16  ;;  %v2095_v40 = vshll.u32 %v2075_v25, 16  ;;  %347 = vst [vmem:[#allocation4 + $0x20] sm:$0x1] %v346_v38 }
 0x165   : > { %v1804_v30 = vrot.slane %v1802_v16, 4  ;;  %v1807_v31 = vrot.slane %v1805_v23, 5  ;;  %v376_v42 = vsel %vm3077_vm5, 0, %v375_v34 }
 0x166   : > { %v2028_v43 = vld [vmem:[#allocation4 + $0x10] sm:$0xf]  ;;  %377 = vst [vmem:[#allocation4 + $0x24] sm:$0x1] %v376_v42 }
 0x167   : > { %1997 = vrot.lane.b32.xlu0 %v1970_v54, %s3004_s7  ;;  %v2332_v56 = vld [vmem:[#allocation4 + $0x10] sm:$0xf]  ;;  %v1808_v49 = vor.u32 %v1807_v31, %v1804_v30 }
 0x168   : > { %v1757_v8 = vld [vmem:[#allocation4 + $0x10] sm:$0xf] }
 0x169   : > { %1765 = vst.msk [vmem:[#allocation5 + $0x8] sm:$0xf] %vm256_vm0, %v1757_v8  ;;  %v2077_v50 = vld [vmem:[#allocation4 + $0x10] sm:$0xf]  ;;  %v2094_v8 = vrot.slane %v2092_v39, 4 }
 0x16a   : > { %v2540_v63 = vld [vmem:[#allocation4 + $0x10] sm:$0xe]  ;;  %v2106_v0 = vshrl.u32 %v2077_v50, 16  ;;  %v2109_v1 = vshll.u32 %v2077_v50, 16 }
 0x16b   : > { %2045 = vrot.lane.b32.xlu1 %v2028_v43, %s3008_s11 }
 0x16c   : > { %v2108_v13 = vrot.slane %v2106_v0, 4 }
 0x16f   : > { %2348 = vrot.lane.b32.xlu0 %v2332_v56, %s3006_s9  ;;  %v1811_v56 = vshll.u32 %v1774_v37, 16 }
 0x175   : > { %v1584_v58 = vpop.f32.mrf.mxu2 }
 0x176   : > { %v1585_v59 = vadd.f32 %v3515_v57, %v1584_v58  ;;  %v2097_v58 = vrot.slane %v2095_v40, 5 }
 0x178   : > { %vm1598_vm11 = vcmp.gt.f32.partialorder %v1585_v59, 0.0  ;;  %v1606_v60 = vmul.f32 0.1, %v1585_v59 }
 0x17a   : > { %v1614_v47 = vsel %vm1598_vm11, %v1585_v59, %v1606_v60  ;;  %v1809_v60 = vrot.slane %v1808_v49, 4 }
 0x17b   : > { %v1622_v6 = vpack.c.bf16 %v1614_v47, %v1614_v47  ;;  %v2541_v47 = vld [vmem:[#allocation4 + $0x14] sm:$0x1] }
 0x17d   : > { %v1659_v26 = vshrl.u32 %v1622_v6, 16  ;;  %v1586_v7 = vpop.f32.mrf.mxu2  ;;  %v1662_v11 = vshll.u32 %v1622_v6, 16  ;;  %v1813_v6 = vrot.slane %v1811_v56, 5 }
 0x17e   : > { %v1587_v9 = vadd.f32 %v3515_v57, %v1586_v7  ;;  %v2098_v7 = vor.u32 %v2097_v58, %v2094_v8 }
 0x17f   : > { %v1661_v10 = vrot.slane %v1659_v26, 7  ;;  %v2076_v26 = vld [vmem:[#allocation4 + $0xc] sm:$0x1] }
 0x180   : > { %vm1599_vm7 = vcmp.gt.f32.partialorder %v1587_v9, 0.0  ;;  %v1607_v55 = vmul.f32 0.1, %v1587_v9 }
 0x181   : > { %v1664_v17 = vor.u32 %v1662_v11, %v1661_v10  ;;  %v1665_v18 = vrot.slane %v1661_v10, 4  ;;  %v2901_v10 = vrot.slane %v2540_v63, 9  ;;  %v2574_v11 = vrot.slane %v2541_v47, 5 }
 0x182   : > { %v1615_v19 = vsel %vm1599_vm7, %v1587_v9, %v1607_v55  ;;  %v1814_v9 = vsel %vm3135_vm14, %v1809_v60, %v1813_v6 }
 0x183   : > { %v1732_v20 = vsel %vm3142_vm15, %v1664_v17, %v1731_v12  ;;  %v1735_v21 = vsel %vm3060_vm4, %v1665_v18, %v1734_v14  ;;  %v1623_v22 = vpack.c.bf16 %v1615_v19, %v1615_v19  ;;  %v2101_v12 = vshll.u32 %v2076_v26, 16  ;;  %v1775_v17 = vld [vmem:[#allocation4 + $0x10] sm:$0xf]  ;;  %v2078_v19 = vld [vmem:[#allocation4 + $0x14] sm:$0x1] }
 0x184   : > { %1733 = vst [vmem:[#allocation4 + $0x28] sm:$0xf] %v1732_v20  ;;  %v2111_v14 = vrot.slane %v2109_v1, 5  ;;  %v2099_v18 = vrot.slane %v2098_v7, 4  ;;  %v2575_v16 = vsel %vm3123_vm12, %v2901_v10, %v2574_v11  ;;  %v1935_v20 = vld [vmem:[#allocation4 + $0x10] sm:$0xe] }
 0x185   : > { %1736 = vst [vmem:[#allocation4 + $0x2c] sm:$0x1] %v1735_v21  ;;  %v1667_v24 = vshrl.u32 %v1623_v22, 16  ;;  %v1670_v28 = vshll.u32 %v1623_v22, 16  ;;  %v1936_v21 = vld [vmem:[#allocation4 + $0x14] sm:$0x1] }
 0x186   : > { %v1819_v30 = vshll.u32 %v1775_v17, 16  ;;  %v2887_v34 = vrot.slane %v1935_v20, 9  ;;  %v1719_v26 = vld [vmem:[#allocation4 + $0x18] sm:$0xf] }
 0x187   : > { %v1669_v27 = vrot.slane %v1667_v24, 7 }
 0x189   : > { %v1672_v35 = vor.u32 %v1670_v28, %v1669_v27  ;;  %v1673_v36 = vrot.slane %v1669_v27, 4  ;;  %v2103_v27 = vrot.slane %v2101_v12, 5  ;;  %v2112_v28 = vor.u32 %v2111_v14, %v2108_v13 }
 0x18b   : > { %v1738_v44 = vsel %vm3142_vm15, %v1672_v35, %v1737_v29  ;;  %v1741_v45 = vsel %vm3060_vm4, %v1673_v36, %v1740_v32  ;;  %v2031_v46 = vld [vmem:[#allocation4 + $0x28] sm:$0xf]  ;;  %v1816_v29 = vshrl.u32 %v1775_v17, 16  ;;  %v2115_v32 = vshll.u32 %v2078_v19, 16  ;;  %v2237_v36 = vld [vmem:[#allocation4 + $0x10] sm:$0xe] }
 0x18c   : > { %v1941_v48 = vld [vmem:[#allocation4 + $0x28] sm:$0xe]  ;;  %1739 = vst [vmem:[#allocation4 + $0x30] sm:$0xf] %v1738_v44  ;;  %2051 = vrot.lane.b32.xlu2 %v2031_v46, %s3008_s11  ;;  %v1942_v51 = vld [vmem:[#allocation4 + $0x2c] sm:$0x1]  ;;  %v2104_v33 = vsel %vm3135_vm14, %v2099_v18, %v2103_v27 }
 0x18d   : > { %v2243_v4 = vld [vmem:[#allocation4 + $0x28] sm:$0xe]  ;;  %v2890_v52 = vrot.slane %v1941_v48, 9  ;;  %1742 = vst [vmem:[#allocation4 + $0x34] sm:$0x1] %v1741_v45  ;;  %v1985_v54 = vrot.slane %v1942_v51, 5 }
 0x18e   : > { %v2897_v53 = vrot.slane %v2243_v4, 9  ;;  %v2244_v43 = vld [vmem:[#allocation4 + $0x2c] sm:$0x1]  ;;  %v2083_v55 = vld [vmem:[#allocation4 + $0x28] sm:$0xf]  ;;  %v1973_v35 = vrot.slane %v1936_v21, 5 }
 0x18f   : > { %v2285_v15 = vrot.slane %v2244_v43, 5  ;;  %v1986_v59 = vsel %vm3123_vm12, %v2890_v52, %v1985_v54  ;;  %v2148_v22 = vshrl.u32 %v2083_v55, 16  ;;  %v2151_v23 = vshll.u32 %v2083_v55, 16  ;;  %v1760_v37 = vld [vmem:[#allocation4 + $0x28] sm:$0xf] }
 0x190   : > { %2005 = vrot.lane.b32.xlu1 %v1986_v59, %s3004_s7  ;;  %v2113_v42 = vrot.slane %v2112_v28, 4  ;;  %v2238_v44 = vld [vmem:[#allocation4 + $0x14] sm:$0x1]  ;;  %v1818_v45 = vrot.slane %v1816_v29, 4  ;;  %v1821_v46 = vrot.slane %v1819_v30, 5  ;;  %v2117_v4 = vrot.slane %v2115_v32, 5  ;;  %v1900_v29 = vpop.permute.xlu1 %1899 }
 0x191   : > { %v2286_v62 = vsel %vm3123_vm12, %v2897_v53, %v2285_v15  ;;  %v2150_v39 = vrot.slane %v2148_v22, 4  ;;  %v2153_v40 = vrot.slane %v2151_v23, 5  ;;  %1768 = vst.msk [vmem:[#allocation5 + $0x14] sm:$0xf] %vm256_vm0, %v1760_v37  ;;  %v2084_v50 = vld [vmem:[#allocation4 + $0x2c] sm:$0x1]  ;;  %v1974_v53 = vsel %vm3123_vm12, %v2887_v34, %v1973_v35 }
 0x192   : > { %2307 = vrot.lane.b32.xlu0 %v2286_v62, %s3007_s10  ;;  %v1776_v51 = vld [vmem:[#allocation4 + $0x14] sm:$0x1]  ;;  %v1781_v52 = vld [vmem:[#allocation4 + $0x28] sm:$0xf]  ;;  %v2894_v54 = vrot.slane %v2237_v36, 9  ;;  %v2273_v43 = vrot.slane %v2238_v44, 5  ;;  %v2118_v58 = vsel %vm3135_vm14, %v2113_v42, %v2117_v4  ;;  %v1822_v60 = vor.u32 %v1821_v46, %v1818_v45 }
 0x193   : > { %v2032_v24 = vld [vmem:[#allocation4 + $0x30] sm:$0xf]  ;;  %v2154_v56 = vor.u32 %v2153_v40, %v2150_v39  ;;  %v1755_v62 = vld [vmem:[#allocation4] sm:$0xf]  ;;  %v2157_v47 = vshll.u32 %v2084_v50, 16  ;;  %v1825_v0 = vshll.u32 %v1776_v51, 16 }
 0x194   : > { %1901 = vrot.lane.b32.xlu2 %v1814_v9, %s3005_s8  ;;  %v1858_v1 = vshrl.u32 %v1781_v52, 16  ;;  %1763 = vst.msk [vmem:[#allocation5] sm:$0xf] %vm256_vm0, %v1755_v62  ;;  %v1861_v7 = vshll.u32 %v1781_v52, 16  ;;  %v1722_v9 = vld [vmem:[#allocation4 + $0x1c] sm:$0x1]  ;;  %v2274_v11 = vsel %vm3123_vm12, %v2894_v54, %v2273_v43 }
 0x195   : > { %v2155_v12 = vrot.slane %v2154_v56, 4  ;;  %v1823_v55 = vrot.slane %v1822_v60, 4  ;;  %v1761_v17 = vld [vmem:[#allocation4 + $0x30] sm:$0xf]  ;;  %v2159_v19 = vrot.slane %v2157_v47, 5 }
 0x196   : > { %v1860_v20 = vrot.slane %v1858_v1, 4  ;;  %1769 = vst.msk [vmem:[#allocation5 + $0x18] sm:$0xf] %vm256_vm0, %v1761_v17  ;;  %v1782_v32 = vld [vmem:[#allocation4 + $0x2c] sm:$0x1] }
 0x197   : > { %1923 = vst.msk [vmem:[#allocation5] sm:$0xf] %vm757_vm8, %v1900_v29  ;;  %v1725_v34 = vld [vmem:[#allocation4 + $0x20] sm:$0xf]  ;;  %v1728_v35 = vld [vmem:[#allocation4 + $0x24] sm:$0x1] }
 0x198   : > { %2604 = vrot.lane.b32.xlu1 %v2575_v16, %s3009_s12  ;;  %v1579_v25 = vpop.f32.mrf.mxu0  ;;  %v1827_v16 = vrot.slane %v1825_v0, 5  ;;  %v2336_v36 = vld [vmem:[#allocation4 + $0x30] sm:$0xf]  ;;  %v354_v39 = vld [vmem:[#allocation4 + $0x38] sm:$0x1]  ;;  %v1867_v42 = vshll.u32 %v1782_v32, 16 }
 0x199   : > { %v1580_v31 = vadd.f32 %v3515_v57, %v1579_v25  ;;  %v2160_v25 = vsel %vm3135_vm14, %v2155_v12, %v2159_v19  ;;  %v384_v40 = vld [vmem:[#allocation4 + $0x3c] sm:$0x1]  ;;  %v2380_v44 = vld [vmem:[#allocation4 + $0x10] sm:$0xf]  ;;  %v355_v51 = vsel %vm3060_vm4, 0, %v354_v39 }
 0x19a   : > { %2053 = vrot.lane.b32.xlu0 %v2032_v24, %s3008_s11  ;;  %v1863_v24 = vrot.slane %v1861_v7, 5  ;;  %v1828_v28 = vsel %vm3135_vm14, %v1823_v55, %v1827_v16  ;;  %v2245_v50 = vld [vmem:[#allocation4 + $0x30] sm:$0xe]  ;;  %v385_v54 = vsel %vm3077_vm5, 0, %v384_v40  ;;  %v2246_v56 = vld [vmem:[#allocation4 + $0x34] sm:$0x1] }
 0x19b   : > { %vm1596_vm7 = vcmp.gt.f32.partialorder %v1580_v31, 0.0  ;;  %v1604_v38 = vmul.f32 0.1, %v1580_v31  ;;  %356 = vst [vmem:[#allocation4 + $0x38] sm:$0x1] %v355_v51  ;;  %v2898_v60 = vrot.slane %v2245_v50, 9 }
 0x19c   : > { %2203 = vrot.lane.b32.xlu2 %v2104_v33, %s3010_s13  ;;  %v1864_v33 = vor.u32 %v1863_v24, %v1860_v20  ;;  %386 = vst [vmem:[#allocation4 + $0x3c] sm:$0x1] %v385_v54  ;;  %v2289_v62 = vrot.slane %v2246_v56, 5  ;;  %v2381_v7 = vld [vmem:[#allocation4 + $0x14] sm:$0x1] }
 0x19d   : > { %v1612_v48 = vsel %vm1596_vm7, %v1580_v31, %v1604_v38  ;;  %v357_v55 = vld [vmem:[#allocation4 + $0x40] sm:$0x1]  ;;  %v387_v17 = vld [vmem:[#allocation4 + $0x44] sm:$0x1]  ;;  %v1944_v24 = vld [vmem:[#allocation4 + $0x34] sm:$0x1] }
 0x19e   : > { %v1620_v49 = vpack.c.bf16 %v1612_v48, %v1612_v48  ;;  %v2290_v47 = vsel %vm3123_vm12, %v2898_v60, %v2289_v62  ;;  %v388_v19 = vsel %vm3077_vm5, 0, %v387_v17  ;;  %v2388_v54 = vld [vmem:[#allocation4 + $0x30] sm:$0xf] }
 0x19f   : > { %389 = vst [vmem:[#allocation4 + $0x44] sm:$0x1] %v388_v19 }
 0x1a0   : > { %v1643_v15 = vshrl.u32 %v1620_v49, 16  ;;  %v1646_v8 = vshll.u32 %v1620_v49, 16  ;;  %1999 = vrot.lane.b32.xlu1 %v1974_v53, %s3004_s7  ;;  %v1581_v59 = vpop.f32.mrf.mxu0  ;;  %v1865_v49 = vrot.slane %v1864_v33, 4 }
 0x1a1   : > { %v1582_v63 = vadd.f32 %v3515_v57, %v1581_v59 }
 0x1a2   : > { %2205 = vrot.lane.b32.xlu0 %v2118_v58, %s3010_s13  ;;  %v1645_v6 = vrot.slane %v1643_v15, 7  ;;  %v1869_v15 = vrot.slane %v1867_v42, 5  ;;  %v2397_v58 = vshrl.u32 %v2380_v44, 16 }
 0x1a3   : > { %vm1597_vm11 = vcmp.gt.f32.partialorder %v1582_v63, 0.0  ;;  %v1605_v10 = vmul.f32 0.1, %v1582_v63 }
 0x1a4   : > { %v1648_v13 = vor.u32 %v1646_v8, %v1645_v6  ;;  %v1649_v14 = vrot.slane %v1645_v6, 4  ;;  %2301 = vrot.lane.b32.xlu2 %v2274_v11, %s3007_s10  ;;  %v1870_v59 = vsel %vm3135_vm14, %v1865_v49, %v1869_v15  ;;  %v2399_v0 = vrot.slane %v2397_v58, 4  ;;  %v2548_v6 = vld [vmem:[#allocation4 + $0x30] sm:$0xe]  ;;  %v1743_v15 = vld [vmem:[#allocation4 + $0x38] sm:$0xf] }
 0x1a5   : > { %v1613_v18 = vsel %vm1597_vm11, %v1582_v63, %v1605_v10  ;;  %v2400_v63 = vshll.u32 %v2380_v44, 16  ;;  %v2905_v11 = vrot.slane %v2548_v6, 9  ;;  %v2086_v6 = vld [vmem:[#allocation4 + $0x34] sm:$0x1] }
 0x1a6   : > { %v1720_v21 = vsel %vm3142_vm15, %v1648_v13, %v1719_v26  ;;  %v1723_v22 = vsel %vm3060_vm4, %v1649_v14, %v1722_v9  ;;  %v1621_v23 = vpack.c.bf16 %v1613_v18, %v1613_v18  ;;  %v2549_v26 = vld [vmem:[#allocation4 + $0x34] sm:$0x1]  ;;  %v1996_v9 = vpop.permute.xlu2 %1995  ;;  %v2406_v14 = vshll.u32 %v2381_v7, 16 }
 0x1a7   : > { %1721 = vst [vmem:[#allocation4 + $0x18] sm:$0xf] %v1720_v21  ;;  %v2402_v1 = vrot.slane %v2400_v63, 5  ;;  %v2590_v12 = vrot.slane %v2549_v26, 5  ;;  %v358_v18 = vsel %vm3060_vm4, 0, %v357_v55 }
 0x1a8   : > { %1724 = vst [vmem:[#allocation4 + $0x1c] sm:$0x1] %v1723_v22  ;;  %v1651_v27 = vshrl.u32 %v1621_v23, 16  ;;  %2211 = vrot.lane.b32.xlu1 %v2160_v25, %s3010_s13  ;;  %v1654_v31 = vshll.u32 %v1621_v23, 16  ;;  %v2408_v21 = vrot.slane %v2406_v14, 5 }
 0x1a9   : > { %v2403_v13 = vor.u32 %v2402_v1, %v2399_v0  ;;  %2019 = vst.msk [vmem:[#allocation5] sm:$0xf] %vm857_vm9, %v1996_v9  ;;  %v2591_v16 = vsel %vm3123_vm12, %v2905_v11, %v2590_v12  ;;  %v1943_v23 = vld [vmem:[#allocation4 + $0x30] sm:$0xe]  ;;  %v2453_v0 = vshrl.u32 %v2388_v54, 16 }
 0x1aa   : > { %1903 = vrot.lane.b32.xlu0 %v1828_v28, %s3005_s8  ;;  %v1653_v30 = vrot.slane %v1651_v27, 7  ;;  %359 = vst [vmem:[#allocation4 + $0x40] sm:$0x1] %v358_v18  ;;  %v3642_v27 = vpop.permute.xlu0 %2522  ;;  %v2891_v5 = vrot.slane %v1943_v23, 9  ;;  %v1989_v28 = vrot.slane %v1944_v24, 5  ;;  %v2171_v18 = vshll.u32 %v2086_v6, 16 }
 0x1ab   : > { %v2404_v20 = vrot.slane %v2403_v13, 4  ;;  %v3661_v13 = vpop.permute.xlu1 %2618 }
 0x1ac   : > { %v1656_v37 = vor.u32 %v1654_v31, %v1653_v30  ;;  %v1657_v38 = vrot.slane %v1653_v30, 4  ;;  %2356 = vrot.lane.b32.xlu2 %v2336_v36, %s3006_s9  ;;  %v1990_v30 = vsel %vm3123_vm12, %v2891_v5, %v1989_v28 }
 0x1ad   : > { %v2409_v22 = vsel %vm3135_vm14, %v2404_v20, %v2408_v21  ;;  %v1783_v21 = vld [vmem:[#allocation4 + $0x30] sm:$0xf] }
 0x1ae   : > { %v1726_v45 = vsel %vm3142_vm15, %v1656_v37, %v1725_v34  ;;  %v1729_v46 = vsel %vm3060_vm4, %v1657_v38, %v1728_v35  ;;  %v2333_v48 = vld [vmem:[#allocation4 + $0x18] sm:$0xf]  ;;  %v2085_v37 = vld [vmem:[#allocation4 + $0x30] sm:$0xf]  ;;  %v3664_v14 = vpop.permute.xlu2 %2362 }
 0x1af   : > { %v2239_v4 = vld [vmem:[#allocation4 + $0x18] sm:$0xe]  ;;  %1727 = vst [vmem:[#allocation4 + $0x20] sm:$0xf] %v1726_v45  ;;  %v2240_v52 = vld [vmem:[#allocation4 + $0x1c] sm:$0x1] }
 0x1b0   : > { %v2895_v53 = vrot.slane %v2239_v4, 9  ;;  %1730 = vst [vmem:[#allocation4 + $0x24] sm:$0x1] %v1729_v46  ;;  %2350 = vrot.lane.b32.xlu1 %v2333_v48, %s3006_s9  ;;  %v2277_v43 = vrot.slane %v2240_v52, 5  ;;  %v2029_v10 = vld [vmem:[#allocation4 + $0x18] sm:$0xf] }
 0x1b1   : > { %v1758_v25 = vld [vmem:[#allocation4 + $0x18] sm:$0xf]  ;;  %v2543_v32 = vld [vmem:[#allocation4 + $0x1c] sm:$0x1]  ;;  %v2162_v42 = vshrl.u32 %v2085_v37, 16  ;;  %v2165_v4 = vshll.u32 %v2085_v37, 16 }
 0x1b2   : > { %v2278_v8 = vsel %vm3123_vm12, %v2895_v53, %v2277_v43  ;;  %1766 = vst.msk [vmem:[#allocation5 + $0xc] sm:$0xf] %vm256_vm0, %v1758_v25  ;;  %v2542_v31 = vld [vmem:[#allocation4 + $0x18] sm:$0xe]  ;;  %v2578_v36 = vrot.slane %v2543_v32, 5 }
 0x1b3   : > { %2303 = vrot.lane.b32.xlu0 %v2278_v8, %s3007_s10  ;;  %v2902_v35 = vrot.slane %v2542_v31, 9  ;;  %v1937_v46 = vld [vmem:[#allocation4 + $0x18] sm:$0xe]  ;;  %v1938_v48 = vld [vmem:[#allocation4 + $0x1c] sm:$0x1]  ;;  %v2164_v52 = vrot.slane %v2162_v42, 4 }
 0x1b4   : > { %1909 = vrot.lane.b32.xlu2 %v1870_v59, %s3005_s8  ;;  %v1777_v53 = vld [vmem:[#allocation4 + $0x18] sm:$0xf]  ;;  %v2888_v8 = vrot.slane %v1937_v46, 9  ;;  %v1977_v58 = vrot.slane %v1938_v48, 5  ;;  %v1746_v59 = vld [vmem:[#allocation4 + $0x3c] sm:$0x1] }
 0x1b5   : > { %v2579_v45 = vsel %vm3123_vm12, %v2902_v35, %v2578_v36  ;;  %v2167_v62 = vrot.slane %v2165_v4, 5  ;;  %v1830_v26 = vshrl.u32 %v1777_v53, 16  ;;  %v1833_v7 = vshll.u32 %v1777_v53, 16  ;;  %v1778_v19 = vld [vmem:[#allocation4 + $0x1c] sm:$0x1] }
 0x1b6   : > { %v1759_v29 = vld [vmem:[#allocation4 + $0x20] sm:$0xf]  ;;  %v1978_v12 = vsel %vm3123_vm12, %v2888_v8, %v1977_v58  ;;  %v2079_v5 = vld [vmem:[#allocation4 + $0x18] sm:$0xf]  ;;  %v1872_v35 = vshrl.u32 %v1783_v21, 16  ;;  %v1839_v36 = vshll.u32 %v1778_v19, 16 }
 0x1b7   : > { %1767 = vst.msk [vmem:[#allocation5 + $0x10] sm:$0xf] %vm256_vm0, %v1759_v29  ;;  %v2168_v55 = vor.u32 %v2167_v62, %v2164_v52  ;;  %v1832_v24 = vrot.slane %v1830_v26, 4  ;;  %v1835_v25 = vrot.slane %v1833_v7, 5  ;;  %v1749_v28 = vld [vmem:[#allocation4 + $0x40] sm:$0xf] }
 0x1b8   : > { %2309 = vrot.lane.b32.xlu1 %v2290_v47, %s3007_s10  ;;  %v1752_v29 = vld [vmem:[#allocation4 + $0x44] sm:$0x1]  ;;  %v2123_v48 = vshll.u32 %v2079_v5, 16  ;;  %v1874_v53 = vrot.slane %v1872_v35, 4  ;;  %v1784_v58 = vld [vmem:[#allocation4 + $0x34] sm:$0x1] }
 0x1b9   : > { %v1836_v46 = vor.u32 %v1835_v25, %v1832_v24  ;;  %v2080_v62 = vld [vmem:[#allocation4 + $0x1c] sm:$0x1] }
 0x1ba   : > { %v2125_v8 = vrot.slane %v2123_v48, 5  ;;  %v2129_v7 = vshll.u32 %v2080_v62, 16  ;;  %v2030_v48 = vld [vmem:[#allocation4 + $0x20] sm:$0xf] }
 0x1bc   : > { %2047 = vrot.lane.b32.xlu2 %v2029_v10, %s3008_s11  ;;  %v2131_v19 = vrot.slane %v2129_v7, 5 }
 0x1c0   : > { %2612 = vrot.lane.b32.xlu1 %v2591_v16, %s3009_s12  ;;  %v2455_v16 = vrot.slane %v2453_v0, 4  ;;  %v1881_v0 = vshll.u32 %v1784_v58, 16 }
 0x1c4   : > { %2508 = vrot.lane.b32.xlu2 %v2409_v22, %s3011_s14 }
 0x1cc   : > { %2007 = vrot.lane.b32.xlu2 %v1990_v30, %s3004_s7  ;;  %v2169_v30 = vrot.slane %v2168_v55, 4 }
 0x1cd   : > { %v1589_v33 = vpop.f32.mrf.mxu2 }
 0x1ce   : > { %v1590_v34 = vadd.f32 %v3515_v57, %v1589_v33  ;;  %v2173_v33 = vrot.slane %v2171_v18, 5 }
 0x1d0   : > { %vm1600_vm5 = vcmp.gt.f32.partialorder %v1590_v34, 0.0  ;;  %v1608_v38 = vmul.f32 0.1, %v1590_v34  ;;  %v2174_v4 = vsel %vm3135_vm14, %v2169_v30, %v2173_v33 }
 0x1d1   : > { %v2044_v39 = vpop.permute.xlu0 %2043 }
 0x1d2   : > { %v1616_v40 = vsel %vm1600_vm5, %v1590_v34, %v1608_v38  ;;  %2067 = vst.msk [vmem:[#allocation5] sm:$0xf] %vm906_vm10, %v2044_v39  ;;  %v2389_v34 = vld [vmem:[#allocation4 + $0x34] sm:$0x1]  ;;  %v2120_v38 = vshrl.u32 %v2079_v5, 16  ;;  %v1875_v39 = vshll.u32 %v1783_v21, 16 }
 0x1d3   : > { %v1624_v44 = vpack.c.bf16 %v1616_v40, %v1616_v40 }
 0x1d4   : > { %2606 = vrot.lane.b32.xlu2 %v2579_v45, %s3009_s12 }
 0x1d5   : > { %v1675_v49 = vshrl.u32 %v1624_v44, 16  ;;  %v1591_v50 = vpop.f32.mrf.mxu2  ;;  %v1678_v56 = vshll.u32 %v1624_v44, 16  ;;  %v2300_v2 = vpop.permute.xlu1 %2299 }
 0x1d6   : > { %v1592_v51 = vadd.f32 %v3515_v57, %v1591_v50  ;;  %v2456_v57 = vshll.u32 %v2388_v54, 16  ;;  %v1877_v54 = vrot.slane %v1875_v39, 5 }
 0x1d7   : > { %v1677_v43 = vrot.slane %v1675_v49, 7  ;;  %v2462_v49 = vshll.u32 %v2389_v34, 16  ;;  %v2383_v34 = vld [vmem:[#allocation4 + $0x1c] sm:$0x1] }
 0x1d8   : > { %vm1601_vm7 = vcmp.gt.f32.partialorder %v1592_v51, 0.0  ;;  %v1609_v60 = vmul.f32 0.1, %v1592_v51  ;;  %v2458_v20 = vrot.slane %v2456_v57, 5 }
 0x1d9   : > { %v1680_v63 = vor.u32 %v1678_v56, %v1677_v43  ;;  %v1681_v47 = vrot.slane %v1677_v43, 4  ;;  %v1837_v43 = vrot.slane %v1836_v46, 4  ;;  %v1841_v56 = vrot.slane %v1839_v36, 5 }
 0x1da   : > { %v1617_v1 = vsel %vm1601_vm7, %v1592_v51, %v1609_v60  ;;  %v2459_v37 = vor.u32 %v2458_v20, %v2455_v16  ;;  %v2382_v16 = vld [vmem:[#allocation4 + $0x18] sm:$0xf] }
 0x1db   : > { %v1744_v9 = vsel %vm3142_vm15, %v1680_v63, %v1743_v15  ;;  %v1747_v10 = vsel %vm3060_vm4, %v1681_v47, %v1746_v59  ;;  %v1625_v11 = vpack.c.bf16 %v1617_v1, %v1617_v1  ;;  %v2122_v15 = vrot.slane %v2120_v38, 4 }
 0x1dc   : > { %1745 = vst [vmem:[#allocation4 + $0x38] sm:$0xf] %v1744_v9  ;;  %2001 = vrot.lane.b32.xlu2 %v1978_v12, %s3004_s7  ;;  %v2460_v52 = vrot.slane %v2459_v37, 4  ;;  %v2464_v63 = vrot.slane %v2462_v49, 5  ;;  %v1878_v47 = vor.u32 %v1877_v54, %v1874_v53  ;;  %v1842_v1 = vsel %vm3135_vm14, %v1837_v43, %v1841_v56 }
 0x1dd   : > { %1748 = vst [vmem:[#allocation4 + $0x3c] sm:$0x1] %v1747_v10  ;;  %v1683_v17 = vshrl.u32 %v1625_v11, 16  ;;  %v1686_v23 = vshll.u32 %v1625_v11, 16  ;;  %v2126_v26 = vor.u32 %v2125_v8, %v2122_v15  ;;  %v1998_v11 = vpop.permute.xlu0 %1997  ;;  %v2046_v20 = vpop.permute.xlu1 %2045  ;;  %v2411_v25 = vshrl.u32 %v2382_v16, 16 }
 0x1de   : > { %v2465_v6 = vsel %vm3135_vm14, %v2460_v52, %v2464_v63  ;;  %v1879_v55 = vrot.slane %v1878_v47, 4  ;;  %v2414_v30 = vshll.u32 %v2382_v16, 16 }
 0x1df   : > { %v1685_v22 = vrot.slane %v1683_v17, 7  ;;  %v1883_v17 = vrot.slane %v1881_v0, 5  ;;  %v2127_v18 = vrot.slane %v2126_v26, 4  ;;  %v2413_v37 = vrot.slane %v2411_v25, 4 }
 0x1e0   : > { %v2416_v38 = vrot.slane %v2414_v30, 5  ;;  %v2386_v30 = vld [vmem:[#allocation4 + $0x28] sm:$0xf] }
 0x1e1   : > { %v1688_v31 = vor.u32 %v1686_v23, %v1685_v22  ;;  %v1689_v32 = vrot.slane %v1685_v22, 4  ;;  %v1884_v24 = vsel %vm3135_vm14, %v1879_v55, %v1883_v17  ;;  %v2132_v5 = vsel %vm3135_vm14, %v2127_v18, %v2131_v19  ;;  %v2082_v55 = vld [vmem:[#allocation4 + $0x24] sm:$0x1] }
 0x1e2   : > { %v2417_v49 = vor.u32 %v2416_v38, %v2413_v37  ;;  %v1780_v38 = vld [vmem:[#allocation4 + $0x24] sm:$0x1] }
 0x1e3   : > { %v1750_v40 = vsel %vm3142_vm15, %v1688_v31, %v1749_v28  ;;  %v1753_v42 = vsel %vm3060_vm4, %v1689_v32, %v1752_v29  ;;  %v2033_v44 = vld [vmem:[#allocation4 + $0x38] sm:$0xf]  ;;  %vm3918_vm4 = vcmask 588800  }
 0x1e4   : > { %v2337_v45 = vld [vmem:[#allocation4 + $0x38] sm:$0xf]  ;;  %1751 = vst [vmem:[#allocation4 + $0x40] sm:$0xf] %v1750_v40  ;;  %2055 = vrot.lane.b32.xlu1 %v2033_v44, %s3008_s11  ;;  %2213 = vrot.lane.b32.xlu2 %v2174_v4, %s3010_s13  ;;  %v2551_v50 = vld [vmem:[#allocation4 + $0x3c] sm:$0x1]  ;;  %vm3921_vm15 = vmmov %vm3918_vm4 }
 0x1e5   : > { %2358 = vrot.lane.b32.xlu0 %v2337_v45, %s3006_s9  ;;  %1754 = vst [vmem:[#allocation4 + $0x44] sm:$0x1] %v1753_v42  ;;  %v2550_v3 = vld [vmem:[#allocation4 + $0x38] sm:$0xe]  ;;  %v2594_v60 = vrot.slane %v2551_v50, 5  ;;  %v2349_v39 = vpop.permute.xlu0 %2348  ;;  %v2420_v45 = vshll.u32 %v2383_v34, 16 }
 0x1e6   : > { %v3675_v51 = vpop.permute.xlu2 %2051  ;;  %v2906_v59 = vrot.slane %v2550_v3, 9  ;;  %v2247_v9 = vld [vmem:[#allocation4 + $0x38] sm:$0xe]  ;;  %v2248_v10 = vld [vmem:[#allocation4 + $0x3c] sm:$0x1]  ;;  %v2418_v8 = vrot.slane %v2417_v49, 4 }
 0x1e7   : > { %v2899_v21 = vrot.slane %v2247_v9, 9  ;;  %v2293_v22 = vrot.slane %v2248_v10, 5  ;;  %v2390_v23 = vld [vmem:[#allocation4 + $0x38] sm:$0xf]  ;;  %v2081_v42 = vld [vmem:[#allocation4 + $0x20] sm:$0xf] }
 0x1e8   : > { %v2595_v57 = vsel %vm3123_vm12, %v2906_v59, %v2594_v60  ;;  %v2467_v28 = vshrl.u32 %v2390_v23, 16  ;;  %v2470_v29 = vshll.u32 %v2390_v23, 16  ;;  %v1762_v32 = vld [vmem:[#allocation4 + $0x38] sm:$0xf]  ;;  %v2391_v44 = vld [vmem:[#allocation4 + $0x3c] sm:$0x1] }
 0x1e9   : > { %v2294_v31 = vsel %vm3123_vm12, %v2899_v21, %v2293_v22  ;;  %1770 = vst.msk [vmem:[#allocation5 + $0x1c] sm:$0xf] %vm256_vm0, %v1762_v32  ;;  %v1785_v40 = vld [vmem:[#allocation4 + $0x38] sm:$0xf]  ;;  %v2134_v53 = vshrl.u32 %v2081_v42, 16  ;;  %v2137_v54 = vshll.u32 %v2081_v42, 16 }
 0x1ea   : > { %v2469_v35 = vrot.slane %v2467_v28, 4  ;;  %v2472_v36 = vrot.slane %v2470_v29, 5  ;;  %v1886_v3 = vshrl.u32 %v1785_v40, 16  ;;  %v1889_v50 = vshll.u32 %v1785_v40, 16  ;;  %v1779_v60 = vld [vmem:[#allocation4 + $0x20] sm:$0xf] }
 0x1eb   : > { %v2338_v46 = vld [vmem:[#allocation4 + $0x40] sm:$0xf]  ;;  %v2422_v56 = vrot.slane %v2420_v45, 5  ;;  %v2136_v62 = vrot.slane %v2134_v53, 4  ;;  %v2139_v63 = vrot.slane %v2137_v54, 5  ;;  %v1844_v26 = vshrl.u32 %v1779_v60, 16 }
 0x1ec   : > { %1905 = vrot.lane.b32.xlu1 %v1842_v1, %s3005_s8  ;;  %2614 = vrot.lane.b32.xlu2 %v2595_v57, %s3009_s12  ;;  %v2473_v4 = vor.u32 %v2472_v36, %v2469_v35  ;;  %v2034_v52 = vld [vmem:[#allocation4 + $0x40] sm:$0xf]  ;;  %v1888_v58 = vrot.slane %v1886_v3, 4  ;;  %v1891_v59 = vrot.slane %v1889_v50, 5  ;;  %v1847_v7 = vshll.u32 %v1779_v60, 16 }
 0x1ed   : > { %2516 = vrot.lane.b32.xlu0 %v2465_v6, %s3011_s14  ;;  %v2392_v0 = vld [vmem:[#allocation4 + $0x40] sm:$0xf]  ;;  %v1786_v6 = vld [vmem:[#allocation4 + $0x3c] sm:$0x1]  ;;  %v2423_v10 = vsel %vm3135_vm14, %v2418_v8, %v2422_v56  ;;  %v1945_v17 = vld [vmem:[#allocation4 + $0x38] sm:$0xe]  ;;  %v2140_v19 = vor.u32 %v2139_v63, %v2136_v62 }
 0x1ee   : > { %v1902_v12 = vpop.permute.xlu2 %1901  ;;  %v2474_v15 = vrot.slane %v2473_v4, 4  ;;  %v1946_v18 = vld [vmem:[#allocation4 + $0x3c] sm:$0x1]  ;;  %v2481_v16 = vshrl.u32 %v2392_v0, 16  ;;  %v1895_v21 = vshll.u32 %v1786_v6, 16  ;;  %v2143_v23 = vshll.u32 %v2082_v55, 16 }
 0x1ef   : > { %1924 = vst.msk [vmem:[#allocation5 + $0x4] sm:$0xf] %vm757_vm8, %v1902_v12  ;;  %v1892_v12 = vor.u32 %v1891_v59, %v1888_v58  ;;  %v1849_v25 = vrot.slane %v1847_v7, 5  ;;  %v2892_v28 = vrot.slane %v1945_v17, 9  ;;  %v1993_v29 = vrot.slane %v1946_v18, 5 }
 0x1f0   : > { %2020 = vst.msk [vmem:[#allocation5 + $0x4] sm:$0xf] %vm857_vm9, %v1998_v11  ;;  %v2334_v11 = vld [vmem:[#allocation4 + $0x20] sm:$0xf]  ;;  %v2483_v32 = vrot.slane %v2481_v16, 4  ;;  %v1897_v35 = vrot.slane %v1895_v21, 5 }
 0x1f1   : > { %2068 = vst.msk [vmem:[#allocation5 + $0x4] sm:$0xf] %vm906_vm10, %v2046_v20  ;;  %v2484_v20 = vshll.u32 %v2392_v0, 16  ;;  %v2087_v34 = vld [vmem:[#allocation4 + $0x38] sm:$0xf]  ;;  %v2145_v37 = vrot.slane %v2143_v23, 5 }
 0x1f2   : > { %v1939_v40 = vld [vmem:[#allocation4 + $0x20] sm:$0xe]  ;;  %v2439_v42 = vshrl.u32 %v2386_v30, 16  ;;  %v2393_v4 = vld [vmem:[#allocation4 + $0x44] sm:$0x1]  ;;  %v2176_v49 = vshrl.u32 %v2087_v34, 16 }
 0x1f3   : > { %v2179_v3 = vshll.u32 %v2087_v34, 16  ;;  %v2442_v53 = vshll.u32 %v2386_v30, 16  ;;  %v1853_v54 = vshll.u32 %v1780_v38, 16  ;;  %v2889_v56 = vrot.slane %v1939_v40, 9  ;;  %v2089_v0 = vld [vmem:[#allocation4 + $0x40] sm:$0xf] }
 0x1f4   : > { %2207 = vrot.lane.b32.xlu1 %v2132_v5, %s3010_s13  ;;  %2311 = vrot.lane.b32.xlu2 %v2294_v31, %s3007_s10  ;;  %v1893_v5 = vrot.slane %v1892_v12, 4  ;;  %v2141_v31 = vrot.slane %v2140_v19, 4  ;;  %v2490_v8 = vshll.u32 %v2393_v4, 16  ;;  %v2178_v59 = vrot.slane %v2176_v49, 4  ;;  %v2241_v55 = vld [vmem:[#allocation4 + $0x20] sm:$0xe] }
 0x1f5   : > { %1911 = vrot.lane.b32.xlu0 %v1884_v24, %s3005_s8  ;;  %v1846_v24 = vrot.slane %v1844_v26, 4  ;;  %v2181_v60 = vrot.slane %v2179_v3, 5  ;;  %v2441_v62 = vrot.slane %v2439_v42, 4  ;;  %v1855_v6 = vrot.slane %v1853_v54, 5  ;;  %v2387_v18 = vld [vmem:[#allocation4 + $0x2c] sm:$0x1] }
 0x1f6   : > { %v2204_v33 = vpop.permute.xlu2 %2203  ;;  %v1898_v45 = vsel %vm3135_vm14, %v1893_v5, %v1897_v35  ;;  %v2146_v50 = vsel %vm3135_vm14, %v2141_v31, %v2145_v37  ;;  %v2193_v19 = vshll.u32 %v2089_v0, 16  ;;  %v2448_v5 = vshll.u32 %v2387_v18, 16  ;;  %v2090_v38 = vld [vmem:[#allocation4 + $0x44] sm:$0x1] }
 0x1f7   : > { %2227 = vst.msk [vmem:[#allocation5] sm:$0xf] %vm1067_vm13, %v2204_v33  ;;  %v2486_v33 = vrot.slane %v2484_v20, 5  ;;  %v2182_v17 = vor.u32 %v2181_v60, %v2178_v59  ;;  %v2242_v20 = vld [vmem:[#allocation4 + $0x24] sm:$0x1]  ;;  %vm3917_vm0 = vcmask 1043456  }
 0x1f8   : > { %2323 = vst.msk [vmem:[#allocation5] sm:$0xf] %vm1164_vm1, %v2300_v2  ;;  %v2476_v2 = vshll.u32 %v2391_v44, 16  ;;  %v2195_v31 = vrot.slane %v2193_v19, 5  ;;  %v2450_v37 = vrot.slane %v2448_v5, 5 }
 0x1f9   : > { %2372 = vst.msk [vmem:[#allocation5] sm:$0xf] %vm1214_vm2, %v2349_v39  ;;  %v1850_v39 = vor.u32 %v1849_v25, %v1846_v24  ;;  %v2896_v25 = vrot.slane %v2241_v55, 9  ;;  %v2385_v54 = vld [vmem:[#allocation4 + $0x24] sm:$0x1] }
 0x1fa   : > { %v2478_v47 = vrot.slane %v2476_v2, 5  ;;  %v2434_v59 = vshll.u32 %v2385_v54, 16  ;;  %v2544_v19 = vld [vmem:[#allocation4 + $0x20] sm:$0xe] }
 0x1fb   : > { %v1851_v58 = vrot.slane %v1850_v39, 4 }
 0x1fc   : > { %2360 = vrot.lane.b32.xlu1 %v2338_v46, %s3006_s9  ;;  %2057 = vrot.lane.b32.xlu2 %v2034_v52, %s3008_s11  ;;  %v2479_v9 = vsel %vm3135_vm14, %v2474_v15, %v2478_v47  ;;  %v1994_v46 = vsel %vm3123_vm12, %v2892_v28, %v1993_v29  ;;  %v2487_v52 = vor.u32 %v2486_v33, %v2483_v32  ;;  %v2444_v47 = vrot.slane %v2442_v53, 5  ;;  %v2384_v32 = vld [vmem:[#allocation4 + $0x20] sm:$0xf] }
 0x1fd   : > { %2049 = vrot.lane.b32.xlu0 %v2030_v48, %s3008_s11  ;;  %v1940_v48 = vld [vmem:[#allocation4 + $0x24] sm:$0x1]  ;;  %v1856_v12 = vsel %vm3135_vm14, %v1851_v58, %v1855_v6  ;;  %v2281_v28 = vrot.slane %v2242_v20, 5  ;;  %v2183_v29 = vrot.slane %v2182_v17, 4  ;;  %v2425_v39 = vshrl.u32 %v2384_v32, 16 }
 0x1fe   : > { %v3705_v43 = vpop.permute.xlu2 %2301  ;;  %v1981_v15 = vrot.slane %v1940_v48, 5  ;;  %v2488_v63 = vrot.slane %v2487_v52, 4  ;;  %v2445_v21 = vor.u32 %v2444_v47, %v2441_v62  ;;  %v2199_v48 = vshll.u32 %v2090_v38, 16  ;;  %v2250_v58 = vld [vmem:[#allocation4 + $0x44] sm:$0x1] }
 0x1ff   : > { %v2427_v3 = vrot.slane %v2425_v39, 4  ;;  %v2436_v47 = vrot.slane %v2434_v59, 5  ;;  %v2964_v39 = vld [vmem:[%s3900_s2 + $0x18] sm:$0xff] }
 0x200   : > { %v1982_v7 = vsel %vm3123_vm12, %v2889_v56, %v1981_v15  ;;  %v2446_v33 = vrot.slane %v2445_v21, 4  ;;  %v2201_v52 = vrot.slane %v2199_v48, 5  ;;  %v2335_v56 = vld [vmem:[#allocation4 + $0x28] sm:$0xf]  ;;  %v2903_v21 = vrot.slane %v2544_v19, 9  ;;  %v2659_v19 = vld [vmem:[%s3089_s28 + $0x30] sm:$0xff] }
 0x202   : > { %v2006_v1 = vpop.permute.xlu1 %2005 }
 0x204   : > { %v3707_v57 = vpop.permute.xlu0 %2307  ;;  %2518 = vrot.lane.b32.xlu1 %v2479_v9, %s3011_s14  ;;  %2352 = vrot.lane.b32.xlu2 %v2334_v11, %s3006_s9  ;;  %v2492_v9 = vrot.slane %v2490_v8, 5  ;;  %v2249_v8 = vld [vmem:[#allocation4 + $0x40] sm:$0xe] }
 0x205   : > { %2510 = vrot.lane.b32.xlu0 %v2423_v10, %s3011_s14  ;;  %v2088_v10 = vld [vmem:[#allocation4 + $0x3c] sm:$0x1]  ;;  %v2900_v62 = vrot.slane %v2249_v8, 9 }
 0x206   : > { %v3716_v22 = vpop.permute.xlu2 %2356  ;;  %v2493_v16 = vsel %vm3135_vm14, %v2488_v63, %v2492_v9  ;;  %v2185_v23 = vshll.u32 %v2088_v10, 16  ;;  %v2297_v63 = vrot.slane %v2250_v58, 5  ;;  %v2552_v9 = vld [vmem:[#allocation4 + $0x40] sm:$0xe]  ;;  %v2553_v10 = vld [vmem:[#allocation4 + $0x44] sm:$0x1] }
 0x207   : > { %v2907_v17 = vrot.slane %v2552_v9, 9  ;;  %v2598_v18 = vrot.slane %v2553_v10, 5  ;;  %v2654_v9 = vld [vmem:[%s3089_s28 + $0x8] sm:$0xff] }
 0x208   : > { %v2187_v34 = vrot.slane %v2185_v23, 5  ;;  %v2298_v6 = vsel %vm3123_vm12, %v2900_v62, %v2297_v63 }
 0x20a   : > { %v3718_v36 = vpop.permute.xlu1 %2604  ;;  %v2188_v42 = vsel %vm3135_vm14, %v2183_v29, %v2187_v34 }
 0x20c   : > { %v2054_v44 = vpop.permute.xlu0 %2053  ;;  %1913 = vrot.lane.b32.xlu1 %v1898_v45, %s3005_s8  ;;  %2209 = vrot.lane.b32.xlu2 %v2146_v50, %s3010_s13  ;;  %v2428_v45 = vshll.u32 %v2384_v32, 16 }
 0x20d   : > { %2009 = vrot.lane.b32.xlu0 %v1994_v46, %s3004_s7  ;;  %v2451_v46 = vsel %vm3135_vm14, %v2446_v33, %v2450_v37 }
 0x20e   : > { %v1910_v2 = vpop.permute.xlu2 %1909  ;;  %v2430_v50 = vrot.slane %v2428_v45, 5  ;;  %v2962_v45 = vld [vmem:[%s3900_s2 + $0x8] sm:$0xff] }
 0x20f   : > { %1928 = vst.msk [vmem:[#allocation5 + $0x14] sm:$0xf] %vm757_vm8, %v1910_v2 }
 0x210   : > { %2024 = vst.msk [vmem:[#allocation5 + $0x14] sm:$0xf] %vm857_vm9, %v2006_v1  ;;  %v2190_v1 = vshrl.u32 %v2089_v0, 16  ;;  %v2431_v15 = vor.u32 %v2430_v50, %v2427_v3 }
 0x211   : > { %2072 = vst.msk [vmem:[#allocation5 + $0x14] sm:$0xf] %vm906_vm10, %v2054_v44 }
 0x212   : > { %v2000_v26 = vpop.permute.xlu1 %1999  ;;  %v2192_v30 = vrot.slane %v2190_v1, 4  ;;  %v2599_v1 = vsel %vm3123_vm12, %v2907_v17, %v2598_v18  ;;  %v2658_v18 = vld [vmem:[%s3089_s28 + $0x28] sm:$0xff] }
 0x214   : > { %v2206_v11 = vpop.permute.xlu0 %2205  ;;  %1907 = vrot.lane.b32.xlu1 %v1856_v12, %s3005_s8  ;;  %2520 = vrot.lane.b32.xlu2 %v2493_v16, %s3011_s14  ;;  %v2196_v44 = vor.u32 %v2195_v31, %v2192_v30  ;;  %v2545_v16 = vld [vmem:[#allocation4 + $0x24] sm:$0x1]  ;;  %v2652_v31 = vld [vmem:[%s3900_s2 + $0x20] sm:$0xf] }
 0x215   : > { %2228 = vst.msk [vmem:[#allocation5 + $0x4] sm:$0xf] %vm1067_vm13, %v2206_v11  ;;  %2003 = vrot.lane.b32.xlu0 %v1982_v7, %s3004_s7  ;;  %v2547_v7 = vld [vmem:[#allocation4 + $0x2c] sm:$0x1]  ;;  %v2582_v23 = vrot.slane %v2545_v16, 5  ;;  %v2698_v41 = vunpack.c.l.b16 %v2652_v31  ;;  %v2655_v16 = vld [vmem:[%s3089_s28 + $0x10] sm:$0xff] }
 0x216   : > { %2324 = vst.msk [vmem:[#allocation5 + $0x4] sm:$0xf] %vm1164_vm1, %v3705_v43  ;;  %v2048_v24 = vpop.permute.xlu2 %2047  ;;  %v2282_v43 = vsel %vm3123_vm12, %v2896_v25, %v2281_v28  ;;  %v2197_v49 = vrot.slane %v2196_v44, 4  ;;  %v2586_v55 = vrot.slane %v2547_v7, 5 }
 0x217   : > { %v2703_v33 = vpack.c.b16 %v2698_v41, %v2698_v41 }
 0x218   : > { %v2202_v2 = vsel %vm3135_vm14, %v2197_v49, %v2201_v52 }
 0x219   : > { %v2721_v34 = vsel %vm3917_vm0, %v2703_v33, 0 }
 0x21a   : > { %v3744_v35 = vpop.permute.xlu1 %2211  ;;  %2726 = vmatpush.bf16.msra.mxu1 %v2721_v34  ;;  %2970 = vmatpush.bf16.msra.mxu3 %v2721_v34 }
 0x21c   : > { %v1904_v40 = vpop.permute.xlu0 %1903  ;;  %2305 = vrot.lane.b32.xlu1 %v2282_v43, %s3007_s10  ;;  %2514 = vrot.lane.b32.xlu2 %v2451_v46, %s3011_s14  ;;  %v2961_v46 = vld [vmem:[%s3900_s2] sm:$0xff] }
 0x21d   : > { %1925 = vst.msk [vmem:[#allocation5 + $0x8] sm:$0xf] %vm757_vm8, %v1904_v40  ;;  %2215 = vrot.lane.b32.xlu0 %v2188_v42, %s3010_s13  ;;  %v2963_v40 = vld [vmem:[%s3900_s2 + $0x10] sm:$0xff] }
 0x21e   : > { %2021 = vst.msk [vmem:[#allocation5 + $0x8] sm:$0xf] %vm857_vm9, %v2000_v26  ;;  %v2509_v4 = vpop.permute.xlu2 %2508  ;;  %v2546_v26 = vld [vmem:[#allocation4 + $0x28] sm:$0xe]  ;;  %2727 = vmatpush.bf16.msra.mxu1 %v2964_v39  ;;  %2971 = vmatpush.bf16.msra.mxu3 %v2964_v39 }
 0x21f   : > { %2069 = vst.msk [vmem:[#allocation5 + $0x8] sm:$0xf] %vm906_vm10, %v2048_v24  ;;  %v2904_v12 = vrot.slane %v2546_v26, 9  ;;  %v2583_v24 = vsel %vm3123_vm12, %v2903_v21, %v2582_v23 }
 0x220   : > { %2532 = vst.msk [vmem:[#allocation5] sm:$0xf] %vm1375_vm3, %v2509_v4 }
 0x221   : > { %2628 = vst.msk [vmem:[#allocation5] sm:$0xf] %vm1472_vm6, %v3718_v36  ;;  %v2432_v36 = vrot.slane %v2431_v15, 4  ;;  %v2587_v61 = vsel %vm3123_vm12, %v2904_v12, %v2586_v55  ;;  %vm3919_vm12 = vmmov %vm3918_vm4  ;;  %v2657_v12 = vld [vmem:[%s3089_s28 + $0x20] sm:$0xff] }
 0x222   : > { %v2351_v53 = vpop.permute.xlu1 %2350  ;;  %2728 = vmatpush.bf16.msra.mxu1 %v2963_v40  ;;  %2972 = vmatpush.bf16.msra.mxu3 %v2963_v40 }
 0x223   : > { %2373 = vst.msk [vmem:[#allocation5 + $0x4] sm:$0xf] %vm1214_vm2, %v2351_v53  ;;  %v2437_v0 = vsel %vm3135_vm14, %v2432_v36, %v2436_v47  ;;  %vm3920_vm14 = vmmov %vm3918_vm4 }
 0x224   : > { %2217 = vrot.lane.b32.xlu1 %v2202_v2, %s3010_s13 }
 0x225   : > { %2354 = vrot.lane.b32.xlu0 %v2335_v56, %s3006_s9  ;;  %v2304_v29 = vpop.permute.xlu0 %2303 }
 0x226   : > { %v3766_v60 = vpop.permute.xlu2 %2007  ;;  %2729 = vmatpush.bf16.msra.mxu1 %v2962_v45  ;;  %2973 = vmatpush.bf16.msra.mxu3 %v2962_v45 }
 0x22a   : > { %v2310_v5 = vpop.permute.xlu1 %2309  ;;  %2730 = vmatpush.bf16.msra.mxu1 %v2961_v46  ;;  %2974 = vmatpush.bf16.msra.mxu3 %v2961_v46 }
 0x22c   : > { %2512 = vrot.lane.b32.xlu1 %v2437_v0, %s3011_s14 }
 0x22d   : > { %2313 = vrot.lane.b32.xlu0 %v2298_v6, %s3007_s10 }
 0x22e   : > { %v3774_v11 = vpop.permute.xlu2 %2606 }
 0x232   : > { %v3787_v30 = vpop.permute.xlu1 %2612 }
 0x234   : > { %2610 = vrot.lane.b32.xlu1 %v2587_v61, %s3009_s12 }
 0x235   : > { %2616 = vrot.lane.b32.xlu0 %v2599_v1, %s3009_s12 }
 0x236   : > { %v2002_v20 = vpop.permute.xlu2 %2001 }
 0x23d   : > { %2608 = vrot.lane.b32.xlu0 %v2583_v24, %s3009_s12 }
 0x23e   : > { %v2214_v25 = vpop.permute.xlu2 %2213 }
 0x23f   : > { %2232 = vst.msk [vmem:[#allocation5 + $0x14] sm:$0xf] %vm1067_vm13, %v2214_v25  ;;  %v2660_v25 = vld [vmem:[%s3089_s28 + $0x38] sm:$0xff] }
 0x240   : > { %2328 = vst.msk [vmem:[#allocation5 + $0x14] sm:$0xf] %vm1164_vm1, %v2310_v5  ;;  %v2656_v5 = vld [vmem:[%s3089_s28 + $0x18] sm:$0xff] }
 0x246   : > { %v2615_v28 = vpop.permute.xlu2 %2614 }
 0x24e   : > { %v3792_v32 = vpop.permute.xlu2 %2311 }
 0x256   : > { %v2056_v37 = vpop.permute.xlu1 %2055  ;;  %v2058_v43 = vpop.permute.xlu2 %2057 }
 0x257   : > { %v2359_v38 = vpop.permute.xlu0 %2358 }
 0x258   : > { %2377 = vst.msk [vmem:[#allocation5 + $0x14] sm:$0xf] %vm1214_vm2, %v2359_v38 }
 0x25e   : > { %v1906_v42 = vpop.permute.xlu1 %1905  ;;  %v2353_v48 = vpop.permute.xlu2 %2352 }
 0x25f   : > { %v2517_v44 = vpop.permute.xlu0 %2516  ;;  %1926 = vst.msk [vmem:[#allocation5 + $0xc] sm:$0xf] %vm757_vm8, %v1906_v42 }
 0x260   : > { %2022 = vst.msk [vmem:[#allocation5 + $0xc] sm:$0xf] %vm857_vm9, %v2002_v20 }
 0x266   : > { %v2208_v4 = vpop.permute.xlu1 %2207  ;;  %v2210_v52 = vpop.permute.xlu2 %2209 }
 0x267   : > { %v1912_v49 = vpop.permute.xlu0 %1911  ;;  %2229 = vst.msk [vmem:[#allocation5 + $0x8] sm:$0xf] %vm1067_vm13, %v2208_v4 }
 0x268   : > { %2325 = vst.msk [vmem:[#allocation5 + $0x8] sm:$0xf] %vm1164_vm1, %v2304_v29 }
 0x269   : > { %2374 = vst.msk [vmem:[#allocation5 + $0x8] sm:$0xf] %vm1214_vm2, %v2353_v48 }
 0x26a   : > { %1929 = vst.msk [vmem:[#allocation5 + $0x18] sm:$0xf] %vm757_vm8, %v1912_v49 }
 0x26b   : > { %2025 = vst.msk [vmem:[#allocation5 + $0x18] sm:$0xf] %vm857_vm9, %v3766_v60 }
 0x26c   : > { %2073 = vst.msk [vmem:[#allocation5 + $0x18] sm:$0xf] %vm906_vm10, %v2056_v37 }
 0x26e   : > { %v2361_v3 = vpop.permute.xlu1 %2360  ;;  %v2521_v59 = vpop.permute.xlu2 %2520 }
 0x26f   : > { %v2050_v50 = vpop.permute.xlu0 %2049 }
 0x270   : > { %2070 = vst.msk [vmem:[#allocation5 + $0xc] sm:$0xf] %vm906_vm10, %v2050_v50 }
 0x271   : > { %2230 = vst.msk [vmem:[#allocation5 + $0xc] sm:$0xf] %vm1067_vm13, %v2210_v52 }
 0x276   : > { %v2519_v53 = vpop.permute.xlu1 %2518 }
 0x277   : > { %v2511_v54 = vpop.permute.xlu0 %2510  ;;  %2537 = vst.msk [vmem:[#allocation5 + $0x14] sm:$0xf] %vm1375_vm3, %v2519_v53 }
 0x278   : > { %2633 = vst.msk [vmem:[#allocation5 + $0x14] sm:$0xf] %vm1472_vm6, %v2615_v28 }
 0x279   : > { %2533 = vst.msk [vmem:[#allocation5 + $0x4] sm:$0xf] %vm1375_vm3, %v2511_v54 }
 0x27a   : > { %2629 = vst.msk [vmem:[#allocation5 + $0x4] sm:$0xf] %vm1472_vm6, %v3774_v11 }
 0x27e   : > { %v1914_v2 = vpop.permute.xlu1 %1913 }
 0x27f   : > { %v2010_v56 = vpop.permute.xlu0 %2009  ;;  %1930 = vst.msk [vmem:[#allocation5 + $0x1c] sm:$0xf] %vm757_vm8, %v1914_v2 }
 0x280   : > { %2026 = vst.msk [vmem:[#allocation5 + $0x1c] sm:$0xf] %vm857_vm9, %v2010_v56 }
 0x281   : > { %2074 = vst.msk [vmem:[#allocation5 + $0x1c] sm:$0xf] %vm906_vm10, %v2058_v43  ;;  %v2957_v15 = vld [vmem:[#allocation5] sm:$0xff] }
 0x282   : > { %2941 = vmatmul.msk.bf16.vlgmr.msra.gmra.mxu1 %vm3918_vm4, %v2957_v15 }
 0x286   : > { %v1908_v8 = vpop.permute.xlu1 %1907 }
 0x287   : > { %v2004_v58 = vpop.permute.xlu0 %2003  ;;  %1927 = vst.msk [vmem:[#allocation5 + $0x10] sm:$0xf] %vm757_vm8, %v1908_v8  ;;  %vm2752_vm8 = vcmask 64512  }
 0x288   : > { %2023 = vst.msk [vmem:[#allocation5 + $0x10] sm:$0xf] %vm857_vm9, %v2004_v58 }
 0x289   : > { %2071 = vst.msk [vmem:[#allocation5 + $0x10] sm:$0xf] %vm906_vm10, %v3675_v51 }
 0x28a   : > { %2231 = vst.msk [vmem:[#allocation5 + $0x10] sm:$0xf] %vm1067_vm13, %v3744_v35  ;;  %v2515_v35 = vpop.permute.xlu2 %2514 }
 0x28b   : > { %2327 = vst.msk [vmem:[#allocation5 + $0x10] sm:$0xf] %vm1164_vm1, %v3707_v57 }
 0x28c   : > { %2376 = vst.msk [vmem:[#allocation5 + $0x10] sm:$0xf] %vm1214_vm2, %v3716_v22 }
 0x28d   : > { %2536 = vst.msk [vmem:[#allocation5 + $0x10] sm:$0xf] %vm1375_vm3, %v2517_v44 }
 0x28e   : > { %2632 = vst.msk [vmem:[#allocation5 + $0x10] sm:$0xf] %vm1472_vm6, %v3787_v30  ;;  %v2306_v60 = vpop.permute.xlu1 %2305 }
 0x28f   : > { %v2216_v36 = vpop.permute.xlu0 %2215  ;;  %2326 = vst.msk [vmem:[#allocation5 + $0xc] sm:$0xf] %vm1164_vm1, %v2306_v60 }
 0x290   : > { %2233 = vst.msk [vmem:[#allocation5 + $0x18] sm:$0xf] %vm1067_vm13, %v2216_v36 }
 0x291   : > { %2329 = vst.msk [vmem:[#allocation5 + $0x18] sm:$0xf] %vm1164_vm1, %v3792_v32 }
 0x292   : > { %2378 = vst.msk [vmem:[#allocation5 + $0x18] sm:$0xf] %vm1214_vm2, %v2361_v3 }
 0x293   : > { %2538 = vst.msk [vmem:[#allocation5 + $0x18] sm:$0xf] %vm1375_vm3, %v2521_v59 }
 0x295   : > { %v2959_v51 = vld [vmem:[#allocation5 + $0x10] sm:$0xff] }
 0x296   : > { %v2218_v57 = vpop.permute.xlu1 %2217  ;;  %2943 = vmatmul.msk.bf16.vlgmr.msra.gmra.mxu3 %vm3919_vm12, %v2959_v51 }
 0x297   : > { %v2355_v22 = vpop.permute.xlu0 %2354  ;;  %2234 = vst.msk [vmem:[#allocation5 + $0x1c] sm:$0xf] %vm1067_vm13, %v2218_v57 }
 0x298   : > { %2375 = vst.msk [vmem:[#allocation5 + $0xc] sm:$0xf] %vm1214_vm2, %v2355_v22 }
 0x299   : > { %2535 = vst.msk [vmem:[#allocation5 + $0xc] sm:$0xf] %vm1375_vm3, %v2515_v35 }
 0x29e   : > { %v2513_v62 = vpop.permute.xlu1 %2512 }
 0x29f   : > { %v2314_v63 = vpop.permute.xlu0 %2313  ;;  %2534 = vst.msk [vmem:[#allocation5 + $0x8] sm:$0xf] %vm1375_vm3, %v2513_v62 }
 0x2a0   : > { %2330 = vst.msk [vmem:[#allocation5 + $0x1c] sm:$0xf] %vm1164_vm1, %v2314_v63 }
 0x2a1   : > { %2379 = vst.msk [vmem:[#allocation5 + $0x1c] sm:$0xf] %vm1214_vm2, %v3664_v14 }
 0x2a2   : > { %2539 = vst.msk [vmem:[#allocation5 + $0x1c] sm:$0xf] %vm1375_vm3, %v3642_v27  ;;  %v2653_v27 = vld [vmem:[%s3089_s28] sm:$0xff] }
 0x2a3   : > { %2635 = vst.msk [vmem:[#allocation5 + $0x1c] sm:$0xf] %vm1472_vm6, %v3661_v13 }
 0x2a6   : > { %v2611_v47 = vpop.permute.xlu1 %2610 }
 0x2a7   : > { %v2617_v0 = vpop.permute.xlu0 %2616  ;;  %2631 = vst.msk [vmem:[#allocation5 + $0xc] sm:$0xf] %vm1472_vm6, %v2611_v47 }
 0x2a8   : > { %2634 = vst.msk [vmem:[#allocation5 + $0x18] sm:$0xf] %vm1472_vm6, %v2617_v0 }
 0x2af   : > { %v2609_v6 = vpop.permute.xlu0 %2608  ;;  %v2960_v26 = vld [vmem:[#allocation5 + $0x18] sm:$0xff] }
 0x2b0   : > { %2630 = vst.msk [vmem:[#allocation5 + $0x8] sm:$0xf] %vm1472_vm6, %v2609_v6  ;;  %2944 = vmatmul.msk.bf16.gmra.mxu3 %vm3920_vm14, %v2960_v26 }
 0x2b7   : > { %v2958_v14 = vld [vmem:[#allocation5 + $0x8] sm:$0xff] }
 0x2b8   : > { %2942 = vmatmul.msk.bf16.gmra.mxu1 %vm3921_vm15, %v2958_v14 }
 0x2ff   : > { %v2732_v13 = vpop.f32.mrf.mxu1 }
 0x300   : > { %v2733_v7 = vadd.f32 %v2732_v13, %v2653_v27 }
 0x302   : > { %2753 = vst.msk [vmem:[%s3870_s19] sm:$0xff] %vm2752_vm8, %v2733_v7 }
 0x307   : > { %v2734_v10 = vpop.f32.mrf.mxu1 }
 0x308   : > { %v2735_v11 = vadd.f32 %v2734_v10, %v2654_v9 }
 0x30a   : > { %2754 = vst.msk [vmem:[%s3870_s19 + $0x8] sm:$0xff] %vm2752_vm8, %v2735_v11 }
 0x319   : > { %v2742_v55 = vpop.f32.mrf.mxu3 }
 0x31a   : > { %v2743_v17 = vadd.f32 %v2742_v55, %v2657_v12 }
 0x31c   : > { %2757 = vst.msk [vmem:[%s3870_s19 + $0x20] sm:$0xff] %vm2752_vm8, %v2743_v17 }
 0x321   : > { %v2744_v61 = vpop.f32.mrf.mxu3 }
 0x322   : > { %v2745_v1 = vadd.f32 %v2744_v61, %v2658_v18 }
 0x324   : > { %2758 = vst.msk [vmem:[%s3870_s19 + $0x28] sm:$0xff] %vm2752_vm8, %v2745_v1 }
 0x333   : > { %v2747_v20 = vpop.f32.mrf.mxu3 }
 0x334   : > { %v2748_v21 = vadd.f32 %v2747_v20, %v2659_v19 }
 0x335   : > { %v2737_v23 = vpop.f32.mrf.mxu1 }
 0x336   : > { %v2738_v24 = vadd.f32 %v2737_v23, %v2655_v16  ;;  %2759 = vst.msk [vmem:[%s3870_s19 + $0x30] sm:$0xff] %vm2752_vm8, %v2748_v21 }
 0x338   : > { %2755 = vst.msk [vmem:[%s3870_s19 + $0x10] sm:$0xff] %vm2752_vm8, %v2738_v24 }
 0x33b   : > { %v2749_v28 = vpop.f32.mrf.mxu3 }
 0x33c   : > { %v2750_v29 = vadd.f32 %v2749_v28, %v2660_v25 }
 0x33d   : > { %v2739_v30 = vpop.f32.mrf.mxu1 }
 0x33e   : > { %v2740_v31 = vadd.f32 %v2739_v30, %v2656_v5  ;;  %2760 = vst.msk [vmem:[%s3870_s19 + $0x38] sm:$0xff] %vm2752_vm8, %v2750_v29 }
 0x340   : > { %2756 = vst.msk [vmem:[%s3870_s19 + $0x18] sm:$0xff] %vm2752_vm8, %v2740_v31 }
 0x341 PF: > { %s16_s21 = sadd.s32 1, %s3001_s21  }
 0x342   : > { %p13_p4 = scmp.ge.s32.totalorder %s16_s21, 4  }
 0x344   :  { %15 = sbr.rel (!%p13_p4) target bundleno = 1 (0x1), region = 80 }

// kernel: network_block_forward.2
= control target key start
LH: loop header
LB: loop body
LE: loop exit
PB: predicated region body
PF: predicated region fallthrough
CT: control target
= control target key end

     0   :  { %s4029_s21 = smov 0   ;;  %s5512_s0 = inlined_call_operand.vmem [shape: f32[2,4,8,8,4], index: 0, kind: input, shape index: {}]   ;;  %s5513_s1 = inlined_call_operand.vmem [shape: bf16[36,16], index: 1, kind: input, shape index: {}]   ;;  %s5514_s2 = inlined_call_operand.vmem [shape: bf16[72,8], index: 2, kind: input, shape index: {}]   ;;  %s5515_s3 = inlined_call_operand.vmem [shape: f32[1,4], index: 3, kind: input, shape index: {}]   ;;  %s5516_s4 = inlined_call_operand.vmem [shape: f32[1,4], index: 4, kind: input, shape index: {}]   ;;  %s5517_s5 = inlined_call_operand.vmem [shape: f32[1,8], index: 5, kind: input, shape index: {}]   ;;  %s5518_s6 = inlined_call_operand.vmem [shape: f32[2,64,8], index: 6, kind: output, shape index: {}]  }
   0x1 LB: > { %s3796_s22 = sadd.s32 4294967295, %s3978_s21   ;;  %p3800_p0 = scmp.ge.s32.totalorder %s3978_s21, 1  ;;  %s3978_s21 = sphi %s4029_s21, %s16_s21  }
   0x2   : > { %p212_p1 = scmp.lt.s32.totalorder %s3978_s21, 3 }
   0x4   : > { %p213_p2 = pnand %p3800_p0, %p212_p1 }
   0x5   : > { %p242_p3 = scmp.lt.s32.totalorder (!%p213_p2), %s3796_s22, 1  ;;  %s3980_s7 = smov (!%p213_p2), 24  }
   0x6   : > { %216 = sbr.rel (%p213_p2) target bundleno = 983 (0x3d7), region = 44  ;;  %s3981_s8 = smov (!%p213_p2), 4  }
   0x7   : > { %s3982_s9 = smov (!%p213_p2), 8   ;;  %s3983_s10 = smov (!%p213_p2), 12  }
   0x8   : > { %s3984_s11 = smov (!%p213_p2), 16   ;;  %s3985_s12 = smov (!%p213_p2), 20  }
   0x9   : > { %s3986_s13 = smov (!%p213_p2), 28   ;;  %s3987_s14 = smov (!%p213_p2), 32  }
   0xa   : > { %s3991_s15 = smov (!%p213_p2), 64   ;;  %s3992_s16 = smov (!%p213_p2), 40  }
   0xb   : > { %vm258_vm0 = vcmask 24576   ;;  %vm264_vm1 = vsmask.f32 256  ;;  %vm5519_vm2 = vsmask.f32 7938  ;;  %s5539_s22 = smov (!%p242_p3, %s3796_s22), 1 }
   0xc   : > { %vm4041_vm3 = vmand %vm258_vm0, %vm264_vm1  ;;  %v475_v1 = vld [vmem:[#allocation2 + $0x108] sm:$0x1]  ;;  %v4056_v4 = vld [vmem:[%s5515_s3] ss:$0 sm:$0xff]  ;;  %s3919_s25 = sshll.u32 %s5539_s22, 8  ;;  %vm256_vm5 = vcmask 27648  }
   0xd   : > { %vm4047_vm4 = vmand %vm258_vm0, %vm5519_vm2  ;;  %v476_v3 = vsel %vm4041_vm3, 0, %v475_v1  ;;  %v406_v5 = vld [vmem:[#allocation2 + $0xb0] sm:$0x1]  ;;  %v436_v7 = vld [vmem:[#allocation2 + $0xb4] sm:$0x1]  ;;  %s4064_s28 = scalar_lea.vmem %s5512_s0, %s3919_s25  ;;  %s3993_s25 = smov 120  }
   0xe   : > { %477 = vst [vmem:[#allocation2 + $0x108] sm:$0x1] %v476_v3  ;;  %v407_v6 = vsel %vm4041_vm3, 0, %v406_v5  ;;  %v4069_v8 = vld [vmem:[%s5516_s4] ss:$0 sm:$0xff]  ;;  %v437_v9 = vsel %vm4047_vm4, 0, %v436_v7  ;;  %vm4113_vm11 = vmand %vm256_vm5, %vm5519_vm2 }
   0xf   : > { %408 = vst [vmem:[#allocation2 + $0xb0] sm:$0x1] %v407_v6  ;;  %v3823_v10 = vld [vmem:[%s4064_s28 + $0xd0] sm:$0xff]  ;;  %v3814_v11 = vld [vmem:[%s4064_s28 + $0x88] sm:$0xff]  ;;  %v472_v14 = vld [vmem:[#allocation2 + $0x100] sm:$0x1] }
  0x10   : > { %438 = vst [vmem:[#allocation2 + $0xb4] sm:$0x1] %v437_v9  ;;  %v1172_v12 = vmul.f32 %v4056_v4, %v3823_v10  ;;  %v985_v13 = vmul.f32 %v4056_v4, %v3814_v11  ;;  %v502_v15 = vld [vmem:[#allocation2 + $0x104] sm:$0x1]  ;;  %v473_v16 = vsel %vm4041_vm3, 0, %v472_v14  ;;  %v3822_v18 = vld [vmem:[%s4064_s28 + $0xc8] sm:$0xff] }
  0x11   : > { %v503_v17 = vsel %vm4047_vm4, 0, %v502_v15  ;;  %v409_v19 = vld [vmem:[#allocation2 + $0xb8] sm:$0x1]  ;;  %v3815_v20 = vld [vmem:[%s4064_s28 + $0x90] sm:$0xff]  ;;  %474 = vst [vmem:[#allocation2 + $0x100] sm:$0x1] %v473_v16  ;;  %v1171_v23 = vmul.f32 %v4056_v4, %v3822_v18 }
  0x12   : > { %v1180_v21 = vadd.f32 %v4069_v8, %v1172_v12  ;;  %v993_v22 = vadd.f32 %v4069_v8, %v985_v13  ;;  %v410_v24 = vsel %vm4041_vm3, 0, %v409_v19  ;;  %v439_v25 = vld [vmem:[#allocation2 + $0xbc] sm:$0x1]  ;;  %v598_v26 = vld [vmem:[%s4064_s28 + $0x10] sm:$0xff]  ;;  %504 = vst [vmem:[#allocation2 + $0x104] sm:$0x1] %v503_v17  ;;  %v986_v28 = vmul.f32 %v4056_v4, %v3815_v20 }
  0x13   : > { %v440_v27 = vsel %vm4047_vm4, 0, %v439_v25  ;;  %v505_v29 = vld [vmem:[#allocation2 + $0x10c] sm:$0x1]  ;;  %v609_v30 = vmul.f32 %v4056_v4, %v598_v26  ;;  %v3807_v31 = vld [vmem:[%s4064_s28 + $0x50] sm:$0xff]  ;;  %v1179_v33 = vadd.f32 %v4069_v8, %v1171_v23  ;;  %411 = vst [vmem:[#allocation2 + $0xb8] sm:$0x1] %v410_v24 }
  0x14   : > { %vm1188_vm6 = vcmp.gt.f32.partialorder %v1180_v21, 0.0  ;;  %v1196_v32 = vmul.f32 0.1, %v1180_v21  ;;  %vm1001_vm7 = vcmp.gt.f32.partialorder %v993_v22, 0.0  ;;  %v1009_v34 = vmul.f32 0.1, %v993_v22 }
  0x15   : > { %v994_v35 = vadd.f32 %v4069_v8, %v986_v28  ;;  %v620_v36 = vadd.f32 %v4069_v8, %v609_v30  ;;  %v800_v37 = vmul.f32 %v4056_v4, %v3807_v31  ;;  %vm1187_vm8 = vcmp.gt.f32.partialorder %v1179_v33, 0.0  ;;  %441 = vst [vmem:[#allocation2 + $0xbc] sm:$0x1] %v440_v27  ;;  %v599_v44 = vld [vmem:[%s4064_s28 + $0x18] sm:$0xff]  ;;  %v1311_v55 = vld [vmem:[#allocation2 + $0x108] sm:$0xf] }
  0x16   : > { %v1204_v38 = vsel %vm1188_vm6, %v1180_v21, %v1196_v32  ;;  %v1195_v39 = vmul.f32 0.1, %v1179_v33  ;;  %v506_v40 = vsel %vm4047_vm4, 0, %v505_v29  ;;  %v1017_v42 = vsel %vm1001_vm7, %v993_v22, %v1009_v34  ;;  %v275_v47 = vld [vmem:[#allocation2 + $0x18] sm:$0x1]  ;;  %s3920_s26 = sshll.u32 %s5539_s22, 6 }
  0x17   : > { %v1212_v41 = vpack.c.bf16 %v1204_v38, %v1204_v38  ;;  %vm1002_vm9 = vcmp.gt.f32.partialorder %v994_v35, 0.0  ;;  %v1010_v43 = vmul.f32 0.1, %v994_v35  ;;  %v1025_v45 = vpack.c.bf16 %v1017_v42, %v1017_v42  ;;  %507 = vst [vmem:[#allocation2 + $0x10c] sm:$0x1] %v506_v40  ;;  %v3808_v32 = vld [vmem:[%s4064_s28 + $0x58] sm:$0xff]  ;;  %s5491_s29 = scalar_lea.vmem %s5518_s6, %s3920_s26 }
  0x18   : > { %v1203_v46 = vsel %vm1187_vm8, %v1179_v33, %v1195_v39  ;;  %v307_v48 = vld [vmem:[#allocation2 + $0x1c] sm:$0x1]  ;;  %v4102_v49 = vadd.f32 %v4069_v8, %v800_v37  ;;  %v4105_v50 = vmul.f32 %v4056_v4, %v599_v44  ;;  %v276_v59 = vsel %vm4041_vm3, 0, %v275_v47  ;;  %v343_v60 = vld [vmem:[#allocation2 + $0x68] sm:$0x1] }
  0x19   : > { %v1235_v51 = vshrl.u32 %v1212_v41, 16  ;;  %v1238_v52 = vshll.u32 %v1212_v41, 16  ;;  %v1211_v53 = vpack.c.bf16 %v1203_v46, %v1203_v46  ;;  %v1018_v54 = vsel %vm1002_vm9, %v994_v35, %v1010_v43  ;;  %v1119_v62 = vld [vmem:[#allocation2 + $0xb0] sm:$0xf]  ;;  %v1122_v63 = vld [vmem:[#allocation2 + $0xb4] sm:$0x1] }
  0x1a   : > { %v1041_v56 = vshrl.u32 %v1025_v45, 16  ;;  %v1044_v57 = vshll.u32 %v1025_v45, 16  ;;  %v1026_v58 = vpack.c.bf16 %v1018_v54, %v1018_v54  ;;  %277 = vst [vmem:[#allocation2 + $0x18] sm:$0x1] %v276_v59  ;;  %v308_v5 = vsel %vm4047_vm4, 0, %v307_v48 }
  0x1b   : > { %v1237_v61 = vrot.slane %v1235_v51, 7  ;;  %v1227_v1 = vshrl.u32 %v1211_v53, 16  ;;  %v1230_v3 = vshll.u32 %v1211_v53, 16  ;;  %v1305_v7 = vld [vmem:[#allocation2 + $0x100] sm:$0xf]  ;;  %vm628_vm10 = vcmp.gt.f32.partialorder %v620_v36, 0.0 }
  0x1c   : > { %v1043_v6 = vrot.slane %v1041_v56, 7  ;;  %v1308_v9 = vld [vmem:[#allocation2 + $0x104] sm:$0x1]  ;;  %v1049_v10 = vshrl.u32 %v1026_v58, 16  ;;  %v1052_v11 = vshll.u32 %v1026_v58, 16  ;;  %v344_v21 = vsel %vm4041_vm3, 0, %v343_v60 }
  0x1d   : > { %v1240_v13 = vor.u32 %v1238_v52, %v1237_v61  ;;  %v1241_v14 = vrot.slane %v1237_v61, 4  ;;  %v1229_v15 = vrot.slane %v1227_v1, 7  ;;  %309 = vst [vmem:[#allocation2 + $0x1c] sm:$0x1] %v308_v5  ;;  %v636_v16 = vmul.f32 0.1, %v620_v36 }
  0x1e   : > { %v1046_v17 = vor.u32 %v1044_v57, %v1043_v6  ;;  %v1047_v18 = vrot.slane %v1043_v6, 4  ;;  %v1051_v19 = vrot.slane %v1049_v10, 7  ;;  %v1125_v20 = vld [vmem:[#allocation2 + $0xb8] sm:$0xf]  ;;  %v1128_v25 = vld [vmem:[#allocation2 + $0xbc] sm:$0x1]  ;;  %v621_v44 = vadd.f32 %v4069_v8, %v4105_v50 }
  0x1f   : > { %v1312_v22 = vsel %vm4113_vm11, %v1240_v13, %v1311_v55  ;;  %v1232_v23 = vor.u32 %v1230_v3, %v1229_v15  ;;  %v1233_v24 = vrot.slane %v1229_v15, 4  ;;  %v644_v26 = vsel %vm628_vm10, %v620_v36, %v636_v16  ;;  %345 = vst [vmem:[#allocation2 + $0x68] sm:$0x1] %v344_v21  ;;  %v1314_v31 = vld [vmem:[#allocation2 + $0x10c] sm:$0x1]  ;;  %v3816_v51 = vld [vmem:[%s4064_s28 + $0x98] sm:$0xff] }
  0x20   : > { %1313 = vst [vmem:[#allocation2 + $0x108] sm:$0xf] %v1312_v22  ;;  %v1120_v27 = vsel %vm4113_vm11, %v1046_v17, %v1119_v62  ;;  %v1123_v28 = vsel %vm4041_vm3, %v1047_v18, %v1122_v63  ;;  %v1054_v29 = vor.u32 %v1052_v11, %v1051_v19  ;;  %v1055_v30 = vrot.slane %v1051_v19, 4  ;;  %v4131_v36 = vld [vmem:[#allocation2 + $0x20] sm:$0x1] }
  0x21   : > { %1121 = vst [vmem:[#allocation2 + $0xb0] sm:$0xf] %v1120_v27  ;;  %v1306_v33 = vsel %vm4113_vm11, %v1232_v23, %v1305_v7  ;;  %v1309_v34 = vsel %vm4041_vm3, %v1233_v24, %v1308_v9  ;;  %v652_v35 = vpack.c.bf16 %v644_v26, %v644_v26  ;;  %v4133_v37 = vld [vmem:[#allocation2 + $0x24] sm:$0x1]  ;;  %vm816_vm12 = vcmp.gt.f32.partialorder %v4102_v49, 0.0 }
  0x22   : > { %1124 = vst [vmem:[#allocation2 + $0xb4] sm:$0x1] %v1123_v28  ;;  %v1126_v38 = vsel %vm4113_vm11, %v1054_v29, %v1125_v20  ;;  %v1129_v39 = vsel %vm4041_vm3, %v1055_v30, %v1128_v25  ;;  %v4140_v40 = vld [vmem:[#allocation2 + $0x70] sm:$0x1]  ;;  %vm1379_vm13 = vsmask.f32 3328  ;;  %v1315_v45 = vsel %vm4041_vm3, %v1241_v14, %v1314_v31 }
  0x23   : > { %vm1380_vm14 = vsmask.f32 7440  ;;  %1307 = vst [vmem:[#allocation2 + $0x100] sm:$0xf] %v1306_v33  ;;  %v675_v41 = vshrl.u32 %v652_v35, 16  ;;  %v678_v42 = vshll.u32 %v652_v35, 16  ;;  %v801_v48 = vmul.f32 %v4056_v4, %v3808_v32 }
  0x24   : > { %v824_v43 = vmul.f32 0.1, %v4102_v49  ;;  %1310 = vst [vmem:[#allocation2 + $0x104] sm:$0x1] %v1309_v34  ;;  %v753_v46 = vld [vmem:[#allocation2 + $0x18] sm:$0xf]  ;;  %v4167_v61 = vmul.f32 %v4056_v4, %v3816_v51  ;;  %vm4178_vm6 = vmor %vm1379_vm13, %vm1380_vm14 }
  0x25   : > { %v279_v47 = vsel %vm4041_vm3, 0, %v4131_v36  ;;  %1127 = vst [vmem:[#allocation2 + $0xb8] sm:$0xf] %v1126_v38  ;;  %v677_v52 = vrot.slane %v675_v41, 7  ;;  %vm629_vm15 = vcmp.gt.f32.partialorder %v621_v44, 0.0  ;;  %v311_v56 = vsel %vm4047_vm4, 0, %v4133_v37 }
  0x26   : > { %v832_v53 = vsel %vm816_vm12, %v4102_v49, %v824_v43  ;;  %v637_v50 = vmul.f32 0.1, %v621_v44  ;;  %1130 = vst [vmem:[#allocation2 + $0xbc] sm:$0x1] %v1129_v39  ;;  %v756_v54 = vld [vmem:[#allocation2 + $0x1c] sm:$0x1]  ;;  %v4164_v49 = vadd.f32 %v4069_v8, %v801_v48 }
  0x27   : > { %v4155_v55 = vpack.c.bf16 %v832_v53, %v832_v53  ;;  %v347_v57 = vsel %vm4041_vm3, 0, %v4140_v40  ;;  %v2061_v58 = vld [vmem:[#allocation2 + $0x108] sm:$0xf]  ;;  %1316 = vst [vmem:[#allocation2 + $0x10c] sm:$0x1] %v1315_v45  ;;  %v680_v60 = vor.u32 %v678_v42, %v677_v52  ;;  %v681_v3 = vrot.slane %v677_v52, 4 }
  0x28   : > { %v1533_v59 = vld [vmem:[#allocation2 + $0x108] sm:$0xf]  ;;  %2079 = vrot.lane.b32.xlu1 %v2061_v58, %s3980_s7  ;;  %v1367_v62 = vld [vmem:[#allocation2 + $0xb0] sm:$0xf]  ;;  %v645_v5 = vsel %vm629_vm15, %v621_v44, %v637_v50  ;;  %v376_v41 = vld [vmem:[#allocation2 + $0x74] sm:$0x1] }
  0x29   : > { %v1586_v63 = vshrl.u32 %v1533_v59, 16  ;;  %v1589_v1 = vshll.u32 %v1533_v59, 16  ;;  %v1368_v6 = vld [vmem:[#allocation2 + $0xb4] sm:$0x1]  ;;  %v1411_v7 = vshrl.u32 %v1367_v62, 16  ;;  %v1414_v9 = vshll.u32 %v1367_v62, 16 }
  0x2a   : > { %v754_v10 = vsel %vm4113_vm11, %v680_v60, %v753_v46  ;;  %v863_v11 = vshrl.u32 %v4155_v55, 16  ;;  %v1420_v13 = vshll.u32 %v1368_v6, 16  ;;  %v1531_v14 = vld [vmem:[#allocation2 + $0x100] sm:$0xf]  ;;  %v757_v17 = vsel %vm4041_vm3, %v681_v3, %v756_v54  ;;  %v939_v46 = vld [vmem:[#allocation2 + $0x68] sm:$0xf] }
  0x2b   : > { %v1588_v15 = vrot.slane %v1586_v63, 4  ;;  %v1591_v16 = vrot.slane %v1589_v1, 5  ;;  %v1413_v18 = vrot.slane %v1411_v7, 4  ;;  %v1416_v19 = vrot.slane %v1414_v9, 5  ;;  %v1532_v20 = vld [vmem:[#allocation2 + $0x104] sm:$0x1] }
  0x2c   : > { %v1572_v21 = vshrl.u32 %v1531_v14, 16  ;;  %v1575_v22 = vshll.u32 %v1531_v14, 16  ;;  %v1422_v23 = vrot.slane %v1420_v13, 5  ;;  %v1581_v24 = vshll.u32 %v1532_v20, 16  ;;  %v1369_v25 = vld [vmem:[#allocation2 + $0xb8] sm:$0xf] }
  0x2d   : > { %v1592_v26 = vor.u32 %v1591_v16, %v1588_v15  ;;  %755 = vst [vmem:[#allocation2 + $0x18] sm:$0xf] %v754_v10  ;;  %v653_v27 = vpack.c.bf16 %v645_v5, %v645_v5  ;;  %v1417_v28 = vor.u32 %v1416_v19, %v1413_v18  ;;  %v1370_v31 = vld [vmem:[#allocation2 + $0xbc] sm:$0x1]  ;;  %v1425_v32 = vshrl.u32 %v1369_v25, 16 }
  0x2e   : > { %v1574_v29 = vrot.slane %v1572_v21, 4  ;;  %v1577_v30 = vrot.slane %v1575_v22, 5  ;;  %v1583_v34 = vrot.slane %v1581_v24, 5  ;;  %v1428_v35 = vshll.u32 %v1369_v25, 16  ;;  %v1534_v38 = vld [vmem:[#allocation2 + $0x10c] sm:$0x1] }
  0x2f   : > { %v1434_v37 = vshll.u32 %v1370_v31, 16  ;;  %v866_v39 = vshll.u32 %v4155_v55, 16  ;;  %v1418_v42 = vrot.slane %v1417_v28, 4  ;;  %v1427_v44 = vrot.slane %v1425_v32, 4  ;;  %758 = vst [vmem:[#allocation2 + $0x1c] sm:$0x1] %v757_v17 }
  0x30   : > { %v1578_v43 = vor.u32 %v1577_v30, %v1574_v29  ;;  %v1595_v45 = vshll.u32 %v1534_v38, 16  ;;  %v1430_v48 = vrot.slane %v1428_v35, 5  ;;  %v4183_v51 = vrot.slane %v1592_v26, 4  ;;  %280 = vst [vmem:[#allocation2 + $0x20] sm:$0x1] %v279_v47  ;;  %v3824_v59 = vld [vmem:[%s4064_s28 + $0xd8] sm:$0xff] }
  0x31   : > { %v4185_v52 = vrot.slane %v863_v11, 7  ;;  %v683_v53 = vshrl.u32 %v653_v27, 16  ;;  %v1423_v50 = vsel %vm4178_vm6, %v1418_v42, %v1422_v23  ;;  %v1436_v55 = vrot.slane %v1434_v37, 5  ;;  %312 = vst [vmem:[#allocation2 + $0x24] sm:$0x1] %v311_v56  ;;  %v3825_v31 = vld [vmem:[%s4064_s28 + $0xe0] sm:$0xff] }
  0x32   : > { %v1579_v54 = vrot.slane %v1578_v43, 4  ;;  %v686_v58 = vshll.u32 %v653_v27, 16  ;;  %1498 = vrot.lane.b32.xlu0 %v1423_v50, %s3981_s8  ;;  %v1431_v60 = vor.u32 %v1430_v48, %v1427_v44  ;;  %v1597_v62 = vrot.slane %v1595_v45, 5  ;;  %348 = vst [vmem:[#allocation2 + $0x70] sm:$0x1] %v347_v57 }
  0x33   : > { %v868_v63 = vor.u32 %v866_v39, %v4185_v52  ;;  %v685_v1 = vrot.slane %v683_v53, 7  ;;  %v412_v36 = vld [vmem:[#allocation2 + $0xc0] sm:$0x1]  ;;  %v377_v3 = vsel %vm4047_vm4, 0, %v376_v41  ;;  %vm817_vm7 = vcmp.gt.f32.partialorder %v4164_v49, 0.0 }
  0x34   : > { %v1584_v47 = vsel %vm4178_vm6, %v1579_v54, %v1583_v34  ;;  %v1741_v56 = vld [vmem:[#allocation2 + $0x18] sm:$0xf]  ;;  %v442_v5 = vld [vmem:[#allocation2 + $0xc4] sm:$0x1]  ;;  %v995_v6 = vadd.f32 %v4069_v8, %v4167_v61  ;;  %v1432_v7 = vrot.slane %v1431_v60, 4  ;;  %v413_v14 = vsel %vm4041_vm3, 0, %v412_v36 }
  0x35   : > { %1659 = vrot.lane.b32.xlu1 %v1584_v47, %s3982_s9  ;;  %v1782_v40 = vshrl.u32 %v1741_v56, 16  ;;  %v1785_v57 = vshll.u32 %v1741_v56, 16  ;;  %v940_v9 = vsel %vm4113_vm11, %v868_v63, %v939_v46  ;;  %378 = vst [vmem:[#allocation2 + $0x74] sm:$0x1] %v377_v3  ;;  %v688_v10 = vor.u32 %v686_v58, %v685_v1  ;;  %v2112_v41 = vld [vmem:[#allocation2 + $0xb8] sm:$0xf] }
  0x36   : > { %941 = vst [vmem:[#allocation2 + $0x68] sm:$0xf] %v940_v9  ;;  %v689_v11 = vrot.slane %v685_v1, 4  ;;  %v825_v13 = vmul.f32 0.1, %v4164_v49  ;;  %v1437_v61 = vsel %vm4178_vm6, %v1432_v7, %v1436_v55  ;;  %v1173_v18 = vmul.f32 %v4056_v4, %v3824_v59 }
  0x37   : > { %v1742_v15 = vld [vmem:[#allocation2 + $0x1c] sm:$0x1]  ;;  %v1784_v16 = vrot.slane %v1782_v40, 4  ;;  %v1787_v17 = vrot.slane %v1785_v57, 5  ;;  %414 = vst [vmem:[#allocation2 + $0xc0] sm:$0x1] %v413_v14  ;;  %v1598_v28 = vsel %vm4178_vm6, %v4183_v51, %v1597_v62  ;;  %v1174_v51 = vmul.f32 %v4056_v4, %v3825_v31 }
  0x38   : > { %v1791_v19 = vshll.u32 %v1742_v15, 16  ;;  %v759_v20 = vld [vmem:[#allocation2 + $0x20] sm:$0xf]  ;;  %v833_v21 = vsel %vm817_vm7, %v4164_v49, %v825_v13  ;;  %v443_v22 = vsel %vm4047_vm4, 0, %v442_v5  ;;  %vm1003_vm8 = vcmp.gt.f32.partialorder %v995_v6, 0.0 }
  0x39   : > { %v1788_v23 = vor.u32 %v1787_v17, %v1784_v16  ;;  %v760_v24 = vsel %vm4113_vm11, %v688_v10, %v759_v20  ;;  %v762_v25 = vld [vmem:[#allocation2 + $0x24] sm:$0x1]  ;;  %v841_v26 = vpack.c.bf16 %v833_v21, %v833_v21  ;;  %444 = vst [vmem:[#allocation2 + $0xc4] sm:$0x1] %v443_v22  ;;  %v1011_v27 = vmul.f32 0.1, %v995_v6 }
  0x3a   : > { %v1793_v29 = vrot.slane %v1791_v19, 5  ;;  %v869_v30 = vrot.slane %v4185_v52, 4  ;;  %761 = vst [vmem:[#allocation2 + $0x20] sm:$0xf] %v760_v24  ;;  %v763_v49 = vsel %vm4041_vm3, %v689_v11, %v762_v25  ;;  %1500 = vrot.lane.b32.xlu0 %v1437_v61, %s3981_s8  ;;  %v945_v38 = vld [vmem:[#allocation2 + $0x70] sm:$0xf]  ;;  %v1181_v43 = vadd.f32 %v4069_v8, %v1173_v18 }
  0x3b   : > { %v1789_v32 = vrot.slane %v1788_v23, 4  ;;  %764 = vst [vmem:[#allocation2 + $0x24] sm:$0x1] %v763_v49  ;;  %v871_v34 = vshrl.u32 %v841_v26, 16  ;;  %v874_v35 = vshll.u32 %v841_v26, 16  ;;  %v1019_v37 = vsel %vm1003_vm8, %v995_v6, %v1011_v27  ;;  %v600_v6 = vld [vmem:[%s4064_s28 + $0x20] sm:$0xff] }
  0x3c   : > { %v1027_v39 = vpack.c.bf16 %v1019_v37, %v1019_v37  ;;  %v2113_v42 = vld [vmem:[#allocation2 + $0xbc] sm:$0x1]  ;;  %v2153_v46 = vshrl.u32 %v2112_v41, 16  ;;  %v2156_v48 = vshll.u32 %v2112_v41, 16  ;;  %v948_v50 = vld [vmem:[#allocation2 + $0x74] sm:$0x1]  ;;  %v4248_v15 = vadd.f32 %v4069_v8, %v1174_v51 }
  0x3d   : > { %1661 = vrot.lane.b32.xlu1 %v1598_v28, %s3982_s9  ;;  %v1690_v44 = vld [vmem:[#allocation2 + $0x68] sm:$0xf]  ;;  %v873_v45 = vrot.slane %v871_v34, 7  ;;  %v1794_v53 = vsel %vm4178_vm6, %v1789_v32, %v1793_v29  ;;  %v2162_v58 = vshll.u32 %v2113_v42, 16  ;;  %v478_v36 = vld [vmem:[#allocation2 + $0x110] sm:$0x1]  ;;  %v611_v49 = vmul.f32 %v4056_v4, %v600_v6 }
  0x3e   : > { %1708 = vrot.lane.b32.xlu2 %v1690_v44, %s3983_s10  ;;  %v1057_v54 = vshrl.u32 %v1027_v39, 16  ;;  %v1060_v55 = vshll.u32 %v1027_v39, 16  ;;  %v1131_v62 = vld [vmem:[#allocation2 + $0xc0] sm:$0xf]  ;;  %v2155_v63 = vrot.slane %v2153_v46, 4  ;;  %v2158_v1 = vrot.slane %v2156_v48, 5 }
  0x3f   : > { %v876_v59 = vor.u32 %v874_v35, %v873_v45  ;;  %v877_v60 = vrot.slane %v873_v45, 4  ;;  %v4238_v3 = vrot.slane %v2162_v58, 5  ;;  %v479_v5 = vsel %vm4041_vm3, 0, %v478_v36  ;;  %v508_v24 = vld [vmem:[#allocation2 + $0x114] sm:$0x1]  ;;  %v3810_v37 = vld [vmem:[%s4064_s28 + $0x68] sm:$0xff] }
  0x40   : > { %v1059_v47 = vrot.slane %v1057_v54, 7  ;;  %v1134_v56 = vld [vmem:[#allocation2 + $0xc4] sm:$0x1]  ;;  %vm1189_vm9 = vcmp.gt.f32.partialorder %v1181_v43, 0.0  ;;  %v2159_v9 = vor.u32 %v2158_v1, %v2155_v63  ;;  %480 = vst [vmem:[#allocation2 + $0x110] sm:$0x1] %v479_v5  ;;  %v803_v36 = vmul.f32 %v4056_v4, %v3810_v37 }
  0x41   : > { %v1743_v7 = vld [vmem:[#allocation2 + $0x20] sm:$0xf]  ;;  %v946_v40 = vsel %vm4113_vm11, %v876_v59, %v945_v38  ;;  %v949_v57 = vsel %vm4041_vm3, %v877_v60, %v948_v50  ;;  %v1197_v10 = vmul.f32 0.1, %v1181_v43  ;;  %v373_v25 = vld [vmem:[#allocation2 + $0x6c] sm:$0x1]  ;;  %v4269_v50 = vadd.f32 %v4069_v8, %v611_v49 }
  0x42   : > { %v1744_v11 = vld [vmem:[#allocation2 + $0x24] sm:$0x1]  ;;  %v1796_v13 = vshrl.u32 %v1743_v7, 16  ;;  %v1799_v14 = vshll.u32 %v1743_v7, 16  ;;  %947 = vst [vmem:[#allocation2 + $0x70] sm:$0xf] %v946_v40  ;;  %v1062_v61 = vor.u32 %v1060_v55, %v1059_v47  ;;  %1869 = vrot.lane.b32.xlu0 %v1794_v53, %s3984_s11 }
  0x43   : > { %v1805_v16 = vshll.u32 %v1744_v11, 16  ;;  %950 = vst [vmem:[#allocation2 + $0x74] sm:$0x1] %v949_v57  ;;  %v1063_v17 = vrot.slane %v1059_v47, 4  ;;  %v4251_v18 = vrot.slane %v2159_v9, 4  ;;  %v1205_v19 = vsel %vm1189_vm9, %v1181_v43, %v1197_v10  ;;  %v3809_v42 = vld [vmem:[%s4064_s28 + $0x60] sm:$0xff] }
  0x44   : > { %v1798_v20 = vrot.slane %v1796_v13, 4  ;;  %v1801_v21 = vrot.slane %v1799_v14, 5  ;;  %v1132_v22 = vsel %vm4113_vm11, %v1062_v61, %v1131_v62  ;;  %v1213_v23 = vpack.c.bf16 %v1205_v19, %v1205_v19  ;;  %v1902_v29 = vld [vmem:[#allocation2 + $0x68] sm:$0xf]  ;;  %v4264_v41 = vld [vmem:[#allocation2 + $0x118] sm:$0x1] }
  0x45   : > { %v1807_v26 = vrot.slane %v1805_v16, 5  ;;  %1133 = vst [vmem:[#allocation2 + $0xc0] sm:$0xf] %v1132_v22  ;;  %v1135_v27 = vsel %vm4041_vm3, %v1063_v17, %v1134_v56  ;;  %v509_v28 = vsel %vm4047_vm4, 0, %v508_v24  ;;  %v374_v35 = vsel %vm4047_vm4, 0, %v373_v25 }
  0x46   : > { %v1802_v31 = vor.u32 %v1801_v21, %v1798_v20  ;;  %1136 = vst [vmem:[#allocation2 + $0xc4] sm:$0x1] %v1135_v27  ;;  %v1243_v32 = vshrl.u32 %v1213_v23, 16  ;;  %v1246_v34 = vshll.u32 %v1213_v23, 16  ;;  %v1943_v38 = vshrl.u32 %v1902_v29, 16 }
  0x47   : > { %510 = vst [vmem:[#allocation2 + $0x114] sm:$0x1] %v509_v28  ;;  %v1946_v39 = vshll.u32 %v1902_v29, 16  ;;  %v1317_v45 = vld [vmem:[#allocation2 + $0x110] sm:$0xf]  ;;  %vm1190_vm10 = vcmp.gt.f32.partialorder %v4248_v15, 0.0  ;;  %v802_v40 = vmul.f32 %v4056_v4, %v3809_v42 }
  0x48   : > { %v1803_v43 = vrot.slane %v1802_v31, 4  ;;  %v1245_v44 = vrot.slane %v1243_v32, 7  ;;  %375 = vst [vmem:[#allocation2 + $0x6c] sm:$0x1] %v374_v35  ;;  %v1945_v51 = vrot.slane %v1943_v38, 4  ;;  %v482_v1 = vsel %vm4041_vm3, 0, %v4264_v41 }
  0x49   : > { %v1904_v46 = vld [vmem:[#allocation2 + $0x70] sm:$0xf]  ;;  %v1948_v53 = vrot.slane %v1946_v39, 5  ;;  %v511_v14 = vld [vmem:[#allocation2 + $0x11c] sm:$0x1]  ;;  %v4285_v31 = vadd.f32 %v4069_v8, %v803_v36  ;;  %vm630_vm12 = vcmp.gt.f32.partialorder %v4269_v50, 0.0 }
  0x4a   : > { %v1691_v48 = vld [vmem:[#allocation2 + $0x70] sm:$0xf]  ;;  %v1808_v54 = vsel %vm4178_vm6, %v1803_v43, %v1807_v26  ;;  %v1905_v55 = vld [vmem:[#allocation2 + $0x74] sm:$0x1]  ;;  %v1957_v58 = vshrl.u32 %v1904_v46, 16  ;;  %v1960_v59 = vshll.u32 %v1904_v46, 16  ;;  %v1248_v60 = vor.u32 %v1246_v34, %v1245_v44 }
  0x4b   : > { %1710 = vrot.lane.b32.xlu2 %v1691_v48, %s3983_s10  ;;  %1871 = vrot.lane.b32.xlu1 %v1808_v54, %s3984_s11  ;;  %v1966_v62 = vshll.u32 %v1905_v55, 16  ;;  %v1249_v63 = vrot.slane %v1245_v44, 4  ;;  %v1949_v20 = vor.u32 %v1948_v53, %v1945_v51  ;;  %v281_v49 = vld [vmem:[#allocation2 + $0x28] sm:$0x1]  ;;  %v313_v38 = vld [vmem:[#allocation2 + $0x2c] sm:$0x1]  ;;  %v2165_v55 = vsel %vm4178_vm6, %v4251_v18, %v4238_v3 }
  0x4c   : > { %v1959_v47 = vrot.slane %v1957_v58, 4  ;;  %v1962_v56 = vrot.slane %v1960_v59, 5  ;;  %v2114_v5 = vld [vmem:[#allocation2 + $0xc0] sm:$0xf]  ;;  %v1318_v6 = vsel %vm4113_vm11, %v1248_v60, %v1317_v45  ;;  %v512_v42 = vsel %vm4047_vm4, 0, %v511_v14 }
  0x4d   : > { %v1371_v7 = vld [vmem:[#allocation2 + $0xc0] sm:$0xf]  ;;  %v1968_v57 = vrot.slane %v1966_v62, 5  ;;  %v2115_v9 = vld [vmem:[#allocation2 + $0xc4] sm:$0x1]  ;;  %v2167_v10 = vshrl.u32 %v2114_v5, 16 }
  0x4e   : > { %v2170_v11 = vshll.u32 %v2114_v5, 16  ;;  %v1439_v13 = vshrl.u32 %v1371_v7, 16  ;;  %v1963_v61 = vor.u32 %v1962_v56, %v1959_v47  ;;  %v2176_v16 = vshll.u32 %v2115_v9, 16  ;;  %1319 = vst [vmem:[#allocation2 + $0x110] sm:$0xf] %v1318_v6  ;;  %v3817_v46 = vld [vmem:[%s4064_s28 + $0xa0] sm:$0xff] }
  0x4f   : > { %v1372_v17 = vld [vmem:[#allocation2 + $0xc4] sm:$0x1]  ;;  %v1442_v19 = vshll.u32 %v1371_v7, 16  ;;  %v2169_v21 = vrot.slane %v2167_v10, 4  ;;  %v1320_v25 = vld [vmem:[#allocation2 + $0x114] sm:$0x1]  ;;  %v4327_v9 = vmul.f32 %v4056_v4, %v3817_v46 }
  0x50   : > { %v2172_v22 = vrot.slane %v2170_v11, 5  ;;  %v1441_v23 = vrot.slane %v1439_v13, 4  ;;  %v1448_v24 = vshll.u32 %v1372_v17, 16  ;;  %v1964_v26 = vrot.slane %v1963_v61, 4  ;;  %v942_v29 = vld [vmem:[#allocation2 + $0x6c] sm:$0x1] }
  0x51   : > { %v1444_v27 = vrot.slane %v1442_v19, 5  ;;  %v1321_v28 = vsel %vm4041_vm3, %v1249_v63, %v1320_v25  ;;  %v2178_v34 = vrot.slane %v2176_v16, 5  ;;  %v943_v37 = vsel %vm4041_vm3, %v869_v30, %v942_v29  ;;  %483 = vst [vmem:[#allocation2 + $0x118] sm:$0x1] %v482_v1 }
  0x52   : > { %v2173_v32 = vor.u32 %v2172_v22, %v2169_v21  ;;  %v4287_v35 = vrot.slane %v1448_v24, 5  ;;  %1322 = vst [vmem:[#allocation2 + $0x114] sm:$0x1] %v1321_v28  ;;  %v1969_v39 = vsel %vm4178_vm6, %v1964_v26, %v1968_v57  ;;  %v1198_v43 = vmul.f32 0.1, %v4248_v15 }
  0x53   : > { %v1445_v41 = vor.u32 %v1444_v27, %v1441_v23  ;;  %944 = vst [vmem:[#allocation2 + $0x6c] sm:$0x1] %v943_v37  ;;  %2032 = vrot.lane.b32.xlu0 %v1969_v39, %s3985_s12  ;;  %v4299_v45 = vrot.slane %v1949_v20, 4  ;;  %v282_v52 = vsel %vm4041_vm3, 0, %v281_v49  ;;  %v314_v30 = vsel %vm4047_vm4, 0, %v313_v38  ;;  %v3826_v27 = vld [vmem:[%s4064_s28 + $0xe8] sm:$0xff] }
  0x54   : > { %v2174_v44 = vrot.slane %v2173_v32, 4  ;;  %513 = vst [vmem:[#allocation2 + $0x11c] sm:$0x1] %v512_v42  ;;  %v1206_v51 = vsel %vm1190_vm10, %v4248_v15, %v1198_v43  ;;  %v638_v53 = vmul.f32 0.1, %v4269_v50  ;;  %v4318_v63 = vadd.f32 %v4069_v8, %v802_v40 }
  0x55   : > { %v1446_v48 = vrot.slane %v1445_v41, 4  ;;  %v2062_v58 = vld [vmem:[#allocation2 + $0x110] sm:$0xf]  ;;  %v1214_v60 = vpack.c.bf16 %v1206_v51, %v1206_v51  ;;  %283 = vst [vmem:[#allocation2 + $0x28] sm:$0x1] %v282_v52  ;;  %vm819_vm13 = vcmp.gt.f32.partialorder %v4285_v31, 0.0  ;;  %v1175_v46 = vmul.f32 %v4056_v4, %v3826_v27 }
  0x56   : > { %v2179_v54 = vsel %vm4178_vm6, %v2174_v44, %v2178_v34  ;;  %v2275_v59 = vld [vmem:[#allocation2 + $0x110] sm:$0xf]  ;;  %2081 = vrot.lane.b32.xlu2 %v2062_v58, %s3980_s7  ;;  %315 = vst [vmem:[#allocation2 + $0x2c] sm:$0x1] %v314_v30  ;;  %v646_v56 = vsel %vm630_vm12, %v4269_v50, %v638_v53  ;;  %v352_v26 = vld [vmem:[#allocation2 + $0x80] sm:$0x1] }
  0x57   : > { %v1535_v62 = vld [vmem:[#allocation2 + $0x110] sm:$0xf]  ;;  %2242 = vrot.lane.b32.xlu1 %v2179_v54, %s3986_s13  ;;  %v2328_v15 = vshrl.u32 %v2275_v59, 16  ;;  %v2331_v1 = vshll.u32 %v2275_v59, 16  ;;  %v1251_v47 = vshrl.u32 %v1214_v60, 16  ;;  %v1254_v3 = vshll.u32 %v1214_v60, 16 }
  0x58   : > { %v1600_v36 = vshrl.u32 %v1535_v62, 16  ;;  %v1603_v18 = vshll.u32 %v1535_v62, 16  ;;  %v654_v57 = vpack.c.bf16 %v646_v56, %v646_v56  ;;  %v1323_v19 = vld [vmem:[#allocation2 + $0x118] sm:$0xf]  ;;  %v1451_v50 = vsel %vm4178_vm6, %v1446_v48, %v4287_v35  ;;  %v2273_v34 = vld [vmem:[#allocation2 + $0x108] sm:$0xf] }
  0x59   : > { %v2276_v5 = vld [vmem:[#allocation2 + $0x114] sm:$0x1]  ;;  %v2330_v6 = vrot.slane %v2328_v15, 4  ;;  %v2333_v7 = vrot.slane %v2331_v1, 5  ;;  %v1253_v13 = vrot.slane %v1251_v47, 7  ;;  %v353_v30 = vsel %vm4041_vm3, 0, %v352_v26 }
  0x5a   : > { %v1536_v40 = vld [vmem:[#allocation2 + $0x114] sm:$0x1]  ;;  %v2337_v10 = vshll.u32 %v2276_v5, 16  ;;  %v1903_v11 = vld [vmem:[#allocation2 + $0x6c] sm:$0x1]  ;;  %v1602_v14 = vrot.slane %v1600_v36, 4 }
  0x5b   : > { %v1605_v61 = vrot.slane %v1603_v18, 5  ;;  %v2334_v16 = vor.u32 %v2333_v7, %v2330_v6  ;;  %v1952_v17 = vshll.u32 %v1903_v11, 16  ;;  %v1609_v20 = vshll.u32 %v1536_v40, 16  ;;  %2240 = vrot.lane.b32.xlu0 %v2165_v55, %s3986_s13  ;;  %v1326_v24 = vld [vmem:[#allocation2 + $0x11c] sm:$0x1]  ;;  %v601_v26 = vld [vmem:[%s4064_s28 + $0x28] sm:$0xff] }
  0x5c   : > { %v691_v21 = vshrl.u32 %v654_v57, 16  ;;  %v1256_v22 = vor.u32 %v1254_v3, %v1253_v13  ;;  %v1257_v23 = vrot.slane %v1253_v13, 4  ;;  %v2339_v29 = vrot.slane %v2337_v10, 5  ;;  %v765_v41 = vld [vmem:[#allocation2 + $0x28] sm:$0xf] }
  0x5d   : > { %v1606_v25 = vor.u32 %v1605_v61, %v1602_v14  ;;  %v2335_v28 = vrot.slane %v2334_v16, 4  ;;  %v1954_v49 = vrot.slane %v1952_v17, 5  ;;  %v4338_v39 = vrot.slane %v1609_v20, 5  ;;  %v2274_v42 = vld [vmem:[#allocation2 + $0x10c] sm:$0x1] }
  0x5e   : > { %v693_v32 = vrot.slane %v691_v21, 7  ;;  %v1324_v37 = vsel %vm4113_vm11, %v1256_v22, %v1323_v19  ;;  %v1327_v38 = vsel %vm4041_vm3, %v1257_v23, %v1326_v24  ;;  %v694_v35 = vshll.u32 %v654_v57, 16  ;;  %v768_v52 = vld [vmem:[#allocation2 + $0x2c] sm:$0x1]  ;;  %354 = vst [vmem:[#allocation2 + $0x80] sm:$0x1] %v353_v30 }
  0x5f   : > { %1502 = vrot.lane.b32.xlu1 %v1451_v50, %s3981_s8  ;;  %v1955_v43 = vsel %vm4178_vm6, %v4299_v45, %v1954_v49  ;;  %1325 = vst [vmem:[#allocation2 + $0x118] sm:$0xf] %v1324_v37  ;;  %v4348_v48 = vrot.slane %v1606_v25, 4  ;;  %v827_v53 = vmul.f32 0.1, %v4285_v31  ;;  %v2314_v54 = vshrl.u32 %v2273_v34, 16 }
  0x60   : > { %v697_v44 = vrot.slane %v693_v32, 4  ;;  %2030 = vrot.lane.b32.xlu2 %v1955_v43, %s3985_s12  ;;  %1328 = vst [vmem:[#allocation2 + $0x11c] sm:$0x1] %v1327_v38  ;;  %v696_v51 = vor.u32 %v694_v35, %v693_v32  ;;  %v2340_v45 = vsel %vm4178_vm6, %v2335_v28, %v2339_v29  ;;  %v2317_v58 = vshll.u32 %v2273_v34, 16  ;;  %v382_v60 = vld [vmem:[#allocation2 + $0x84] sm:$0x1] }
  0x61   : > { %v2323_v59 = vshll.u32 %v2274_v42, 16  ;;  %v835_v62 = vsel %vm819_vm13, %v4285_v31, %v827_v53  ;;  %v2316_v15 = vrot.slane %v2314_v54, 4  ;;  %v383_v1 = vsel %vm4047_vm4, 0, %v382_v60  ;;  %v349_v36 = vld [vmem:[#allocation2 + $0x78] sm:$0x1] }
  0x62   : > { %v769_v55 = vsel %vm4041_vm3, %v697_v44, %v768_v52  ;;  %v766_v4 = vsel %vm4113_vm11, %v696_v51, %v765_v41  ;;  %v843_v47 = vpack.c.bf16 %v835_v62, %v835_v62  ;;  %v2319_v3 = vrot.slane %v2317_v58, 5  ;;  %384 = vst [vmem:[#allocation2 + $0x84] sm:$0x1] %v383_v1  ;;  %v379_v5 = vld [vmem:[#allocation2 + $0x7c] sm:$0x1] }
  0x63   : > { %770 = vst [vmem:[#allocation2 + $0x2c] sm:$0x1] %v769_v55  ;;  %v350_v18 = vsel %vm4041_vm3, 0, %v349_v36  ;;  %2403 = vrot.lane.b32.xlu0 %v2340_v45, %s3987_s14  ;;  %v2325_v56 = vrot.slane %v2323_v59, 5  ;;  %vm818_vm14 = vcmp.gt.f32.partialorder %v4318_v63, 0.0  ;;  %v4368_v31 = vadd.f32 %v4069_v8, %v4327_v9 }
  0x64   : > { %767 = vst [vmem:[#allocation2 + $0x28] sm:$0xf] %v766_v4  ;;  %v4371_v6 = vadd.f32 %v4069_v8, %v1175_v46  ;;  %v887_v7 = vshrl.u32 %v843_v47, 16  ;;  %v890_v40 = vshll.u32 %v843_v47, 16  ;;  %v2320_v57 = vor.u32 %v2319_v3, %v2316_v15  ;;  %v415_v34 = vld [vmem:[#allocation2 + $0xc8] sm:$0x1] }
  0x65   : > { %351 = vst [vmem:[#allocation2 + $0x78] sm:$0x1] %v350_v18  ;;  %v380_v10 = vsel %vm4047_vm4, 0, %v379_v5  ;;  %v1612_v13 = vsel %vm4178_vm6, %v4348_v48, %v4338_v39  ;;  %v826_v9 = vmul.f32 0.1, %v4318_v63  ;;  %vm1004_vm15 = vcmp.gt.f32.partialorder %v4368_v31, 0.0 }
  0x66   : > { %v1537_v11 = vld [vmem:[#allocation2 + $0x118] sm:$0xf]  ;;  %381 = vst [vmem:[#allocation2 + $0x7c] sm:$0x1] %v380_v10  ;;  %v889_v16 = vrot.slane %v887_v7, 7  ;;  %v2321_v17 = vrot.slane %v2320_v57, 4 }
  0x67   : > { %v1538_v14 = vld [vmem:[#allocation2 + $0x11c] sm:$0x1]  ;;  %v1614_v8 = vshrl.u32 %v1537_v11, 16  ;;  %v1617_v61 = vshll.u32 %v1537_v11, 16  ;;  %v957_v20 = vld [vmem:[#allocation2 + $0x80] sm:$0xf]  ;;  %v834_v21 = vsel %vm818_vm14, %v4318_v63, %v826_v9 }
  0x68   : > { %v1623_v19 = vshll.u32 %v1538_v14, 16  ;;  %vm1191_vm7 = vcmp.gt.f32.partialorder %v4371_v6, 0.0  ;;  %v892_v24 = vor.u32 %v890_v40, %v889_v16  ;;  %v893_v25 = vrot.slane %v889_v16, 4  ;;  %v445_v41 = vld [vmem:[#allocation2 + $0xcc] sm:$0x1] }
  0x69   : > { %v1616_v50 = vrot.slane %v1614_v8, 4  ;;  %v1619_v22 = vrot.slane %v1617_v61, 5  ;;  %v2326_v49 = vsel %vm4178_vm6, %v2321_v17, %v2325_v56  ;;  %v842_v32 = vpack.c.bf16 %v834_v21, %v834_v21  ;;  %v960_v35 = vld [vmem:[#allocation2 + $0x84] sm:$0x1]  ;;  %v484_v52 = vld [vmem:[#allocation2 + $0x120] sm:$0x1] }
  0x6a   : > { %v1746_v23 = vld [vmem:[#allocation2 + $0x2c] sm:$0x1]  ;;  %v1625_v27 = vrot.slane %v1623_v19, 5  ;;  %v958_v39 = vsel %vm4113_vm11, %v892_v24, %v957_v20  ;;  %2401 = vrot.lane.b32.xlu2 %v2326_v49, %s3987_s14  ;;  %v961_v42 = vsel %vm4041_vm3, %v893_v25, %v960_v35  ;;  %v416_v51 = vsel %vm4041_vm3, 0, %v415_v34  ;;  %v4401_v58 = vld [vmem:[%s5515_s3] ss:$0 sm:$0xff] }
  0x6b   : > { %v1745_v28 = vld [vmem:[#allocation2 + $0x28] sm:$0xf]  ;;  %v1819_v29 = vshll.u32 %v1746_v23, 16  ;;  %v1620_v37 = vor.u32 %v1619_v22, %v1616_v50  ;;  %1663 = vrot.lane.b32.xlu0 %v1612_v13, %s3982_s9  ;;  %959 = vst [vmem:[#allocation2 + $0x80] sm:$0xf] %v958_v39  ;;  %v879_v43 = vshrl.u32 %v842_v32, 16  ;;  %v612_v59 = vmul.f32 %v4401_v58, %v601_v26 }
  0x6c   : > { %v1810_v63 = vshrl.u32 %v1745_v28, 16  ;;  %v1813_v38 = vshll.u32 %v1745_v28, 16  ;;  %v882_v44 = vshll.u32 %v842_v32, 16  ;;  %962 = vst [vmem:[#allocation2 + $0x84] sm:$0x1] %v961_v42  ;;  %v446_v55 = vsel %vm4047_vm4, 0, %v445_v41 }
  0x6d   : > { %v1621_v30 = vrot.slane %v1620_v37, 4  ;;  %v881_v53 = vrot.slane %v879_v43, 7  ;;  %v951_v54 = vld [vmem:[#allocation2 + $0x78] sm:$0xf]  ;;  %v954_v45 = vld [vmem:[#allocation2 + $0x7c] sm:$0x1] }
  0x6e   : > { %v1812_v46 = vrot.slane %v1810_v63, 4  ;;  %v1815_v48 = vrot.slane %v1813_v38, 5  ;;  %417 = vst [vmem:[#allocation2 + $0xc8] sm:$0x1] %v416_v51  ;;  %v1012_v62 = vmul.f32 0.1, %v4368_v31 }
  0x6f   : > { %v1626_v60 = vsel %vm4178_vm6, %v1621_v30, %v1625_v27  ;;  %v485_v15 = vsel %vm4041_vm3, 0, %v484_v52  ;;  %v1821_v1 = vrot.slane %v1819_v29, 5  ;;  %v884_v36 = vor.u32 %v882_v44, %v881_v53  ;;  %447 = vst [vmem:[#allocation2 + $0xcc] sm:$0x1] %v446_v55  ;;  %v514_v10 = vld [vmem:[#allocation2 + $0x124] sm:$0x1] }
  0x70   : > { %v1816_v4 = vor.u32 %v1815_v48, %v1812_v46  ;;  %1665 = vrot.lane.b32.xlu1 %v1626_v60, %s3982_s9  ;;  %v885_v47 = vrot.slane %v881_v53, 4  ;;  %v1199_v3 = vmul.f32 0.1, %v4371_v6  ;;  %v1020_v56 = vsel %vm1004_vm15, %v4368_v31, %v1012_v62  ;;  %486 = vst [vmem:[#allocation2 + $0x120] sm:$0x1] %v485_v15 }
  0x71   : > { %v952_v5 = vsel %vm4113_vm11, %v884_v36, %v951_v54  ;;  %v1028_v40 = vpack.c.bf16 %v1020_v56, %v1020_v56  ;;  %v4427_v16 = vld [vmem:[%s5516_s4] ss:$0 sm:$0xff]  ;;  %v515_v24 = vsel %vm4047_vm4, 0, %v514_v10  ;;  %v2277_v27 = vld [vmem:[#allocation2 + $0x118] sm:$0xf]  ;;  %v3988_v41 = vmov 0  }
  0x72   : > { %v1817_v18 = vrot.slane %v1816_v4, 4  ;;  %v955_v7 = vsel %vm4041_vm3, %v885_v47, %v954_v45  ;;  %v1207_v57 = vsel %vm1191_vm7, %v4371_v6, %v1199_v3  ;;  %v1693_v11 = vld [vmem:[#allocation2 + $0x80] sm:$0xf]  ;;  %953 = vst [vmem:[#allocation2 + $0x78] sm:$0xf] %v952_v5  ;;  %v623_v6 = vadd.f32 %v4427_v16, %v612_v59 }
  0x73   : > { %v1908_v13 = vld [vmem:[#allocation2 + $0x80] sm:$0xf]  ;;  %v1215_v9 = vpack.c.bf16 %v1207_v57, %v1207_v57  ;;  %1714 = vrot.lane.b32.xlu0 %v1693_v11, %s3983_s10  ;;  %v1909_v14 = vld [vmem:[#allocation2 + $0x84] sm:$0x1]  ;;  %956 = vst [vmem:[#allocation2 + $0x7c] sm:$0x1] %v955_v7 }
  0x74   : > { %v1822_v31 = vsel %vm4178_vm6, %v1817_v18, %v1821_v1  ;;  %v1985_v8 = vshrl.u32 %v1908_v13, 16  ;;  %v1988_v61 = vshll.u32 %v1908_v13, 16  ;;  %v1994_v17 = vshll.u32 %v1909_v14, 16  ;;  %516 = vst [vmem:[#allocation2 + $0x124] sm:$0x1] %v515_v24  ;;  %v3819_v13 = vld [vmem:[%s4064_s28 + $0xb0] sm:$0xff] }
  0x75   : > { %v1065_v19 = vshrl.u32 %v1028_v40, 16  ;;  %v1068_v20 = vshll.u32 %v1028_v40, 16  ;;  %v1259_v21 = vshrl.u32 %v1215_v9, 16  ;;  %v1262_v23 = vshll.u32 %v1215_v9, 16  ;;  %v1137_v29 = vld [vmem:[#allocation2 + $0xc8] sm:$0xf] }
  0x76   : > { %v1987_v50 = vrot.slane %v1985_v8, 4  ;;  %v1990_v22 = vrot.slane %v1988_v61, 5  ;;  %v1140_v49 = vld [vmem:[#allocation2 + $0xcc] sm:$0x1]  ;;  %v284_v32 = vld [vmem:[#allocation2 + $0x30] sm:$0x1] }
  0x77   : > { %v1067_v25 = vrot.slane %v1065_v19, 7  ;;  %v1261_v26 = vrot.slane %v1259_v21, 7  ;;  %v1996_v34 = vrot.slane %v1994_v17, 5  ;;  %v1329_v39 = vld [vmem:[#allocation2 + $0x120] sm:$0xf]  ;;  %v2342_v44 = vshrl.u32 %v2277_v27, 16 }
  0x78   : > { %1873 = vrot.lane.b32.xlu1 %v1822_v31, %s3984_s11  ;;  %v1991_v28 = vor.u32 %v1990_v22, %v1987_v50  ;;  %v316_v35 = vld [vmem:[#allocation2 + $0x34] sm:$0x1]  ;;  %257 = vst.msk [vmem:[#allocation2] sm:$0xf] %vm256_vm5, %v3988_v41  ;;  %v2345_v52 = vshll.u32 %v2277_v27, 16  ;;  %vm631_vm8 = vcmp.gt.f32.partialorder %v623_v6, 0.0 }
  0x79   : > { %v1070_v37 = vor.u32 %v1068_v20, %v1067_v25  ;;  %v1071_v63 = vrot.slane %v1067_v25, 4  ;;  %v1264_v38 = vor.u32 %v1262_v23, %v1261_v26  ;;  %v1906_v43 = vld [vmem:[#allocation2 + $0x78] sm:$0xf]  ;;  %259 = vst.msk [vmem:[#allocation2 + $0x4] sm:$0x1] %vm258_vm0, %v3988_v41  ;;  %v1265_v45 = vrot.slane %v1261_v26, 4 }
  0x7a   : > { %v1992_v42 = vrot.slane %v1991_v28, 4  ;;  %v1907_v30 = vld [vmem:[#allocation2 + $0x7c] sm:$0x1]  ;;  %v1971_v46 = vshrl.u32 %v1906_v43, 16  ;;  %v1974_v48 = vshll.u32 %v1906_v43, 16  ;;  %v285_v15 = vsel %vm4041_vm3, 0, %v284_v32 }
  0x7b   : > { %v1138_v51 = vsel %vm4113_vm11, %v1070_v37, %v1137_v29  ;;  %v1141_v53 = vsel %vm4041_vm3, %v1071_v63, %v1140_v49  ;;  %v1980_v54 = vshll.u32 %v1907_v30, 16  ;;  %v1330_v55 = vsel %vm4113_vm11, %v1264_v38, %v1329_v39  ;;  %v4443_v59 = vld [vmem:[#allocation2 + $0x11c] sm:$0x1]  ;;  %v1332_v18 = vld [vmem:[#allocation2 + $0x124] sm:$0x1] }
  0x7c   : > { %1139 = vst [vmem:[#allocation2 + $0xc8] sm:$0xf] %v1138_v51  ;;  %v1997_v60 = vsel %vm4178_vm6, %v1992_v42, %v1996_v34  ;;  %v1973_v4 = vrot.slane %v1971_v46, 4  ;;  %v1976_v62 = vrot.slane %v1974_v48, 5  ;;  %v317_v1 = vsel %vm4047_vm4, 0, %v316_v35 }
  0x7d   : > { %1142 = vst [vmem:[#allocation2 + $0xcc] sm:$0x1] %v1141_v53  ;;  %v639_v36 = vmul.f32 0.1, %v623_v6  ;;  %v1982_v3 = vrot.slane %v1980_v54, 5  ;;  %v1333_v56 = vsel %vm4041_vm3, %v1265_v45, %v1332_v18  ;;  %v4454_v5 = vrot.slane %v2342_v44, 4 }
  0x7e   : > { %1331 = vst [vmem:[#allocation2 + $0x120] sm:$0xf] %v1330_v55  ;;  %v1977_v47 = vor.u32 %v1976_v62, %v1973_v4  ;;  %v4456_v7 = vrot.slane %v2345_v52, 5  ;;  %v2351_v10 = vshll.u32 %v4443_v59, 16  ;;  %v990_v23 = vmul.f32 %v4401_v58, %v3819_v13 }
  0x7f   : > { %286 = vst [vmem:[#allocation2 + $0x30] sm:$0x1] %v285_v15  ;;  %v647_v40 = vsel %vm631_vm8, %v623_v6, %v639_v36  ;;  %v266_v9 = vld [vmem:[#allocation2] sm:$0x1]  ;;  %vm1518_vm7 = vcmask 60448   ;;  %vm2478_vm2 = vcmask 293888  }
  0x80   : > { %2036 = vrot.lane.b32.xlu1 %v1997_v60, %s3985_s12  ;;  %318 = vst [vmem:[#allocation2 + $0x34] sm:$0x1] %v317_v1  ;;  %v1978_v57 = vrot.slane %v1977_v47, 4  ;;  %v655_v11 = vpack.c.bf16 %v647_v40, %v647_v40  ;;  %v298_v31 = vld [vmem:[#allocation2 + $0x4] sm:$0x1]  ;;  %v2348_v22 = vor.u32 %v4456_v7, %v4454_v5  ;;  %v267_v34 = vsel %vm4041_vm3, 0, %v266_v9 }
  0x81   : > { %1334 = vst [vmem:[#allocation2 + $0x124] sm:$0x1] %v1333_v56  ;;  %v299_v42 = vsel %vm4047_vm4, 0, %v298_v31  ;;  %v998_v55 = vadd.f32 %v4427_v16, %v990_v23  ;;  %v3827_v1 = vld [vmem:[%s4064_s28 + $0xf0] sm:$0xff] }
  0x82   : > { %261 = vst.msk [vmem:[#allocation2 + $0x48] sm:$0xf] %vm256_vm5, %v3988_v41  ;;  %v1983_v14 = vsel %vm4178_vm6, %v1978_v57, %v1982_v3  ;;  %v699_v17 = vshrl.u32 %v655_v11, 16  ;;  %v702_v19 = vshll.u32 %v655_v11, 16  ;;  %v1176_v7 = vmul.f32 %v4401_v58, %v3827_v1 }
  0x83   : > { %v1373_v8 = vld [vmem:[#allocation2 + $0xc8] sm:$0xf]  ;;  %2034 = vrot.lane.b32.xlu0 %v1983_v14, %s3985_s12  ;;  %262 = vst.msk [vmem:[#allocation2 + $0x4c] sm:$0x1] %vm258_vm0, %v3988_v41  ;;  %v2349_v57 = vrot.slane %v2348_v22, 4  ;;  %v2353_v11 = vrot.slane %v2351_v10, 5 }
  0x84   : > { %v2116_v61 = vld [vmem:[#allocation2 + $0xc8] sm:$0xf]  ;;  %v1374_v6 = vld [vmem:[#allocation2 + $0xcc] sm:$0x1]  ;;  %v1453_v20 = vshrl.u32 %v1373_v8, 16  ;;  %v1456_v21 = vshll.u32 %v1373_v8, 16  ;;  %v1184_v13 = vadd.f32 %v4427_v16, %v1176_v7 }
  0x85   : > { %v2117_v50 = vld [vmem:[#allocation2 + $0xcc] sm:$0x1]  ;;  %v1462_v24 = vshll.u32 %v1374_v6, 16  ;;  %v2181_v25 = vshrl.u32 %v2116_v61, 16  ;;  %v2184_v26 = vshll.u32 %v2116_v61, 16  ;;  %v701_v32 = vrot.slane %v699_v17, 7 }
  0x86   : > { %v2190_v27 = vshll.u32 %v2117_v50, 16  ;;  %v1455_v28 = vrot.slane %v1453_v20, 4  ;;  %v1458_v29 = vrot.slane %v1456_v21, 5  ;;  %v2279_v49 = vld [vmem:[#allocation2 + $0x120] sm:$0xf]  ;;  %vm1006_vm9 = vcmp.gt.f32.partialorder %v998_v55, 0.0 }
  0x87   : > { %v1464_v37 = vrot.slane %v1462_v24, 5  ;;  %v2183_v63 = vrot.slane %v2181_v25, 4  ;;  %v2186_v38 = vrot.slane %v2184_v26, 5  ;;  %v2064_v39 = vld [vmem:[#allocation2 + $0x120] sm:$0xf]  ;;  %v2356_v52 = vshrl.u32 %v2279_v49, 16 }
  0x88   : > { %v771_v35 = vld [vmem:[#allocation2 + $0x30] sm:$0xf]  ;;  %v1459_v43 = vor.u32 %v1458_v29, %v1455_v28  ;;  %v2280_v44 = vld [vmem:[#allocation2 + $0x124] sm:$0x1]  ;;  %v2359_v30 = vshll.u32 %v2279_v49, 16  ;;  %v704_v46 = vor.u32 %v702_v19, %v701_v32  ;;  %v2192_v53 = vrot.slane %v2190_v27, 5 }
  0x89   : > { %v774_v48 = vld [vmem:[#allocation2 + $0x34] sm:$0x1]  ;;  %v2187_v51 = vor.u32 %v2186_v38, %v2183_v63  ;;  %v705_v54 = vrot.slane %v701_v32, 4  ;;  %v293_v45 = vld [vmem:[#allocation2 + $0x48] sm:$0x1]  ;;  %v2358_v4 = vrot.slane %v2356_v52, 4  ;;  %v2354_v59 = vsel %vm4178_vm6, %v2349_v57, %v2353_v11 }
  0x8a   : > { %v1460_v60 = vrot.slane %v1459_v43, 4  ;;  %v2361_v62 = vrot.slane %v2359_v30, 5  ;;  %v772_v15 = vsel %vm4113_vm11, %v704_v46, %v771_v35  ;;  %268 = vst [vmem:[#allocation2] sm:$0x1] %v267_v34  ;;  %v2365_v47 = vshll.u32 %v2280_v44, 16  ;;  %v3818_v20 = vld [vmem:[%s4064_s28 + $0xa8] sm:$0xff] }
  0x8b   : > { %v2188_v36 = vrot.slane %v2187_v51, 4  ;;  %773 = vst [vmem:[#allocation2 + $0x30] sm:$0xf] %v772_v15  ;;  %v775_v3 = vsel %vm4041_vm3, %v705_v54, %v774_v48  ;;  %v294_v18 = vsel %vm4041_vm3, 0, %v293_v45  ;;  %2085 = vrot.lane.b32.xlu0 %v2064_v39, %s3980_s7  ;;  %v4496_v14 = vld [vmem:[#allocation2 + $0xd8] sm:$0x1]  ;;  %v989_v63 = vmul.f32 %v4401_v58, %v3818_v20 }
  0x8c   : > { %v1465_v56 = vsel %vm4178_vm6, %v1460_v60, %v1464_v37  ;;  %v2362_v5 = vor.u32 %v2361_v62, %v2358_v4  ;;  %776 = vst [vmem:[#allocation2 + $0x34] sm:$0x1] %v775_v3  ;;  %v2367_v31 = vrot.slane %v2365_v47, 5  ;;  %v1014_v8 = vmul.f32 0.1, %v998_v55  ;;  %v3821_v54 = vld [vmem:[%s4064_s28 + $0xc0] sm:$0xff] }
  0x8d   : > { %1504 = vrot.lane.b32.xlu2 %v1465_v56, %s3981_s8  ;;  %v2193_v40 = vsel %vm4178_vm6, %v2188_v36, %v2192_v53  ;;  %295 = vst [vmem:[#allocation2 + $0x48] sm:$0x1] %v294_v18  ;;  %v1692_v61 = vld [vmem:[#allocation2 + $0x78] sm:$0xf]  ;;  %v325_v17 = vld [vmem:[#allocation2 + $0x4c] sm:$0x1]  ;;  %v997_v4 = vadd.f32 %v4427_v16, %v989_v63 }
  0x8e   : > { %2244 = vrot.lane.b32.xlu1 %v2193_v40, %s3986_s13  ;;  %300 = vst [vmem:[#allocation2 + $0x4] sm:$0x1] %v299_v42  ;;  %v2363_v9 = vrot.slane %v2362_v5, 4  ;;  %v326_v10 = vsel %vm4047_vm4, 0, %v325_v17  ;;  %vm1192_vm10 = vcmp.gt.f32.partialorder %v1184_v13, 0.0  ;;  %v1022_v24 = vsel %vm1006_vm9, %v998_v55, %v1014_v8  ;;  %v3811_v53 = vld [vmem:[%s4064_s28 + $0x70] sm:$0xff] }
  0x8f   : > { %329 = vst.msk [vmem:[#allocation2 + $0x50] sm:$0xf] %vm256_vm5, %v3988_v41  ;;  %v1200_v19 = vmul.f32 0.1, %v1184_v13  ;;  %v422_v26 = vsel %vm4041_vm3, 0, %v4496_v14  ;;  %v4525_v34 = vpack.c.bf16 %v1022_v24, %v1022_v24  ;;  %v804_v47 = vmul.f32 %v4401_v58, %v3811_v53 }
  0x90   : > { %330 = vst.msk [vmem:[#allocation2 + $0x54] sm:$0x1] %vm258_vm0, %v3988_v41  ;;  %v2368_v21 = vsel %vm4178_vm6, %v2363_v9, %v2367_v31  ;;  %v4520_v49 = vld [vmem:[#allocation2 + $0xdc] sm:$0x1]  ;;  %v4527_v37 = vld [vmem:[#allocation2 + $0x128] sm:$0x1]  ;;  %v1170_v31 = vmul.f32 %v4401_v58, %v3821_v54 }
  0x91   : > { %332 = vst.msk [vmem:[#allocation2 + $0x98] sm:$0xf] %vm256_vm5, %v3988_v41  ;;  %v1208_v27 = vsel %vm1192_vm10, %v1184_v13, %v1200_v19  ;;  %v4534_v43 = vld [vmem:[#allocation2 + $0x12c] sm:$0x1]  ;;  %v452_v46 = vsel %vm4047_vm4, 0, %v4520_v49  ;;  %v1081_v55 = vshrl.u32 %v4525_v34, 16  ;;  %v812_v17 = vadd.f32 %v4427_v16, %v804_v47 }
  0x92   : > { %v1747_v6 = vld [vmem:[#allocation2 + $0x30] sm:$0xf]  ;;  %327 = vst [vmem:[#allocation2 + $0x4c] sm:$0x1] %v326_v10  ;;  %v4536_v44 = vpack.c.bf16 %v1208_v27, %v1208_v27  ;;  %v488_v60 = vsel %vm4041_vm3, 0, %v4527_v37  ;;  %v518_v56 = vsel %vm4047_vm4, 0, %v4534_v43  ;;  %v4589_v24 = vadd.f32 %v4427_v16, %v1170_v31 }
  0x93   : > { %v1748_v50 = vld [vmem:[#allocation2 + $0x34] sm:$0x1]  ;;  %v1824_v22 = vshrl.u32 %v1747_v6, 16  ;;  %v1827_v23 = vshll.u32 %v1747_v6, 16  ;;  %333 = vst.msk [vmem:[#allocation2 + $0x9c] sm:$0x1] %vm258_vm0, %v3988_v41  ;;  %2405 = vrot.lane.b32.xlu0 %v2354_v59, %s3987_s14 }
  0x94   : > { %v1833_v25 = vshll.u32 %v1748_v50, 16  ;;  %395 = vst.msk [vmem:[#allocation2 + $0xa0] sm:$0xf] %vm256_vm5, %v3988_v41  ;;  %v1267_v36 = vshrl.u32 %v4536_v44, 16  ;;  %v418_v5 = vld [vmem:[#allocation2 + $0xd0] sm:$0x1] }
  0x95   : > { %1712 = vrot.lane.b32.xlu2 %v1692_v61, %s3983_s10  ;;  %v1826_v28 = vrot.slane %v1824_v22, 4  ;;  %v1829_v29 = vrot.slane %v1827_v23, 5  ;;  %396 = vst.msk [vmem:[#allocation2 + $0xa4] sm:$0x1] %vm258_vm0, %v3988_v41  ;;  %v1084_v57 = vshll.u32 %v4525_v34, 16  ;;  %v4571_v9 = vrot.slane %v1081_v55, 7 }
  0x96   : > { %2407 = vrot.lane.b32.xlu1 %v2368_v21, %s3987_s14  ;;  %v334_v32 = vld [vmem:[#allocation2 + $0x50] sm:$0x1]  ;;  %398 = vst.msk [vmem:[#allocation2 + $0xe8] sm:$0xf] %vm256_vm5, %v3988_v41  ;;  %v1835_v39 = vrot.slane %v1833_v25, 5  ;;  %v4576_v61 = vrot.slane %v1267_v36, 7 }
  0x97   : > { %v1830_v38 = vor.u32 %v1829_v29, %v1826_v28  ;;  %v335_v35 = vsel %vm4041_vm3, 0, %v334_v32  ;;  %v364_v42 = vld [vmem:[#allocation2 + $0x54] sm:$0x1]  ;;  %399 = vst.msk [vmem:[#allocation2 + $0xec] sm:$0x1] %vm258_vm0, %v3988_v41  ;;  %vm1005_vm12 = vcmp.gt.f32.partialorder %v997_v4, 0.0 }
  0x98   : > { %336 = vst [vmem:[#allocation2 + $0x50] sm:$0x1] %v335_v35  ;;  %v361_v52 = vld [vmem:[#allocation2 + $0x98] sm:$0x1]  ;;  %v365_v30 = vsel %vm4047_vm4, 0, %v364_v42  ;;  %v1087_v19 = vrot.slane %v4571_v9, 4 }
  0x99   : > { %v1831_v48 = vrot.slane %v1830_v38, 4  ;;  %v362_v51 = vsel %vm4041_vm3, 0, %v361_v52  ;;  %366 = vst [vmem:[#allocation2 + $0x54] sm:$0x1] %v365_v30  ;;  %v448_v59 = vld [vmem:[#allocation2 + $0xd4] sm:$0x1] }
  0x9a   : > { %363 = vst [vmem:[#allocation2 + $0x98] sm:$0x1] %v362_v51  ;;  %v391_v45 = vld [vmem:[#allocation2 + $0x9c] sm:$0x1]  ;;  %v1013_v10 = vmul.f32 0.1, %v997_v4 }
  0x9b   : > { %v1836_v62 = vsel %vm4178_vm6, %v1831_v48, %v1835_v39  ;;  %v392_v15 = vsel %vm4047_vm4, 0, %v391_v45  ;;  %v400_v1 = vld [vmem:[#allocation2 + $0xa0] sm:$0x1]  ;;  %464 = vst.msk [vmem:[#allocation2 + $0x138] sm:$0xf] %vm256_vm5, %v3988_v41  ;;  %v1270_v6 = vshll.u32 %v4536_v44, 16 }
  0x9c   : > { %393 = vst [vmem:[#allocation2 + $0x9c] sm:$0x1] %v392_v15  ;;  %v401_v3 = vsel %vm4041_vm3, 0, %v400_v1  ;;  %v430_v18 = vld [vmem:[#allocation2 + $0xa4] sm:$0x1]  ;;  %v1273_v20 = vrot.slane %v4576_v61, 4  ;;  %v1021_v23 = vsel %vm1005_vm12, %v997_v4, %v1013_v10 }
  0x9d   : > { %1875 = vrot.lane.b32.xlu2 %v1836_v62, %s3984_s11  ;;  %402 = vst [vmem:[#allocation2 + $0xa0] sm:$0x1] %v401_v3  ;;  %v427_v7 = vld [vmem:[#allocation2 + $0xe8] sm:$0x1]  ;;  %v431_v40 = vsel %vm4047_vm4, 0, %v430_v18  ;;  %v419_v21 = vsel %vm4041_vm3, 0, %v418_v5  ;;  %v1029_v28 = vpack.c.bf16 %v1021_v23, %v1021_v23  ;;  %v1272_v62 = vor.u32 %v1270_v6, %v4576_v61 }
  0x9e   : > { %v428_v11 = vsel %vm4041_vm3, 0, %v427_v7  ;;  %432 = vst [vmem:[#allocation2 + $0xa4] sm:$0x1] %v431_v40  ;;  %v457_v13 = vld [vmem:[#allocation2 + $0xec] sm:$0x1]  ;;  %v449_v27 = vsel %vm4047_vm4, 0, %v448_v59 }
  0x9f   : > { %429 = vst [vmem:[#allocation2 + $0xe8] sm:$0x1] %v428_v11  ;;  %v458_v8 = vsel %vm4047_vm4, 0, %v457_v13  ;;  %v2063_v22 = vld [vmem:[#allocation2 + $0x118] sm:$0xf]  ;;  %vm820_vm13 = vcmp.gt.f32.partialorder %v812_v17, 0.0 }
  0xa0   : > { %459 = vst [vmem:[#allocation2 + $0xec] sm:$0x1] %v458_v8  ;;  %v1539_v32 = vld [vmem:[#allocation2 + $0x120] sm:$0xf]  ;;  %v4606_v39 = vld [vmem:[#allocation2 + $0x124] sm:$0x1] }
  0xa1   : > { %465 = vst.msk [vmem:[#allocation2 + $0x13c] sm:$0x1] %vm258_vm0, %v3988_v41  ;;  %v1073_v35 = vshrl.u32 %v1029_v28, 16  ;;  %v3806_v42 = vld [vmem:[%s4064_s28 + $0x48] sm:$0xff]  ;;  %v1628_v52 = vshrl.u32 %v1539_v32, 16  ;;  %v1631_v30 = vshll.u32 %v1539_v32, 16 }
  0xa2   : > { %v493_v50 = vld [vmem:[#allocation2 + $0x138] sm:$0x1]  ;;  %461 = vst.msk [vmem:[#allocation2 + $0xf0] sm:$0xf] %vm256_vm5, %v3988_v41  ;;  %v1076_v48 = vshll.u32 %v1029_v28, 16  ;;  %v1637_v45 = vshll.u32 %v4606_v39, 16  ;;  %v799_v36 = vmul.f32 %v4401_v58, %v3806_v42 }
  0xa3   : > { %v494_v25 = vsel %vm4041_vm3, 0, %v493_v50  ;;  %462 = vst.msk [vmem:[#allocation2 + $0xf4] sm:$0x1] %vm258_vm0, %v3988_v41  ;;  %vm1186_vm0 = vcmp.gt.f32.partialorder %v4589_v24, 0.0  ;;  %v1075_v53 = vrot.slane %v1073_v35, 7  ;;  %v1630_v15 = vrot.slane %v1628_v52, 4 }
  0xa4   : > { %495 = vst [vmem:[#allocation2 + $0x138] sm:$0x1] %v494_v25  ;;  %v1363_v29 = vld [vmem:[#allocation2 + $0xa0] sm:$0xf]  ;;  %v355_v54 = vld [vmem:[#allocation2 + $0x88] sm:$0x1]  ;;  %v807_v23 = vadd.f32 %v4427_v16, %v799_v36 }
  0xa5   : > { %v1364_v34 = vld [vmem:[#allocation2 + $0xa4] sm:$0x1]  ;;  %v1383_v37 = vshrl.u32 %v1363_v29, 16  ;;  %v1386_v63 = vshll.u32 %v1363_v29, 16  ;;  %423 = vst [vmem:[#allocation2 + $0xd8] sm:$0x1] %v422_v26  ;;  %2083 = vrot.lane.b32.xlu2 %v2063_v22, %s3980_s7  ;;  %v1078_v11 = vor.u32 %v1076_v48, %v1075_v53 }
  0xa6   : > { %v1392_v38 = vshll.u32 %v1364_v34, 16  ;;  %453 = vst [vmem:[#allocation2 + $0xdc] sm:$0x1] %v452_v46  ;;  %v1086_v46 = vor.u32 %v1084_v57, %v4571_v9  ;;  %v356_v55 = vsel %vm4041_vm3, 0, %v355_v54  ;;  %v469_v1 = vld [vmem:[#allocation2 + $0xf8] sm:$0x1] }
  0xa7   : > { %v1385_v43 = vrot.slane %v1383_v37, 4  ;;  %v1388_v44 = vrot.slane %v1386_v63, 5  ;;  %489 = vst [vmem:[#allocation2 + $0x128] sm:$0x1] %v488_v60  ;;  %v828_v60 = vmul.f32 0.1, %v812_v17 }
  0xa8   : > { %v523_v14 = vld [vmem:[#allocation2 + $0x13c] sm:$0x1]  ;;  %v1394_v26 = vrot.slane %v1392_v38, 5  ;;  %519 = vst [vmem:[#allocation2 + $0x12c] sm:$0x1] %v518_v56  ;;  %v1633_v3 = vrot.slane %v1631_v30, 5 }
  0xa9   : > { %v524_v51 = vsel %vm4047_vm4, 0, %v523_v14  ;;  %v1389_v49 = vor.u32 %v1388_v44, %v1385_v43  ;;  %420 = vst [vmem:[#allocation2 + $0xd0] sm:$0x1] %v419_v21  ;;  %v836_v18 = vsel %vm820_vm13, %v812_v17, %v828_v60  ;;  %v470_v56 = vsel %vm4041_vm3, 0, %v469_v1  ;;  %v3805_v5 = vld [vmem:[%s4064_s28 + $0x40] sm:$0xff] }
  0xaa   : > { %525 = vst [vmem:[#allocation2 + $0x13c] sm:$0x1] %v524_v51  ;;  %v844_v13 = vpack.c.bf16 %v836_v18, %v836_v18  ;;  %v499_v31 = vld [vmem:[#allocation2 + $0xfc] sm:$0x1]  ;;  %v1079_v59 = vrot.slane %v1075_v53, 4  ;;  %v798_v34 = vmul.f32 %v4401_v58, %v3805_v5  ;;  %vm815_vm14 = vcmp.gt.f32.partialorder %v807_v23, 0.0 }
  0xab   : > { %v1390_v4 = vrot.slane %v1389_v49, 4  ;;  %450 = vst [vmem:[#allocation2 + $0xd4] sm:$0x1] %v449_v27  ;;  %v500_v10 = vsel %vm4047_vm4, 0, %v499_v31  ;;  %v1194_v27 = vmul.f32 0.1, %v4589_v24 }
  0xac   : > { %v1149_v47 = vld [vmem:[#allocation2 + $0xd8] sm:$0xf]  ;;  %357 = vst [vmem:[#allocation2 + $0x88] sm:$0x1] %v356_v55  ;;  %v895_v50 = vshrl.u32 %v844_v13, 16  ;;  %v898_v22 = vshll.u32 %v844_v13, 16  ;;  %v4662_v48 = vadd.f32 %v4427_v16, %v798_v34 }
  0xad   : > { %v1395_v7 = vsel %vm4178_vm6, %v1390_v4, %v1394_v26  ;;  %v1150_v40 = vsel %vm4113_vm11, %v1086_v46, %v1149_v47  ;;  %v1152_v57 = vld [vmem:[#allocation2 + $0xdc] sm:$0x1]  ;;  %471 = vst [vmem:[#allocation2 + $0xf8] sm:$0x1] %v470_v56  ;;  %v340_v32 = vld [vmem:[#allocation2 + $0x60] sm:$0x1]  ;;  %v1202_v61 = vsel %vm1186_vm0, %v4589_v24, %v1194_v27 }
  0xae   : > { %1494 = vrot.lane.b32.xlu1 %v1395_v7, %s3981_s8  ;;  %1151 = vst [vmem:[#allocation2 + $0xd8] sm:$0xf] %v1150_v40  ;;  %v1153_v8 = vsel %vm4041_vm3, %v1087_v19, %v1152_v57  ;;  %v1335_v17 = vld [vmem:[#allocation2 + $0x128] sm:$0xf]  ;;  %v1634_v19 = vor.u32 %v1633_v3, %v1630_v15  ;;  %v4643_v29 = vrot.slane %v895_v50, 7  ;;  %v1210_v35 = vpack.c.bf16 %v1202_v61, %v1202_v61  ;;  %v3813_v42 = vld [vmem:[%s4064_s28 + $0x80] sm:$0xff] }
  0xaf   : > { %1154 = vst [vmem:[#allocation2 + $0xdc] sm:$0x1] %v1153_v8  ;;  %v1336_v6 = vsel %vm4113_vm11, %v1272_v62, %v1335_v17  ;;  %v1338_v21 = vld [vmem:[#allocation2 + $0x12c] sm:$0x1]  ;;  %v4657_v44 = vrot.slane %v1637_v45, 5  ;;  %v984_v62 = vmul.f32 %v4401_v58, %v3813_v42  ;;  %vm814_vm15 = vcmp.gt.f32.partialorder %v4662_v48, 0.0 }
  0xb0   : > { %1337 = vst [vmem:[#allocation2 + $0x128] sm:$0xf] %v1336_v6  ;;  %v1339_v9 = vsel %vm4041_vm3, %v1273_v20, %v1338_v21  ;;  %v1143_v25 = vld [vmem:[#allocation2 + $0xd0] sm:$0xf]  ;;  %v341_v20 = vsel %vm4041_vm3, 0, %v340_v32  ;;  %v900_v38 = vor.u32 %v898_v22, %v4643_v29  ;;  %v4655_v43 = vrot.slane %v1634_v19, 4 }
  0xb1   : > { %1340 = vst [vmem:[#allocation2 + $0x12c] sm:$0x1] %v1339_v9  ;;  %v1144_v28 = vsel %vm4113_vm11, %v1078_v11, %v1143_v25  ;;  %v823_v52 = vmul.f32 0.1, %v807_v23  ;;  %v1219_v14 = vshrl.u32 %v1210_v35, 16  ;;  %v1222_v26 = vshll.u32 %v1210_v35, 16 }
  0xb2   : > { %1145 = vst [vmem:[#allocation2 + $0xd0] sm:$0xf] %v1144_v28  ;;  %v1146_v37 = vld [vmem:[#allocation2 + $0xd4] sm:$0x1]  ;;  %v603_v17 = vld [vmem:[%s4064_s28 + $0x38] sm:$0xff]  ;;  %v4675_v34 = vadd.f32 %v4427_v16, %v984_v62  ;;  %vm1679_vm12 = vcmask 93248  }
  0xb3   : > { %v1147_v63 = vsel %vm4041_vm3, %v1079_v59, %v1146_v37  ;;  %v963_v39 = vld [vmem:[#allocation2 + $0x88] sm:$0xf]  ;;  %501 = vst [vmem:[#allocation2 + $0xfc] sm:$0x1] %v500_v10  ;;  %v831_v53 = vsel %vm815_vm14, %v807_v23, %v823_v52  ;;  %v1221_v55 = vrot.slane %v1219_v14, 7  ;;  %v614_v37 = vmul.f32 %v4401_v58, %v603_v17 }
  0xb4   : > { %1148 = vst [vmem:[#allocation2 + $0xd4] sm:$0x1] %v1147_v63  ;;  %v964_v30 = vsel %vm4113_vm11, %v900_v38, %v963_v39  ;;  %v1299_v60 = vld [vmem:[#allocation2 + $0xf8] sm:$0xf]  ;;  %v4665_v4 = vpack.c.bf16 %v831_v53, %v831_v53  ;;  %v1349_v53 = vld [vmem:[#allocation2 + $0x100] sm:$0xf] }
  0xb5   : > { %v1377_v24 = vld [vmem:[#allocation2 + $0xd8] sm:$0xf]  ;;  %342 = vst [vmem:[#allocation2 + $0x60] sm:$0x1] %v341_v20  ;;  %v1224_v7 = vor.u32 %v1222_v26, %v1221_v55  ;;  %v1225_v40 = vrot.slane %v1221_v55, 4  ;;  %vm1000_vm8 = vcmp.gt.f32.partialorder %v4675_v34, 0.0 }
  0xb6   : > { %v1378_v51 = vld [vmem:[#allocation2 + $0xdc] sm:$0x1]  ;;  %v1481_v49 = vshrl.u32 %v1377_v24, 16  ;;  %v1484_v46 = vshll.u32 %v1377_v24, 16  ;;  %965 = vst [vmem:[#allocation2 + $0x88] sm:$0xf] %v964_v30 }
  0xb7   : > { %v1490_v54 = vshll.u32 %v1378_v51, 16  ;;  %v1541_v45 = vld [vmem:[#allocation2 + $0x128] sm:$0xf]  ;;  %v1300_v21 = vsel %vm4113_vm11, %v1224_v7, %v1299_v60  ;;  %v337_v32 = vld [vmem:[#allocation2 + $0x58] sm:$0x1]  ;;  %v855_v24 = vshrl.u32 %v4665_v4, 16  ;;  %v1640_v60 = vsel %vm4178_vm6, %v4655_v43, %v4657_v44 }
  0xb8   : > { %v1483_v15 = vrot.slane %v1481_v49, 4  ;;  %v1486_v1 = vrot.slane %v1484_v46, 5  ;;  %v1542_v36 = vld [vmem:[#allocation2 + $0x12c] sm:$0x1]  ;;  %v1642_v47 = vshrl.u32 %v1541_v45, 16  ;;  %v1645_v3 = vshll.u32 %v1541_v45, 16 }
  0xb9   : > { %v1492_v18 = vrot.slane %v1490_v54, 5  ;;  %v1651_v56 = vshll.u32 %v1542_v36, 16  ;;  %v2118_v5 = vld [vmem:[#allocation2 + $0xd0] sm:$0xf]  ;;  %1301 = vst [vmem:[#allocation2 + $0xf8] sm:$0xf] %v1300_v21  ;;  %v1499_v54 = vpop.permute.xlu0 %1498  ;;  %v625_v44 = vadd.f32 %v4427_v16, %v614_v37 }
  0xba   : > { %v1487_v57 = vor.u32 %v1486_v1, %v1483_v15  ;;  %v1644_v11 = vrot.slane %v1642_v47, 4  ;;  %v1647_v13 = vrot.slane %v1645_v3, 5  ;;  %v2195_v31 = vshrl.u32 %v2118_v5, 16  ;;  %v1302_v8 = vld [vmem:[#allocation2 + $0xfc] sm:$0x1]  ;;  %v596_v30 = vld [vmem:[%s4064_s28] sm:$0xff] }
  0xbb   : > { %v1653_v59 = vrot.slane %v1651_v56, 5  ;;  %v2119_v10 = vld [vmem:[#allocation2 + $0xd4] sm:$0x1]  ;;  %v2198_v6 = vshll.u32 %v2118_v5, 16  ;;  %v1303_v50 = vsel %vm4041_vm3, %v1225_v40, %v1302_v8  ;;  %v1375_v22 = vld [vmem:[#allocation2 + $0xd0] sm:$0xf]  ;;  %v607_v1 = vmul.f32 %v4401_v58, %v596_v30 }
  0xbc   : > { %v1488_v23 = vrot.slane %v1487_v57, 4  ;;  %v1648_v9 = vor.u32 %v1647_v13, %v1644_v11  ;;  %v2197_v19 = vrot.slane %v2195_v31, 4  ;;  %v2204_v25 = vshll.u32 %v2119_v10, 16  ;;  %1304 = vst [vmem:[#allocation2 + $0xfc] sm:$0x1] %v1303_v50  ;;  %v4720_v50 = vpop.permute.xlu2 %1708 }
  0xbd   : > { %v2200_v27 = vrot.slane %v2198_v6, 5  ;;  %v1467_v28 = vshrl.u32 %v1375_v22, 16  ;;  %v1376_v38 = vld [vmem:[#allocation2 + $0xd4] sm:$0x1]  ;;  %v1470_v39 = vshll.u32 %v1375_v22, 16  ;;  %v858_v51 = vshll.u32 %v4665_v4, 16 }
  0xbe   : > { %v1493_v61 = vsel %vm4178_vm6, %v1488_v23, %v1492_v18  ;;  %v1649_v20 = vrot.slane %v1648_v9, 4  ;;  %v2206_v63 = vrot.slane %v2204_v25, 5  ;;  %v1476_v52 = vshll.u32 %v1376_v38, 16  ;;  %v933_v49 = vld [vmem:[#allocation2 + $0x60] sm:$0xf]  ;;  %v4702_v18 = vpop.permute.xlu1 %2079 }
  0xbf   : > { %1508 = vrot.lane.b32.xlu0 %v1493_v61, %s3981_s8  ;;  %v2201_v35 = vor.u32 %v2200_v27, %v2197_v19  ;;  %v1469_v42 = vrot.slane %v1467_v28, 4  ;;  %v1472_v26 = vrot.slane %v1470_v39, 5  ;;  %v338_v46 = vsel %vm4041_vm3, 0, %v337_v32  ;;  %1357 = vst.msk [vmem:[#allocation3 + $0x8] sm:$0xf] %vm256_vm5, %v1349_v53 }
  0xc0   : > { %v1654_v14 = vsel %vm4178_vm6, %v1649_v20, %v1653_v59  ;;  %v4689_v55 = vrot.slane %v855_v24, 7  ;;  %339 = vst [vmem:[#allocation2 + $0x58] sm:$0x1] %v338_v46  ;;  %v822_v62 = vmul.f32 0.1, %v4662_v48  ;;  %v1478_v40 = vrot.slane %v1476_v52, 5 }
  0xc1   : > { %1669 = vrot.lane.b32.xlu1 %v1654_v14, %s3982_s9  ;;  %v2202_v45 = vrot.slane %v2201_v35, 4  ;;  %v1473_v4 = vor.u32 %v1472_v26, %v1469_v42  ;;  %v403_v15 = vld [vmem:[#allocation2 + $0xa8] sm:$0x1]  ;;  %v1529_v47 = vld [vmem:[#allocation2 + $0xf8] sm:$0xf]  ;;  %v4717_v21 = vadd.f32 %v4427_v16, %v607_v1  ;;  %vm633_vm9 = vcmp.gt.f32.partialorder %v625_v44, 0.0 }
  0xc2   : > { %v860_v3 = vor.u32 %v858_v51, %v4689_v55  ;;  %1521 = vst.msk [vmem:[#allocation3 + $0x8] sm:$0xf] %vm1518_vm7, %v1499_v54  ;;  %v404_v43 = vsel %vm4041_vm3, 0, %v403_v15  ;;  %v1694_v56 = vld [vmem:[#allocation2 + $0x88] sm:$0xf]  ;;  %v1558_v58 = vshrl.u32 %v1529_v47, 16  ;;  %v830_v57 = vsel %vm814_vm15, %v4662_v48, %v822_v62 }
  0xc3   : > { %v2207_v36 = vsel %vm4178_vm6, %v2202_v45, %v2206_v63  ;;  %v1530_v5 = vld [vmem:[#allocation2 + $0xfc] sm:$0x1]  ;;  %v1561_v7 = vshll.u32 %v1529_v47, 16  ;;  %v1474_v13 = vrot.slane %v1473_v4, 4  ;;  %v838_v8 = vpack.c.bf16 %v830_v57, %v830_v57  ;;  %405 = vst [vmem:[#allocation2 + $0xa8] sm:$0x1] %v404_v43 }
  0xc4   : > { %2246 = vrot.lane.b32.xlu2 %v2207_v36, %s3986_s13  ;;  %v1567_v11 = vshll.u32 %v1530_v5, 16  ;;  %v934_v31 = vsel %vm4113_vm11, %v860_v3, %v933_v49  ;;  %v433_v17 = vld [vmem:[#allocation2 + $0xac] sm:$0x1]  ;;  %v1560_v59 = vrot.slane %v1558_v58, 4  ;;  %v1008_v25 = vmul.f32 0.1, %v4675_v34  ;;  %v1501_v3 = vpop.permute.xlu0 %1500  ;;  %v4758_v58 = vpop.permute.xlu2 %1710 }
  0xc5   : > { %v1563_v10 = vrot.slane %v1561_v7, 5  ;;  %935 = vst [vmem:[#allocation2 + $0x60] sm:$0xf] %v934_v31  ;;  %v434_v6 = vsel %vm4047_vm4, 0, %v433_v17  ;;  %v847_v22 = vshrl.u32 %v838_v8, 16  ;;  %v850_v23 = vshll.u32 %v838_v8, 16 }
  0xc6   : > { %v1569_v48 = vrot.slane %v1567_v11, 5  ;;  %435 = vst [vmem:[#allocation2 + $0xac] sm:$0x1] %v434_v6  ;;  %v290_v27 = vld [vmem:[#allocation2 + $0x40] sm:$0x1]  ;;  %v1479_v16 = vsel %vm4178_vm6, %v1474_v13, %v1478_v40  ;;  %v1016_v63 = vsel %vm1000_vm8, %v4675_v34, %v1008_v25  ;;  %vm626_vm10 = vcmp.gt.f32.partialorder %v4717_v21, 0.0 }
  0xc7   : > { %1667 = vrot.lane.b32.xlu0 %v1640_v60, %s3982_s9  ;;  %v1564_v9 = vor.u32 %v1563_v10, %v1560_v59  ;;  %v927_v19 = vld [vmem:[#allocation2 + $0x58] sm:$0xf]  ;;  %v4726_v28 = vrot.slane %v847_v22, 7  ;;  %v291_v32 = vsel %vm4041_vm3, 0, %v290_v27  ;;  %v322_v37 = vld [vmem:[#allocation2 + $0x44] sm:$0x1]  ;;  %v1024_v42 = vpack.c.bf16 %v1016_v63, %v1016_v63  ;;  %v1660_v60 = vpop.permute.xlu1 %1659 }
  0xc8   : > { %v641_v61 = vmul.f32 0.1, %v625_v44  ;;  %292 = vst [vmem:[#allocation2 + $0x40] sm:$0x1] %v291_v32  ;;  %v323_v38 = vsel %vm4047_vm4, 0, %v322_v37  ;;  %v3812_v49 = vld [vmem:[%s4064_s28 + $0x78] sm:$0xff] }
  0xc9   : > { %1716 = vrot.lane.b32.xlu1 %v1694_v56, %s3983_s10  ;;  %v1565_v20 = vrot.slane %v1564_v9, 4  ;;  %v269_v39 = vld [vmem:[#allocation2 + $0x8] sm:$0x1]  ;;  %v852_v35 = vor.u32 %v850_v23, %v4726_v28  ;;  %324 = vst [vmem:[#allocation2 + $0x44] sm:$0x1] %v323_v38  ;;  %v1033_v54 = vshrl.u32 %v1024_v42, 16 }
  0xca   : > { %v649_v52 = vsel %vm633_vm9, %v625_v44, %v641_v61  ;;  %v301_v24 = vld [vmem:[#allocation2 + $0xc] sm:$0x1]  ;;  %v270_v14 = vsel %vm4041_vm3, 0, %v269_v39  ;;  %v1350_v51 = vld [vmem:[#allocation2 + $0x108] sm:$0xf]  ;;  %v1036_v45 = vshll.u32 %v1024_v42, 16 }
  0xcb   : > { %v1570_v30 = vsel %vm4178_vm6, %v1565_v20, %v1569_v48  ;;  %v657_v34 = vpack.c.bf16 %v649_v52, %v649_v52  ;;  %v302_v26 = vsel %vm4047_vm4, 0, %v301_v24  ;;  %v928_v53 = vsel %vm4113_vm11, %v852_v35, %v927_v19  ;;  %271 = vst [vmem:[#allocation2 + $0x8] sm:$0x1] %v270_v14  ;;  %v1113_v4 = vld [vmem:[#allocation2 + $0xa8] sm:$0xf] }
  0xcc   : > { %1506 = vrot.lane.b32.xlu2 %v1479_v16, %s3981_s8  ;;  %v1689_v46 = vld [vmem:[#allocation2 + $0x60] sm:$0xf]  ;;  %929 = vst [vmem:[#allocation2 + $0x58] sm:$0xf] %v928_v53  ;;  %v1035_v36 = vrot.slane %v1033_v54, 7  ;;  %v901_v31 = vrot.slane %v4643_v29, 4 }
  0xcd   : > { %v1116_v62 = vld [vmem:[#allocation2 + $0xac] sm:$0x1]  ;;  %v715_v15 = vshrl.u32 %v657_v34, 16  ;;  %v718_v1 = vshll.u32 %v657_v34, 16  ;;  %303 = vst [vmem:[#allocation2 + $0xc] sm:$0x1] %v302_v26 }
  0xce   : > { %v634_v47 = vmul.f32 0.1, %v4717_v21  ;;  %1682 = vst.msk [vmem:[#allocation3 + $0x8] sm:$0xf] %vm1679_vm12, %v1660_v60  ;;  %v466_v44 = vld [vmem:[#allocation2 + $0xf0] sm:$0x1]  ;;  %v1038_v7 = vor.u32 %v1036_v45, %v1035_v36  ;;  %v4797_v60 = vpop.permute.xlu2 %2081 }
  0xcf   : > { %1657 = vrot.lane.b32.xlu0 %v1570_v30, %s3982_s9  ;;  %v717_v43 = vrot.slane %v715_v15, 7  ;;  %v4754_v56 = vld [vmem:[%s5515_s3] ss:$0 sm:$0xff]  ;;  %v1039_v40 = vrot.slane %v1035_v36, 4  ;;  %1358 = vst.msk [vmem:[#allocation3 + $0xc] sm:$0xf] %vm256_vm5, %v1350_v51 }
  0xd0   : > { %v805_v5 = vmul.f32 %v4754_v56, %v3812_v49  ;;  %v783_v57 = vld [vmem:[#allocation2 + $0x40] sm:$0xf]  ;;  %v642_v11 = vsel %vm626_vm10, %v4717_v21, %v634_v47  ;;  %v467_v13 = vsel %vm4041_vm3, 0, %v466_v44  ;;  %v786_v59 = vld [vmem:[#allocation2 + $0x44] sm:$0x1]  ;;  %v1114_v6 = vsel %vm4113_vm11, %v1038_v7, %v1113_v4 }
  0xd1   : > { %1706 = vrot.lane.b32.xlu1 %v1689_v46, %s3983_s10  ;;  %v720_v8 = vor.u32 %v718_v1, %v717_v43  ;;  %v721_v17 = vrot.slane %v717_v43, 4  ;;  %v650_v10 = vpack.c.bf16 %v642_v11, %v642_v11  ;;  %1522 = vst.msk [vmem:[#allocation3 + $0xc] sm:$0xf] %vm1518_vm7, %v1501_v3  ;;  %v1117_v48 = vsel %vm4041_vm3, %v1039_v40, %v1116_v62  ;;  %v496_v21 = vld [vmem:[#allocation2 + $0xf4] sm:$0x1] }
  0xd2   : > { %468 = vst [vmem:[#allocation2 + $0xf0] sm:$0x1] %v467_v13  ;;  %v385_v22 = vld [vmem:[#allocation2 + $0x8c] sm:$0x1]  ;;  %v861_v27 = vrot.slane %v4689_v55, 4  ;;  %v497_v37 = vsel %vm4047_vm4, 0, %v496_v21  ;;  %v1870_v21 = vpop.permute.xlu0 %1869 }
  0xd3   : > { %1115 = vst [vmem:[#allocation2 + $0xa8] sm:$0xf] %v1114_v6  ;;  %v784_v23 = vsel %vm4113_vm11, %v720_v8, %v783_v57  ;;  %v787_v9 = vsel %vm4041_vm3, %v721_v17, %v786_v59  ;;  %v659_v19 = vshrl.u32 %v650_v10, 16  ;;  %v662_v25 = vshll.u32 %v650_v10, 16  ;;  %v1688_v16 = vld [vmem:[#allocation2 + $0x58] sm:$0xf] }
  0xd4   : > { %1118 = vst [vmem:[#allocation2 + $0xac] sm:$0x1] %v1117_v48  ;;  %v741_v32 = vld [vmem:[#allocation2 + $0x8] sm:$0xf]  ;;  %v4782_v61 = vld [vmem:[%s5516_s4] ss:$0 sm:$0xff]  ;;  %v1662_v48 = vpop.permute.xlu1 %1661 }
  0xd5   : > { %v4785_v20 = vadd.f32 %v4782_v61, %v805_v5  ;;  %785 = vst [vmem:[#allocation2 + $0x40] sm:$0xf] %v784_v23  ;;  %v661_v63 = vrot.slane %v659_v19, 7  ;;  %v744_v38 = vld [vmem:[#allocation2 + $0xc] sm:$0x1]  ;;  %v386_v39 = vsel %vm4047_vm4, 0, %v385_v22 }
  0xd6   : > { %788 = vst [vmem:[#allocation2 + $0x44] sm:$0x1] %v787_v9  ;;  %v1910_v35 = vld [vmem:[#allocation2 + $0x88] sm:$0xf]  ;;  %v358_v42 = vld [vmem:[#allocation2 + $0x90] sm:$0x1] }
  0xd7   : > { %1704 = vrot.lane.b32.xlu0 %v1688_v16, %s3983_s10  ;;  %v664_v52 = vor.u32 %v662_v25, %v661_v63  ;;  %v665_v24 = vrot.slane %v661_v63, 4  ;;  %498 = vst [vmem:[#allocation2 + $0xf4] sm:$0x1] %v497_v37  ;;  %v1999_v30 = vshrl.u32 %v1910_v35, 16  ;;  %v2002_v34 = vshll.u32 %v1910_v35, 16  ;;  %v602_v22 = vld [vmem:[%s4064_s28 + $0x30] sm:$0xff] }
  0xd8   : > { %387 = vst [vmem:[#allocation2 + $0x8c] sm:$0x1] %v386_v39  ;;  %v359_v14 = vsel %vm4041_vm3, 0, %v358_v42  ;;  %v388_v26 = vld [vmem:[#allocation2 + $0x94] sm:$0x1]  ;;  %vm821_vm13 = vcmp.gt.f32.partialorder %v4785_v20, 0.0 }
  0xd9   : > { %v742_v51 = vsel %vm4113_vm11, %v664_v52, %v741_v32  ;;  %v745_v49 = vsel %vm4041_vm3, %v665_v24, %v744_v38  ;;  %v1527_v46 = vld [vmem:[#allocation2 + $0xf0] sm:$0xf]  ;;  %v2001_v53 = vrot.slane %v1999_v30, 4  ;;  %v2004_v54 = vrot.slane %v2002_v34, 5  ;;  %360 = vst [vmem:[#allocation2 + $0x90] sm:$0x1] %v359_v14 }
  0xda   : > { %v1365_v45 = vld [vmem:[#allocation2 + $0xa8] sm:$0xf]  ;;  %743 = vst [vmem:[#allocation2 + $0x8] sm:$0xf] %v742_v51  ;;  %v1544_v4 = vshrl.u32 %v1527_v46, 16  ;;  %v1547_v62 = vshll.u32 %v1527_v46, 16  ;;  %v613_v24 = vmul.f32 %v4754_v56, %v602_v22 }
  0xdb   : > { %v1366_v15 = vld [vmem:[#allocation2 + $0xac] sm:$0x1]  ;;  %v1397_v1 = vshrl.u32 %v1365_v45, 16  ;;  %v1400_v36 = vshll.u32 %v1365_v45, 16  ;;  %746 = vst [vmem:[#allocation2 + $0xc] sm:$0x1] %v745_v49  ;;  %v2005_v47 = vor.u32 %v2004_v54, %v2001_v53 }
  0xdc   : > { %v1406_v3 = vshll.u32 %v1366_v15, 16  ;;  %v1751_v43 = vld [vmem:[#allocation2 + $0x40] sm:$0xf]  ;;  %v1546_v44 = vrot.slane %v1544_v4, 4  ;;  %v1549_v5 = vrot.slane %v1547_v62, 5  ;;  %v389_v7 = vsel %vm4047_vm4, 0, %v388_v26  ;;  %v2031_v4 = vpop.permute.xlu2 %2030 }
  0xdd   : > { %v1399_v40 = vrot.slane %v1397_v1, 4  ;;  %v1402_v57 = vrot.slane %v1400_v36, 5  ;;  %v1752_v11 = vld [vmem:[#allocation2 + $0x44] sm:$0x1]  ;;  %v1852_v13 = vshrl.u32 %v1751_v43, 16  ;;  %v1855_v8 = vshll.u32 %v1751_v43, 16 }
  0xde   : > { %v1408_v17 = vrot.slane %v1406_v3, 5  ;;  %v1861_v59 = vshll.u32 %v1752_v11, 16  ;;  %v1528_v10 = vld [vmem:[#allocation2 + $0xf4] sm:$0x1]  ;;  %v1550_v6 = vor.u32 %v1549_v5, %v1546_v44  ;;  %vm1728_vm0 = vcmask 126048   ;;  %v597_v36 = vld [vmem:[%s4064_s28 + $0x8] sm:$0xff]  ;;  %v2033_v11 = vpop.permute.xlu0 %2032 }
  0xdf   : > { %v1403_v23 = vor.u32 %v1402_v57, %v1399_v40  ;;  %v1854_v9 = vrot.slane %v1852_v13, 4  ;;  %v1857_v19 = vrot.slane %v1855_v8, 5  ;;  %v1553_v25 = vshll.u32 %v1528_v10, 16  ;;  %v966_v16 = vld [vmem:[#allocation2 + $0x8c] sm:$0x1]  ;;  %v1872_v57 = vpop.permute.xlu1 %1871 }
  0xe0   : > { %v1863_v32 = vrot.slane %v1861_v59, 5  ;;  %v967_v37 = vsel %vm4041_vm3, %v901_v31, %v966_v16  ;;  %v4806_v63 = vrot.slane %v2005_v47, 4  ;;  %390 = vst [vmem:[#allocation2 + $0x94] sm:$0x1] %v389_v7  ;;  %v829_v38 = vmul.f32 0.1, %v4785_v20 }
  0xe1   : > { %v1404_v39 = vrot.slane %v1403_v23, 4  ;;  %v1858_v35 = vor.u32 %v1857_v19, %v1854_v9  ;;  %v1737_v42 = vld [vmem:[#allocation2 + $0x8] sm:$0xf]  ;;  %v4809_v52 = vrot.slane %v1550_v6, 4  ;;  %968 = vst [vmem:[#allocation2 + $0x8c] sm:$0x1] %v967_v37  ;;  %v624_v44 = vadd.f32 %v4782_v61, %v613_v24 }
  0xe2   : > { %v1738_v30 = vld [vmem:[#allocation2 + $0xc] sm:$0x1]  ;;  %v1754_v34 = vshrl.u32 %v1737_v42, 16  ;;  %v1757_v29 = vshll.u32 %v1737_v42, 16  ;;  %v1555_v14 = vrot.slane %v1553_v25, 5  ;;  %v837_v31 = vsel %vm821_vm13, %v4785_v20, %v829_v38  ;;  %v3820_v20 = vld [vmem:[%s4064_s28 + $0xb8] sm:$0xff] }
  0xe3   : > { %v1409_v26 = vsel %vm4178_vm6, %v1404_v39, %v1408_v17  ;;  %v1859_v51 = vrot.slane %v1858_v35, 4  ;;  %v1763_v49 = vshll.u32 %v1738_v30, 16  ;;  %1683 = vst.msk [vmem:[#allocation3 + $0xc] sm:$0xf] %vm1679_vm12, %v1662_v48  ;;  %v370_v46 = vld [vmem:[#allocation2 + $0x64] sm:$0x1]  ;;  %v845_v45 = vpack.c.bf16 %v837_v31, %v837_v31 }
  0xe4   : > { %1496 = vrot.lane.b32.xlu2 %v1409_v26, %s3981_s8  ;;  %v1756_v53 = vrot.slane %v1754_v34, 4  ;;  %v1759_v54 = vrot.slane %v1757_v29, 5  ;;  %1731 = vst.msk [vmem:[#allocation3 + $0x8] sm:$0xf] %vm1728_vm0, %v4720_v50  ;;  %vm1889_vm14 = vcmask 158848   ;;  %vm2050_vm15 = vcmask 191648  }
  0xe5   : > { %v1864_v62 = vsel %vm4178_vm6, %v1859_v51, %v1863_v32  ;;  %v1765_v15 = vrot.slane %v1763_v49, 5  ;;  %1892 = vst.msk [vmem:[#allocation3 + $0x8] sm:$0xf] %vm1889_vm14, %v1870_v21  ;;  %v371_v1 = vsel %vm4047_vm4, 0, %v370_v46  ;;  %v903_v3 = vshrl.u32 %v845_v45, 16 }
  0xe6   : > { %1879 = vrot.lane.b32.xlu0 %v1864_v62, %s3984_s11  ;;  %v1760_v47 = vor.u32 %v1759_v54, %v1756_v53  ;;  %v906_v43 = vshll.u32 %v845_v45, 16  ;;  %1732 = vst.msk [vmem:[#allocation3 + $0xc] sm:$0xf] %vm1728_vm0, %v4758_v58  ;;  %v1900_v50 = vld [vmem:[#allocation2 + $0x60] sm:$0xf]  ;;  %v991_v13 = vmul.f32 %v4754_v56, %v3820_v20  ;;  %v608_v10 = vmul.f32 %v4754_v56, %v597_v36  ;;  %v2241_v45 = vpop.permute.xlu0 %2240 }
  0xe7   : > { %v969_v5 = vld [vmem:[#allocation2 + $0x90] sm:$0xf]  ;;  %2053 = vst.msk [vmem:[#allocation3 + $0x8] sm:$0xf] %vm2050_vm15, %v2031_v4  ;;  %v1929_v7 = vshrl.u32 %v1900_v50, 16  ;;  %v1932_v40 = vshll.u32 %v1900_v50, 16  ;;  %v1556_v58 = vsel %vm4178_vm6, %v4809_v52, %v1555_v14  ;;  %v2243_v54 = vpop.permute.xlu1 %2242 }
  0xe8   : > { %v1761_v8 = vrot.slane %v1760_v47, 4  ;;  %v1911_v17 = vld [vmem:[#allocation2 + $0x8c] sm:$0x1]  ;;  %v905_v59 = vrot.slane %v903_v3, 7  ;;  %372 = vst [vmem:[#allocation2 + $0x64] sm:$0x1] %v371_v1  ;;  %v999_v39 = vadd.f32 %v4782_v61, %v991_v13  ;;  %v4857_v34 = vadd.f32 %v4782_v61, %v608_v10 }
  0xe9   : > { %v2008_v6 = vshll.u32 %v1911_v17, 16  ;;  %v972_v48 = vld [vmem:[#allocation2 + $0x94] sm:$0x1]  ;;  %v1931_v21 = vrot.slane %v1929_v7, 4  ;;  %v1934_v22 = vrot.slane %v1932_v40, 5  ;;  %vm632_vm8 = vcmp.gt.f32.partialorder %v624_v44, 0.0 }
  0xea   : > { %v1766_v23 = vsel %vm4178_vm6, %v1761_v8, %v1765_v15  ;;  %v908_v9 = vor.u32 %v906_v43, %v905_v59  ;;  %v909_v19 = vrot.slane %v905_v59, 4  ;;  %1893 = vst.msk [vmem:[#allocation3 + $0xc] sm:$0xf] %vm1889_vm14, %v1872_v57  ;;  %v287_v25 = vld [vmem:[#allocation2 + $0x38] sm:$0x1]  ;;  %vm2099_vm9 = vcmask 224448  }
  0xeb   : > { %1865 = vrot.lane.b32.xlu1 %v1766_v23, %s3984_s11  ;;  %v2010_v16 = vrot.slane %v2008_v6, 5  ;;  %v1935_v32 = vor.u32 %v1934_v22, %v1931_v21  ;;  %2054 = vst.msk [vmem:[#allocation3 + $0xc] sm:$0xf] %vm2050_vm15, %v2033_v11  ;;  %v288_v37 = vsel %vm4041_vm3, 0, %v287_v25  ;;  %v319_v38 = vld [vmem:[#allocation2 + $0x3c] sm:$0x1]  ;;  %v2402_v23 = vpop.permute.xlu2 %2401 }
  0xec   : > { %1655 = vrot.lane.b32.xlu2 %v1556_v58, %s3982_s9  ;;  %v970_v35 = vsel %vm4113_vm11, %v908_v9, %v969_v5  ;;  %v973_v42 = vsel %vm4041_vm3, %v909_v19, %v972_v48  ;;  %289 = vst [vmem:[#allocation2 + $0x38] sm:$0x1] %v288_v37  ;;  %v320_v52 = vsel %vm4047_vm4, 0, %v319_v38  ;;  %v640_v24 = vmul.f32 0.1, %v624_v44 }
  0xed   : > { %v2011_v30 = vsel %vm4178_vm6, %v4806_v63, %v2010_v16  ;;  %971 = vst [vmem:[#allocation2 + $0x90] sm:$0xf] %v970_v35  ;;  %v4860_v29 = vrot.slane %v1935_v32, 4  ;;  %v424_v51 = vld [vmem:[#allocation2 + $0xe0] sm:$0x1]  ;;  %vm2260_vm10 = vcmask 257248  }
  0xee   : > { %2038 = vrot.lane.b32.xlu0 %v2011_v30, %s3985_s12  ;;  %974 = vst [vmem:[#allocation2 + $0x94] sm:$0x1] %v973_v42  ;;  %v648_v14 = vsel %vm632_vm8, %v624_v44, %v640_v24  ;;  %v454_v49 = vld [vmem:[#allocation2 + $0xe4] sm:$0x1]  ;;  %vm1007_vm13 = vcmp.gt.f32.partialorder %v999_v39, 0.0  ;;  %v425_v4 = vsel %vm4041_vm3, 0, %v424_v51 }
  0xef   : > { %v936_v31 = vld [vmem:[#allocation2 + $0x64] sm:$0x1]  ;;  %321 = vst [vmem:[#allocation2 + $0x3c] sm:$0x1] %v320_v52  ;;  %v656_v26 = vpack.c.bf16 %v648_v14, %v648_v14  ;;  %vm627_vm8 = vcmp.gt.f32.partialorder %v4857_v34, 0.0  ;;  %v853_v37 = vrot.slane %v4726_v28, 4 }
  0xf0   : > { %v937_v63 = vsel %vm4041_vm3, %v861_v27, %v936_v31  ;;  %2103 = vst.msk [vmem:[#allocation3 + $0xc] sm:$0xf] %vm2099_vm9, %v4797_v60  ;;  %v1015_v55 = vmul.f32 0.1, %v999_v39  ;;  %v272_v27 = vld [vmem:[#allocation2 + $0x10] sm:$0x1] }
  0xf1   : > { %938 = vst [vmem:[#allocation2 + $0x64] sm:$0x1] %v937_v63  ;;  %v707_v46 = vshrl.u32 %v656_v26, 16  ;;  %v710_v53 = vshll.u32 %v656_v26, 16  ;;  %v455_v60 = vsel %vm4047_vm4, 0, %v454_v49  ;;  %v273_v40 = vsel %vm4041_vm3, 0, %v272_v27 }
  0xf2   : > { %2264 = vst.msk [vmem:[#allocation3 + $0xc] sm:$0xf] %vm2260_vm10, %v2243_v54  ;;  %v1023_v36 = vsel %vm1007_vm13, %v999_v39, %v1015_v55  ;;  %v304_v17 = vld [vmem:[#allocation2 + $0x14] sm:$0x1]  ;;  %v635_v19 = vmul.f32 0.1, %v4857_v34 }
  0xf3   : > { %v709_v20 = vrot.slane %v707_v46, 7  ;;  %v777_v62 = vld [vmem:[#allocation2 + $0x38] sm:$0xf]  ;;  %2102 = vst.msk [vmem:[#allocation3 + $0x8] sm:$0xf] %vm2099_vm9, %v4702_v18  ;;  %v1031_v18 = vpack.c.bf16 %v1023_v36, %v1023_v36  ;;  %v305_v22 = vsel %vm4047_vm4, 0, %v304_v17 }
  0xf4   : > { %v1912_v15 = vld [vmem:[#allocation2 + $0x90] sm:$0xf]  ;;  %2263 = vst.msk [vmem:[#allocation3 + $0x8] sm:$0xf] %vm2260_vm10, %v2241_v45  ;;  %vm2421_vm13 = vcmask 290048   ;;  %v643_v35 = vsel %vm627_vm8, %v4857_v34, %v635_v19  ;;  %v3828_v26 = vld [vmem:[%s4064_s28 + $0xf8] sm:$0xff] }
  0xf5   : > { %v1695_v1 = vld [vmem:[#allocation2 + $0x90] sm:$0xf]  ;;  %v1913_v47 = vld [vmem:[#allocation2 + $0x94] sm:$0x1]  ;;  %v2013_v3 = vshrl.u32 %v1912_v15, 16  ;;  %v2016_v43 = vshll.u32 %v1912_v15, 16  ;;  %v712_v50 = vor.u32 %v710_v53, %v709_v20  ;;  %v651_v30 = vpack.c.bf16 %v643_v35, %v643_v35 }
  0xf6   : > { %1718 = vrot.lane.b32.xlu2 %v1695_v1, %s3983_s10  ;;  %v713_v44 = vrot.slane %v709_v20, 4  ;;  %v2022_v5 = vshll.u32 %v1913_v47, 16  ;;  %v780_v7 = vld [vmem:[#allocation2 + $0x3c] sm:$0x1]  ;;  %426 = vst [vmem:[#allocation2 + $0xe0] sm:$0x1] %v425_v4  ;;  %v1177_v15 = vmul.f32 %v4754_v56, %v3828_v26 }
  0xf7   : > { %v2015_v57 = vrot.slane %v2013_v3, 4  ;;  %v2018_v11 = vrot.slane %v2016_v43, 5  ;;  %v778_v13 = vsel %vm4113_vm11, %v712_v50, %v777_v62  ;;  %456 = vst [vmem:[#allocation2 + $0xe4] sm:$0x1] %v455_v60  ;;  %v1089_v58 = vshrl.u32 %v1031_v18, 16  ;;  %v1503_v60 = vpop.permute.xlu1 %1502 }
  0xf8   : > { %v781_v8 = vsel %vm4041_vm3, %v713_v44, %v780_v7  ;;  %v2024_v59 = vrot.slane %v2022_v5, 5  ;;  %v1901_v10 = vld [vmem:[#allocation2 + $0x64] sm:$0x1]  ;;  %779 = vst [vmem:[#allocation2 + $0x38] sm:$0xf] %v778_v13  ;;  %v1092_v21 = vshll.u32 %v1031_v18, 16  ;;  %v2404_v44 = vpop.permute.xlu0 %2403 }
  0xf9   : > { %v2019_v6 = vor.u32 %v2018_v11, %v2015_v57  ;;  %v1938_v48 = vshll.u32 %v1901_v10, 16  ;;  %782 = vst [vmem:[#allocation2 + $0x3c] sm:$0x1] %v781_v8  ;;  %v1091_v9 = vrot.slane %v1089_v58, 7  ;;  %v2108_v32 = vld [vmem:[#allocation2 + $0xa8] sm:$0xf] }
  0xfa   : > { %274 = vst [vmem:[#allocation2 + $0x10] sm:$0x1] %v273_v40  ;;  %v2125_v14 = vshrl.u32 %v2108_v32, 16  ;;  %v2442_v31 = vld [vmem:[%s5513_s1 + $0x10] sm:$0x3]  ;;  %v2128_v63 = vshll.u32 %v2108_v32, 16 }
  0xfb   : > { %v2020_v25 = vrot.slane %v2019_v6, 4  ;;  %v1940_v16 = vrot.slane %v1938_v48, 5  ;;  %306 = vst [vmem:[#allocation2 + $0x14] sm:$0x1] %v305_v22  ;;  %v1094_v38 = vor.u32 %v1092_v21, %v1091_v9  ;;  %v1095_v39 = vrot.slane %v1091_v9, 4  ;;  %v3926_v5 = vld [vmem:[%s5513_s1 + $0x8] sm:$0xff] }
  0xfc   : > { %2424 = vst.msk [vmem:[#allocation3 + $0x8] sm:$0xf] %vm2421_vm13, %v2402_v23  ;;  %v2472_v49 = vunpack.c.l.b16 %v2442_v31  ;;  %vm2491_vm8 = vcmask 1041408   ;;  %v667_v54 = vshrl.u32 %v651_v30, 16  ;;  %v670_v45 = vshll.u32 %v651_v30, 16 }
  0xfd   : > { %v2025_v42 = vsel %vm4178_vm6, %v2020_v25, %v2024_v59  ;;  %v1941_v52 = vsel %vm4178_vm6, %v4860_v29, %v1940_v16  ;;  %v1155_v24 = vld [vmem:[#allocation2 + $0xe0] sm:$0xf]  ;;  %v1351_v29 = vld [vmem:[#allocation2 + $0x110] sm:$0xf]  ;;  %v2109_v20 = vld [vmem:[#allocation2 + $0xac] sm:$0x1]  ;;  %v4917_v48 = vadd.f32 %v4782_v61, %v1177_v15 }
  0xfe   : > { %2040 = vrot.lane.b32.xlu1 %v2025_v42, %s3985_s12  ;;  %2028 = vrot.lane.b32.xlu0 %v1941_v52, %s3985_s12  ;;  %v1156_v34 = vsel %vm4113_vm11, %v1094_v38, %v1155_v24  ;;  %v1158_v51 = vld [vmem:[#allocation2 + $0xe4] sm:$0x1]  ;;  %v2475_v62 = vpack.c.b16 %v2472_v49, %v2472_v49  ;;  %v2065_v1 = vld [vmem:[#allocation2 + $0x128] sm:$0xf]  ;;  %v2059_v47 = vld [vmem:[#allocation2 + $0xf8] sm:$0xf] }
  0xff   : > { %v1749_v46 = vld [vmem:[#allocation2 + $0x38] sm:$0xf]  ;;  %1157 = vst [vmem:[#allocation2 + $0xe0] sm:$0xf] %v1156_v34  ;;  %v1159_v53 = vsel %vm4041_vm3, %v1095_v39, %v1158_v51  ;;  %v669_v3 = vrot.slane %v667_v54, 7  ;;  %v2127_v50 = vrot.slane %v2125_v14, 4 }
 0x100   : > { %v1750_v4 = vld [vmem:[#allocation2 + $0x3c] sm:$0x1]  ;;  %v1838_v55 = vshrl.u32 %v1749_v46, 16  ;;  %v1841_v27 = vshll.u32 %v1749_v46, 16  ;;  %1160 = vst [vmem:[#allocation2 + $0xe4] sm:$0x1] %v1159_v53  ;;  %v1505_v53 = vpop.permute.xlu2 %1504 }
 0x101   : > { %v1847_v36 = vshll.u32 %v1750_v4, 16  ;;  %v747_v43 = vld [vmem:[#allocation2 + $0x10] sm:$0xf]  ;;  %v2130_v57 = vrot.slane %v2128_v63, 5  ;;  %v2493_v11 = vsel %vm2491_vm8, %v2475_v62, 0  ;;  %v672_v8 = vor.u32 %v670_v45, %v669_v3  ;;  %v3925_v54 = vld [vmem:[%s5513_s1] sm:$0xff]  ;;  %v1666_v45 = vpop.permute.xlu1 %1665 }
 0x102   : > { %v1840_v7 = vrot.slane %v1838_v55, 4  ;;  %v1843_v18 = vrot.slane %v1841_v27, 5  ;;  %v750_v40 = vld [vmem:[#allocation2 + $0x14] sm:$0x1]  ;;  %v673_v56 = vrot.slane %v669_v3, 4  ;;  %3935 = vmatpush.bf16.msra.mxu3 %v2493_v11  ;;  %2500 = vmatpush.bf16.msra.mxu0 %v2493_v11  ;;  %v2134_v23 = vshll.u32 %v2109_v20, 16 }
 0x103   : > { %v1849_v13 = vrot.slane %v1847_v36, 5  ;;  %1359 = vst.msk [vmem:[#allocation3 + $0x10] sm:$0xf] %vm256_vm5, %v1351_v29  ;;  %v2281_v17 = vld [vmem:[#allocation2 + $0x128] sm:$0xf]  ;;  %v748_v21 = vsel %vm4113_vm11, %v672_v8, %v747_v43  ;;  %v2131_v61 = vor.u32 %v2130_v57, %v2127_v50  ;;  %vm1193_vm8 = vcmp.gt.f32.partialorder %v4917_v48, 0.0 }
 0x104   : > { %v1844_v59 = vor.u32 %v1843_v18, %v1840_v7  ;;  %1523 = vst.msk [vmem:[#allocation3 + $0x10] sm:$0xf] %vm1518_vm7, %v1503_v60  ;;  %v2282_v10 = vld [vmem:[#allocation2 + $0x12c] sm:$0x1]  ;;  %v2370_v58 = vshrl.u32 %v2281_v17, 16  ;;  %v2373_v6 = vshll.u32 %v2281_v17, 16  ;;  %v751_v22 = vsel %vm4041_vm3, %v673_v56, %v750_v40  ;;  %v1664_v60 = vpop.permute.xlu0 %1663 }
 0x105   : > { %2425 = vst.msk [vmem:[#allocation3 + $0xc] sm:$0xf] %vm2421_vm13, %v2404_v44  ;;  %v2379_v9 = vshll.u32 %v2282_v10, 16  ;;  %v367_v19 = vld [vmem:[#allocation2 + $0x5c] sm:$0x1]  ;;  %v4932_v49 = vrot.slane %v2131_v61, 4 }
 0x106   : > { %2087 = vrot.lane.b32.xlu1 %v2065_v1, %s3980_s7  ;;  %v1845_v25 = vrot.slane %v1844_v59, 4  ;;  %2075 = vrot.lane.b32.xlu0 %v2059_v47, %s3980_s7  ;;  %v2122_v16 = vld [vmem:[#allocation2 + $0xe0] sm:$0xf]  ;;  %749 = vst [vmem:[#allocation2 + $0x10] sm:$0xf] %v748_v21  ;;  %v2372_v32 = vrot.slane %v2370_v58, 4 }
 0x107   : > { %v2123_v38 = vld [vmem:[#allocation2 + $0xe4] sm:$0x1]  ;;  %v2223_v39 = vshrl.u32 %v2122_v16, 16  ;;  %v2226_v35 = vshll.u32 %v2122_v16, 16  ;;  %752 = vst [vmem:[#allocation2 + $0x14] sm:$0x1] %v751_v22  ;;  %3936 = vmatpush.bf16.msra.mxu3 %v3926_v5  ;;  %2501 = vmatpush.bf16.msra.mxu0 %v3926_v5 }
 0x108   : > { %v1850_v42 = vsel %vm4178_vm6, %v1845_v25, %v1849_v13  ;;  %v2232_v52 = vshll.u32 %v2123_v38, 16  ;;  %v2375_v24 = vrot.slane %v2373_v6, 5  ;;  %v1898_v30 = vld [vmem:[#allocation2 + $0x58] sm:$0xf]  ;;  %v2060_v14 = vld [vmem:[#allocation2 + $0x100] sm:$0xf] }
 0x109   : > { %1877 = vrot.lane.b32.xlu2 %v1850_v42, %s3984_s11  ;;  %v2225_v31 = vrot.slane %v2223_v39, 4  ;;  %v2228_v26 = vrot.slane %v2226_v35, 5  ;;  %v368_v34 = vsel %vm4047_vm4, 0, %v367_v19  ;;  %v1915_v51 = vshrl.u32 %v1898_v30, 16  ;;  %v490_v63 = vld [vmem:[#allocation2 + $0x130] sm:$0x1]  ;;  %v1874_v19 = vpop.permute.xlu1 %1873 }
 0x10a   : > { %v4934_v29 = vrot.slane %v2134_v23, 5  ;;  %369 = vst [vmem:[#allocation2 + $0x5c] sm:$0x1] %v368_v34  ;;  %v491_v46 = vsel %vm4041_vm3, 0, %v490_v63  ;;  %v2234_v55 = vrot.slane %v2232_v52, 5  ;;  %v2376_v27 = vor.u32 %v2375_v24, %v2372_v32 }
 0x10b   : > { %v2229_v4 = vor.u32 %v2228_v26, %v2225_v31  ;;  %v4941_v20 = vrot.slane %v2379_v9, 5  ;;  %492 = vst [vmem:[#allocation2 + $0x130] sm:$0x1] %v491_v46  ;;  %v520_v62 = vld [vmem:[#allocation2 + $0x134] sm:$0x1]  ;;  %v1918_v15 = vshll.u32 %v1898_v30, 16  ;;  %3937 = vmatpush.bf16.msra.mxu3 %v3925_v54  ;;  %2502 = vmatpush.bf16.msra.mxu0 %v3925_v54  ;;  %v1713_v9 = vpop.permute.xlu2 %1712 }
 0x10c   : > { %v521_v1 = vsel %vm4047_vm4, 0, %v520_v62  ;;  %v1201_v36 = vmul.f32 0.1, %v4917_v48  ;;  %v3922_v47 = vld [vmem:[#allocation3 + $0x8] sm:$0xff]  ;;  %v4946_v50 = vrot.slane %v1915_v51, 4  ;;  %v2377_v57 = vrot.slane %v2376_v27, 4  ;;  %v1715_v38 = vpop.permute.xlu0 %1714 }
 0x10d   : > { %v2230_v3 = vrot.slane %v2229_v4, 4  ;;  %v1739_v43 = vld [vmem:[#allocation2 + $0x10] sm:$0xf]  ;;  %522 = vst [vmem:[#allocation2 + $0x134] sm:$0x1] %v521_v1  ;;  %v1920_v17 = vrot.slane %v1918_v15, 5  ;;  %v2137_v25 = vsel %vm4178_vm6, %v4932_v49, %v4934_v29 }
 0x10e   : > { %2077 = vrot.lane.b32.xlu1 %v2060_v14, %s3980_s7  ;;  %v1740_v44 = vld [vmem:[#allocation2 + $0x14] sm:$0x1]  ;;  %v1768_v5 = vshrl.u32 %v1739_v43, 16  ;;  %v1771_v7 = vshll.u32 %v1739_v43, 16  ;;  %v1352_v18 = vld [vmem:[#allocation2 + $0x118] sm:$0xf]  ;;  %v1209_v11 = vsel %vm1193_vm8, %v4917_v48, %v1201_v36  ;;  %3854 = vmatmul.msk.bf16.vlgmr.msra.gmra.mxu3 %vm2478_vm2, %v3922_v47 }
 0x10f   : > { %v2235_v2 = vsel %vm4178_vm6, %v2230_v3, %v2234_v55  ;;  %v1777_v40 = vshll.u32 %v1740_v44, 16  ;;  %1360 = vst.msk [vmem:[#allocation3 + $0x14] sm:$0xf] %vm256_vm5, %v1352_v18  ;;  %v2271_v13 = vld [vmem:[#allocation2 + $0x100] sm:$0xf]  ;;  %v1217_v59 = vpack.c.bf16 %v1209_v11, %v1209_v11  ;;  %v1921_v26 = vor.u32 %v1920_v17, %v4946_v50 }
 0x110   : > { %2250 = vrot.lane.b32.xlu0 %v2235_v2, %s3986_s13  ;;  %v1770_v8 = vrot.slane %v1768_v5, 4  ;;  %v1773_v56 = vrot.slane %v1771_v7, 5  ;;  %1524 = vst.msk [vmem:[#allocation3 + $0x14] sm:$0xf] %vm1518_vm7, %v1505_v53  ;;  %v2300_v6 = vshrl.u32 %v2271_v13, 16  ;;  %v2303_v32 = vshll.u32 %v2271_v13, 16 }
 0x111   : > { %v1779_v10 = vrot.slane %v1777_v40, 5  ;;  %v930_v58 = vld [vmem:[#allocation2 + $0x5c] sm:$0x1]  ;;  %1685 = vst.msk [vmem:[#allocation3 + $0x14] sm:$0xf] %vm1679_vm12, %v1666_v45  ;;  %v1275_v22 = vshrl.u32 %v1217_v59, 16  ;;  %v2037_v45 = vpop.permute.xlu1 %2036 }
 0x112   : > { %v1774_v21 = vor.u32 %v1773_v56, %v1770_v8  ;;  %v931_v48 = vsel %vm4041_vm3, %v853_v37, %v930_v58  ;;  %v1278_v23 = vshll.u32 %v1217_v59, 16  ;;  %1684 = vst.msk [vmem:[#allocation3 + $0x10] sm:$0xf] %vm1679_vm12, %v1664_v60  ;;  %v2272_v16 = vld [vmem:[#allocation2 + $0x104] sm:$0x1]  ;;  %v2302_v61 = vrot.slane %v2300_v6, 4 }
 0x113   : > { %932 = vst [vmem:[#allocation2 + $0x5c] sm:$0x1] %v931_v48  ;;  %v1277_v39 = vrot.slane %v1275_v22, 7  ;;  %v1341_v35 = vld [vmem:[#allocation2 + $0x130] sm:$0xf]  ;;  %v2382_v37 = vsel %vm4178_vm6, %v2377_v57, %v4941_v20  ;;  %v2305_v52 = vrot.slane %v2303_v32, 5  ;;  %v1876_v54 = vpop.permute.xlu2 %1875 }
 0x114   : > { %v1775_v28 = vrot.slane %v1774_v21, 4  ;;  %v1344_v42 = vld [vmem:[#allocation2 + $0x134] sm:$0x1]  ;;  %v2309_v24 = vshll.u32 %v2272_v16, 16  ;;  %1733 = vst.msk [vmem:[#allocation3 + $0x10] sm:$0xf] %vm1728_vm0, %v1713_v9  ;;  %v2035_v27 = vpop.permute.xlu0 %2034 }
 0x115   : > { %v1280_v14 = vor.u32 %v1278_v23, %v1277_v39  ;;  %v1281_v31 = vrot.slane %v1277_v39, 4  ;;  %1894 = vst.msk [vmem:[#allocation3 + $0x10] sm:$0xf] %vm1889_vm14, %v1874_v19  ;;  %v2306_v34 = vor.u32 %v2305_v52, %v2302_v61  ;;  %v2120_v46 = vld [vmem:[#allocation2 + $0xd8] sm:$0xf]  ;;  %v1922_v4 = vrot.slane %v1921_v26, 4 }
 0x116   : > { %v1780_v30 = vsel %vm4178_vm6, %v1775_v28, %v1779_v10  ;;  %2236 = vrot.lane.b32.xlu1 %v2137_v25, %s3986_s13  ;;  %1734 = vst.msk [vmem:[#allocation3 + $0x14] sm:$0xf] %vm1728_vm0, %v1715_v38  ;;  %v2311_v29 = vrot.slane %v2309_v24, 5  ;;  %v2209_v20 = vshrl.u32 %v2120_v46, 16  ;;  %v2212_v62 = vshll.u32 %v2120_v46, 16 }
 0x117   : > { %1867 = vrot.lane.b32.xlu2 %v1780_v30, %s3984_s11  ;;  %v1342_v51 = vsel %vm4113_vm11, %v1280_v14, %v1341_v35  ;;  %v1345_v63 = vsel %vm4041_vm3, %v1281_v31, %v1344_v42  ;;  %v2307_v49 = vrot.slane %v2306_v34, 4  ;;  %1895 = vst.msk [vmem:[#allocation3 + $0x14] sm:$0xf] %vm1889_vm14, %v1876_v54  ;;  %v2121_v15 = vld [vmem:[#allocation2 + $0xdc] sm:$0x1]  ;;  %vm528_vm3 = vcmask 57344  }
 0x118   : > { %2409 = vrot.lane.b32.xlu0 %v2382_v37, %s3987_s14  ;;  %1343 = vst [vmem:[#allocation2 + $0x130] sm:$0xf] %v1342_v51  ;;  %v2110_v1 = vld [vmem:[#allocation2 + $0xb0] sm:$0xf]  ;;  %v2211_v47 = vrot.slane %v2209_v20, 4  ;;  %v2214_v3 = vrot.slane %v2212_v62, 5 }
 0x119   : > { %1346 = vst [vmem:[#allocation2 + $0x134] sm:$0x1] %v1345_v63  ;;  %v2312_v0 = vsel %vm4178_vm6, %v2307_v49, %v2311_v29  ;;  %v1353_v5 = vld [vmem:[#allocation2 + $0x120] sm:$0xf]  ;;  %v2218_v18 = vshll.u32 %v2121_v15, 16  ;;  %v2139_v2 = vshrl.u32 %v2110_v1, 16  ;;  %v2245_v57 = vpop.permute.xlu1 %2244 }
 0x11a   : > { %v1899_v53 = vld [vmem:[#allocation2 + $0x5c] sm:$0x1]  ;;  %2056 = vst.msk [vmem:[#allocation3 + $0x14] sm:$0xf] %vm2050_vm15, %v2037_v45  ;;  %v1347_v56 = vld [vmem:[#allocation2 + $0xf0] sm:$0xf]  ;;  %v2215_v6 = vor.u32 %v2214_v3, %v2211_v47 }
 0x11b   : > { %v1924_v55 = vshll.u32 %v1899_v53, 16  ;;  %2055 = vst.msk [vmem:[#allocation3 + $0x10] sm:$0xf] %vm2050_vm15, %v2035_v27  ;;  %v2084_v40 = vpop.permute.xlu2 %2083  ;;  %v1354_v59 = vld [vmem:[#allocation2 + $0x128] sm:$0xf]  ;;  %v2142_v21 = vshll.u32 %v2110_v1, 16 }
 0x11c   : > { %1361 = vst.msk [vmem:[#allocation3 + $0x18] sm:$0xf] %vm256_vm5, %v1353_v5  ;;  %v2086_v8 = vpop.permute.xlu0 %2085  ;;  %v1348_v48 = vld [vmem:[#allocation2 + $0xf8] sm:$0xf]  ;;  %v2220_v23 = vrot.slane %v2218_v18, 5  ;;  %v2216_v19 = vrot.slane %v2215_v6, 4 }
 0x11d   : > { %v1926_v12 = vrot.slane %v1924_v55, 5  ;;  %2104 = vst.msk [vmem:[#allocation3 + $0x10] sm:$0xf] %vm2099_vm9, %v2084_v40  ;;  %v2111_v25 = vld [vmem:[#allocation2 + $0xb4] sm:$0x1]  ;;  %v2141_v16 = vrot.slane %v2139_v2, 4 }
 0x11e   : > { %2265 = vst.msk [vmem:[#allocation3 + $0x10] sm:$0xf] %vm2260_vm10, %v2245_v57  ;;  %v2144_v61 = vrot.slane %v2142_v21, 5  ;;  %v2269_v32 = vld [vmem:[#allocation2 + $0xf8] sm:$0xf]  ;;  %v2148_v35 = vshll.u32 %v2111_v25, 16  ;;  %v2221_v37 = vsel %vm4178_vm6, %v2216_v19, %v2220_v23 }
 0x11f   : > { %v1927_v60 = vsel %vm4178_vm6, %v1922_v4, %v1926_v12  ;;  %v2283_v36 = vld [vmem:[#allocation2 + $0x130] sm:$0xf]  ;;  %2105 = vst.msk [vmem:[#allocation3 + $0x14] sm:$0xf] %vm2099_vm9, %v2086_v8  ;;  %v2286_v52 = vshrl.u32 %v2269_v32, 16  ;;  %v2289_v24 = vshll.u32 %v2269_v32, 16 }
 0x120   : > { %2026 = vrot.lane.b32.xlu2 %v1927_v60, %s3985_s12  ;;  %2399 = vrot.lane.b32.xlu0 %v2312_v0, %s3987_s14  ;;  %v2284_v43 = vld [vmem:[#allocation2 + $0x134] sm:$0x1]  ;;  %v2384_v50 = vshrl.u32 %v2283_v36, 16  ;;  %v2387_v44 = vshll.u32 %v2283_v36, 16  ;;  %v2066_v17 = vld [vmem:[#allocation2 + $0x130] sm:$0xf]  ;;  %v2145_v42 = vor.u32 %v2144_v61, %v2141_v16 }
 0x121   : > { %v2393_v7 = vshll.u32 %v2284_v43, 16  ;;  %1355 = vst.msk [vmem:[#allocation3] sm:$0xf] %vm256_vm5, %v1347_v56  ;;  %v2408_v28 = vpop.permute.xlu1 %2407  ;;  %v2150_v14 = vrot.slane %v2148_v35, 5  ;;  %v2288_v31 = vrot.slane %v2286_v52, 4  ;;  %v2291_v26 = vrot.slane %v2289_v24, 5 }
 0x122   : > { %v2386_v11 = vrot.slane %v2384_v50, 4  ;;  %v2389_v13 = vrot.slane %v2387_v44, 5  ;;  %1362 = vst.msk [vmem:[#allocation3 + $0x1c] sm:$0xf] %vm256_vm5, %v1354_v59  ;;  %v2146_v30 = vrot.slane %v2145_v42, 4  ;;  %vm526_vm4 = vcmask 60416  }
 0x123   : > { %v2395_v58 = vrot.slane %v2393_v7, 5  ;;  %1356 = vst.msk [vmem:[#allocation3 + $0x4] sm:$0xf] %vm256_vm5, %v1348_v48  ;;  %v2247_v38 = vpop.permute.xlu2 %2246  ;;  %v2270_v34 = vld [vmem:[#allocation2 + $0xfc] sm:$0x1]  ;;  %v2292_v53 = vor.u32 %v2291_v26, %v2288_v31  ;;  %vm5046_vm5 = vmand %vm528_vm3, %vm264_vm1  ;;  %vm2907_vm1 = vcmask 1042432  }
 0x124   : > { %v2390_v10 = vor.u32 %v2389_v13, %v2386_v11  ;;  %2266 = vst.msk [vmem:[#allocation3 + $0x14] sm:$0xf] %vm2260_vm10, %v2247_v38  ;;  %v2406_v39 = vpop.permute.xlu0 %2405  ;;  %v2151_v46 = vsel %vm4178_vm6, %v2146_v30, %v2150_v14  ;;  %v2295_v54 = vshll.u32 %v2270_v34, 16  ;;  %v544_v56 = vld [vmem:[#allocation4 + $0x18] sm:$0x1]  ;;  %s3989_s12 = smov 48  }
 0x125   : > { %2427 = vst.msk [vmem:[#allocation3 + $0x14] sm:$0xf] %vm2421_vm13, %v2408_v28  ;;  %v2293_v45 = vrot.slane %v2292_v53, 4  ;;  %v545_v59 = vsel %vm5046_vm5, 0, %v544_v56  ;;  %vm5530_vm11 = vsmask.f32 7938 }
 0x126   : > { %v2391_v22 = vrot.slane %v2390_v10, 4  ;;  %2426 = vst.msk [vmem:[#allocation3 + $0x10] sm:$0xf] %vm2421_vm13, %v2406_v39  ;;  %v2297_v4 = vrot.slane %v2295_v54, 5  ;;  %v578_v23 = vld [vmem:[#allocation4 + $0x24] sm:$0x1] }
 0x127   : > { %529 = vst.msk [vmem:[#allocation4 + $0x4] sm:$0x1] %vm528_vm3, %v3988_v41  ;;  %v550_v19 = vld [vmem:[#allocation4 + $0x28] sm:$0x1]  ;;  %v581_v38 = vld [vmem:[#allocation4 + $0x2c] sm:$0x1] }
 0x128   : > { %2089 = vrot.lane.b32.xlu2 %v2066_v17, %s3980_s7  ;;  %v2396_v9 = vsel %vm4178_vm6, %v2391_v22, %v2395_v58  ;;  %v2298_v20 = vsel %vm4178_vm6, %v2293_v45, %v2297_v4  ;;  %v575_v17 = vld [vmem:[#allocation4 + $0x1c] sm:$0x1]  ;;  %527 = vst.msk [vmem:[#allocation4] sm:$0xf] %vm526_vm4, %v3988_v41  ;;  %v547_v22 = vld [vmem:[#allocation4 + $0x20] sm:$0x1] }
 0x129   : > { %2411 = vrot.lane.b32.xlu1 %v2396_v9, %s3987_s14  ;;  %v1495_v63 = vpop.permute.xlu1 %1494  ;;  %546 = vst [vmem:[#allocation4 + $0x18] sm:$0x1] %v545_v59  ;;  %v548_v16 = vsel %vm5046_vm5, 0, %v547_v22  ;;  %v551_v32 = vsel %vm5046_vm5, 0, %v550_v19  ;;  %v5080_v28 = vld [vmem:[%s5517_s5] ss:$0 sm:$0xff] }
 0x12a   : > { %1519 = vst.msk [vmem:[#allocation3] sm:$0xf] %vm1518_vm7, %v1495_v63  ;;  %v553_v59 = vld [vmem:[#allocation4 + $0x30] sm:$0x1] }
 0x12b   : > { %v1507_v51 = vpop.permute.xlu2 %1506  ;;  %531 = vst.msk [vmem:[#allocation4 + $0x48] sm:$0xf] %vm526_vm4, %v3988_v41 }
 0x12c   : > { %1525 = vst.msk [vmem:[#allocation3 + $0x18] sm:$0xf] %vm1518_vm7, %v1507_v51 }
 0x12d   : > { %v3923_v29 = vld [vmem:[#allocation3 + $0x10] sm:$0xff]  ;;  %532 = vst.msk [vmem:[#allocation4 + $0x4c] sm:$0x1] %vm528_vm3, %v3988_v41 }
 0x12e   : > { %3855 = vmatmul.msk.bf16.gmra.mxu3 %vm2478_vm2, %v3923_v29  ;;  %v566_v9 = vld [vmem:[#allocation4 + $0x4] sm:$0x1]  ;;  %549 = vst [vmem:[#allocation4 + $0x20] sm:$0x1] %v548_v16 }
 0x12f   : > { %552 = vst [vmem:[#allocation4 + $0x28] sm:$0x1] %v551_v32 }
 0x130   : > { %2248 = vrot.lane.b32.xlu2 %v2221_v37, %s3986_s13  ;;  %v2875_v37 = vld [vmem:[#allocation4] sm:$0xe] }
 0x131   : > { %v1509_v49 = vpop.permute.xlu0 %1508  ;;  %v3857_v30 = vrot.slane %v2875_v37, 9 }
 0x132   : > { %1526 = vst.msk [vmem:[#allocation3 + $0x1c] sm:$0xf] %vm1518_vm7, %v1509_v49  ;;  %v562_v24 = vld [vmem:[#allocation4 + $0x48] sm:$0x1] }
 0x133   : > { %v1670_v55 = vpop.permute.xlu1 %1669  ;;  %v563_v14 = vsel %vm5046_vm5, 0, %v562_v24 }
 0x134   : > { %1687 = vst.msk [vmem:[#allocation3 + $0x1c] sm:$0xf] %vm1679_vm12, %v1670_v55 }
 0x135   : > { %564 = vst [vmem:[#allocation4 + $0x48] sm:$0x1] %v563_v14 }
 0x138   : > { %2238 = vrot.lane.b32.xlu2 %v2151_v46, %s3986_s13  ;;  %s3990_s13 = smov 56  }
 0x139   : > { %v1668_v27 = vpop.permute.xlu0 %1667 }
 0x13a   : > { %1686 = vst.msk [vmem:[#allocation3 + $0x18] sm:$0xf] %vm1679_vm12, %v1668_v27 }
 0x13b   : > { %v1717_v12 = vpop.permute.xlu1 %1716 }
 0x13c   : > { %1735 = vst.msk [vmem:[#allocation3 + $0x18] sm:$0xf] %vm1728_vm0, %v1717_v12 }
 0x13e   : > { %v1497_v62 = vpop.permute.xlu2 %1496 }
 0x13f   : > { %1520 = vst.msk [vmem:[#allocation3 + $0x4] sm:$0xf] %vm1518_vm7, %v1497_v62  ;;  %vm5054_vm7 = vmand %vm528_vm3, %vm5530_vm11 }
 0x140   : > { %2397 = vrot.lane.b32.xlu2 %v2298_v20, %s3987_s14  ;;  %v576_v6 = vsel %vm5054_vm7, 0, %v575_v17  ;;  %v567_v25 = vsel %vm5054_vm7, 0, %v566_v9  ;;  %v579_v61 = vsel %vm5054_vm7, 0, %v578_v23  ;;  %v582_v41 = vsel %vm5054_vm7, 0, %v581_v38  ;;  %v2662_v20 = vld [vmem:[#allocation4 + $0x18] sm:$0xf] }
 0x141   : > { %v1658_v0 = vpop.permute.xlu0 %1657  ;;  %577 = vst [vmem:[#allocation4 + $0x1c] sm:$0x1] %v576_v6  ;;  %v554_v6 = vsel %vm5046_vm5, 0, %v553_v59  ;;  %v3346_v59 = vld [vmem:[#allocation4 + $0x48] sm:$0xf] }
 0x142   : > { %1681 = vst.msk [vmem:[#allocation3 + $0x4] sm:$0xf] %vm1679_vm12, %v1658_v0 }
 0x143   : > { %v1707_v15 = vpop.permute.xlu1 %1706  ;;  %568 = vst [vmem:[#allocation4 + $0x4] sm:$0x1] %v567_v25 }
 0x144   : > { %1730 = vst.msk [vmem:[#allocation3 + $0x4] sm:$0xf] %vm1728_vm0, %v1707_v15 }
 0x145   : > { %580 = vst [vmem:[#allocation4 + $0x24] sm:$0x1] %v579_v61 }
 0x146   : > { %v1656_v60 = vpop.permute.xlu2 %1655  ;;  %583 = vst [vmem:[#allocation4 + $0x2c] sm:$0x1] %v582_v41 }
 0x147   : > { %1680 = vst.msk [vmem:[#allocation3] sm:$0xf] %vm1679_vm12, %v1656_v60  ;;  %vm2908_vm12 = vcmask 1046532  }
 0x148   : > { %v2665_v12 = vld [vmem:[#allocation4 + $0x1c] sm:$0x1]  ;;  %555 = vst [vmem:[#allocation4 + $0x30] sm:$0x1] %v554_v6  ;;  %v3450_v6 = vshll.u32 %v3346_v59, 16 }
 0x149   : > { %v1705_v1 = vpop.permute.xlu0 %1704 }
 0x14a   : > { %1729 = vst.msk [vmem:[#allocation3] sm:$0xf] %vm1728_vm0, %v1705_v1  ;;  %v2876_v26 = vld [vmem:[#allocation4 + $0x4] sm:$0x1]  ;;  %v3290_v1 = vld [vmem:[#allocation4 + $0x48] sm:$0xf] }
 0x14b   : > { %v2912_v51 = vrot.slane %v2876_v26, 5 }
 0x14d   : > { %v2677_v37 = vld [vmem:[#allocation4 + $0x2c] sm:$0x1] }
 0x150   : > { %v1719_v36 = vpop.permute.xlu2 %1718 }
 0x151   : > { %1736 = vst.msk [vmem:[#allocation3 + $0x1c] sm:$0xf] %vm1728_vm0, %v1719_v36 }
 0x158   : > { %v1880_v47 = vpop.permute.xlu0 %1879 }
 0x159   : > { %1897 = vst.msk [vmem:[#allocation3 + $0x1c] sm:$0xf] %vm1889_vm14, %v1880_v47 }
 0x15d   : > { %v1866_v3 = vpop.permute.xlu1 %1865 }
 0x15e   : > { %1890 = vst.msk [vmem:[#allocation3] sm:$0xf] %vm1889_vm14, %v1866_v3 }
 0x160   : > { %v2039_v43 = vpop.permute.xlu0 %2038 }
 0x163   : > { %v1878_v50 = vpop.permute.xlu2 %1877 }
 0x164   : > { %1896 = vst.msk [vmem:[#allocation3 + $0x18] sm:$0xf] %vm1889_vm14, %v1878_v50 }
 0x165   : > { %2057 = vst.msk [vmem:[#allocation3 + $0x18] sm:$0xf] %vm2050_vm15, %v2039_v43 }
 0x170   : > { %v2041_v44 = vpop.permute.xlu1 %2040  ;;  %v2029_v5 = vpop.permute.xlu0 %2028 }
 0x171   : > { %v1868_v7 = vpop.permute.xlu2 %1867  ;;  %2058 = vst.msk [vmem:[#allocation3 + $0x1c] sm:$0xf] %vm2050_vm15, %v2041_v44 }
 0x172   : > { %1891 = vst.msk [vmem:[#allocation3 + $0x4] sm:$0xf] %vm1889_vm14, %v1868_v7  ;;  %vm5092_vm14 = vmor %vm2907_vm1, %vm2908_vm12  ;;  %vm3015_vm1 = vcmask 257216   ;;  %vm3176_vm12 = vcmask 322816  }
 0x173   : > { %2052 = vst.msk [vmem:[#allocation3 + $0x4] sm:$0xf] %vm2050_vm15, %v2029_v5  ;;  %v2913_v29 = vsel %vm5092_vm14, %v3857_v30, %v2912_v51 }
 0x174   : > { %2942 = vrot.lane.b32.xlu2 %v2913_v29, %s3984_s11 }
 0x178   : > { %v2088_v18 = vpop.permute.xlu1 %2087  ;;  %v2076_v2 = vpop.permute.xlu0 %2075 }
 0x179   : > { %2106 = vst.msk [vmem:[#allocation3 + $0x18] sm:$0xf] %vm2099_vm9, %v2088_v18 }
 0x17a   : > { %v2027_v40 = vpop.permute.xlu2 %2026 }
 0x17b   : > { %2051 = vst.msk [vmem:[#allocation3] sm:$0xf] %vm2050_vm15, %v2027_v40  ;;  %vm5535_vm15 = vmmov %vm5530_vm11  ;;  %v2671_v40 = vld [vmem:[#allocation4 + $0x24] sm:$0x1] }
 0x17c   : > { %2100 = vst.msk [vmem:[#allocation3] sm:$0xf] %vm2099_vm9, %v2076_v2  ;;  %3313 = vrot.lane.b32.xlu2 %v3290_v1, %s3989_s12  ;;  %v2668_v2 = vld [vmem:[#allocation4 + $0x20] sm:$0xf] }
 0x180   : > { %v2078_v57 = vpop.permute.xlu1 %2077 }
 0x181   : > { %2101 = vst.msk [vmem:[#allocation3 + $0x4] sm:$0xf] %vm2099_vm9, %v2078_v57 }
 0x182   : > { %v2090_v11 = vpop.permute.xlu2 %2089  ;;  %v2251_v13 = vpop.permute.xlu0 %2250 }
 0x183   : > { %2107 = vst.msk [vmem:[#allocation3 + $0x1c] sm:$0xf] %vm2099_vm9, %v2090_v11  ;;  %vm5107_vm9 = vmand %vm526_vm4, %vm5535_vm15  ;;  %vm3323_vm15 = vcmask 454016  }
 0x184   : > { %2268 = vst.msk [vmem:[#allocation3 + $0x1c] sm:$0xf] %vm2260_vm10, %v2251_v13 }
 0x188   : > { %v2237_v58 = vpop.permute.xlu1 %2236 }
 0x189   : > { %2261 = vst.msk [vmem:[#allocation3] sm:$0xf] %vm2260_vm10, %v2237_v58  ;;  %v584_v58 = vld [vmem:[#allocation4 + $0x34] sm:$0x1] }
 0x18a   : > { %v2249_v21 = vpop.permute.xlu2 %2248  ;;  %v2410_v48 = vpop.permute.xlu0 %2409 }
 0x18b   : > { %2267 = vst.msk [vmem:[#allocation3 + $0x18] sm:$0xf] %vm2260_vm10, %v2249_v21  ;;  %v585_v21 = vsel %vm5054_vm7, 0, %v584_v58  ;;  %v3447_v58 = vshrl.u32 %v3346_v59, 16 }
 0x18c   : > { %2428 = vst.msk [vmem:[#allocation3 + $0x18] sm:$0xf] %vm2421_vm13, %v2410_v48 }
 0x18d   : > { %586 = vst [vmem:[#allocation4 + $0x34] sm:$0x1] %v585_v21 }
 0x191   : > { %v5085_v42 = vpop.f32.mrf.mxu3 }
 0x192   : > { %v2239_v39 = vpop.permute.xlu2 %2238  ;;  %v2400_v35 = vpop.permute.xlu0 %2399  ;;  %v2529_v52 = vadd.f32 %v5080_v28, %v5085_v42 }
 0x193   : > { %2262 = vst.msk [vmem:[#allocation3 + $0x4] sm:$0xf] %vm2260_vm10, %v2239_v39 }
 0x194   : > { %2423 = vst.msk [vmem:[#allocation3 + $0x4] sm:$0xf] %vm2421_vm13, %v2400_v35  ;;  %vm2537_vm0 = vcmp.gt.f32.partialorder %v2529_v52, 0.0  ;;  %v2545_v31 = vmul.f32 0.1, %v2529_v52 }
 0x195   : > { %v2674_v35 = vld [vmem:[#allocation4 + $0x28] sm:$0xf] }
 0x196   : > { %v2553_v63 = vsel %vm2537_vm0, %v2529_v52, %v2545_v31  ;;  %vm3273_vm0 = vcmask 388416  }
 0x197   : > { %v2561_v49 = vpack.c.bf16 %v2553_v63, %v2553_v63 }
 0x199   : > { %v2584_v53 = vshrl.u32 %v2561_v49, 16  ;;  %v5100_v54 = vpop.f32.mrf.mxu3  ;;  %v2587_v27 = vshll.u32 %v2561_v49, 16 }
 0x19a   : > { %v2398_v46 = vpop.permute.xlu2 %2397  ;;  %v2530_v4 = vadd.f32 %v5080_v28, %v5100_v54 }
 0x19b   : > { %2422 = vst.msk [vmem:[#allocation3] sm:$0xf] %vm2421_vm13, %v2398_v46  ;;  %v2412_v45 = vpop.permute.xlu1 %2411  ;;  %v2586_v55 = vrot.slane %v2584_v53, 7  ;;  %v2680_v46 = vld [vmem:[#allocation4 + $0x30] sm:$0xf] }
 0x19c   : > { %2429 = vst.msk [vmem:[#allocation3 + $0x1c] sm:$0xf] %vm2421_vm13, %v2412_v45  ;;  %vm2538_vm10 = vcmp.gt.f32.partialorder %v2530_v4, 0.0  ;;  %v2546_v0 = vmul.f32 0.1, %v2530_v4 }
 0x19d   : > { %v2589_v60 = vor.u32 %v2587_v27, %v2586_v55  ;;  %v2590_v15 = vrot.slane %v2586_v55, 4  ;;  %v2683_v53 = vld [vmem:[#allocation4 + $0x34] sm:$0x1] }
 0x19e   : > { %v2554_v36 = vsel %vm2538_vm10, %v2530_v4, %v2546_v0  ;;  %vm3484_vm10 = vcmask 519616  }
 0x19f   : > { %v2663_v47 = vsel %vm5107_vm9, %v2589_v60, %v2662_v20  ;;  %v2666_v3 = vsel %vm5046_vm5, %v2590_v15, %v2665_v12  ;;  %v2562_v43 = vpack.c.bf16 %v2554_v36, %v2554_v36  ;;  %v556_v20 = vld [vmem:[#allocation4 + $0x38] sm:$0x1]  ;;  %v587_v12 = vld [vmem:[#allocation4 + $0x3c] sm:$0x1]  ;;  %v535_v36 = vld [vmem:[#allocation4] sm:$0x1] }
 0x1a0   : > { %2664 = vst [vmem:[#allocation4 + $0x18] sm:$0xf] %v2663_v47  ;;  %v557_v0 = vsel %vm5046_vm5, 0, %v556_v20  ;;  %v588_v60 = vsel %vm5054_vm7, 0, %v587_v12  ;;  %v536_v47 = vsel %vm5046_vm5, 0, %v535_v36 }
 0x1a1   : > { %2667 = vst [vmem:[#allocation4 + $0x1c] sm:$0x1] %v2666_v3  ;;  %v2592_v44 = vshrl.u32 %v2562_v43, 16  ;;  %v2595_v18 = vshll.u32 %v2562_v43, 16  ;;  %v593_v43 = vld [vmem:[#allocation4 + $0x4c] sm:$0x1] }
 0x1a2   : > { %v3921_v50 = vld [vmem:[#allocation3] sm:$0xff]  ;;  %558 = vst [vmem:[#allocation4 + $0x38] sm:$0x1] %v557_v0 }
 0x1a3   : > { %v3924_v5 = vld [vmem:[#allocation3 + $0x18] sm:$0xff]  ;;  %3853 = vmatmul.msk.bf16.vlgmr.msra.gmra.mxu0 %vm2478_vm2, %v3921_v50  ;;  %v2594_v7 = vrot.slane %v2592_v44, 7  ;;  %589 = vst [vmem:[#allocation4 + $0x3c] sm:$0x1] %v588_v60 }
 0x1a4   : > { %3856 = vmatmul.msk.bf16.gmra.mxu3 %vm2478_vm2, %v3924_v5  ;;  %537 = vst [vmem:[#allocation4] sm:$0x1] %v536_v47  ;;  %v594_v5 = vsel %vm5054_vm7, 0, %v593_v43 }
 0x1a5   : > { %v2597_v57 = vor.u32 %v2595_v18, %v2594_v7  ;;  %v2598_v11 = vrot.slane %v2594_v7, 4  ;;  %595 = vst [vmem:[#allocation4 + $0x4c] sm:$0x1] %v594_v5 }
 0x1a7   : > { %v2669_v13 = vsel %vm5107_vm9, %v2597_v57, %v2668_v2  ;;  %v2672_v56 = vsel %vm5046_vm5, %v2598_v11, %v2671_v40  ;;  %v2977_v17 = vld [vmem:[#allocation4 + $0x18] sm:$0xf]  ;;  %v538_v2 = vld [vmem:[#allocation4 + $0x8] sm:$0x1]  ;;  %v569_v40 = vld [vmem:[#allocation4 + $0xc] sm:$0x1] }
 0x1a8   : > { %2670 = vst [vmem:[#allocation4 + $0x20] sm:$0xf] %v2669_v13  ;;  %2995 = vrot.lane.b32.xlu2 %v2977_v17, %s3980_s7  ;;  %v2701_v23 = vld [vmem:[#allocation4 + $0x18] sm:$0xf]  ;;  %v2715_v57 = vld [vmem:[#allocation4 + $0x4] sm:$0x1] }
 0x1a9   : > { %2673 = vst [vmem:[#allocation4 + $0x24] sm:$0x1] %v2672_v56  ;;  %v539_v11 = vsel %vm5046_vm5, 0, %v538_v2  ;;  %v570_v13 = vsel %vm5054_vm7, 0, %v569_v40  ;;  %v2740_v17 = vshll.u32 %v2715_v57, 16 }
 0x1aa   : > { %2709 = vst.msk [vmem:[#allocation5 + $0xc] sm:$0xf] %vm526_vm4, %v2701_v23  ;;  %v3449_v23 = vrot.slane %v3447_v58, 4 }
 0x1ab   : > { %v2714_v3 = vld [vmem:[#allocation4] sm:$0xf]  ;;  %540 = vst [vmem:[#allocation4 + $0x8] sm:$0x1] %v539_v11 }
 0x1ac   : > { %v2731_v50 = vshrl.u32 %v2714_v3, 16  ;;  %v2734_v44 = vshll.u32 %v2714_v3, 16  ;;  %571 = vst [vmem:[#allocation4 + $0xc] sm:$0x1] %v570_v13 }
 0x1ae   : > { %v2733_v7 = vrot.slane %v2731_v50, 4  ;;  %v2736_v18 = vrot.slane %v2734_v44, 5 }
 0x1af   : > { %v2702_v14 = vld [vmem:[#allocation4 + $0x20] sm:$0xf] }
 0x1b0   : > { %2710 = vst.msk [vmem:[#allocation5 + $0x10] sm:$0xf] %vm526_vm4, %v2702_v14  ;;  %v2737_v56 = vor.u32 %v2736_v18, %v2733_v7 }
 0x1b1   : > { %v5127_v48 = vpop.f32.mrf.mxu3 }
 0x1b2   : > { %v2531_v22 = vadd.f32 %v5080_v28, %v5127_v48  ;;  %v2738_v21 = vrot.slane %v2737_v56, 4  ;;  %v2650_v36 = vld [vmem:[#allocation4 + $0x8] sm:$0xf] }
 0x1b3   : > { %v2653_v47 = vld [vmem:[#allocation4 + $0xc] sm:$0x1] }
 0x1b4   : > { %vm2539_vm2 = vcmp.gt.f32.partialorder %v2531_v22, 0.0  ;;  %v2547_v9 = vmul.f32 0.1, %v2531_v22 }
 0x1b6   : > { %v2555_v19 = vsel %vm2539_vm2, %v2531_v22, %v2547_v9  ;;  %v2742_v22 = vrot.slane %v2740_v17, 5  ;;  %v3452_v9 = vrot.slane %v3450_v6, 5  ;;  %v2686_v17 = vld [vmem:[#allocation4 + $0x38] sm:$0xf]  ;;  %vm3581_vm2 = vcmask 585216  }
 0x1b7   : > { %v2563_v25 = vpack.c.bf16 %v2555_v19, %v2555_v19 }
 0x1b8   : > { %v2743_v19 = vsel %vm4178_vm6, %v2738_v21, %v2742_v22  ;;  %v2689_v21 = vld [vmem:[#allocation4 + $0x3c] sm:$0x1] }
 0x1b9   : > { %v2600_v16 = vshrl.u32 %v2563_v25, 16  ;;  %v5132_v61 = vpop.f32.mrf.mxu3  ;;  %v2603_v39 = vshll.u32 %v2563_v25, 16  ;;  %v3347_v25 = vld [vmem:[#allocation4 + $0x4c] sm:$0x1]  ;;  %2842 = vrot.lane.b32.xlu1 %v2743_v19, %s3982_s9 }
 0x1ba   : > { %v2532_v32 = vadd.f32 %v5080_v28, %v5132_v61 }
 0x1bb   : > { %v2602_v38 = vrot.slane %v2600_v16, 7  ;;  %v559_v16 = vld [vmem:[#allocation4 + $0x40] sm:$0x1] }
 0x1bc   : > { %vm2540_vm13 = vcmp.gt.f32.partialorder %v2532_v32, 0.0  ;;  %v2548_v41 = vmul.f32 0.1, %v2532_v32 }
 0x1bd   : > { %v2605_v52 = vor.u32 %v2603_v39, %v2602_v38  ;;  %v2606_v24 = vrot.slane %v2602_v38, 4  ;;  %v3453_v38 = vor.u32 %v3452_v9, %v3449_v23  ;;  %v560_v39 = vsel %vm5046_vm5, 0, %v559_v16 }
 0x1be   : > { %v2556_v30 = vsel %vm2540_vm13, %v2532_v32, %v2548_v41  ;;  %v590_v32 = vld [vmem:[#allocation4 + $0x44] sm:$0x1]  ;;  %561 = vst [vmem:[#allocation4 + $0x40] sm:$0x1] %v560_v39  ;;  %v541_v41 = vld [vmem:[#allocation4 + $0x10] sm:$0x1] }
 0x1bf   : > { %v2675_v31 = vsel %vm5107_vm9, %v2605_v52, %v2674_v35  ;;  %v2678_v26 = vsel %vm5046_vm5, %v2606_v24, %v2677_v37  ;;  %v2564_v51 = vpack.c.bf16 %v2556_v30, %v2556_v30  ;;  %v591_v35 = vsel %vm5054_vm7, 0, %v590_v32  ;;  %v572_v52 = vld [vmem:[#allocation4 + $0x14] sm:$0x1] }
 0x1c0   : > { %2676 = vst [vmem:[#allocation4 + $0x28] sm:$0xf] %v2675_v31  ;;  %v3456_v37 = vshll.u32 %v3347_v25, 16  ;;  %v542_v24 = vsel %vm5046_vm5, 0, %v541_v41  ;;  %v573_v30 = vsel %vm5054_vm7, 0, %v572_v52  ;;  %v3454_v14 = vrot.slane %v3453_v38, 4 }
 0x1c1   : > { %2679 = vst [vmem:[#allocation4 + $0x2c] sm:$0x1] %v2678_v26  ;;  %v2608_v63 = vshrl.u32 %v2564_v51, 16  ;;  %v2611_v29 = vshll.u32 %v2564_v51, 16  ;;  %v3507_v26 = vld [vmem:[#allocation4 + $0x48] sm:$0xe] }
 0x1c2   : > { %592 = vst [vmem:[#allocation4 + $0x44] sm:$0x1] %v591_v35  ;;  %v3458_v31 = vrot.slane %v3456_v37, 5  ;;  %v3508_v51 = vld [vmem:[#allocation4 + $0x4c] sm:$0x1] }
 0x1c3   : > { %v2610_v49 = vrot.slane %v2608_v63, 7  ;;  %543 = vst [vmem:[#allocation4 + $0x10] sm:$0x1] %v542_v24 }
 0x1c4   : > { %574 = vst [vmem:[#allocation4 + $0x14] sm:$0x1] %v573_v30  ;;  %v3459_v63 = vsel %vm4178_vm6, %v3454_v14, %v3458_v31 }
 0x1c5   : > { %v2613_v45 = vor.u32 %v2611_v29, %v2610_v49  ;;  %v2614_v4 = vrot.slane %v2610_v49, 4  ;;  %v3880_v49 = vrot.slane %v3507_v26, 9  ;;  %v3555_v29 = vrot.slane %v3508_v51, 5  ;;  %3474 = vrot.lane.b32.xlu0 %v3459_v63, %s3990_s13 }
 0x1c7   : > { %v2681_v55 = vsel %vm5107_vm9, %v2613_v45, %v2680_v46  ;;  %v2684_v27 = vsel %vm5046_vm5, %v2614_v4, %v2683_v53  ;;  %v2703_v15 = vld [vmem:[#allocation4 + $0x28] sm:$0xf]  ;;  %v3556_v46 = vsel %vm5092_vm14, %v3880_v49, %v3555_v29 }
 0x1c8   : > { %2682 = vst [vmem:[#allocation4 + $0x30] sm:$0xf] %v2681_v55  ;;  %3571 = vrot.lane.b32.xlu1 %v3556_v46, %s3991_s15 }
 0x1c9   : > { %2685 = vst [vmem:[#allocation4 + $0x34] sm:$0x1] %v2684_v27 }
 0x1ca   : > { %2711 = vst.msk [vmem:[#allocation5 + $0x14] sm:$0xf] %vm526_vm4, %v2703_v15  ;;  %v2656_v19 = vld [vmem:[#allocation4 + $0x10] sm:$0xf] }
 0x1cb   : > { %v2659_v39 = vld [vmem:[#allocation4 + $0x14] sm:$0x1] }
 0x1cf   : > { %v2704_v1 = vld [vmem:[#allocation4 + $0x30] sm:$0xf] }
 0x1d0   : > { %2712 = vst.msk [vmem:[#allocation5 + $0x18] sm:$0xf] %vm526_vm4, %v2704_v1 }
 0x220   : > { %v5176_v10 = vpop.f32.mrf.mxu0 }
 0x221   : > { %v2527_v53 = vadd.f32 %v5080_v28, %v5176_v10 }
 0x223   : > { %vm2535_vm8 = vcmp.gt.f32.partialorder %v2527_v53, 0.0  ;;  %v2543_v45 = vmul.f32 0.1, %v2527_v53 }
 0x225   : > { %v2551_v4 = vsel %vm2535_vm8, %v2527_v53, %v2543_v45  ;;  %v2692_v53 = vld [vmem:[#allocation4 + $0x40] sm:$0xf] }
 0x226   : > { %v2559_v55 = vpack.c.bf16 %v2551_v4, %v2551_v4 }
 0x227   : > { %v5180_v27 = vpop.f32.mrf.mxu3 }
 0x228   : > { %v2568_v20 = vshrl.u32 %v2559_v55, 16  ;;  %v5182_v12 = vpop.f32.mrf.mxu0  ;;  %v2533_v0 = vadd.f32 %v5080_v28, %v5180_v27  ;;  %v2571_v1 = vshll.u32 %v2559_v55, 16 }
 0x229   : > { %v2528_v60 = vadd.f32 %v5080_v28, %v5182_v12 }
 0x22a   : > { %v2570_v15 = vrot.slane %v2568_v20, 7  ;;  %vm2541_vm3 = vcmp.gt.f32.partialorder %v2533_v0, 0.0  ;;  %v2549_v3 = vmul.f32 0.1, %v2533_v0 }
 0x22b   : > { %vm2536_vm11 = vcmp.gt.f32.partialorder %v2528_v60, 0.0  ;;  %v2544_v43 = vmul.f32 0.1, %v2528_v60 }
 0x22c   : > { %v2573_v50 = vor.u32 %v2571_v1, %v2570_v15  ;;  %v2574_v44 = vrot.slane %v2570_v15, 4  ;;  %v2557_v5 = vsel %vm2541_vm3, %v2533_v0, %v2549_v3  ;;  %v2695_v15 = vld [vmem:[#allocation4 + $0x44] sm:$0x1] }
 0x22d   : > { %v2552_v7 = vsel %vm2536_vm11, %v2528_v60, %v2544_v43  ;;  %v2565_v18 = vpack.c.bf16 %v2557_v5, %v2557_v5 }
 0x22e   : > { %v2651_v2 = vsel %vm5107_vm9, %v2573_v50, %v2650_v36  ;;  %v2654_v40 = vsel %vm5046_vm5, %v2574_v44, %v2653_v47  ;;  %v2560_v57 = vpack.c.bf16 %v2552_v7, %v2552_v7 }
 0x22f   : > { %2652 = vst [vmem:[#allocation4 + $0x8] sm:$0xf] %v2651_v2  ;;  %v2616_v11 = vshrl.u32 %v2565_v18, 16  ;;  %v5192_v13 = vpop.f32.mrf.mxu3  ;;  %v2619_v6 = vshll.u32 %v2565_v18, 16 }
 0x230   : > { %2655 = vst [vmem:[#allocation4 + $0xc] sm:$0x1] %v2654_v40  ;;  %v2576_v56 = vshrl.u32 %v2560_v57, 16  ;;  %v2534_v59 = vadd.f32 %v5080_v28, %v5192_v13  ;;  %v2579_v23 = vshll.u32 %v2560_v57, 16 }
 0x231   : > { %v2618_v58 = vrot.slane %v2616_v11, 7 }
 0x232   : > { %v2578_v22 = vrot.slane %v2576_v56, 7  ;;  %vm2542_vm7 = vcmp.gt.f32.partialorder %v2534_v59, 0.0  ;;  %v2550_v9 = vmul.f32 0.1, %v2534_v59 }
 0x233   : > { %v2621_v25 = vor.u32 %v2619_v6, %v2618_v58  ;;  %v2622_v16 = vrot.slane %v2618_v58, 4 }
 0x234   : > { %v2581_v32 = vor.u32 %v2579_v23, %v2578_v22  ;;  %v2582_v38 = vrot.slane %v2578_v22, 4  ;;  %v2558_v35 = vsel %vm2542_vm7, %v2534_v59, %v2550_v9 }
 0x235   : > { %v2687_v37 = vsel %vm5107_vm9, %v2621_v25, %v2686_v17  ;;  %v2690_v28 = vsel %vm5046_vm5, %v2622_v16, %v2689_v21  ;;  %v2566_v41 = vpack.c.bf16 %v2558_v35, %v2558_v35  ;;  %v3284_v21 = vld [vmem:[#allocation4 + $0x18] sm:$0xf]  ;;  %v3190_v16 = vld [vmem:[#allocation4 + $0x1c] sm:$0x1] }
 0x236   : > { %v2657_v52 = vsel %vm5107_vm9, %v2581_v32, %v2656_v19  ;;  %v2975_v24 = vld [vmem:[#allocation4 + $0x8] sm:$0xf]  ;;  %2688 = vst [vmem:[#allocation4 + $0x38] sm:$0xf] %v2687_v37  ;;  %v2660_v31 = vsel %vm5046_vm5, %v2582_v38, %v2659_v39  ;;  %v3189_v25 = vld [vmem:[#allocation4 + $0x18] sm:$0xe] }
 0x237   : > { %v3185_v30 = vld [vmem:[#allocation4 + $0x8] sm:$0xe]  ;;  %2991 = vrot.lane.b32.xlu0 %v2975_v24, %s3980_s7  ;;  %v3186_v26 = vld [vmem:[#allocation4 + $0xc] sm:$0x1]  ;;  %2691 = vst [vmem:[#allocation4 + $0x3c] sm:$0x1] %v2690_v28 }
 0x238   : > { %v2877_v14 = vld [vmem:[#allocation4 + $0x8] sm:$0xe]  ;;  %v3865_v51 = vrot.slane %v3185_v30, 9  ;;  %v2624_v63 = vshrl.u32 %v2566_v41, 16  ;;  %v2627_v49 = vshll.u32 %v2566_v41, 16  ;;  %v3219_v29 = vrot.slane %v3186_v26, 5 }
 0x239   : > { %v3858_v46 = vrot.slane %v2877_v14, 9  ;;  %2658 = vst [vmem:[#allocation4 + $0x10] sm:$0xf] %v2657_v52  ;;  %v2878_v45 = vld [vmem:[#allocation4 + $0xc] sm:$0x1]  ;;  %v3867_v39 = vrot.slane %v3189_v25, 9 }
 0x23a   : > { %v2716_v4 = vld [vmem:[#allocation4 + $0x8] sm:$0xf]  ;;  %v2626_v55 = vrot.slane %v2624_v63, 7  ;;  %2661 = vst [vmem:[#allocation4 + $0x14] sm:$0x1] %v2660_v31  ;;  %v3220_v20 = vsel %vm5092_vm14, %v3865_v51, %v3219_v29  ;;  %v2916_v0 = vrot.slane %v2878_v45, 5 }
 0x23b   : > { %v2717_v60 = vld [vmem:[#allocation4 + $0xc] sm:$0x1]  ;;  %3249 = vrot.lane.b32.xlu1 %v3220_v20, %s3992_s16  ;;  %v2745_v1 = vshrl.u32 %v2716_v4, 16  ;;  %v2748_v36 = vshll.u32 %v2716_v4, 16  ;;  %v3024_v47 = vld [vmem:[#allocation4 + $0x8] sm:$0xf] }
 0x23c   : > { %v2629_v3 = vor.u32 %v2627_v49, %v2626_v55  ;;  %v2630_v43 = vrot.slane %v2626_v55, 4  ;;  %v3041_v50 = vshrl.u32 %v3024_v47, 16  ;;  %v2699_v44 = vld [vmem:[#allocation4 + $0x8] sm:$0xf]  ;;  %v2754_v18 = vshll.u32 %v2717_v60, 16 }
 0x23d   : > { %v2747_v5 = vrot.slane %v2745_v1, 4  ;;  %v2750_v7 = vrot.slane %v2748_v36, 5  ;;  %v3044_v2 = vshll.u32 %v3024_v47, 16  ;;  %2707 = vst.msk [vmem:[#allocation5 + $0x4] sm:$0xf] %vm526_vm4, %v2699_v44  ;;  %v2917_v11 = vsel %vm5092_vm14, %v3858_v46, %v2916_v0 }
 0x23e   : > { %v2693_v40 = vsel %vm5107_vm9, %v2629_v3, %v2692_v53  ;;  %v2696_v57 = vsel %vm5046_vm5, %v2630_v43, %v2695_v15  ;;  %v3043_v17 = vrot.slane %v3041_v50, 4  ;;  %v2756_v6 = vrot.slane %v2754_v18, 5  ;;  %v3025_v22 = vld [vmem:[#allocation4 + $0xc] sm:$0x1]  ;;  %v3334_v37 = vld [vmem:[#allocation4 + $0x18] sm:$0xf] }
 0x23f   : > { %2694 = vst [vmem:[#allocation4 + $0x40] sm:$0xf] %v2693_v40  ;;  %2944 = vrot.lane.b32.xlu0 %v2917_v11, %s3984_s11  ;;  %v2751_v56 = vor.u32 %v2750_v7, %v2747_v5  ;;  %v3046_v59 = vrot.slane %v3044_v2, 5  ;;  %v3050_v23 = vshll.u32 %v3025_v22, 16  ;;  %v3227_v35 = vrot.slane %v3190_v16, 5 }
 0x240   : > { %2697 = vst [vmem:[#allocation4 + $0x44] sm:$0x1] %v2696_v57  ;;  %v3283_v9 = vld [vmem:[#allocation4 + $0x10] sm:$0xf]  ;;  %v3495_v24 = vld [vmem:[#allocation4 + $0x18] sm:$0xe] }
 0x241   : > { %v2752_v58 = vrot.slane %v2751_v56, 4  ;;  %v3047_v8 = vor.u32 %v3046_v59, %v3043_v17  ;;  %v3052_v32 = vrot.slane %v3050_v23, 5  ;;  %v2976_v38 = vld [vmem:[#allocation4 + $0x10] sm:$0xf]  ;;  %v3494_v52 = vld [vmem:[#allocation4 + $0x14] sm:$0x1]  ;;  %v3228_v26 = vsel %vm5092_vm14, %v3867_v39, %v3227_v35 }
 0x242   : > { %v3493_v41 = vld [vmem:[#allocation4 + $0x10] sm:$0xe]  ;;  %v3496_v30 = vld [vmem:[#allocation4 + $0x1c] sm:$0x1]  ;;  %v3363_v14 = vshrl.u32 %v3334_v37, 16  ;;  %v3366_v31 = vshll.u32 %v3334_v37, 16 }
 0x243   : > { %v2757_v62 = vsel %vm4178_vm6, %v2752_v58, %v2756_v6  ;;  %3301 = vrot.lane.b32.xlu1 %v3284_v21, %s3989_s12  ;;  %v3048_v19 = vrot.slane %v3047_v8, 4  ;;  %v3873_v51 = vrot.slane %v3493_v41, 9  ;;  %v3527_v63 = vrot.slane %v3494_v52, 5  ;;  %v2720_v49 = vld [vmem:[#allocation4 + $0x18] sm:$0xf] }
 0x244   : > { %2844 = vrot.lane.b32.xlu2 %v2757_v62, %s3982_s9  ;;  %v3874_v29 = vrot.slane %v3495_v24, 9  ;;  %v3531_v46 = vrot.slane %v3496_v30, 5  ;;  %v3365_v53 = vrot.slane %v3363_v14, 4  ;;  %v3368_v45 = vrot.slane %v3366_v31, 5  ;;  %v2879_v60 = vld [vmem:[#allocation4 + $0x10] sm:$0xe] }
 0x245   : > { %v3053_v28 = vsel %vm4178_vm6, %v3048_v19, %v3052_v32  ;;  %v2773_v4 = vshrl.u32 %v2720_v49, 16  ;;  %v2776_v55 = vshll.u32 %v2720_v49, 16  ;;  %v3528_v20 = vsel %vm5092_vm14, %v3873_v51, %v3527_v63  ;;  %v2880_v15 = vld [vmem:[#allocation4 + $0x14] sm:$0x1]  ;;  %v3026_v1 = vld [vmem:[#allocation4 + $0x10] sm:$0xf] }
 0x246   : > { %v3532_v0 = vsel %vm5092_vm14, %v3874_v29, %v3531_v46  ;;  %v2881_v36 = vld [vmem:[#allocation4 + $0x18] sm:$0xe]  ;;  %v2882_v47 = vld [vmem:[#allocation4 + $0x1c] sm:$0x1]  ;;  %v2978_v43 = vld [vmem:[#allocation4 + $0x20] sm:$0xf]  ;;  %v3369_v50 = vor.u32 %v3368_v45, %v3365_v53 }
 0x247   : > { %3299 = vrot.lane.b32.xlu0 %v3283_v9, %s3989_s12  ;;  %v3335_v3 = vld [vmem:[#allocation4 + $0x1c] sm:$0x1]  ;;  %v2775_v44 = vrot.slane %v2773_v4, 4  ;;  %v2778_v5 = vrot.slane %v2776_v55, 5  ;;  %v3859_v7 = vrot.slane %v2879_v60, 9  ;;  %v2920_v18 = vrot.slane %v2880_v15, 5 }
 0x248   : > { %v3055_v2 = vshrl.u32 %v3026_v1, 16  ;;  %v3058_v40 = vshll.u32 %v3026_v1, 16  ;;  %v3028_v57 = vld [vmem:[#allocation4 + $0x18] sm:$0xf]  ;;  %v3860_v11 = vrot.slane %v2881_v36, 9  ;;  %v2924_v56 = vrot.slane %v2882_v47, 5 }
 0x249   : > { %v3372_v17 = vshll.u32 %v3335_v3, 16  ;;  %v2721_v59 = vld [vmem:[#allocation4 + $0x1c] sm:$0x1]  ;;  %v2779_v58 = vor.u32 %v2778_v5, %v2775_v44  ;;  %v3069_v6 = vshrl.u32 %v3028_v57, 16  ;;  %v3072_v21 = vshll.u32 %v3028_v57, 16 }
 0x24a   : > { %v2700_v22 = vld [vmem:[#allocation4 + $0x10] sm:$0xf]  ;;  %v2921_v62 = vsel %vm5092_vm14, %v3859_v7, %v2920_v18  ;;  %v3370_v8 = vrot.slane %v3369_v50, 4  ;;  %v3057_v23 = vrot.slane %v3055_v2, 4  ;;  %v3060_v9 = vrot.slane %v3058_v40, 5 }
 0x24b   : > { %2993 = vrot.lane.b32.xlu1 %v2976_v38, %s3980_s7  ;;  %2708 = vst.msk [vmem:[#allocation5 + $0x8] sm:$0xf] %vm526_vm4, %v2700_v22  ;;  %v2925_v19 = vsel %vm5092_vm14, %v3860_v11, %v2924_v56  ;;  %v3374_v25 = vrot.slane %v3372_v17, 5  ;;  %v2782_v16 = vshll.u32 %v2721_v59, 16  ;;  %v2718_v32 = vld [vmem:[#allocation4 + $0x10] sm:$0xf] }
 0x24c   : > { %3152 = vrot.lane.b32.xlu2 %v3053_v28, %s3987_s14  ;;  %v2705_v38 = vld [vmem:[#allocation4 + $0x38] sm:$0xf]  ;;  %v3187_v39 = vld [vmem:[#allocation4 + $0x10] sm:$0xe]  ;;  %v3188_v35 = vld [vmem:[#allocation4 + $0x14] sm:$0x1]  ;;  %v3061_v30 = vor.u32 %v3060_v9, %v3057_v23 }
 0x24d   : > { %2713 = vst.msk [vmem:[#allocation5 + $0x1c] sm:$0xf] %vm526_vm4, %v2705_v38  ;;  %v2780_v37 = vrot.slane %v2779_v58, 4  ;;  %v3027_v28 = vld [vmem:[#allocation4 + $0x14] sm:$0x1]  ;;  %v3071_v41 = vrot.slane %v3069_v6, 4  ;;  %v3375_v24 = vsel %vm4178_vm6, %v3370_v8, %v3374_v25 }
 0x24e   : > { %v3074_v52 = vrot.slane %v3072_v21, 5  ;;  %v2759_v14 = vshrl.u32 %v2718_v32, 16  ;;  %v2762_v31 = vshll.u32 %v2718_v32, 16  ;;  %v3223_v51 = vrot.slane %v3188_v35, 5  ;;  %v3332_v29 = vld [vmem:[#allocation4 + $0x10] sm:$0xf] }
 0x24f   : > { %3253 = vrot.lane.b32.xlu0 %v3228_v26, %s3992_s16  ;;  %v3866_v26 = vrot.slane %v3187_v39, 9  ;;  %v2784_v63 = vrot.slane %v2782_v16, 5  ;;  %v3064_v49 = vshll.u32 %v3027_v28, 16  ;;  %v3029_v53 = vld [vmem:[#allocation4 + $0x1c] sm:$0x1]  ;;  %v3062_v45 = vrot.slane %v3061_v30, 4 }
 0x250   : > { %v3075_v4 = vor.u32 %v3074_v52, %v3071_v41  ;;  %v2761_v55 = vrot.slane %v2759_v14, 4  ;;  %v3349_v60 = vshrl.u32 %v3332_v29, 16  ;;  %v3352_v15 = vshll.u32 %v3332_v29, 16  ;;  %v2719_v47 = vld [vmem:[#allocation4 + $0x14] sm:$0x1] }
 0x251   : > { %v2785_v46 = vsel %vm4178_vm6, %v2780_v37, %v2784_v63  ;;  %v3066_v1 = vrot.slane %v3064_v49, 5  ;;  %v3078_v36 = vshll.u32 %v3029_v53, 16  ;;  %v2768_v18 = vshll.u32 %v2719_v47, 16  ;;  %v2722_v2 = vld [vmem:[#allocation4 + $0x20] sm:$0xf] }
 0x252   : > { %v3351_v44 = vrot.slane %v3349_v60, 4  ;;  %v3354_v5 = vrot.slane %v3352_v15, 5  ;;  %v3285_v40 = vld [vmem:[#allocation4 + $0x20] sm:$0xf]  ;;  %v3333_v56 = vld [vmem:[#allocation4 + $0x14] sm:$0x1] }
 0x253   : > { %3557 = vrot.lane.b32.xlu1 %v3528_v20, %s3991_s15  ;;  %v2764_v20 = vrot.slane %v2762_v31, 5  ;;  %v3067_v3 = vsel %vm4178_vm6, %v3062_v45, %v3066_v1  ;;  %v3080_v7 = vrot.slane %v3078_v36, 5  ;;  %v2883_v59 = vld [vmem:[#allocation4 + $0x20] sm:$0xe]  ;;  %v2884_v58 = vld [vmem:[#allocation4 + $0x24] sm:$0x1] }
 0x254   : > { %3559 = vrot.lane.b32.xlu2 %v3532_v0, %s3991_s15  ;;  %v3224_v0 = vsel %vm5092_vm14, %v3866_v26, %v3223_v51  ;;  %v3355_v17 = vor.u32 %v3354_v5, %v3351_v44  ;;  %v2787_v6 = vshrl.u32 %v2722_v2, 16  ;;  %v2790_v21 = vshll.u32 %v2722_v2, 16  ;;  %v3030_v32 = vld [vmem:[#allocation4 + $0x20] sm:$0xf]  ;;  %v2723_v35 = vld [vmem:[#allocation4 + $0x24] sm:$0x1] }
 0x255   : > { %v2765_v50 = vor.u32 %v2764_v20, %v2761_v55  ;;  %v2770_v22 = vrot.slane %v2768_v18, 5  ;;  %v3861_v23 = vrot.slane %v2883_v59, 9  ;;  %v2928_v9 = vrot.slane %v2884_v58, 5  ;;  %v3191_v41 = vld [vmem:[#allocation4 + $0x20] sm:$0xe]  ;;  %v2943_v18 = vpop.permute.xlu2 %2942 }
 0x256   : > { %v2789_v25 = vrot.slane %v2787_v6, 4  ;;  %v2792_v16 = vrot.slane %v2790_v21, 5  ;;  %v3192_v52 = vld [vmem:[#allocation4 + $0x24] sm:$0x1]  ;;  %v3086_v30 = vshll.u32 %v3030_v32, 16  ;;  %v2796_v14 = vshll.u32 %v2723_v35, 16 }
 0x257   : > { %2997 = vrot.lane.b32.xlu0 %v2978_v43, %s3980_s7  ;;  %v3076_v43 = vrot.slane %v3075_v4, 4  ;;  %v2766_v11 = vrot.slane %v2765_v50, 4  ;;  %v2929_v39 = vsel %vm5092_vm14, %v3861_v23, %v2928_v9  ;;  %v2979_v31 = vld [vmem:[#allocation4 + $0x28] sm:$0xf]  ;;  %v3868_v26 = vrot.slane %v3191_v41, 9 }
 0x258   : > { %v2793_v28 = vor.u32 %v2792_v16, %v2789_v25  ;;  %v3231_v51 = vrot.slane %v3192_v52, 5  ;;  %v3088_v29 = vrot.slane %v3086_v30, 5  ;;  %v3031_v45 = vld [vmem:[#allocation4 + $0x24] sm:$0x1]  ;;  %v3193_v20 = vld [vmem:[#allocation4 + $0x28] sm:$0xe] }
 0x259   : > { %v3081_v57 = vsel %vm4178_vm6, %v3076_v43, %v3080_v7  ;;  %v2771_v8 = vsel %vm4178_vm6, %v2766_v11, %v2770_v22  ;;  %v2724_v60 = vld [vmem:[#allocation4 + $0x28] sm:$0xf]  ;;  %v3092_v15 = vshll.u32 %v3031_v45, 16  ;;  %v3869_v36 = vrot.slane %v3193_v20, 9  ;;  %v2698_v44 = vld [vmem:[#allocation4] sm:$0xf] }
 0x25a   : > { %v2794_v63 = vrot.slane %v2793_v28, 4  ;;  %v3232_v53 = vsel %vm5092_vm14, %v3868_v26, %v3231_v51  ;;  %v3286_v1 = vld [vmem:[#allocation4 + $0x28] sm:$0xf]  ;;  %v2804_v43 = vshll.u32 %v2724_v60, 16  ;;  %2706 = vst.msk [vmem:[#allocation5] sm:$0xf] %vm526_vm4, %v2698_v44 }
 0x25b   : > { %2946 = vrot.lane.b32.xlu1 %v2921_v62, %s3984_s11  ;;  %v3358_v62 = vshll.u32 %v3333_v56, 16  ;;  %v3032_v5 = vld [vmem:[#allocation4 + $0x28] sm:$0xf]  ;;  %v3094_v7 = vrot.slane %v3092_v15, 5  ;;  %v3034_v58 = vld [vmem:[#allocation4 + $0x30] sm:$0xf] }
 0x25c   : > { %2948 = vrot.lane.b32.xlu2 %v2925_v19, %s3984_s11  ;;  %v3356_v19 = vrot.slane %v3355_v17, 4  ;;  %v2885_v56 = vld [vmem:[#allocation4 + $0x28] sm:$0xe]  ;;  %v3097_v17 = vshrl.u32 %v3032_v5, 16  ;;  %v3100_v59 = vshll.u32 %v3032_v5, 16  ;;  %v3111_v23 = vshrl.u32 %v3034_v58, 16 }
 0x25d   : > { %v3360_v38 = vrot.slane %v3358_v62, 5  ;;  %v2886_v6 = vld [vmem:[#allocation4 + $0x2c] sm:$0x1]  ;;  %v3287_v22 = vld [vmem:[#allocation4 + $0x30] sm:$0xf]  ;;  %v3862_v62 = vrot.slane %v2885_v56, 9  ;;  %v5288_v26 = vpop.permute.xlu2 %3313 }
 0x25e   : > { %v2725_v21 = vld [vmem:[#allocation4 + $0x2c] sm:$0x1]  ;;  %v3114_v9 = vshll.u32 %v3034_v58, 16  ;;  %v3099_v25 = vrot.slane %v3097_v17, 4  ;;  %v3102_v16 = vrot.slane %v3100_v59, 5  ;;  %vm2866_vm4 = vcmask 126016  }
 0x25f   : > { %3462 = vrot.lane.b32.xlu0 %v3375_v24, %s3990_s13  ;;  %v3361_v37 = vsel %vm4178_vm6, %v3356_v19, %v3360_v38  ;;  %v3083_v24 = vshrl.u32 %v3030_v32, 16  ;;  %v2932_v19 = vrot.slane %v2886_v6, 5  ;;  %v2843_v32 = vpop.permute.xlu1 %2842  ;;  %v2810_v38 = vshll.u32 %v2725_v21, 16  ;;  %v3033_v35 = vld [vmem:[#allocation4 + $0x2c] sm:$0x1] }
 0x260   : > { %2867 = vst.msk [vmem:[#allocation5] sm:$0xf] %vm2866_vm4, %v2843_v32  ;;  %v3502_v41 = vld [vmem:[#allocation4 + $0x34] sm:$0x1]  ;;  %v3113_v52 = vrot.slane %v3111_v23, 4  ;;  %vm2966_vm5 = vcmask 191616  }
 0x261   : > { %v3085_v49 = vrot.slane %v3083_v24, 4  ;;  %v3116_v24 = vrot.slane %v3114_v9, 5  ;;  %v2933_v30 = vsel %vm5092_vm14, %v3862_v62, %v2932_v19  ;;  %v2812_v51 = vrot.slane %v2810_v38, 5  ;;  %2967 = vst.msk [vmem:[#allocation5] sm:$0xf] %vm2966_vm5, %v2943_v18 }
 0x262   : > { %v3195_v44 = vld [vmem:[#allocation4 + $0x30] sm:$0xe]  ;;  %v3196_v5 = vld [vmem:[#allocation4 + $0x34] sm:$0x1]  ;;  %v3288_v21 = vld [vmem:[#allocation4 + $0x38] sm:$0xf] }
 0x263   : > { %2848 = vrot.lane.b32.xlu1 %v2785_v46, %s3982_s9  ;;  %v2798_v46 = vrot.slane %v2796_v14, 5  ;;  %v3089_v55 = vor.u32 %v3088_v29, %v3085_v49  ;;  %v3103_v14 = vor.u32 %v3102_v16, %v3099_v25  ;;  %v3543_v29 = vrot.slane %v3502_v41, 5  ;;  %v2887_v23 = vld [vmem:[#allocation4 + $0x30] sm:$0xe]  ;;  %v2888_v9 = vld [vmem:[#allocation4 + $0x34] sm:$0x1] }
 0x264   : > { %3251 = vrot.lane.b32.xlu2 %v3224_v0, %s3992_s16  ;;  %v3194_v0 = vld [vmem:[#allocation4 + $0x2c] sm:$0x1]  ;;  %v3117_v45 = vor.u32 %v3116_v24, %v3113_v52  ;;  %v3870_v56 = vrot.slane %v3195_v44, 9  ;;  %v3239_v17 = vrot.slane %v3196_v5, 5  ;;  %v2727_v19 = vld [vmem:[#allocation4 + $0x34] sm:$0x1] }
 0x265   : > { %v2799_v4 = vsel %vm4178_vm6, %v2794_v63, %v2798_v46  ;;  %v3235_v47 = vrot.slane %v3194_v0, 5  ;;  %v3090_v50 = vrot.slane %v3089_v55, 4  ;;  %v3106_v63 = vshll.u32 %v3033_v35, 16  ;;  %v3035_v46 = vld [vmem:[#allocation4 + $0x34] sm:$0x1]  ;;  %v5314_v35 = vpop.permute.xlu0 %3474 }
 0x266   : > { %v3104_v20 = vrot.slane %v3103_v14, 4  ;;  %v3120_v0 = vshll.u32 %v3035_v46, 16  ;;  %v3240_v62 = vsel %vm5092_vm14, %v3870_v56, %v3239_v17  ;;  %v3863_v38 = vrot.slane %v2887_v23, 9  ;;  %v2981_v52 = vld [vmem:[#allocation4 + $0x38] sm:$0xf] }
 0x267   : > { %3154 = vrot.lane.b32.xlu0 %v3067_v3, %s3987_s14  ;;  %v2801_v3 = vshrl.u32 %v2724_v60, 16  ;;  %v3236_v2 = vsel %vm5092_vm14, %v3869_v36, %v3235_v47  ;;  %v3095_v11 = vsel %vm4178_vm6, %v3090_v50, %v3094_v7  ;;  %v3108_v60 = vrot.slane %v3106_v63, 5  ;;  %v3341_v7 = vld [vmem:[#allocation4 + $0x34] sm:$0x1]  ;;  %v3036_v14 = vld [vmem:[#allocation4 + $0x38] sm:$0xf] }
 0x268   : > { %v3122_v50 = vrot.slane %v3120_v0, 5  ;;  %v3414_v59 = vshll.u32 %v3341_v7, 16  ;;  %v3503_v63 = vld [vmem:[#allocation4 + $0x38] sm:$0xe]  ;;  %v3125_v46 = vshrl.u32 %v3036_v14, 16  ;;  %vm3699_vm9 = vcmask 1043456  }
 0x269   : > { %v3197_v56 = vld [vmem:[#allocation4 + $0x38] sm:$0xe]  ;;  %v3198_v17 = vld [vmem:[#allocation4 + $0x3c] sm:$0x1] }
 0x26a   : > { %v3127_v44 = vrot.slane %v3125_v46, 4 }
 0x26b   : > { %3156 = vrot.lane.b32.xlu1 %v3081_v57, %s3987_s14  ;;  %v2806_v57 = vrot.slane %v2804_v43, 5  ;;  %v3109_v43 = vsel %vm4178_vm6, %v3104_v20, %v3108_v60  ;;  %v2889_v20 = vld [vmem:[#allocation4 + $0x38] sm:$0xe] }
 0x26c   : > { %3303 = vrot.lane.b32.xlu2 %v3285_v40, %s3989_s12  ;;  %v2803_v40 = vrot.slane %v2801_v3, 4  ;;  %v2726_v3 = vld [vmem:[#allocation4 + $0x30] sm:$0xf] }
 0x26d   : > { %v2815_v18 = vshrl.u32 %v2726_v3, 16 }
 0x26f   : > { %2846 = vrot.lane.b32.xlu0 %v2771_v8, %s3982_s9  ;;  %v2807_v8 = vor.u32 %v2806_v57, %v2803_v40  ;;  %v5301_v40 = vpop.permute.xlu2 %2995  ;;  %v2817_v58 = vrot.slane %v2815_v18, 4 }
 0x271   : > { %v2808_v28 = vrot.slane %v2807_v8, 4  ;;  %v3416_v8 = vrot.slane %v3414_v59, 5 }
 0x273   : > { %2950 = vrot.lane.b32.xlu1 %v2929_v39, %s3984_s11  ;;  %v2980_v39 = vld [vmem:[#allocation4 + $0x30] sm:$0xf] }
 0x274   : > { %3460 = vrot.lane.b32.xlu2 %v3361_v37, %s3990_s13  ;;  %v3501_v37 = vld [vmem:[#allocation4 + $0x30] sm:$0xe] }
 0x275   : > { %v3877_v49 = vrot.slane %v3501_v37, 9  ;;  %v3342_v37 = vld [vmem:[#allocation4 + $0x38] sm:$0xf] }
 0x276   : > { %v3419_v24 = vshrl.u32 %v3342_v37, 16 }
 0x277   : > { %2999 = vrot.lane.b32.xlu0 %v2979_v31, %s3980_s7  ;;  %v3340_v31 = vld [vmem:[#allocation4 + $0x30] sm:$0xf]  ;;  %v3544_v15 = vsel %vm5092_vm14, %v3877_v49, %v3543_v29  ;;  %v3504_v29 = vld [vmem:[#allocation4 + $0x3c] sm:$0x1] }
 0x278   : > { %v3408_v55 = vshll.u32 %v3340_v31, 16  ;;  %v3421_v0 = vrot.slane %v3419_v24, 4 }
 0x27a   : > { %v3410_v47 = vrot.slane %v3408_v55, 5  ;;  %v3878_v55 = vrot.slane %v3503_v63, 9 }
 0x27b   : > { %3255 = vrot.lane.b32.xlu1 %v3232_v53, %s3992_s16  ;;  %v2813_v53 = vsel %vm4178_vm6, %v2808_v28, %v2812_v51  ;;  %v2824_v28 = vshll.u32 %v2727_v19, 16  ;;  %v5319_v51 = vpop.permute.xlu1 %3571  ;;  %v3871_v19 = vrot.slane %v3197_v56, 9 }
 0x27c   : > { %2850 = vrot.lane.b32.xlu2 %v2799_v4, %s3982_s9  ;;  %v3405_v4 = vshrl.u32 %v3340_v31, 16 }
 0x27d   : > { %v2826_v49 = vrot.slane %v2824_v28, 5 }
 0x27e   : > { %v3407_v36 = vrot.slane %v3405_v4, 4 }
 0x27f   : > { %3305 = vrot.lane.b32.xlu0 %v3286_v1, %s3989_s12  ;;  %v3118_v1 = vrot.slane %v3117_v45, 4 }
 0x281   : > { %v3123_v57 = vsel %vm4178_vm6, %v3118_v1, %v3122_v50  ;;  %v2890_v1 = vld [vmem:[#allocation4 + $0x3c] sm:$0x1] }
 0x282   : > { %v3343_v50 = vld [vmem:[#allocation4 + $0x3c] sm:$0x1]  ;;  %v2940_v7 = vrot.slane %v2890_v1, 5 }
 0x283   : > { %3257 = vrot.lane.b32.xlu1 %v3236_v2, %s3992_s16  ;;  %v2818_v2 = vshll.u32 %v2726_v3, 16  ;;  %v3428_v59 = vshll.u32 %v3343_v50, 16 }
 0x284   : > { %3158 = vrot.lane.b32.xlu2 %v3095_v11, %s3987_s14  ;;  %v3411_v11 = vor.u32 %v3410_v47, %v3407_v36  ;;  %v2728_v36 = vld [vmem:[#allocation4 + $0x38] sm:$0xf]  ;;  %v3289_v47 = vld [vmem:[#allocation4 + $0x40] sm:$0xf] }
 0x285   : > { %v2820_v6 = vrot.slane %v2818_v2, 5  ;;  %v2829_v2 = vshrl.u32 %v2728_v36, 16 }
 0x287   : > { %3307 = vrot.lane.b32.xlu0 %v3287_v22, %s3989_s12  ;;  %v3412_v22 = vrot.slane %v3411_v11, 4  ;;  %v2821_v25 = vor.u32 %v2820_v6, %v2817_v58  ;;  %v3037_v6 = vld [vmem:[#allocation4 + $0x3c] sm:$0x1]  ;;  %v2831_v23 = vrot.slane %v2829_v2, 4  ;;  %v3039_v2 = vld [vmem:[#allocation4 + $0x44] sm:$0x1] }
 0x289   : > { %v3417_v32 = vsel %vm4178_vm6, %v3412_v22, %v3416_v8  ;;  %v2822_v41 = vrot.slane %v2821_v25, 4  ;;  %v3243_v25 = vrot.slane %v3198_v17, 5 }
 0x28b   : > { %3001 = vrot.lane.b32.xlu1 %v2980_v39, %s3980_s7  ;;  %v2936_v39 = vrot.slane %v2888_v9, 5  ;;  %v2827_v4 = vsel %vm4178_vm6, %v2822_v41, %v2826_v49  ;;  %v2729_v41 = vld [vmem:[#allocation4 + $0x3c] sm:$0x1] }
 0x28c   : > { %2952 = vrot.lane.b32.xlu2 %v2933_v30, %s3984_s11  ;;  %v3422_v30 = vshll.u32 %v3342_v37, 16  ;;  %v2838_v46 = vshll.u32 %v2729_v41, 16 }
 0x28d   : > { %v2937_v31 = vsel %vm5092_vm14, %v3863_v38, %v2936_v39  ;;  %v3134_v38 = vshll.u32 %v3037_v6, 16  ;;  %v3344_v39 = vld [vmem:[#allocation4 + $0x40] sm:$0xf] }
 0x28e   : > { %v3424_v60 = vrot.slane %v3422_v30, 5  ;;  %v3433_v63 = vshrl.u32 %v3344_v39, 16  ;;  %v3436_v49 = vshll.u32 %v3344_v39, 16 }
 0x28f   : > { %2852 = vrot.lane.b32.xlu0 %v2813_v53, %s3982_s9  ;;  %v3128_v53 = vshll.u32 %v3036_v14, 16 }
 0x290   : > { %v3425_v18 = vor.u32 %v3424_v60, %v3421_v0  ;;  %v3199_v60 = vld [vmem:[#allocation4 + $0x40] sm:$0xe] }
 0x291   : > { %v3130_v5 = vrot.slane %v3128_v53, 5 }
 0x292   : > { %v3426_v8 = vrot.slane %v3425_v18, 4  ;;  %v3872_v18 = vrot.slane %v3199_v60, 9 }
 0x293   : > { %3565 = vrot.lane.b32.xlu1 %v3544_v15, %s3991_s15  ;;  %v3547_v15 = vrot.slane %v3504_v29, 5  ;;  %v3136_v29 = vrot.slane %v3134_v38, 5 }
 0x294   : > { %3160 = vrot.lane.b32.xlu2 %v3109_v43, %s3987_s14  ;;  %v3864_v43 = vrot.slane %v2889_v20, 9 }
 0x295   : > { %v3548_v11 = vsel %vm5092_vm14, %v3878_v55, %v3547_v15 }
 0x297   : > { %3162 = vrot.lane.b32.xlu0 %v3123_v57, %s3987_s14  ;;  %v2832_v57 = vshll.u32 %v2728_v36, 16  ;;  %v3200_v36 = vld [vmem:[#allocation4 + $0x44] sm:$0x1] }
 0x298   : > { %v3247_v17 = vrot.slane %v3200_v36, 5 }
 0x299   : > { %v2834_v9 = vrot.slane %v2832_v57, 5 }
 0x29a   : > { %v3248_v39 = vsel %vm5092_vm14, %v3872_v18, %v3247_v17  ;;  %v3498_v18 = vld [vmem:[#allocation4 + $0x24] sm:$0x1] }
 0x29b   : > { %3309 = vrot.lane.b32.xlu1 %v3288_v21, %s3989_s12  ;;  %v3131_v21 = vor.u32 %v3130_v5, %v3127_v44  ;;  %v2835_v24 = vor.u32 %v2834_v9, %v2831_v23 }
 0x29c   : > { %3259 = vrot.lane.b32.xlu2 %v3240_v62, %s3992_s16  ;;  %v2941_v62 = vsel %vm5092_vm14, %v3864_v43, %v2940_v7  ;;  %v2840_v43 = vrot.slane %v2838_v46, 5 }
 0x29d   : > { %v3132_v28 = vrot.slane %v3131_v21, 4  ;;  %v2836_v0 = vrot.slane %v2835_v24, 4  ;;  %v2982_v21 = vld [vmem:[#allocation4 + $0x40] sm:$0xf] }
 0x29e   : > { %v2845_v16 = vpop.permute.xlu2 %2844  ;;  %v3505_v24 = vld [vmem:[#allocation4 + $0x40] sm:$0xe] }
 0x29f   : > { %2868 = vst.msk [vmem:[#allocation5 + $0x4] sm:$0xf] %vm2866_vm4, %v2845_v16  ;;  %3468 = vrot.lane.b32.xlu0 %v3417_v32, %s3990_s13  ;;  %v3038_v16 = vld [vmem:[#allocation4 + $0x40] sm:$0xf]  ;;  %v3430_v32 = vrot.slane %v3428_v59, 5  ;;  %v3137_v20 = vsel %vm4178_vm6, %v3132_v28, %v3136_v29  ;;  %v2841_v56 = vsel %vm4178_vm6, %v2836_v0, %v2840_v43 }
 0x2a0   : > { %v3139_v30 = vshrl.u32 %v3038_v16, 16  ;;  %v3142_v14 = vshll.u32 %v3038_v16, 16  ;;  %v3345_v59 = vld [vmem:[#allocation4 + $0x44] sm:$0x1] }
 0x2a1   : > { %v3337_v29 = vld [vmem:[#allocation4 + $0x24] sm:$0x1] }
 0x2a2   : > { %v3141_v15 = vrot.slane %v3139_v30, 4  ;;  %v3144_v1 = vrot.slane %v3142_v14, 5  ;;  %v3506_v30 = vld [vmem:[#allocation4 + $0x44] sm:$0x1]  ;;  %v3934_v14 = vld [vmem:[%s5514_s2 + $0x18] sm:$0xff]  ;;  %v3386_v36 = vshll.u32 %v3337_v29, 16 }
 0x2a3   : > { %3003 = vrot.lane.b32.xlu1 %v2981_v52, %s3980_s7  ;;  %v3431_v52 = vsel %vm4178_vm6, %v3426_v8, %v3430_v32  ;;  %v3148_v8 = vshll.u32 %v3039_v2, 16  ;;  %v3932_v2 = vld [vmem:[%s5514_s2 + $0x8] sm:$0xff] }
 0x2a4   : > { %2954 = vrot.lane.b32.xlu2 %v2937_v31, %s3984_s11  ;;  %v3244_v31 = vsel %vm5092_vm14, %v3871_v19, %v3243_v25  ;;  %v3442_v19 = vshll.u32 %v3345_v59, 16 }
 0x2a6   : > { %v3153_v45 = vpop.permute.xlu2 %3152 }
 0x2a7   : > { %2854 = vrot.lane.b32.xlu0 %v2827_v4, %s3982_s9  ;;  %v3336_v4 = vld [vmem:[#allocation4 + $0x20] sm:$0xf] }
 0x2a8   : > { %v3377_v44 = vshrl.u32 %v3336_v4, 16  ;;  %v3380_v5 = vshll.u32 %v3336_v4, 16  ;;  %v3551_v4 = vrot.slane %v3506_v30, 5 }
 0x2a9   : > { %v2992_v3 = vpop.permute.xlu0 %2991 }
 0x2aa   : > { %3016 = vst.msk [vmem:[#allocation5] sm:$0xf] %vm3015_vm1, %v2992_v3  ;;  %v3438_v3 = vrot.slane %v3436_v49, 5  ;;  %v3379_v16 = vrot.slane %v3377_v44, 4  ;;  %v3382_v32 = vrot.slane %v3380_v5, 5 }
 0x2ab   : > { %3311 = vrot.lane.b32.xlu1 %v3289_v47, %s3989_s12  ;;  %3177 = vst.msk [vmem:[#allocation5] sm:$0xf] %vm3176_vm12, %v3153_v45  ;;  %v3338_v45 = vld [vmem:[#allocation4 + $0x28] sm:$0xf]  ;;  %v3435_v47 = vrot.slane %v3433_v63, 4  ;;  %v3444_v63 = vrot.slane %v3442_v19, 5 }
 0x2ac   : > { %3567 = vrot.lane.b32.xlu2 %v3548_v11, %s3991_s15  ;;  %v3391_v50 = vshrl.u32 %v3338_v45, 16  ;;  %v3394_v57 = vshll.u32 %v3338_v45, 16  ;;  %v3606_v11 = vld [vmem:[%s5514_s2 + $0x20] sm:$0xf]  ;;  %v3879_v45 = vrot.slane %v3505_v24, 9  ;;  %v3383_v0 = vor.u32 %v3382_v32, %v3379_v16 }
 0x2ad   : > { %v3250_v58 = vpop.permute.xlu1 %3249  ;;  %v3644_v6 = vunpack.c.l.b16 %v3606_v11 }
 0x2ae   : > { %v5331_v22 = vpop.permute.xlu2 %3559  ;;  %3274 = vst.msk [vmem:[#allocation5] sm:$0xf] %vm3273_vm0, %v3250_v58  ;;  %v3145_v58 = vor.u32 %v3144_v1, %v3141_v15  ;;  %v3393_v25 = vrot.slane %v3391_v50, 4  ;;  %v3396_v28 = vrot.slane %v3394_v57, 5  ;;  %v3933_v1 = vld [vmem:[%s5514_s2 + $0x10] sm:$0xff]  ;;  %v3552_v50 = vsel %vm5092_vm14, %v3879_v45, %v3551_v4 }
 0x2af   : > { %2956 = vrot.lane.b32.xlu0 %v2941_v62, %s3984_s11  ;;  %v3439_v62 = vor.u32 %v3438_v3, %v3435_v47  ;;  %v3649_v23 = vpack.c.b16 %v3644_v6, %v3644_v6  ;;  %v3384_v44 = vrot.slane %v3383_v0, 4  ;;  %v3388_v57 = vrot.slane %v3386_v36, 5 }
 0x2b0   : > { %v3397_v15 = vor.u32 %v3396_v28, %v3393_v25 }
 0x2b1   : > { %v2945_v37 = vpop.permute.xlu0 %2944  ;;  %v3701_v41 = vsel %vm3699_vm9, %v3649_v23, 0  ;;  %v3389_v17 = vsel %vm4178_vm6, %v3384_v44, %v3388_v57 }
 0x2b2   : > { %2968 = vst.msk [vmem:[#allocation5 + $0x4] sm:$0xf] %vm2966_vm5, %v2945_v37  ;;  %v3146_v37 = vrot.slane %v3145_v58, 4  ;;  %3706 = vmatpush.bf16.msra.mxu1 %v3701_v41  ;;  %3938 = vmatpush.bf16.msra.mxu2 %v3701_v41  ;;  %v3398_v5 = vrot.slane %v3397_v15, 4  ;;  %v3535_v58 = vrot.slane %v3498_v18, 5 }
 0x2b3   : > { %3470 = vrot.lane.b32.xlu1 %v3431_v52, %s3990_s13  ;;  %v3440_v52 = vrot.slane %v3439_v62, 4  ;;  %v3500_v62 = vld [vmem:[#allocation4 + $0x2c] sm:$0x1] }
 0x2b4   : > { %3261 = vrot.lane.b32.xlu2 %v3244_v31, %s3992_s16  ;;  %v3150_v31 = vrot.slane %v3148_v8, 5  ;;  %v3931_v8 = vld [vmem:[%s5514_s2] sm:$0xff]  ;;  %v3539_v25 = vrot.slane %v3500_v62, 5 }
 0x2b5   : > { %v5344_v53 = vpop.permute.xlu1 %3301  ;;  %v3445_v60 = vsel %vm4178_vm6, %v3440_v52, %v3444_v63 }
 0x2b6   : > { %v5346_v55 = vpop.permute.xlu2 %2948  ;;  %v3151_v46 = vsel %vm4178_vm6, %v3146_v37, %v3150_v31  ;;  %3707 = vmatpush.bf16.msra.mxu1 %v3934_v14  ;;  %3939 = vmatpush.bf16.msra.mxu2 %v3934_v14 }
 0x2b7   : > { %3164 = vrot.lane.b32.xlu0 %v3137_v20, %s3987_s14  ;;  %v3339_v20 = vld [vmem:[#allocation4 + $0x2c] sm:$0x1] }
 0x2b8   : > { %v3400_v3 = vshll.u32 %v3339_v20, 16 }
 0x2b9   : > { %v3300_v7 = vpop.permute.xlu0 %3299 }
 0x2ba   : > { %3324 = vst.msk [vmem:[#allocation5] sm:$0xf] %vm3323_vm15, %v3300_v7  ;;  %v3497_v7 = vld [vmem:[#allocation4 + $0x20] sm:$0xe]  ;;  %3708 = vmatpush.bf16.msra.mxu1 %v3933_v1  ;;  %3940 = vmatpush.bf16.msra.mxu2 %v3933_v1  ;;  %v3402_v11 = vrot.slane %v3400_v3, 5 }
 0x2bb   : > { %2856 = vrot.lane.b32.xlu1 %v2841_v56, %s3982_s9  ;;  %v3875_v59 = vrot.slane %v3497_v7, 9 }
 0x2bc   : > { %3005 = vrot.lane.b32.xlu2 %v2982_v21, %s3980_s7  ;;  %v3403_v6 = vsel %vm4178_vm6, %v3398_v5, %v3402_v11  ;;  %v3499_v21 = vld [vmem:[#allocation4 + $0x28] sm:$0xe]  ;;  %vm3686_vm6 = vcmask 588800  }
 0x2bd   : > { %v2994_v9 = vpop.permute.xlu1 %2993  ;;  %v3536_v33 = vsel %vm5092_vm14, %v3875_v59, %v3535_v58  ;;  %v3876_v19 = vrot.slane %v3499_v21, 9 }
 0x2be   : > { %v5359_v38 = vpop.permute.xlu2 %3251  ;;  %3017 = vst.msk [vmem:[#allocation5 + $0x4] sm:$0xf] %vm3015_vm1, %v2994_v9  ;;  %3709 = vmatpush.bf16.msra.mxu1 %v3932_v2  ;;  %3941 = vmatpush.bf16.msra.mxu2 %v3932_v2 }
 0x2bf   : > { %3263 = vrot.lane.b32.xlu0 %v3248_v39, %s3992_s16  ;;  %v3540_v32 = vsel %vm5092_vm14, %v3876_v19, %v3539_v25  ;;  %vm3732_vm14 = vcmask 64512  }
 0x2c1   : > { %v5368_v49 = vpop.permute.xlu0 %3253 }
 0x2c2   : > { %3710 = vmatpush.bf16.msra.mxu1 %v3931_v8  ;;  %3942 = vmatpush.bf16.msra.mxu2 %v3931_v8 }
 0x2c3   : > { %3166 = vrot.lane.b32.xlu1 %v3151_v46, %s3987_s14 }
 0x2c4   : > { %3472 = vrot.lane.b32.xlu2 %v3445_v60, %s3990_s13 }
 0x2c5   : > { %v3558_v47 = vpop.permute.xlu1 %3557 }
 0x2c6   : > { %v5379_v43 = vpop.permute.xlu2 %3303 }
 0x2c7   : > { %3569 = vrot.lane.b32.xlu0 %v3552_v50, %s3991_s15 }
 0x2c9   : > { %v2998_v56 = vpop.permute.xlu0 %2997 }
 0x2cb   : > { %3464 = vrot.lane.b32.xlu1 %v3389_v17, %s3990_s13 }
 0x2cc   : > { %3466 = vrot.lane.b32.xlu2 %v3403_v6, %s3990_s13 }
 0x2cd   : > { %v2947_v23 = vpop.permute.xlu1 %2946 }
 0x2ce   : > { %v3461_v9 = vpop.permute.xlu2 %3460 }
 0x2cf   : > { %3485 = vst.msk [vmem:[#allocation5] sm:$0xf] %vm3484_vm10, %v3461_v9  ;;  %3561 = vrot.lane.b32.xlu0 %v3536_v33, %s3991_s15 }
 0x2d0   : > { %3582 = vst.msk [vmem:[#allocation5] sm:$0xf] %vm3581_vm2, %v3558_v47 }
 0x2d1   : > { %v3463_v16 = vpop.permute.xlu0 %3462 }
 0x2d3   : > { %3563 = vrot.lane.b32.xlu1 %v3540_v32, %s3991_s15 }
 0x2d4   : > { %3662 = vrot.lane.b32.xlu2 %v5176_v10, %s3993_s25 }
 0x2d5   : > { %v2849_v39 = vpop.permute.xlu1 %2848 }
 0x2d6   : > { %v2851_v37 = vpop.permute.xlu2 %2850  ;;  %2870 = vst.msk [vmem:[#allocation5 + $0xc] sm:$0xf] %vm2866_vm4, %v2849_v39 }
 0x2d7   : > { %2871 = vst.msk [vmem:[#allocation5 + $0x10] sm:$0xf] %vm2866_vm4, %v2851_v37  ;;  %3664 = vrot.lane.b32.xlu0 %v5182_v12, %s3993_s25 }
 0x2d8   : > { %2970 = vst.msk [vmem:[#allocation5 + $0xc] sm:$0xf] %vm2966_vm5, %v5346_v55 }
 0x2d9   : > { %3019 = vst.msk [vmem:[#allocation5 + $0xc] sm:$0xf] %vm3015_vm1, %v2998_v56  ;;  %v3155_v34 = vpop.permute.xlu0 %3154 }
 0x2da   : > { %3178 = vst.msk [vmem:[#allocation5 + $0x4] sm:$0xf] %vm3176_vm12, %v3155_v34 }
 0x2db   : > { %3275 = vst.msk [vmem:[#allocation5 + $0x4] sm:$0xf] %vm3273_vm0, %v5359_v38  ;;  %3666 = vrot.lane.b32.xlu1 %v5085_v42, %s3993_s25 }
 0x2dc   : > { %3668 = vrot.lane.b32.xlu2 %v5100_v54, %s3993_s25  ;;  %3325 = vst.msk [vmem:[#allocation5 + $0x4] sm:$0xf] %vm3323_vm15, %v5344_v53 }
 0x2dd   : > { %3486 = vst.msk [vmem:[#allocation5 + $0x4] sm:$0xf] %vm3484_vm10, %v3463_v16  ;;  %v3157_v10 = vpop.permute.xlu1 %3156 }
 0x2de   : > { %3583 = vst.msk [vmem:[#allocation5 + $0x4] sm:$0xf] %vm3581_vm2, %v5331_v22  ;;  %v3159_v12 = vpop.permute.xlu2 %3158 }
 0x2df   : > { %3180 = vst.msk [vmem:[#allocation5 + $0xc] sm:$0xf] %vm3176_vm12, %v3159_v12  ;;  %3670 = vrot.lane.b32.xlu0 %v5127_v48, %s3993_s25 }
 0x2e1   : > { %v2847_v55 = vpop.permute.xlu0 %2846 }
 0x2e2   : > { %2869 = vst.msk [vmem:[#allocation5 + $0x8] sm:$0xf] %vm2866_vm4, %v2847_v55 }
 0x2e3   : > { %2969 = vst.msk [vmem:[#allocation5 + $0x8] sm:$0xf] %vm2966_vm5, %v2947_v23  ;;  %3672 = vrot.lane.b32.xlu1 %v5132_v61, %s3993_s25 }
 0x2e4   : > { %3674 = vrot.lane.b32.xlu2 %v5180_v27, %s3993_s25  ;;  %3018 = vst.msk [vmem:[#allocation5 + $0x8] sm:$0xf] %vm3015_vm1, %v5301_v40 }
 0x2e5   : > { %3179 = vst.msk [vmem:[#allocation5 + $0x8] sm:$0xf] %vm3176_vm12, %v3157_v10  ;;  %v2951_v42 = vpop.permute.xlu1 %2950  ;;  %v3927_v54 = vld [vmem:[#allocation5] sm:$0xff] }
 0x2e6   : > { %v2953_v48 = vpop.permute.xlu2 %2952  ;;  %3276 = vst.msk [vmem:[#allocation5 + $0x8] sm:$0xf] %vm3273_vm0, %v5368_v49  ;;  %3913 = vmatmul.msk.bf16.vlgmr.msra.gmra.mxu1 %vm3686_vm6, %v3927_v54 }
 0x2e7   : > { %3326 = vst.msk [vmem:[#allocation5 + $0x8] sm:$0xf] %vm3323_vm15, %v5379_v43  ;;  %3676 = vrot.lane.b32.xlu0 %v5192_v13, %s3993_s25 }
 0x2e8   : > { %2971 = vst.msk [vmem:[#allocation5 + $0x10] sm:$0xf] %vm2966_vm5, %v2951_v42 }
 0x2e9   : > { %v3000_v61 = vpop.permute.xlu0 %2999 }
 0x2ea   : > { %3020 = vst.msk [vmem:[#allocation5 + $0x10] sm:$0xf] %vm3015_vm1, %v3000_v61 }
 0x2ed   : > { %v3256_v27 = vpop.permute.xlu1 %3255 }
 0x2ee   : > { %v3161_v40 = vpop.permute.xlu2 %3160  ;;  %3277 = vst.msk [vmem:[#allocation5 + $0xc] sm:$0xf] %vm3273_vm0, %v3256_v27 }
 0x2ef   : > { %3181 = vst.msk [vmem:[#allocation5 + $0x10] sm:$0xf] %vm3176_vm12, %v3161_v40 }
 0x2f1   : > { %v3306_v22 = vpop.permute.xlu0 %3305 }
 0x2f2   : > { %3327 = vst.msk [vmem:[#allocation5 + $0xc] sm:$0xf] %vm3323_vm15, %v3306_v22 }
 0x2f5   : > { %v3258_v53 = vpop.permute.xlu1 %3257 }
 0x2f6   : > { %v3260_v38 = vpop.permute.xlu2 %3259  ;;  %3278 = vst.msk [vmem:[#allocation5 + $0x10] sm:$0xf] %vm3273_vm0, %v3258_v53 }
 0x2f9   : > { %v3308_v13 = vpop.permute.xlu0 %3307 }
 0x2fa   : > { %3328 = vst.msk [vmem:[#allocation5 + $0x10] sm:$0xf] %vm3323_vm15, %v3308_v13 }
 0x2fd   : > { %v3002_v28 = vpop.permute.xlu1 %3001 }
 0x2fe   : > { %v2955_v41 = vpop.permute.xlu2 %2954 }
 0x301   : > { %v2853_v52 = vpop.permute.xlu0 %2852 }
 0x302   : > { %2872 = vst.msk [vmem:[#allocation5 + $0x14] sm:$0xf] %vm2866_vm4, %v2853_v52 }
 0x303   : > { %2972 = vst.msk [vmem:[#allocation5 + $0x14] sm:$0xf] %vm2966_vm5, %v2953_v48 }
 0x304   : > { %3021 = vst.msk [vmem:[#allocation5 + $0x14] sm:$0xf] %vm3015_vm1, %v3002_v28 }
 0x305   : > { %v3566_v24 = vpop.permute.xlu1 %3565 }
 0x306   : > { %v3568_v30 = vpop.permute.xlu2 %3567 }
 0x309   : > { %v3163_v14 = vpop.permute.xlu0 %3162 }
 0x30a   : > { %3182 = vst.msk [vmem:[#allocation5 + $0x14] sm:$0xf] %vm3176_vm12, %v3163_v14 }
 0x30b   : > { %3279 = vst.msk [vmem:[#allocation5 + $0x14] sm:$0xf] %vm3273_vm0, %v3260_v38 }
 0x30d   : > { %v3310_v31 = vpop.permute.xlu1 %3309 }
 0x30e   : > { %v3262_v63 = vpop.permute.xlu2 %3261  ;;  %3329 = vst.msk [vmem:[#allocation5 + $0x14] sm:$0xf] %vm3323_vm15, %v3310_v31 }
 0x311   : > { %v3469_v49 = vpop.permute.xlu0 %3468 }
 0x312   : > { %3489 = vst.msk [vmem:[#allocation5 + $0x10] sm:$0xf] %vm3484_vm10, %v3469_v49 }
 0x313   : > { %3586 = vst.msk [vmem:[#allocation5 + $0x10] sm:$0xf] %vm3581_vm2, %v3566_v24 }
 0x315   : > { %v3004_v29 = vpop.permute.xlu1 %3003 }
 0x316   : > { %v3006_v46 = vpop.permute.xlu2 %3005 }
 0x319   : > { %v2855_v45 = vpop.permute.xlu0 %2854 }
 0x31a   : > { %2873 = vst.msk [vmem:[#allocation5 + $0x18] sm:$0xf] %vm2866_vm4, %v2855_v45 }
 0x31b   : > { %2973 = vst.msk [vmem:[#allocation5 + $0x18] sm:$0xf] %vm2966_vm5, %v2955_v41 }
 0x31c   : > { %3022 = vst.msk [vmem:[#allocation5 + $0x18] sm:$0xf] %vm3015_vm1, %v3004_v29 }
 0x31d   : > { %v3312_v4 = vpop.permute.xlu1 %3311 }
 0x31e   : > { %v3473_v20 = vpop.permute.xlu2 %3472 }
 0x321   : > { %v2957_v0 = vpop.permute.xlu0 %2956 }
 0x325   : > { %v3471_v60 = vpop.permute.xlu1 %3470 }
 0x326   : > { %v3467_v15 = vpop.permute.xlu2 %3466  ;;  %3490 = vst.msk [vmem:[#allocation5 + $0x14] sm:$0xf] %vm3484_vm10, %v3471_v60 }
 0x327   : > { %3488 = vst.msk [vmem:[#allocation5 + $0xc] sm:$0xf] %vm3484_vm10, %v3467_v15 }
 0x328   : > { %3587 = vst.msk [vmem:[#allocation5 + $0x14] sm:$0xf] %vm3581_vm2, %v3568_v30 }
 0x329   : > { %v3165_v1 = vpop.permute.xlu0 %3164 }
 0x32a   : > { %3183 = vst.msk [vmem:[#allocation5 + $0x18] sm:$0xf] %vm3176_vm12, %v3165_v1 }
 0x32b   : > { %3280 = vst.msk [vmem:[#allocation5 + $0x18] sm:$0xf] %vm3273_vm0, %v3262_v63 }
 0x32c   : > { %3330 = vst.msk [vmem:[#allocation5 + $0x18] sm:$0xf] %vm3323_vm15, %v3312_v4 }
 0x32d   : > { %3491 = vst.msk [vmem:[#allocation5 + $0x18] sm:$0xf] %vm3484_vm10, %v3473_v20  ;;  %v2857_v36 = vpop.permute.xlu1 %2856 }
 0x32e   : > { %2874 = vst.msk [vmem:[#allocation5 + $0x1c] sm:$0xf] %vm2866_vm4, %v2857_v36 }
 0x32f   : > { %2974 = vst.msk [vmem:[#allocation5 + $0x1c] sm:$0xf] %vm2966_vm5, %v2957_v0  ;;  %v3929_v47 = vld [vmem:[#allocation5 + $0x10] sm:$0xff] }
 0x330   : > { %3023 = vst.msk [vmem:[#allocation5 + $0x1c] sm:$0xf] %vm3015_vm1, %v3006_v46  ;;  %3915 = vmatmul.msk.bf16.vlgmr.msra.gmra.mxu2 %vm3686_vm6, %v3929_v47 }
 0x331   : > { %v3264_v3 = vpop.permute.xlu0 %3263 }
 0x335   : > { %v3167_v43 = vpop.permute.xlu1 %3166 }
 0x336   : > { %3184 = vst.msk [vmem:[#allocation5 + $0x1c] sm:$0xf] %vm3176_vm12, %v3167_v43 }
 0x337   : > { %3281 = vst.msk [vmem:[#allocation5 + $0x1c] sm:$0xf] %vm3273_vm0, %v3264_v3 }
 0x338   : > { %3331 = vst.msk [vmem:[#allocation5 + $0x1c] sm:$0xf] %vm3323_vm15, %v5288_v26 }
 0x339   : > { %3492 = vst.msk [vmem:[#allocation5 + $0x1c] sm:$0xf] %vm3484_vm10, %v5314_v35  ;;  %v3570_v50 = vpop.permute.xlu0 %3569  ;;  %v3663_v35 = vpop.permute.xlu2 %3662 }
 0x33a   : > { %3589 = vst.msk [vmem:[#allocation5 + $0x1c] sm:$0xf] %vm3581_vm2, %v5319_v51 }
 0x33b   : > { %3588 = vst.msk [vmem:[#allocation5 + $0x18] sm:$0xf] %vm3581_vm2, %v3570_v50 }
 0x33d   : > { %v3465_v44 = vpop.permute.xlu1 %3464 }
 0x33e   : > { %3487 = vst.msk [vmem:[#allocation5 + $0x8] sm:$0xf] %vm3484_vm10, %v3465_v44 }
 0x341   : > { %v3562_v5 = vpop.permute.xlu0 %3561  ;;  %v3669_v8 = vpop.permute.xlu2 %3668 }
 0x342   : > { %3584 = vst.msk [vmem:[#allocation5 + $0x8] sm:$0xf] %vm3581_vm2, %v3562_v5  ;;  %v3930_v7 = vld [vmem:[#allocation5 + $0x18] sm:$0xff] }
 0x343   : > { %3916 = vmatmul.msk.bf16.gmra.mxu2 %vm3686_vm6, %v3930_v7 }
 0x345   : > { %v3564_v18 = vpop.permute.xlu1 %3563 }
 0x346   : > { %3585 = vst.msk [vmem:[#allocation5 + $0xc] sm:$0xf] %vm3581_vm2, %v3564_v18 }
 0x349   : > { %v3665_v57 = vpop.permute.xlu0 %3664  ;;  %v3675_v9 = vpop.permute.xlu2 %3674 }
 0x34d   : > { %v3928_v26 = vld [vmem:[#allocation5 + $0x8] sm:$0xff]  ;;  %v3667_v17 = vpop.permute.xlu1 %3666 }
 0x34e   : > { %3914 = vmatmul.msk.bf16.gmra.mxu1 %vm3686_vm6, %v3928_v26 }
 0x351   : > { %v3671_v59 = vpop.permute.xlu0 %3670 }
 0x355   : > { %v3673_v21 = vpop.permute.xlu1 %3672 }
 0x359   : > { %v3677_v32 = vpop.permute.xlu0 %3676 }
 0x363   : > { %v3712_v51 = vpop.f32.mrf.mxu1 }
 0x364   : > { %v3713_v2 = vadd.f32 %v3712_v51, %v3663_v35 }
 0x366   : > { %3733 = vst.msk [vmem:[%s5491_s29] sm:$0xff] %vm3732_vm14, %v3713_v2 }
 0x36b   : > { %v3714_v11 = vpop.f32.mrf.mxu1 }
 0x36c   : > { %v3715_v56 = vadd.f32 %v3714_v11, %v3665_v57 }
 0x36e   : > { %3734 = vst.msk [vmem:[%s5491_s29 + $0x8] sm:$0xff] %vm3732_vm14, %v3715_v56 }
 0x3b3   : > { %v3722_v58 = vpop.f32.mrf.mxu2 }
 0x3b4   : > { %v3723_v6 = vadd.f32 %v3722_v58, %v3671_v59 }
 0x3b6   : > { %3737 = vst.msk [vmem:[%s5491_s29 + $0x20] sm:$0xff] %vm3732_vm14, %v3723_v6 }
 0x3bb   : > { %v3724_v62 = vpop.f32.mrf.mxu2 }
 0x3bc   : > { %v3725_v23 = vadd.f32 %v3724_v62, %v3673_v21 }
 0x3be   : > { %3738 = vst.msk [vmem:[%s5491_s29 + $0x28] sm:$0xff] %vm3732_vm14, %v3725_v23 }
 0x3c6   : > { %v3727_v33 = vpop.f32.mrf.mxu2 }
 0x3c7   : > { %v3728_v19 = vadd.f32 %v3727_v33, %v3675_v9 }
 0x3c9   : > { %3739 = vst.msk [vmem:[%s5491_s29 + $0x30] sm:$0xff] %vm3732_vm14, %v3728_v19 }
 0x3cb   : > { %v3717_v25 = vpop.f32.mrf.mxu1 }
 0x3cc   : > { %v3718_v16 = vadd.f32 %v3717_v25, %v3667_v17 }
 0x3ce   : > { %3735 = vst.msk [vmem:[%s5491_s29 + $0x10] sm:$0xff] %vm3732_vm14, %v3718_v16  ;;  %v3729_v39 = vpop.f32.mrf.mxu2 }
 0x3cf   : > { %v3730_v37 = vadd.f32 %v3729_v39, %v3677_v32 }
 0x3d1   : > { %3740 = vst.msk [vmem:[%s5491_s29 + $0x38] sm:$0xff] %vm3732_vm14, %v3730_v37 }
 0x3d3   : > { %v3719_v34 = vpop.f32.mrf.mxu1 }
 0x3d4   : > { %v3720_v10 = vadd.f32 %v3719_v34, %v3669_v8 }
 0x3d6   : > { %3736 = vst.msk [vmem:[%s5491_s29 + $0x18] sm:$0xff] %vm3732_vm14, %v3720_v10 }
 0x3d7 PF: > { %s16_s21 = sadd.s32 1, %s3978_s21  }
 0x3d8   : > { %p13_p4 = scmp.ge.s32.totalorder %s16_s21, 4  }
 0x3da   :  { %15 = sbr.rel (!%p13_p4) target bundleno = 1 (0x1), region = 91 }

</bundles_post_ra>
